<compile_context>
chip_gen: v5e
topology: v5e:2x2
jax: 0.10.0
libtpu: 0.0.40
codegen_flags: <defaults>
</compile_context>

<pallas_src>
import numpy as np
import jax
import jax.numpy as jnp
from jax.experimental import pallas as pl
from jax.experimental.pallas import tpu as pltpu

# ----------------- synthetic config (mirrors h.data.*) -----------------
SR = 16000              # h.data.sampling_rate
FILTER_LENGTH = 128     # h.data.filter_length (n_fft)
WIN_LENGTH = 128        # h.data.win_length
HOP = 32                # h.data.hop_length
NUM_CODE = 32           # LinearPredictiveCoding(32, ...)
NC1 = NUM_CODE + 1
B = 2
T = 512

W = FILTER_LENGTH
F = W // 2 + 1                  # 65 rfft bins
NFRAMES = T // HOP + 1          # 17 frames (torch.stft center=True)
NF_PAD = 24                     # frames padded to a sublane multiple of 8
FP = 128                        # frequency axis padded lane-dense
BN = B * NF_PAD                 # 48: batch flattened into the sublane axis
T_OUT = (NFRAMES - 1) * HOP     # torch.istft(center=True, length=None)


def _hann(n):
    i = np.arange(n)
    return (0.5 - 0.5 * np.cos(2.0 * np.pi * i / n)).astype(np.float32)


# ----------------- constant matrices (zero-padded lane/sublane dense) -----------------
_win = _hann(WIN_LENGTH)
_wk = np.where((np.arange(F) == 0) | (np.arange(F) == F - 1), 1.0, 2.0)   # irfft weights

# forward rfft of a frame, Hann window folded into the rows: [W, 2*FP] = [win*cos | -win*sin]
_cos_f = np.zeros((W, FP), np.float32)
_sin_f = np.zeros((W, FP), np.float32)
_th = 2.0 * np.pi * np.arange(W)[:, None] * np.arange(F)[None, :] / W
_cos_f[:, :F] = _win[:, None] * np.cos(_th)
_sin_f[:, :F] = -_win[:, None] * np.sin(_th)
COSSIN = jnp.asarray(np.concatenate([_cos_f, _sin_f], axis=1))            # [128, 256]

# autocorrelation = irfft(power spectrum) at lags 0..32 (shifted copy now derived in-kernel)
_cir = np.zeros((FP, FP), np.float32)
_kf = np.arange(F)[:, None]
_cir[:F, :NC1] = _wk[:, None] * np.cos(2.0 * np.pi * _kf * np.arange(NC1)[None, :] / W) / W
CIR = jnp.asarray(_cir)                                                   # [128, 128]

# spectral envelope: rfft of [1, lpc] padded to W, [lag, 2*FP] = [cos | sin]
_ecos = np.zeros((FP, FP), np.float32)
_esin = np.zeros((FP, FP), np.float32)
_nn = np.arange(NC1)[:, None]
_ecos[:NC1, :F] = np.cos(2.0 * np.pi * _nn * np.arange(F)[None, :] / W)
_esin[:NC1, :F] = np.sin(2.0 * np.pi * _nn * np.arange(F)[None, :] / W)
ECS = jnp.asarray(np.concatenate([_ecos, _esin], axis=1))                 # [128, 256]

# inverse rfft with the synthesis window folded into the columns: two [128, 128] halves
_nw = np.arange(W)[None, :]
_icos = np.zeros((FP, W), np.float32)
_isin = np.zeros((FP, W), np.float32)
_icos[:F, :] = _wk[:, None] * np.cos(2.0 * np.pi * _kf * _nw / W) / W * _win[None, :]
_isin[:F, :] = -_wk[:, None] * np.sin(2.0 * np.pi * _kf * _nw / W) / W * _win[None, :]
ICOS = jnp.asarray(_icos)                                                 # [128, 128]
ISIN = jnp.asarray(_isin)                                                 # [128, 128]

WINDOW = jnp.asarray(_win)
PEAK_CENTERS = jnp.asarray(60.0 * (10000.0 / 60.0) ** (np.arange(8) / 7.0), jnp.float32)


# ----------------- Pallas kernels -----------------
def _analysis_kernel(frames_ref, peq_re_ref, peq_im_ref, cossin_ref, cir_ref, ecs_ref,
                     filt_ref, sre_ref, sim_ref):
    # STFT: single windowed-DFT matmul; lanes [0:128) = real, [128:256) = imag
    spec = jnp.dot(frames_ref[...], cossin_ref[...], preferred_element_type=jnp.float32)
    fft_re = spec[:, :FP]
    fft_im = spec[:, FP:]
    # parametric-EQ filter (complex multiply; peq already tiled per frame in glue)
    pre = peq_re_ref[...]
    pim = peq_im_ref[...]
    fre = fft_re * pre - fft_im * pim
    fim = fft_re * pim + fft_im * pre
    # stash the filtered fft in the output refs (VMEM) so it is not held in vregs across the
    # 31-step unrolled recursion below (reduces register pressure / spills).
    sre_ref[...] = fre
    sim_ref[...] = fim
    # normalized power spectrum |fft / mean|fft||^2 (mean over the F real bins only)
    mag2 = fre * fre + fim * fim
    mag = jnp.sqrt(mag2)
    m = jnp.maximum(jnp.sum(mag, axis=-1, keepdims=True) * (1.0 / F), 1e-7)
    power = mag2 * pl.reciprocal(m * m, approx=True)
    # autocorrelation (irfft of power), one [.,128]x[128,128] matmul
    corr = jnp.dot(power, cir_ref[...], preferred_element_type=jnp.float32)
    # corr_sh[j] = corr[j+1] via circular +127 lane roll (XLU).  Lane 127 wraps corr[0] but
    # sol_flip has support only on lanes 0..NUM_CODE-1, so the wrapped lane never contributes.
    corr_sh = pltpu.roll(corr, shift=FP - 1, axis=1)
    lane = jax.lax.broadcasted_iota(jnp.int32, (BN, FP), 1)
    oh0 = (lane == 0).astype(jnp.float32)
    oh1 = (lane == 1).astype(jnp.float32)
    lane_gt0 = (lane > 0).astype(jnp.float32)
    c0 = corr[:, 0:1]
    c1 = corr[:, 1:2]
    s1 = -c1 / jnp.maximum(c0, 1e-7)             # exact reciprocal on the serial chain
    sol = oh0 + oh1 * s1                         # [1, s1, 0, ...]
    sol_flip = oh0 * s1 + oh1                    # reversed copy carried along (no lane-reverse)
    extra = c0 + c1 * s1
    # Levinson-Durbin recursion, fully unrolled.  The per-step lane shift is an XLU roll plus a
    # lane-0 zero mask (circular wrap brings lane 127 to lane 0); exact division for lam/extra
    # so approximation error does not compound over 31 dependent steps.
    for _ in range(1, NUM_CODE):
        lam = -jnp.sum(sol_flip * corr_sh, axis=-1, keepdims=True) / jnp.maximum(extra, 1e-7)
        shifted = pltpu.roll(sol_flip, shift=1, axis=1) * lane_gt0
        new_sol = sol + lam * shifted
        sol_flip = shifted + lam * sol
        sol = new_sol
        extra = (1.0 - lam * lam) * extra
    # spectral envelope |rfft([1, lpc], W)|^-1 ; |rfft(-x)| == |rfft(x)| and sol == [1, lpc]
    dd = jnp.dot(sol, ecs_ref[...], preferred_element_type=jnp.float32)
    dre = dd[:, :FP]
    dim_ = dd[:, FP:]
    d2 = dre * dre + dim_ * dim_
    filt = jnp.where(d2 < 1e-14, 1.0, jax.lax.rsqrt(jnp.maximum(d2, 1e-14)))
    filt_ref[...] = filt
    inv = pl.reciprocal(filt + 1e-7, approx=True)
    sre_ref[...] = sre_ref[...] * inv            # source = fft / (envelope + eps)
    sim_ref[...] = sim_ref[...] * inv


def _synth_kernel(re_ref, im_ref, icos_ref, isin_ref, frames_ref):
    # inverse rfft (with the synthesis window folded in) as two [.,128]x[128,128] matmuls
    frames_ref[...] = (
        jnp.dot(re_ref[...], icos_ref[...], preferred_element_type=jnp.float32)
        + jnp.dot(im_ref[...], isin_ref[...], preferred_element_type=jnp.float32))


# ----------------- pallas_call wrappers (grid-free: whole arrays in VMEM) -----------------
def analysis_pallas(frames, peq_re, peq_im):
    return pl.pallas_call(
        _analysis_kernel,
        out_shape=[jax.ShapeDtypeStruct((BN, FP), jnp.float32)] * 3,
    )(frames, peq_re, peq_im, COSSIN, CIR, ECS)


def synth_pallas(fft_re, fft_im):
    return pl.pallas_call(
        _synth_kernel,
        out_shape=jax.ShapeDtypeStruct((BN, W), jnp.float32),
    )(fft_re, fft_im, ICOS, ISIN)


# ----------------- JAX glue (framing, PEQ coefficients, interpolation, overlap-add) -----------------
def _frame_signal(wavs):
    pad = FILTER_LENGTH // 2
    x = jnp.pad(wavs, ((0, 0), (pad, pad)), mode='reflect')
    idx = np.arange(NFRAMES)[:, None] * HOP + np.arange(W)[None, :]
    frames = x[:, idx]                                           # [B, NFRAMES, W]
    frames = jnp.pad(frames, ((0, 0), (0, NF_PAD - NFRAMES), (0, 0)))
    return frames.reshape(BN, W)


def _biquad_response(a, b):
    k = jnp.arange(F)
    z1 = jnp.exp(-2j * jnp.pi * k / W)
    z2 = z1 * z1
    num = b[..., 0:1] + b[..., 1:2] * z1 + b[..., 2:3] * z2
    den = a[..., 0:1] + a[..., 1:2] * z1 + a[..., 2:3] * z2
    return num / den


# TODO(synk): ParametricEqualizer source was not provided with the module; its biquad
# frequency responses (peaking / low / high second-order sections) are reconstructed
# here as parameter-setup glue.
def _peaking_equalizer(center, gain, q):
    amp = 10.0 ** (gain / 40.0)
    omega = 2.0 * jnp.pi * center / SR
    cos, sin = jnp.cos(omega), jnp.sin(omega)
    alpha = sin / (2.0 * q)
    a = jnp.stack([1.0 + alpha / amp, -2.0 * cos, 1.0 - alpha / amp], axis=-1)
    b = jnp.stack([1.0 + alpha * amp, -2.0 * cos, 1.0 - alpha * amp], axis=-1)
    return _biquad_response(a, b)


def _low_shelving(cutoff, q):
    omega = 2.0 * np.pi * cutoff / SR
    cos, sin = np.cos(omega), np.sin(omega)
    alpha = sin / (2.0 * q)
    ones = jnp.ones_like(q)
    a = jnp.stack([1.0 + alpha, -2.0 * cos * ones, 1.0 - alpha], axis=-1)
    b = jnp.stack([(1.0 - cos) / 2.0 * ones, (1.0 - cos) * ones, (1.0 - cos) / 2.0 * ones], axis=-1)
    return _biquad_response(a, b)


def _high_shelving(cutoff, q):
    omega = 2.0 * np.pi * cutoff / SR
    cos, sin = np.cos(omega), np.sin(omega)
    alpha = sin / (2.0 * q)
    ones = jnp.ones_like(q)
    a = jnp.stack([1.0 + alpha, -2.0 * cos * ones, 1.0 - alpha], axis=-1)
    b = jnp.stack([(1.0 + cos) / 2.0 * ones, -(1.0 + cos) * ones, (1.0 + cos) / 2.0 * ones], axis=-1)
    return _biquad_response(a, b)


# TODO(synk): the formant interpolation could be expressed as a per-batch [128,128] matrix and
# fused into the synthesis kernel; kept as XLA glue here (data-dependent output length).
def _interp_real(x, shifts, mode):
    # x: [B, T, C]; per-sample F.interpolate(scale_factor=s)[..., :C] then zero-pad to C.
    bsz, _, chans = x.shape
    j = jnp.arange(chans, dtype=jnp.float32)
    out_len = jnp.floor(chans * shifts).astype(jnp.int32)
    if mode == 'linear':
        src = jnp.maximum((j[None, :] + 0.5) / shifts[:, None] - 0.5, 0.0)
        i0 = jnp.clip(jnp.floor(src).astype(jnp.int32), 0, chans - 1)
        i1 = jnp.minimum(i0 + 1, chans - 1)
        lam = src - i0.astype(jnp.float32)
        g0 = jnp.take_along_axis(x, jnp.broadcast_to(i0[:, None, :], x.shape), axis=2)
        g1 = jnp.take_along_axis(x, jnp.broadcast_to(i1[:, None, :], x.shape), axis=2)
        y = g0 * (1.0 - lam[:, None, :]) + g1 * lam[:, None, :]
    else:  # nearest
        src = jnp.clip(jnp.floor(j[None, :] / shifts[:, None]).astype(jnp.int32), 0, chans - 1)
        y = jnp.take_along_axis(x, jnp.broadcast_to(src[:, None, :], x.shape), axis=2)
    mask = (jnp.arange(chans)[None, :] < out_len[:, None]).astype(x.dtype)
    return y * mask[:, None, :]


def _interp_complex(re, im, shifts, mode):
    mag = jnp.sqrt(re * re + im * im)
    ang = jnp.arctan2(im, re)
    mag_i = _interp_real(mag, shifts, mode)
    ang_i = _interp_real(ang, shifts, mode)
    return mag_i * jnp.cos(ang_i), mag_i * jnp.sin(ang_i)


def _sampler(key, ratio):
    k1, k2 = jax.random.split(key)
    shifts = jax.random.uniform(k1, (B,), jnp.float32) * (ratio - 1.0) + 1.0
    flip = jax.random.uniform(k2, (B,), jnp.float32) < 0.5
    return jnp.where(flip, 1.0 / shifts, shifts)


def _overlap_add(frames):
    # frames: [B, NFRAMES, W] (already multiplied by the synthesis window inside the kernel)
    length = W + (NFRAMES - 1) * HOP
    idx = (np.arange(NFRAMES)[:, None] * HOP + np.arange(W)[None, :]).reshape(-1)
    y = jnp.zeros((B, length), jnp.float32).at[:, idx].add(frames.reshape(B, -1))
    wsq = jnp.zeros((length,), jnp.float32).at[idx].add(jnp.tile(WINDOW * WINDOW, NFRAMES))
    pad = FILTER_LENGTH // 2
    y = y[:, pad:pad + T_OUT]
    wsq = wsq[pad:pad + T_OUT]
    return y / jnp.maximum(wsq, 1e-11)


def _pad_flat(x):
    # [B, NFRAMES, F] -> flattened, lane-dense [B*NF_PAD, FP]
    return jnp.pad(x, ((0, 0), (0, NF_PAD - NFRAMES), (0, FP - F))).reshape(BN, FP)


# ----------------- Augment.forward -----------------
def _augment_forward(wavs, key, mode='linear'):
    k_power, k_gain, k_fs, k_ps = jax.random.split(key, 4)
    frames = _frame_signal(wavs)                                          # [BN, 128]
    # sample(): random PEQ powers / gains; build per-frame [BN, 128] complex filter (glue)
    power = jax.random.uniform(k_power, (B, 10), jnp.float32)
    gain = jax.random.uniform(k_gain, (B, 8), jnp.float32) * 24.0 - 12.0
    q = 2.0 * (5.0 / 2.0) ** power
    center = jnp.tile(PEAK_CENTERS[None, :], (B, 1))
    peaks = jnp.prod(_peaking_equalizer(center, gain, q[:, :-2]), axis=1)
    lowpass = _low_shelving(60.0, q[:, -2])
    highpass = _high_shelving(10000.0, q[:, -1])
    filters = peaks * highpass * lowpass                                  # [B, F] complex64
    peq_re1 = jnp.zeros((B, FP), jnp.float32).at[:, :F].set(jnp.real(filters).astype(jnp.float32))
    peq_im1 = jnp.zeros((B, FP), jnp.float32).at[:, :F].set(jnp.imag(filters).astype(jnp.float32))
    peq_re = jnp.broadcast_to(peq_re1[:, None, :], (B, NF_PAD, FP)).reshape(BN, FP)
    peq_im = jnp.broadcast_to(peq_im1[:, None, :], (B, NF_PAD, FP)).reshape(BN, FP)
    # fused Pallas kernel 1: STFT + PEQ + LPC (Levinson-Durbin) + envelope + source split
    filter_, src_re, src_im = analysis_pallas(frames, peq_re, peq_im)
    # random formant / pitch shift interpolation along the frequency axis (glue)
    fs_shift = _sampler(k_fs, 1.4)
    ps_shift = _sampler(k_ps, 2.0)
    filt3 = filter_.reshape(B, NF_PAD, FP)[:, :NFRAMES, :F]
    sre3 = src_re.reshape(B, NF_PAD, FP)[:, :NFRAMES, :F]
    sim3 = src_im.reshape(B, NF_PAD, FP)[:, :NFRAMES, :F]
    filt_i = _interp_real(filt3, fs_shift, mode)
    sre_i, sim_i = _interp_complex(sre3, sim3, ps_shift, mode)
    # fused Pallas kernel 2: inverse rfft + synthesis window (real/imag passed separately)
    frames_out = synth_pallas(_pad_flat(sre_i * filt_i), _pad_flat(sim_i * filt_i))
    # iSTFT overlap-add (scatter-add glue) + peak normalization (glue)
    out = _overlap_add(frames_out.reshape(B, NF_PAD, W)[:, :NFRAMES, :])
    return out / jnp.maximum(jnp.max(out, axis=-1, keepdims=True), 1e-7)


augment_forward = jax.jit(_augment_forward, static_argnames=('mode',))


if __name__ == "__main__":
    key = jax.random.PRNGKey(0)
    k_wav, k_fwd = jax.random.split(key)
    wavs = jax.random.normal(k_wav, (B, T), jnp.float32) * 0.1
    out = augment_forward(wavs, k_fwd, mode='linear')
    out = jax.block_until_ready(out)
    assert out.shape == (B, T_OUT) and out.dtype == jnp.float32
    assert bool(jnp.all(jnp.isfinite(out)))
    print("KERNEL_OK")
</pallas_src>

<mosaic_0001>
module attributes {stable_mosaic.version = 11 : i64} {
  func.func @_analysis_kernel(%arg0: memref<48x128xf32, #tpu.memory_space<vmem>>, %arg1: memref<48x128xf32, #tpu.memory_space<vmem>>, %arg2: memref<48x128xf32, #tpu.memory_space<vmem>>, %arg3: memref<128x256xf32, #tpu.memory_space<vmem>>, %arg4: memref<128x128xf32, #tpu.memory_space<vmem>>, %arg5: memref<128x256xf32, #tpu.memory_space<vmem>>, %arg6: memref<48x128xf32, #tpu.memory_space<vmem>>, %arg7: memref<48x128xf32, #tpu.memory_space<vmem>>, %arg8: memref<48x128xf32, #tpu.memory_space<vmem>>) attributes {dimension_semantics = [], scalar_prefetch = 0 : i64, scratch_operands = 0 : i64, tpu.core_type = #tpu.core_type<tc>} {
    %c0 = arith.constant 0 : index
    %c0_0 = arith.constant 0 : index
    %0 = vector.load %arg0[%c0, %c0_0] : memref<48x128xf32, #tpu.memory_space<vmem>>, vector<48x128xf32>
    %c0_1 = arith.constant 0 : index
    %c0_2 = arith.constant 0 : index
    %1 = vector.load %arg3[%c0_1, %c0_2] : memref<128x256xf32, #tpu.memory_space<vmem>>, vector<128x256xf32>
    %cst = arith.constant dense<0.000000e+00> : vector<48x256xf32>
    %2 = tpu.matmul %0, %1, %cst {dimension_numbers = #tpu.dot_dimension_numbers<[1], [0], [0], [1], [0, 0, 1, 1], [], []>} : vector<48x128xf32>, vector<128x256xf32>, vector<48x256xf32> -> vector<48x256xf32>
    %3 = vector.extract_strided_slice %2 {offsets = [0, 0], sizes = [48, 128], strides = [1, 1]} : vector<48x256xf32> to vector<48x128xf32>
    %4 = vector.extract_strided_slice %2 {offsets = [0, 128], sizes = [48, 128], strides = [1, 1]} : vector<48x256xf32> to vector<48x128xf32>
    %c0_3 = arith.constant 0 : index
    %c0_4 = arith.constant 0 : index
    %5 = vector.load %arg1[%c0_3, %c0_4] : memref<48x128xf32, #tpu.memory_space<vmem>>, vector<48x128xf32>
    %c0_5 = arith.constant 0 : index
    %c0_6 = arith.constant 0 : index
    %6 = vector.load %arg2[%c0_5, %c0_6] : memref<48x128xf32, #tpu.memory_space<vmem>>, vector<48x128xf32>
    %7 = arith.mulf %3, %5 : vector<48x128xf32>
    %8 = arith.mulf %4, %6 : vector<48x128xf32>
    %9 = arith.subf %7, %8 : vector<48x128xf32>
    %10 = arith.mulf %3, %6 : vector<48x128xf32>
    %11 = arith.mulf %4, %5 : vector<48x128xf32>
    %12 = arith.addf %10, %11 : vector<48x128xf32>
    %c0_7 = arith.constant 0 : index
    %c0_8 = arith.constant 0 : index
    %13 = vector.load %arg7[%c0_7, %c0_8] : memref<48x128xf32, #tpu.memory_space<vmem>>, vector<48x128xf32>
    tpu.vector_store %arg7[%c0_7, %c0_8], %9 {strides = array<i32>} : memref<48x128xf32, #tpu.memory_space<vmem>>, vector<48x128xf32>,
    %c0_9 = arith.constant 0 : index
    %c0_10 = arith.constant 0 : index
    %14 = vector.load %arg8[%c0_9, %c0_10] : memref<48x128xf32, #tpu.memory_space<vmem>>, vector<48x128xf32>
    tpu.vector_store %arg8[%c0_9, %c0_10], %12 {strides = array<i32>} : memref<48x128xf32, #tpu.memory_space<vmem>>, vector<48x128xf32>,
    %15 = arith.mulf %9, %9 : vector<48x128xf32>
    %16 = arith.mulf %12, %12 : vector<48x128xf32>
    %17 = arith.addf %15, %16 : vector<48x128xf32>
    %18 = math.sqrt %17 : vector<48x128xf32>
    %cst_11 = arith.constant dense<0.000000e+00> : vector<48xf32>
    %19 = vector.multi_reduction <add>, %18, %cst_11 [1] : vector<48x128xf32> to vector<48xf32>
    %20 = vector.shape_cast %19 : vector<48xf32> to vector<48x1xf32>
    %cst_12 = arith.constant 0.0153846154 : f32
    %21 = vector.broadcast %cst_12 : f32 to vector<48x1xf32>
    %22 = arith.mulf %20, %21 : vector<48x1xf32>
    %cst_13 = arith.constant 1.000000e-07 : f32
    %23 = vector.broadcast %cst_13 : f32 to vector<48x1xf32>
    %24 = arith.maximumf %22, %23 : vector<48x1xf32>
    %25 = arith.mulf %24, %24 : vector<48x1xf32>
    %26 = tpu.reciprocal %25 {approx = true} : vector<48x1xf32> -> vector<48x1xf32>
    %27 = vector.broadcast %26 : vector<48x1xf32> to vector<48x128xf32>
    %28 = arith.mulf %17, %27 : vector<48x128xf32>
    %c0_14 = arith.constant 0 : index
    %c0_15 = arith.constant 0 : index
    %29 = vector.load %arg4[%c0_14, %c0_15] : memref<128x128xf32, #tpu.memory_space<vmem>>, vector<128x128xf32>
    %cst_16 = arith.constant dense<0.000000e+00> : vector<48x128xf32>
    %30 = tpu.matmul %28, %29, %cst_16 {dimension_numbers = #tpu.dot_dimension_numbers<[1], [0], [0], [1], [0, 0, 1, 1], [], []>} : vector<48x128xf32>, vector<128x128xf32>, vector<48x128xf32> -> vector<48x128xf32>
    %c127_i32 = arith.constant 127 : i32
    %31 = tpu.dynamic_rotate %30 by %c127_i32 dim 1 : vector<48x128xf32>, i32 -> vector<48x128xf32>
    %32 = tpu.iota {dimensions = array<i32: 1>} : vector<48x128xi32>
    %c0_i32 = arith.constant 0 : i32
    %33 = vector.broadcast %c0_i32 : i32 to vector<48x128xi32>
    %34 = arith.cmpi eq, %32, %33 : vector<48x128xi32>
    %35 = arith.extui %34 : vector<48x128xi1> to vector<48x128xi32>
    %36 = arith.sitofp %35 : vector<48x128xi32> to vector<48x128xf32>
    %c1_i32 = arith.constant 1 : i32
    %37 = vector.broadcast %c1_i32 : i32 to vector<48x128xi32>
    %38 = arith.cmpi eq, %32, %37 : vector<48x128xi32>
    %39 = arith.extui %38 : vector<48x128xi1> to vector<48x128xi32>
    %40 = arith.sitofp %39 : vector<48x128xi32> to vector<48x128xf32>
    %c0_i32_17 = arith.constant 0 : i32
    %41 = vector.broadcast %c0_i32_17 : i32 to vector<48x128xi32>
    %42 = arith.cmpi sgt, %32, %41 : vector<48x128xi32>
    %43 = arith.extui %42 : vector<48x128xi1> to vector<48x128xi32>
    %44 = arith.sitofp %43 : vector<48x128xi32> to vector<48x128xf32>
    %45 = vector.extract_strided_slice %30 {offsets = [0, 0], sizes = [48, 1], strides = [1, 1]} : vector<48x128xf32> to vector<48x1xf32>
    %46 = vector.extract_strided_slice %30 {offsets = [0, 1], sizes = [48, 1], strides = [1, 1]} : vector<48x128xf32> to vector<48x1xf32>
    %cst_18 = arith.constant 0.000000e+00 : f32
    %47 = vector.broadcast %cst_18 : f32 to vector<48x1xf32>
    %48 = arith.subf %47, %46 : vector<48x1xf32>
    %cst_19 = arith.constant 1.000000e-07 : f32
    %49 = vector.broadcast %cst_19 : f32 to vector<48x1xf32>
    %50 = arith.maximumf %45, %49 : vector<48x1xf32>
    %51 = arith.divf %48, %50 : vector<48x1xf32>
    %52 = vector.broadcast %51 : vector<48x1xf32> to vector<48x128xf32>
    %53 = arith.mulf %40, %52 : vector<48x128xf32>
    %54 = arith.addf %36, %53 : vector<48x128xf32>
    %55 = vector.broadcast %51 : vector<48x1xf32> to vector<48x128xf32>
    %56 = arith.mulf %36, %55 : vector<48x128xf32>
    %57 = arith.addf %56, %40 : vector<48x128xf32>
    %58 = arith.mulf %46, %51 : vector<48x1xf32>
    %59 = arith.addf %45, %58 : vector<48x1xf32>
    %60 = arith.mulf %57, %31 : vector<48x128xf32>
    %cst_20 = arith.constant dense<0.000000e+00> : vector<48xf32>
    %61 = vector.multi_reduction <add>, %60, %cst_20 [1] : vector<48x128xf32> to vector<48xf32>
    %62 = vector.shape_cast %61 : vector<48xf32> to vector<48x1xf32>
    %cst_21 = arith.constant 0.000000e+00 : f32
    %63 = vector.broadcast %cst_21 : f32 to vector<48x1xf32>
    %64 = arith.subf %63, %62 : vector<48x1xf32>
    %cst_22 = arith.constant 1.000000e-07 : f32
    %65 = vector.broadcast %cst_22 : f32 to vector<48x1xf32>
    %66 = arith.maximumf %59, %65 : vector<48x1xf32>
    %67 = arith.divf %64, %66 : vector<48x1xf32>
    %c1_i32_23 = arith.constant 1 : i32
    %68 = tpu.dynamic_rotate %57 by %c1_i32_23 dim 1 : vector<48x128xf32>, i32 -> vector<48x128xf32>
    %69 = arith.mulf %68, %44 : vector<48x128xf32>
    %70 = vector.broadcast %67 : vector<48x1xf32> to vector<48x128xf32>
    %71 = arith.mulf %70, %69 : vector<48x128xf32>
    %72 = arith.addf %54, %71 : vector<48x128xf32>
    %73 = vector.broadcast %67 : vector<48x1xf32> to vector<48x128xf32>
    %74 = arith.mulf %73, %54 : vector<48x128xf32>
    %75 = arith.addf %69, %74 : vector<48x128xf32>
    %76 = arith.mulf %67, %67 : vector<48x1xf32>
    %cst_24 = arith.constant 1.000000e+00 : f32
    %77 = vector.broadcast %cst_24 : f32 to vector<48x1xf32>
    %78 = arith.subf %77, %76 : vector<48x1xf32>
    %79 = arith.mulf %78, %59 : vector<48x1xf32>
    %80 = arith.mulf %75, %31 : vector<48x128xf32>
    %cst_25 = arith.constant dense<0.000000e+00> : vector<48xf32>
    %81 = vector.multi_reduction <add>, %80, %cst_25 [1] : vector<48x128xf32> to vector<48xf32>
    %82 = vector.shape_cast %81 : vector<48xf32> to vector<48x1xf32>
    %cst_26 = arith.constant 0.000000e+00 : f32
    %83 = vector.broadcast %cst_26 : f32 to vector<48x1xf32>
    %84 = arith.subf %83, %82 : vector<48x1xf32>
    %cst_27 = arith.constant 1.000000e-07 : f32
    %85 = vector.broadcast %cst_27 : f32 to vector<48x1xf32>
    %86 = arith.maximumf %79, %85 : vector<48x1xf32>
    %87 = arith.divf %84, %86 : vector<48x1xf32>
    %c1_i32_28 = arith.constant 1 : i32
    %88 = tpu.dynamic_rotate %75 by %c1_i32_28 dim 1 : vector<48x128xf32>, i32 -> vector<48x128xf32>
    %89 = arith.mulf %88, %44 : vector<48x128xf32>
    %90 = vector.broadcast %87 : vector<48x1xf32> to vector<48x128xf32>
    %91 = arith.mulf %90, %89 : vector<48x128xf32>
    %92 = arith.addf %72, %91 : vector<48x128xf32>
    %93 = vector.broadcast %87 : vector<48x1xf32> to vector<48x128xf32>
    %94 = arith.mulf %93, %72 : vector<48x128xf32>
    %95 = arith.addf %89, %94 : vector<48x128xf32>
    %96 = arith.mulf %87, %87 : vector<48x1xf32>
    %cst_29 = arith.constant 1.000000e+00 : f32
    %97 = vector.broadcast %cst_29 : f32 to vector<48x1xf32>
    %98 = arith.subf %97, %96 : vector<48x1xf32>
    %99 = arith.mulf %98, %79 : vector<48x1xf32>
    %100 = arith.mulf %95, %31 : vector<48x128xf32>
    %cst_30 = arith.constant dense<0.000000e+00> : vector<48xf32>
    %101 = vector.multi_reduction <add>, %100, %cst_30 [1] : vector<48x128xf32> to vector<48xf32>
    %102 = vector.shape_cast %101 : vector<48xf32> to vector<48x1xf32>
    %cst_31 = arith.constant 0.000000e+00 : f32
    %103 = vector.broadcast %cst_31 : f32 to vector<48x1xf32>
    %104 = arith.subf %103, %102 : vector<48x1xf32>
    %cst_32 = arith.constant 1.000000e-07 : f32
    %105 = vector.broadcast %cst_32 : f32 to vector<48x1xf32>
    %106 = arith.maximumf %99, %105 : vector<48x1xf32>
    %107 = arith.divf %104, %106 : vector<48x1xf32>
    %c1_i32_33 = arith.constant 1 : i32
    %108 = tpu.dynamic_rotate %95 by %c1_i32_33 dim 1 : vector<48x128xf32>, i32 -> vector<48x128xf32>
    %109 = arith.mulf %108, %44 : vector<48x128xf32>
    %110 = vector.broadcast %107 : vector<48x1xf32> to vector<48x128xf32>
    %111 = arith.mulf %110, %109 : vector<48x128xf32>
    %112 = arith.addf %92, %111 : vector<48x128xf32>
    %113 = vector.broadcast %107 : vector<48x1xf32> to vector<48x128xf32>
    %114 = arith.mulf %113, %92 : vector<48x128xf32>
    %115 = arith.addf %109, %114 : vector<48x128xf32>
    %116 = arith.mulf %107, %107 : vector<48x1xf32>
    %cst_34 = arith.constant 1.000000e+00 : f32
    %117 = vector.broadcast %cst_34 : f32 to vector<48x1xf32>
    %118 = arith.subf %117, %116 : vector<48x1xf32>
    %119 = arith.mulf %118, %99 : vector<48x1xf32>
    %120 = arith.mulf %115, %31 : vector<48x128xf32>
    %cst_35 = arith.constant dense<0.000000e+00> : vector<48xf32>
    %121 = vector.multi_reduction <add>, %120, %cst_35 [1] : vector<48x128xf32> to vector<48xf32>
    %122 = vector.shape_cast %121 : vector<48xf32> to vector<48x1xf32>
    %cst_36 = arith.constant 0.000000e+00 : f32
    %123 = vector.broadcast %cst_36 : f32 to vector<48x1xf32>
    %124 = arith.subf %123, %122 : vector<48x1xf32>
    %cst_37 = arith.constant 1.000000e-07 : f32
    %125 = vector.broadcast %cst_37 : f32 to vector<48x1xf32>
    %126 = arith.maximumf %119, %125 : vector<48x1xf32>
    %127 = arith.divf %124, %126 : vector<48x1xf32>
    %c1_i32_38 = arith.constant 1 : i32
    %128 = tpu.dynamic_rotate %115 by %c1_i32_38 dim 1 : vector<48x128xf32>, i32 -> vector<48x128xf32>
    %129 = arith.mulf %128, %44 : vector<48x128xf32>
    %130 = vector.broadcast %127 : vector<48x1xf32> to vector<48x128xf32>
    %131 = arith.mulf %130, %129 : vector<48x128xf32>
    %132 = arith.addf %112, %131 : vector<48x128xf32>
    %133 = vector.broadcast %127 : vector<48x1xf32> to vector<48x128xf32>
    %134 = arith.mulf %133, %112 : vector<48x128xf32>
    %135 = arith.addf %129, %134 : vector<48x128xf32>
    %136 = arith.mulf %127, %127 : vector<48x1xf32>
    %cst_39 = arith.constant 1.000000e+00 : f32
    %137 = vector.broadcast %cst_39 : f32 to vector<48x1xf32>
    %138 = arith.subf %137, %136 : vector<48x1xf32>
    %139 = arith.mulf %138, %119 : vector<48x1xf32>
    %140 = arith.mulf %135, %31 : vector<48x128xf32>
    %cst_40 = arith.constant dense<0.000000e+00> : vector<48xf32>
    %141 = vector.multi_reduction <add>, %140, %cst_40 [1] : vector<48x128xf32> to vector<48xf32>
    %142 = vector.shape_cast %141 : vector<48xf32> to vector<48x1xf32>
    %cst_41 = arith.constant 0.000000e+00 : f32
    %143 = vector.broadcast %cst_41 : f32 to vector<48x1xf32>
    %144 = arith.subf %143, %142 : vector<48x1xf32>
    %cst_42 = arith.constant 1.000000e-07 : f32
    %145 = vector.broadcast %cst_42 : f32 to vector<48x1xf32>
    %146 = arith.maximumf %139, %145 : vector<48x1xf32>
    %147 = arith.divf %144, %146 : vector<48x1xf32>
    %c1_i32_43 = arith.constant 1 : i32
    %148 = tpu.dynamic_rotate %135 by %c1_i32_43 dim 1 : vector<48x128xf32>, i32 -> vector<48x128xf32>
    %149 = arith.mulf %148, %44 : vector<48x128xf32>
    %150 = vector.broadcast %147 : vector<48x1xf32> to vector<48x128xf32>
    %151 = arith.mulf %150, %149 : vector<48x128xf32>
    %152 = arith.addf %132, %151 : vector<48x128xf32>
    %153 = vector.broadcast %147 : vector<48x1xf32> to vector<48x128xf32>
    %154 = arith.mulf %153, %132 : vector<48x128xf32>
    %155 = arith.addf %149, %154 : vector<48x128xf32>
    %156 = arith.mulf %147, %147 : vector<48x1xf32>
    %cst_44 = arith.constant 1.000000e+00 : f32
    %157 = vector.broadcast %cst_44 : f32 to vector<48x1xf32>
    %158 = arith.subf %157, %156 : vector<48x1xf32>
    %159 = arith.mulf %158, %139 : vector<48x1xf32>
    %160 = arith.mulf %155, %31 : vector<48x128xf32>
    %cst_45 = arith.constant dense<0.000000e+00> : vector<48xf32>
    %161 = vector.multi_reduction <add>, %160, %cst_45 [1] : vector<48x128xf32> to vector<48xf32>
    %162 = vector.shape_cast %161 : vector<48xf32> to vector<48x1xf32>
    %cst_46 = arith.constant 0.000000e+00 : f32
    %163 = vector.broadcast %cst_46 : f32 to vector<48x1xf32>
    %164 = arith.subf %163, %162 : vector<48x1xf32>
    %cst_47 = arith.constant 1.000000e-07 : f32
    %165 = vector.broadcast %cst_47 : f32 to vector<48x1xf32>
    %166 = arith.maximumf %159, %165 : vector<48x1xf32>
    %167 = arith.divf %164, %166 : vector<48x1xf32>
    %c1_i32_48 = arith.constant 1 : i32
    %168 = tpu.dynamic_rotate %155 by %c1_i32_48 dim 1 : vector<48x128xf32>, i32 -> vector<48x128xf32>
    %169 = arith.mulf %168, %44 : vector<48x128xf32>
    %170 = vector.broadcast %167 : vector<48x1xf32> to vector<48x128xf32>
    %171 = arith.mulf %170, %169 : vector<48x128xf32>
    %172 = arith.addf %152, %171 : vector<48x128xf32>
    %173 = vector.broadcast %167 : vector<48x1xf32> to vector<48x128xf32>
    %174 = arith.mulf %173, %152 : vector<48x128xf32>
    %175 = arith.addf %169, %174 : vector<48x128xf32>
    %176 = arith.mulf %167, %167 : vector<48x1xf32>
    %cst_49 = arith.constant 1.000000e+00 : f32
    %177 = vector.broadcast %cst_49 : f32 to vector<48x1xf32>
    %178 = arith.subf %177, %176 : vector<48x1xf32>
    %179 = arith.mulf %178, %159 : vector<48x1xf32>
    %180 = arith.mulf %175, %31 : vector<48x128xf32>
    %cst_50 = arith.constant dense<0.000000e+00> : vector<48xf32>
    %181 = vector.multi_reduction <add>, %180, %cst_50 [1] : vector<48x128xf32> to vector<48xf32>
    %182 = vector.shape_cast %181 : vector<48xf32> to vector<48x1xf32>
    %cst_51 = arith.constant 0.000000e+00 : f32
    %183 = vector.broadcast %cst_51 : f32 to vector<48x1xf32>
    %184 = arith.subf %183, %182 : vector<48x1xf32>
    %cst_52 = arith.constant 1.000000e-07 : f32
    %185 = vector.broadcast %cst_52 : f32 to vector<48x1xf32>
    %186 = arith.maximumf %179, %185 : vector<48x1xf32>
    %187 = arith.divf %184, %186 : vector<48x1xf32>
    %c1_i32_53 = arith.constant 1 : i32
    %188 = tpu.dynamic_rotate %175 by %c1_i32_53 dim 1 : vector<48x128xf32>, i32 -> vector<48x128xf32>
    %189 = arith.mulf %188, %44 : vector<48x128xf32>
    %190 = vector.broadcast %187 : vector<48x1xf32> to vector<48x128xf32>
    %191 = arith.mulf %190, %189 : vector<48x128xf32>
    %192 = arith.addf %172, %191 : vector<48x128xf32>
    %193 = vector.broadcast %187 : vector<48x1xf32> to vector<48x128xf32>
    %194 = arith.mulf %193, %172 : vector<48x128xf32>
    %195 = arith.addf %189, %194 : vector<48x128xf32>
    %196 = arith.mulf %187, %187 : vector<48x1xf32>
    %cst_54 = arith.constant 1.000000e+00 : f32
    %197 = vector.broadcast %cst_54 : f32 to vector<48x1xf32>
    %198 = arith.subf %197, %196 : vector<48x1xf32>
    %199 = arith.mulf %198, %179 : vector<48x1xf32>
    %200 = arith.mulf %195, %31 : vector<48x128xf32>
    %cst_55 = arith.constant dense<0.000000e+00> : vector<48xf32>
    %201 = vector.multi_reduction <add>, %200, %cst_55 [1] : vector<48x128xf32> to vector<48xf32>
    %202 = vector.shape_cast %201 : vector<48xf32> to vector<48x1xf32>
    %cst_56 = arith.constant 0.000000e+00 : f32
    %203 = vector.broadcast %cst_56 : f32 to vector<48x1xf32>
    %204 = arith.subf %203, %202 : vector<48x1xf32>
    %cst_57 = arith.constant 1.000000e-07 : f32
    %205 = vector.broadcast %cst_57 : f32 to vector<48x1xf32>
    %206 = arith.maximumf %199, %205 : vector<48x1xf32>
    %207 = arith.divf %204, %206 : vector<48x1xf32>
    %c1_i32_58 = arith.constant 1 : i32
    %208 = tpu.dynamic_rotate %195 by %c1_i32_58 dim 1 : vector<48x128xf32>, i32 -> vector<48x128xf32>
    %209 = arith.mulf %208, %44 : vector<48x128xf32>
    %210 = vector.broadcast %207 : vector<48x1xf32> to vector<48x128xf32>
    %211 = arith.mulf %210, %209 : vector<48x128xf32>
    %212 = arith.addf %192, %211 : vector<48x128xf32>
    %213 = vector.broadcast %207 : vector<48x1xf32> to vector<48x128xf32>
    %214 = arith.mulf %213, %192 : vector<48x128xf32>
    %215 = arith.addf %209, %214 : vector<48x128xf32>
    %216 = arith.mulf %207, %207 : vector<48x1xf32>
    %cst_59 = arith.constant 1.000000e+00 : f32
    %217 = vector.broadcast %cst_59 : f32 to vector<48x1xf32>
    %218 = arith.subf %217, %216 : vector<48x1xf32>
    %219 = arith.mulf %218, %199 : vector<48x1xf32>
    %220 = arith.mulf %215, %31 : vector<48x128xf32>
    %cst_60 = arith.constant dense<0.000000e+00> : vector<48xf32>
    %221 = vector.multi_reduction <add>, %220, %cst_60 [1] : vector<48x128xf32> to vector<48xf32>
    %222 = vector.shape_cast %221 : vector<48xf32> to vector<48x1xf32>
    %cst_61 = arith.constant 0.000000e+00 : f32
    %223 = vector.broadcast %cst_61 : f32 to vector<48x1xf32>
    %224 = arith.subf %223, %222 : vector<48x1xf32>
    %cst_62 = arith.constant 1.000000e-07 : f32
    %225 = vector.broadcast %cst_62 : f32 to vector<48x1xf32>
    %226 = arith.maximumf %219, %225 : vector<48x1xf32>
    %227 = arith.divf %224, %226 : vector<48x1xf32>
    %c1_i32_63 = arith.constant 1 : i32
    %228 = tpu.dynamic_rotate %215 by %c1_i32_63 dim 1 : vector<48x128xf32>, i32 -> vector<48x128xf32>
    %229 = arith.mulf %228, %44 : vector<48x128xf32>
    %230 = vector.broadcast %227 : vector<48x1xf32> to vector<48x128xf32>
    %231 = arith.mulf %230, %229 : vector<48x128xf32>
    %232 = arith.addf %212, %231 : vector<48x128xf32>
    %233 = vector.broadcast %227 : vector<48x1xf32> to vector<48x128xf32>
    %234 = arith.mulf %233, %212 : vector<48x128xf32>
    %235 = arith.addf %229, %234 : vector<48x128xf32>
    %236 = arith.mulf %227, %227 : vector<48x1xf32>
    %cst_64 = arith.constant 1.000000e+00 : f32
    %237 = vector.broadcast %cst_64 : f32 to vector<48x1xf32>
    %238 = arith.subf %237, %236 : vector<48x1xf32>
    %239 = arith.mulf %238, %219 : vector<48x1xf32>
    %240 = arith.mulf %235, %31 : vector<48x128xf32>
    %cst_65 = arith.constant dense<0.000000e+00> : vector<48xf32>
    %241 = vector.multi_reduction <add>, %240, %cst_65 [1] : vector<48x128xf32> to vector<48xf32>
    %242 = vector.shape_cast %241 : vector<48xf32> to vector<48x1xf32>
    %cst_66 = arith.constant 0.000000e+00 : f32
    %243 = vector.broadcast %cst_66 : f32 to vector<48x1xf32>
    %244 = arith.subf %243, %242 : vector<48x1xf32>
    %cst_67 = arith.constant 1.000000e-07 : f32
    %245 = vector.broadcast %cst_67 : f32 to vector<48x1xf32>
    %246 = arith.maximumf %239, %245 : vector<48x1xf32>
    %247 = arith.divf %244, %246 : vector<48x1xf32>
    %c1_i32_68 = arith.constant 1 : i32
    %248 = tpu.dynamic_rotate %235 by %c1_i32_68 dim 1 : vector<48x128xf32>, i32 -> vector<48x128xf32>
    %249 = arith.mulf %248, %44 : vector<48x128xf32>
    %250 = vector.broadcast %247 : vector<48x1xf32> to vector<48x128xf32>
    %251 = arith.mulf %250, %249 : vector<48x128xf32>
    %252 = arith.addf %232, %251 : vector<48x128xf32>
    %253 = vector.broadcast %247 : vector<48x1xf32> to vector<48x128xf32>
    %254 = arith.mulf %253, %232 : vector<48x128xf32>
    %255 = arith.addf %249, %254 : vector<48x128xf32>
    %256 = arith.mulf %247, %247 : vector<48x1xf32>
    %cst_69 = arith.constant 1.000000e+00 : f32
    %257 = vector.broadcast %cst_69 : f32 to vector<48x1xf32>
    %258 = arith.subf %257, %256 : vector<48x1xf32>
    %259 = arith.mulf %258, %239 : vector<48x1xf32>
    %260 = arith.mulf %255, %31 : vector<48x128xf32>
    %cst_70 = arith.constant dense<0.000000e+00> : vector<48xf32>
    %261 = vector.multi_reduction <add>, %260, %cst_70 [1] : vector<48x128xf32> to vector<48xf32>
    %262 = vector.shape_cast %261 : vector<48xf32> to vector<48x1xf32>
    %cst_71 = arith.constant 0.000000e+00 : f32
    %263 = vector.broadcast %cst_71 : f32 to vector<48x1xf32>
    %264 = arith.subf %263, %262 : vector<48x1xf32>
    %cst_72 = arith.constant 1.000000e-07 : f32
    %265 = vector.broadcast %cst_72 : f32 to vector<48x1xf32>
    %266 = arith.maximumf %259, %265 : vector<48x1xf32>
    %267 = arith.divf %264, %266 : vector<48x1xf32>
    %c1_i32_73 = arith.constant 1 : i32
    %268 = tpu.dynamic_rotate %255 by %c1_i32_73 dim 1 : vector<48x128xf32>, i32 -> vector<48x128xf32>
    %269 = arith.mulf %268, %44 : vector<48x128xf32>
    %270 = vector.broadcast %267 : vector<48x1xf32> to vector<48x128xf32>
    %271 = arith.mulf %270, %269 : vector<48x128xf32>
    %272 = arith.addf %252, %271 : vector<48x128xf32>
    %273 = vector.broadcast %267 : vector<48x1xf32> to vector<48x128xf32>
    %274 = arith.mulf %273, %252 : vector<48x128xf32>
    %275 = arith.addf %269, %274 : vector<48x128xf32>
    %276 = arith.mulf %267, %267 : vector<48x1xf32>
    %cst_74 = arith.constant 1.000000e+00 : f32
    %277 = vector.broadcast %cst_74 : f32 to vector<48x1xf32>
    %278 = arith.subf %277, %276 : vector<48x1xf32>
    %279 = arith.mulf %278, %259 : vector<48x1xf32>
    %280 = arith.mulf %275, %31 : vector<48x128xf32>
    %cst_75 = arith.constant dense<0.000000e+00> : vector<48xf32>
    %281 = vector.multi_reduction <add>, %280, %cst_75 [1] : vector<48x128xf32> to vector<48xf32>
    %282 = vector.shape_cast %281 : vector<48xf32> to vector<48x1xf32>
    %cst_76 = arith.constant 0.000000e+00 : f32
    %283 = vector.broadcast %cst_76 : f32 to vector<48x1xf32>
    %284 = arith.subf %283, %282 : vector<48x1xf32>
    %cst_77 = arith.constant 1.000000e-07 : f32
    %285 = vector.broadcast %cst_77 : f32 to vector<48x1xf32>
    %286 = arith.maximumf %279, %285 : vector<48x1xf32>
    %287 = arith.divf %284, %286 : vector<48x1xf32>
    %c1_i32_78 = arith.constant 1 : i32
    %288 = tpu.dynamic_rotate %275 by %c1_i32_78 dim 1 : vector<48x128xf32>, i32 -> vector<48x128xf32>
    %289 = arith.mulf %288, %44 : vector<48x128xf32>
    %290 = vector.broadcast %287 : vector<48x1xf32> to vector<48x128xf32>
    %291 = arith.mulf %290, %289 : vector<48x128xf32>
    %292 = arith.addf %272, %291 : vector<48x128xf32>
    %293 = vector.broadcast %287 : vector<48x1xf32> to vector<48x128xf32>
    %294 = arith.mulf %293, %272 : vector<48x128xf32>
    %295 = arith.addf %289, %294 : vector<48x128xf32>
    %296 = arith.mulf %287, %287 : vector<48x1xf32>
    %cst_79 = arith.constant 1.000000e+00 : f32
    %297 = vector.broadcast %cst_79 : f32 to vector<48x1xf32>
    %298 = arith.subf %297, %296 : vector<48x1xf32>
    %299 = arith.mulf %298, %279 : vector<48x1xf32>
    %300 = arith.mulf %295, %31 : vector<48x128xf32>
    %cst_80 = arith.constant dense<0.000000e+00> : vector<48xf32>
    %301 = vector.multi_reduction <add>, %300, %cst_80 [1] : vector<48x128xf32> to vector<48xf32>
    %302 = vector.shape_cast %301 : vector<48xf32> to vector<48x1xf32>
    %cst_81 = arith.constant 0.000000e+00 : f32
    %303 = vector.broadcast %cst_81 : f32 to vector<48x1xf32>
    %304 = arith.subf %303, %302 : vector<48x1xf32>
    %cst_82 = arith.constant 1.000000e-07 : f32
    %305 = vector.broadcast %cst_82 : f32 to vector<48x1xf32>
    %306 = arith.maximumf %299, %305 : vector<48x1xf32>
    %307 = arith.divf %304, %306 : vector<48x1xf32>
    %c1_i32_83 = arith.constant 1 : i32
    %308 = tpu.dynamic_rotate %295 by %c1_i32_83 dim 1 : vector<48x128xf32>, i32 -> vector<48x128xf32>
    %309 = arith.mulf %308, %44 : vector<48x128xf32>
    %310 = vector.broadcast %307 : vector<48x1xf32> to vector<48x128xf32>
    %311 = arith.mulf %310, %309 : vector<48x128xf32>
    %312 = arith.addf %292, %311 : vector<48x128xf32>
    %313 = vector.broadcast %307 : vector<48x1xf32> to vector<48x128xf32>
    %314 = arith.mulf %313, %292 : vector<48x128xf32>
    %315 = arith.addf %309, %314 : vector<48x128xf32>
    %316 = arith.mulf %307, %307 : vector<48x1xf32>
    %cst_84 = arith.constant 1.000000e+00 : f32
    %317 = vector.broadcast %cst_84 : f32 to vector<48x1xf32>
    %318 = arith.subf %317, %316 : vector<48x1xf32>
    %319 = arith.mulf %318, %299 : vector<48x1xf32>
    %320 = arith.mulf %315, %31 : vector<48x128xf32>
    %cst_85 = arith.constant dense<0.000000e+00> : vector<48xf32>
    %321 = vector.multi_reduction <add>, %320, %cst_85 [1] : vector<48x128xf32> to vector<48xf32>
    %322 = vector.shape_cast %321 : vector<48xf32> to vector<48x1xf32>
    %cst_86 = arith.constant 0.000000e+00 : f32
    %323 = vector.broadcast %cst_86 : f32 to vector<48x1xf32>
    %324 = arith.subf %323, %322 : vector<48x1xf32>
    %cst_87 = arith.constant 1.000000e-07 : f32
    %325 = vector.broadcast %cst_87 : f32 to vector<48x1xf32>
    %326 = arith.maximumf %319, %325 : vector<48x1xf32>
    %327 = arith.divf %324, %326 : vector<48x1xf32>
    %c1_i32_88 = arith.constant 1 : i32
    %328 = tpu.dynamic_rotate %315 by %c1_i32_88 dim 1 : vector<48x128xf32>, i32 -> vector<48x128xf32>
    %329 = arith.mulf %328, %44 : vector<48x128xf32>
    %330 = vector.broadcast %327 : vector<48x1xf32> to vector<48x128xf32>
    %331 = arith.mulf %330, %329 : vector<48x128xf32>
    %332 = arith.addf %312, %331 : vector<48x128xf32>
    %333 = vector.broadcast %327 : vector<48x1xf32> to vector<48x128xf32>
    %334 = arith.mulf %333, %312 : vector<48x128xf32>
    %335 = arith.addf %329, %334 : vector<48x128xf32>
    %336 = arith.mulf %327, %327 : vector<48x1xf32>
    %cst_89 = arith.constant 1.000000e+00 : f32
    %337 = vector.broadcast %cst_89 : f32 to vector<48x1xf32>
    %338 = arith.subf %337, %336 : vector<48x1xf32>
    %339 = arith.mulf %338, %319 : vector<48x1xf32>
    %340 = arith.mulf %335, %31 : vector<48x128xf32>
    %cst_90 = arith.constant dense<0.000000e+00> : vector<48xf32>
    %341 = vector.multi_reduction <add>, %340, %cst_90 [1] : vector<48x128xf32> to vector<48xf32>
    %342 = vector.shape_cast %341 : vector<48xf32> to vector<48x1xf32>
    %cst_91 = arith.constant 0.000000e+00 : f32
    %343 = vector.broadcast %cst_91 : f32 to vector<48x1xf32>
    %344 = arith.subf %343, %342 : vector<48x1xf32>
    %cst_92 = arith.constant 1.000000e-07 : f32
    %345 = vector.broadcast %cst_92 : f32 to vector<48x1xf32>
    %346 = arith.maximumf %339, %345 : vector<48x1xf32>
    %347 = arith.divf %344, %346 : vector<48x1xf32>
    %c1_i32_93 = arith.constant 1 : i32
    %348 = tpu.dynamic_rotate %335 by %c1_i32_93 dim 1 : vector<48x128xf32>, i32 -> vector<48x128xf32>
    %349 = arith.mulf %348, %44 : vector<48x128xf32>
    %350 = vector.broadcast %347 : vector<48x1xf32> to vector<48x128xf32>
    %351 = arith.mulf %350, %349 : vector<48x128xf32>
    %352 = arith.addf %332, %351 : vector<48x128xf32>
    %353 = vector.broadcast %347 : vector<48x1xf32> to vector<48x128xf32>
    %354 = arith.mulf %353, %332 : vector<48x128xf32>
    %355 = arith.addf %349, %354 : vector<48x128xf32>
    %356 = arith.mulf %347, %347 : vector<48x1xf32>
    %cst_94 = arith.constant 1.000000e+00 : f32
    %357 = vector.broadcast %cst_94 : f32 to vector<48x1xf32>
    %358 = arith.subf %357, %356 : vector<48x1xf32>
    %359 = arith.mulf %358, %339 : vector<48x1xf32>
    %360 = arith.mulf %355, %31 : vector<48x128xf32>
    %cst_95 = arith.constant dense<0.000000e+00> : vector<48xf32>
    %361 = vector.multi_reduction <add>, %360, %cst_95 [1] : vector<48x128xf32> to vector<48xf32>
    %362 = vector.shape_cast %361 : vector<48xf32> to vector<48x1xf32>
    %cst_96 = arith.constant 0.000000e+00 : f32
    %363 = vector.broadcast %cst_96 : f32 to vector<48x1xf32>
    %364 = arith.subf %363, %362 : vector<48x1xf32>
    %cst_97 = arith.constant 1.000000e-07 : f32
    %365 = vector.broadcast %cst_97 : f32 to vector<48x1xf32>
    %366 = arith.maximumf %359, %365 : vector<48x1xf32>
    %367 = arith.divf %364, %366 : vector<48x1xf32>
    %c1_i32_98 = arith.constant 1 : i32
    %368 = tpu.dynamic_rotate %355 by %c1_i32_98 dim 1 : vector<48x128xf32>, i32 -> vector<48x128xf32>
    %369 = arith.mulf %368, %44 : vector<48x128xf32>
    %370 = vector.broadcast %367 : vector<48x1xf32> to vector<48x128xf32>
    %371 = arith.mulf %370, %369 : vector<48x128xf32>
    %372 = arith.addf %352, %371 : vector<48x128xf32>
    %373 = vector.broadcast %367 : vector<48x1xf32> to vector<48x128xf32>
    %374 = arith.mulf %373, %352 : vector<48x128xf32>
    %375 = arith.addf %369, %374 : vector<48x128xf32>
    %376 = arith.mulf %367, %367 : vector<48x1xf32>
    %cst_99 = arith.constant 1.000000e+00 : f32
    %377 = vector.broadcast %cst_99 : f32 to vector<48x1xf32>
    %378 = arith.subf %377, %376 : vector<48x1xf32>
    %379 = arith.mulf %378, %359 : vector<48x1xf32>
    %380 = arith.mulf %375, %31 : vector<48x128xf32>
    %cst_100 = arith.constant dense<0.000000e+00> : vector<48xf32>
    %381 = vector.multi_reduction <add>, %380, %cst_100 [1] : vector<48x128xf32> to vector<48xf32>
    %382 = vector.shape_cast %381 : vector<48xf32> to vector<48x1xf32>
    %cst_101 = arith.constant 0.000000e+00 : f32
    %383 = vector.broadcast %cst_101 : f32 to vector<48x1xf32>
    %384 = arith.subf %383, %382 : vector<48x1xf32>
    %cst_102 = arith.constant 1.000000e-07 : f32
    %385 = vector.broadcast %cst_102 : f32 to vector<48x1xf32>
    %386 = arith.maximumf %379, %385 : vector<48x1xf32>
    %387 = arith.divf %384, %386 : vector<48x1xf32>
    %c1_i32_103 = arith.constant 1 : i32
    %388 = tpu.dynamic_rotate %375 by %c1_i32_103 dim 1 : vector<48x128xf32>, i32 -> vector<48x128xf32>
    %389 = arith.mulf %388, %44 : vector<48x128xf32>
    %390 = vector.broadcast %387 : vector<48x1xf32> to vector<48x128xf32>
    %391 = arith.mulf %390, %389 : vector<48x128xf32>
    %392 = arith.addf %372, %391 : vector<48x128xf32>
    %393 = vector.broadcast %387 : vector<48x1xf32> to vector<48x128xf32>
    %394 = arith.mulf %393, %372 : vector<48x128xf32>
    %395 = arith.addf %389, %394 : vector<48x128xf32>
    %396 = arith.mulf %387, %387 : vector<48x1xf32>
    %cst_104 = arith.constant 1.000000e+00 : f32
    %397 = vector.broadcast %cst_104 : f32 to vector<48x1xf32>
    %398 = arith.subf %397, %396 : vector<48x1xf32>
    %399 = arith.mulf %398, %379 : vector<48x1xf32>
    %400 = arith.mulf %395, %31 : vector<48x128xf32>
    %cst_105 = arith.constant dense<0.000000e+00> : vector<48xf32>
    %401 = vector.multi_reduction <add>, %400, %cst_105 [1] : vector<48x128xf32> to vector<48xf32>
    %402 = vector.shape_cast %401 : vector<48xf32> to vector<48x1xf32>
    %cst_106 = arith.constant 0.000000e+00 : f32
    %403 = vector.broadcast %cst_106 : f32 to vector<48x1xf32>
    %404 = arith.subf %403, %402 : vector<48x1xf32>
    %cst_107 = arith.constant 1.000000e-07 : f32
    %405 = vector.broadcast %cst_107 : f32 to vector<48x1xf32>
    %406 = arith.maximumf %399, %405 : vector<48x1xf32>
    %407 = arith.divf %404, %406 : vector<48x1xf32>
    %c1_i32_108 = arith.constant 1 : i32
    %408 = tpu.dynamic_rotate %395 by %c1_i32_108 dim 1 : vector<48x128xf32>, i32 -> vector<48x128xf32>
    %409 = arith.mulf %408, %44 : vector<48x128xf32>
    %410 = vector.broadcast %407 : vector<48x1xf32> to vector<48x128xf32>
    %411 = arith.mulf %410, %409 : vector<48x128xf32>
    %412 = arith.addf %392, %411 : vector<48x128xf32>
    %413 = vector.broadcast %407 : vector<48x1xf32> to vector<48x128xf32>
    %414 = arith.mulf %413, %392 : vector<48x128xf32>
    %415 = arith.addf %409, %414 : vector<48x128xf32>
    %416 = arith.mulf %407, %407 : vector<48x1xf32>
    %cst_109 = arith.constant 1.000000e+00 : f32
    %417 = vector.broadcast %cst_109 : f32 to vector<48x1xf32>
    %418 = arith.subf %417, %416 : vector<48x1xf32>
    %419 = arith.mulf %418, %399 : vector<48x1xf32>
    %420 = arith.mulf %415, %31 : vector<48x128xf32>
    %cst_110 = arith.constant dense<0.000000e+00> : vector<48xf32>
    %421 = vector.multi_reduction <add>, %420, %cst_110 [1] : vector<48x128xf32> to vector<48xf32>
    %422 = vector.shape_cast %421 : vector<48xf32> to vector<48x1xf32>
    %cst_111 = arith.constant 0.000000e+00 : f32
    %423 = vector.broadcast %cst_111 : f32 to vector<48x1xf32>
    %424 = arith.subf %423, %422 : vector<48x1xf32>
    %cst_112 = arith.constant 1.000000e-07 : f32
    %425 = vector.broadcast %cst_112 : f32 to vector<48x1xf32>
    %426 = arith.maximumf %419, %425 : vector<48x1xf32>
    %427 = arith.divf %424, %426 : vector<48x1xf32>
    %c1_i32_113 = arith.constant 1 : i32
    %428 = tpu.dynamic_rotate %415 by %c1_i32_113 dim 1 : vector<48x128xf32>, i32 -> vector<48x128xf32>
    %429 = arith.mulf %428, %44 : vector<48x128xf32>
    %430 = vector.broadcast %427 : vector<48x1xf32> to vector<48x128xf32>
    %431 = arith.mulf %430, %429 : vector<48x128xf32>
    %432 = arith.addf %412, %431 : vector<48x128xf32>
    %433 = vector.broadcast %427 : vector<48x1xf32> to vector<48x128xf32>
    %434 = arith.mulf %433, %412 : vector<48x128xf32>
    %435 = arith.addf %429, %434 : vector<48x128xf32>
    %436 = arith.mulf %427, %427 : vector<48x1xf32>
    %cst_114 = arith.constant 1.000000e+00 : f32
    %437 = vector.broadcast %cst_114 : f32 to vector<48x1xf32>
    %438 = arith.subf %437, %436 : vector<48x1xf32>
    %439 = arith.mulf %438, %419 : vector<48x1xf32>
    %440 = arith.mulf %435, %31 : vector<48x128xf32>
    %cst_115 = arith.constant dense<0.000000e+00> : vector<48xf32>
    %441 = vector.multi_reduction <add>, %440, %cst_115 [1] : vector<48x128xf32> to vector<48xf32>
    %442 = vector.shape_cast %441 : vector<48xf32> to vector<48x1xf32>
    %cst_116 = arith.constant 0.000000e+00 : f32
    %443 = vector.broadcast %cst_116 : f32 to vector<48x1xf32>
    %444 = arith.subf %443, %442 : vector<48x1xf32>
    %cst_117 = arith.constant 1.000000e-07 : f32
    %445 = vector.broadcast %cst_117 : f32 to vector<48x1xf32>
    %446 = arith.maximumf %439, %445 : vector<48x1xf32>
    %447 = arith.divf %444, %446 : vector<48x1xf32>
    %c1_i32_118 = arith.constant 1 : i32
    %448 = tpu.dynamic_rotate %435 by %c1_i32_118 dim 1 : vector<48x128xf32>, i32 -> vector<48x128xf32>
    %449 = arith.mulf %448, %44 : vector<48x128xf32>
    %450 = vector.broadcast %447 : vector<48x1xf32> to vector<48x128xf32>
    %451 = arith.mulf %450, %449 : vector<48x128xf32>
    %452 = arith.addf %432, %451 : vector<48x128xf32>
    %453 = vector.broadcast %447 : vector<48x1xf32> to vector<48x128xf32>
    %454 = arith.mulf %453, %432 : vector<48x128xf32>
    %455 = arith.addf %449, %454 : vector<48x128xf32>
    %456 = arith.mulf %447, %447 : vector<48x1xf32>
    %cst_119 = arith.constant 1.000000e+00 : f32
    %457 = vector.broadcast %cst_119 : f32 to vector<48x1xf32>
    %458 = arith.subf %457, %456 : vector<48x1xf32>
    %459 = arith.mulf %458, %439 : vector<48x1xf32>
    %460 = arith.mulf %455, %31 : vector<48x128xf32>
    %cst_120 = arith.constant dense<0.000000e+00> : vector<48xf32>
    %461 = vector.multi_reduction <add>, %460, %cst_120 [1] : vector<48x128xf32> to vector<48xf32>
    %462 = vector.shape_cast %461 : vector<48xf32> to vector<48x1xf32>
    %cst_121 = arith.constant 0.000000e+00 : f32
    %463 = vector.broadcast %cst_121 : f32 to vector<48x1xf32>
    %464 = arith.subf %463, %462 : vector<48x1xf32>
    %cst_122 = arith.constant 1.000000e-07 : f32
    %465 = vector.broadcast %cst_122 : f32 to vector<48x1xf32>
    %466 = arith.maximumf %459, %465 : vector<48x1xf32>
    %467 = arith.divf %464, %466 : vector<48x1xf32>
    %c1_i32_123 = arith.constant 1 : i32
    %468 = tpu.dynamic_rotate %455 by %c1_i32_123 dim 1 : vector<48x128xf32>, i32 -> vector<48x128xf32>
    %469 = arith.mulf %468, %44 : vector<48x128xf32>
    %470 = vector.broadcast %467 : vector<48x1xf32> to vector<48x128xf32>
    %471 = arith.mulf %470, %469 : vector<48x128xf32>
    %472 = arith.addf %452, %471 : vector<48x128xf32>
    %473 = vector.broadcast %467 : vector<48x1xf32> to vector<48x128xf32>
    %474 = arith.mulf %473, %452 : vector<48x128xf32>
    %475 = arith.addf %469, %474 : vector<48x128xf32>
    %476 = arith.mulf %467, %467 : vector<48x1xf32>
    %cst_124 = arith.constant 1.000000e+00 : f32
    %477 = vector.broadcast %cst_124 : f32 to vector<48x1xf32>
    %478 = arith.subf %477, %476 : vector<48x1xf32>
    %479 = arith.mulf %478, %459 : vector<48x1xf32>
    %480 = arith.mulf %475, %31 : vector<48x128xf32>
    %cst_125 = arith.constant dense<0.000000e+00> : vector<48xf32>
    %481 = vector.multi_reduction <add>, %480, %cst_125 [1] : vector<48x128xf32> to vector<48xf32>
    %482 = vector.shape_cast %481 : vector<48xf32> to vector<48x1xf32>
    %cst_126 = arith.constant 0.000000e+00 : f32
    %483 = vector.broadcast %cst_126 : f32 to vector<48x1xf32>
    %484 = arith.subf %483, %482 : vector<48x1xf32>
    %cst_127 = arith.constant 1.000000e-07 : f32
    %485 = vector.broadcast %cst_127 : f32 to vector<48x1xf32>
    %486 = arith.maximumf %479, %485 : vector<48x1xf32>
    %487 = arith.divf %484, %486 : vector<48x1xf32>
    %c1_i32_128 = arith.constant 1 : i32
    %488 = tpu.dynamic_rotate %475 by %c1_i32_128 dim 1 : vector<48x128xf32>, i32 -> vector<48x128xf32>
    %489 = arith.mulf %488, %44 : vector<48x128xf32>
    %490 = vector.broadcast %487 : vector<48x1xf32> to vector<48x128xf32>
    %491 = arith.mulf %490, %489 : vector<48x128xf32>
    %492 = arith.addf %472, %491 : vector<48x128xf32>
    %493 = vector.broadcast %487 : vector<48x1xf32> to vector<48x128xf32>
    %494 = arith.mulf %493, %472 : vector<48x128xf32>
    %495 = arith.addf %489, %494 : vector<48x128xf32>
    %496 = arith.mulf %487, %487 : vector<48x1xf32>
    %cst_129 = arith.constant 1.000000e+00 : f32
    %497 = vector.broadcast %cst_129 : f32 to vector<48x1xf32>
    %498 = arith.subf %497, %496 : vector<48x1xf32>
    %499 = arith.mulf %498, %479 : vector<48x1xf32>
    %500 = arith.mulf %495, %31 : vector<48x128xf32>
    %cst_130 = arith.constant dense<0.000000e+00> : vector<48xf32>
    %501 = vector.multi_reduction <add>, %500, %cst_130 [1] : vector<48x128xf32> to vector<48xf32>
    %502 = vector.shape_cast %501 : vector<48xf32> to vector<48x1xf32>
    %cst_131 = arith.constant 0.000000e+00 : f32
    %503 = vector.broadcast %cst_131 : f32 to vector<48x1xf32>
    %504 = arith.subf %503, %502 : vector<48x1xf32>
    %cst_132 = arith.constant 1.000000e-07 : f32
    %505 = vector.broadcast %cst_132 : f32 to vector<48x1xf32>
    %506 = arith.maximumf %499, %505 : vector<48x1xf32>
    %507 = arith.divf %504, %506 : vector<48x1xf32>
    %c1_i32_133 = arith.constant 1 : i32
    %508 = tpu.dynamic_rotate %495 by %c1_i32_133 dim 1 : vector<48x128xf32>, i32 -> vector<48x128xf32>
    %509 = arith.mulf %508, %44 : vector<48x128xf32>
    %510 = vector.broadcast %507 : vector<48x1xf32> to vector<48x128xf32>
    %511 = arith.mulf %510, %509 : vector<48x128xf32>
    %512 = arith.addf %492, %511 : vector<48x128xf32>
    %513 = vector.broadcast %507 : vector<48x1xf32> to vector<48x128xf32>
    %514 = arith.mulf %513, %492 : vector<48x128xf32>
    %515 = arith.addf %509, %514 : vector<48x128xf32>
    %516 = arith.mulf %507, %507 : vector<48x1xf32>
    %cst_134 = arith.constant 1.000000e+00 : f32
    %517 = vector.broadcast %cst_134 : f32 to vector<48x1xf32>
    %518 = arith.subf %517, %516 : vector<48x1xf32>
    %519 = arith.mulf %518, %499 : vector<48x1xf32>
    %520 = arith.mulf %515, %31 : vector<48x128xf32>
    %cst_135 = arith.constant dense<0.000000e+00> : vector<48xf32>
    %521 = vector.multi_reduction <add>, %520, %cst_135 [1] : vector<48x128xf32> to vector<48xf32>
    %522 = vector.shape_cast %521 : vector<48xf32> to vector<48x1xf32>
    %cst_136 = arith.constant 0.000000e+00 : f32
    %523 = vector.broadcast %cst_136 : f32 to vector<48x1xf32>
    %524 = arith.subf %523, %522 : vector<48x1xf32>
    %cst_137 = arith.constant 1.000000e-07 : f32
    %525 = vector.broadcast %cst_137 : f32 to vector<48x1xf32>
    %526 = arith.maximumf %519, %525 : vector<48x1xf32>
    %527 = arith.divf %524, %526 : vector<48x1xf32>
    %c1_i32_138 = arith.constant 1 : i32
    %528 = tpu.dynamic_rotate %515 by %c1_i32_138 dim 1 : vector<48x128xf32>, i32 -> vector<48x128xf32>
    %529 = arith.mulf %528, %44 : vector<48x128xf32>
    %530 = vector.broadcast %527 : vector<48x1xf32> to vector<48x128xf32>
    %531 = arith.mulf %530, %529 : vector<48x128xf32>
    %532 = arith.addf %512, %531 : vector<48x128xf32>
    %533 = vector.broadcast %527 : vector<48x1xf32> to vector<48x128xf32>
    %534 = arith.mulf %533, %512 : vector<48x128xf32>
    %535 = arith.addf %529, %534 : vector<48x128xf32>
    %536 = arith.mulf %527, %527 : vector<48x1xf32>
    %cst_139 = arith.constant 1.000000e+00 : f32
    %537 = vector.broadcast %cst_139 : f32 to vector<48x1xf32>
    %538 = arith.subf %537, %536 : vector<48x1xf32>
    %539 = arith.mulf %538, %519 : vector<48x1xf32>
    %540 = arith.mulf %535, %31 : vector<48x128xf32>
    %cst_140 = arith.constant dense<0.000000e+00> : vector<48xf32>
    %541 = vector.multi_reduction <add>, %540, %cst_140 [1] : vector<48x128xf32> to vector<48xf32>
    %542 = vector.shape_cast %541 : vector<48xf32> to vector<48x1xf32>
    %cst_141 = arith.constant 0.000000e+00 : f32
    %543 = vector.broadcast %cst_141 : f32 to vector<48x1xf32>
    %544 = arith.subf %543, %542 : vector<48x1xf32>
    %cst_142 = arith.constant 1.000000e-07 : f32
    %545 = vector.broadcast %cst_142 : f32 to vector<48x1xf32>
    %546 = arith.maximumf %539, %545 : vector<48x1xf32>
    %547 = arith.divf %544, %546 : vector<48x1xf32>
    %c1_i32_143 = arith.constant 1 : i32
    %548 = tpu.dynamic_rotate %535 by %c1_i32_143 dim 1 : vector<48x128xf32>, i32 -> vector<48x128xf32>
    %549 = arith.mulf %548, %44 : vector<48x128xf32>
    %550 = vector.broadcast %547 : vector<48x1xf32> to vector<48x128xf32>
    %551 = arith.mulf %550, %549 : vector<48x128xf32>
    %552 = arith.addf %532, %551 : vector<48x128xf32>
    %553 = vector.broadcast %547 : vector<48x1xf32> to vector<48x128xf32>
    %554 = arith.mulf %553, %532 : vector<48x128xf32>
    %555 = arith.addf %549, %554 : vector<48x128xf32>
    %556 = arith.mulf %547, %547 : vector<48x1xf32>
    %cst_144 = arith.constant 1.000000e+00 : f32
    %557 = vector.broadcast %cst_144 : f32 to vector<48x1xf32>
    %558 = arith.subf %557, %556 : vector<48x1xf32>
    %559 = arith.mulf %558, %539 : vector<48x1xf32>
    %560 = arith.mulf %555, %31 : vector<48x128xf32>
    %cst_145 = arith.constant dense<0.000000e+00> : vector<48xf32>
    %561 = vector.multi_reduction <add>, %560, %cst_145 [1] : vector<48x128xf32> to vector<48xf32>
    %562 = vector.shape_cast %561 : vector<48xf32> to vector<48x1xf32>
    %cst_146 = arith.constant 0.000000e+00 : f32
    %563 = vector.broadcast %cst_146 : f32 to vector<48x1xf32>
    %564 = arith.subf %563, %562 : vector<48x1xf32>
    %cst_147 = arith.constant 1.000000e-07 : f32
    %565 = vector.broadcast %cst_147 : f32 to vector<48x1xf32>
    %566 = arith.maximumf %559, %565 : vector<48x1xf32>
    %567 = arith.divf %564, %566 : vector<48x1xf32>
    %c1_i32_148 = arith.constant 1 : i32
    %568 = tpu.dynamic_rotate %555 by %c1_i32_148 dim 1 : vector<48x128xf32>, i32 -> vector<48x128xf32>
    %569 = arith.mulf %568, %44 : vector<48x128xf32>
    %570 = vector.broadcast %567 : vector<48x1xf32> to vector<48x128xf32>
    %571 = arith.mulf %570, %569 : vector<48x128xf32>
    %572 = arith.addf %552, %571 : vector<48x128xf32>
    %573 = vector.broadcast %567 : vector<48x1xf32> to vector<48x128xf32>
    %574 = arith.mulf %573, %552 : vector<48x128xf32>
    %575 = arith.addf %569, %574 : vector<48x128xf32>
    %576 = arith.mulf %567, %567 : vector<48x1xf32>
    %cst_149 = arith.constant 1.000000e+00 : f32
    %577 = vector.broadcast %cst_149 : f32 to vector<48x1xf32>
    %578 = arith.subf %577, %576 : vector<48x1xf32>
    %579 = arith.mulf %578, %559 : vector<48x1xf32>
    %580 = arith.mulf %575, %31 : vector<48x128xf32>
    %cst_150 = arith.constant dense<0.000000e+00> : vector<48xf32>
    %581 = vector.multi_reduction <add>, %580, %cst_150 [1] : vector<48x128xf32> to vector<48xf32>
    %582 = vector.shape_cast %581 : vector<48xf32> to vector<48x1xf32>
    %cst_151 = arith.constant 0.000000e+00 : f32
    %583 = vector.broadcast %cst_151 : f32 to vector<48x1xf32>
    %584 = arith.subf %583, %582 : vector<48x1xf32>
    %cst_152 = arith.constant 1.000000e-07 : f32
    %585 = vector.broadcast %cst_152 : f32 to vector<48x1xf32>
    %586 = arith.maximumf %579, %585 : vector<48x1xf32>
    %587 = arith.divf %584, %586 : vector<48x1xf32>
    %c1_i32_153 = arith.constant 1 : i32
    %588 = tpu.dynamic_rotate %575 by %c1_i32_153 dim 1 : vector<48x128xf32>, i32 -> vector<48x128xf32>
    %589 = arith.mulf %588, %44 : vector<48x128xf32>
    %590 = vector.broadcast %587 : vector<48x1xf32> to vector<48x128xf32>
    %591 = arith.mulf %590, %589 : vector<48x128xf32>
    %592 = arith.addf %572, %591 : vector<48x128xf32>
    %593 = vector.broadcast %587 : vector<48x1xf32> to vector<48x128xf32>
    %594 = arith.mulf %593, %572 : vector<48x128xf32>
    %595 = arith.addf %589, %594 : vector<48x128xf32>
    %596 = arith.mulf %587, %587 : vector<48x1xf32>
    %cst_154 = arith.constant 1.000000e+00 : f32
    %597 = vector.broadcast %cst_154 : f32 to vector<48x1xf32>
    %598 = arith.subf %597, %596 : vector<48x1xf32>
    %599 = arith.mulf %598, %579 : vector<48x1xf32>
    %600 = arith.mulf %595, %31 : vector<48x128xf32>
    %cst_155 = arith.constant dense<0.000000e+00> : vector<48xf32>
    %601 = vector.multi_reduction <add>, %600, %cst_155 [1] : vector<48x128xf32> to vector<48xf32>
    %602 = vector.shape_cast %601 : vector<48xf32> to vector<48x1xf32>
    %cst_156 = arith.constant 0.000000e+00 : f32
    %603 = vector.broadcast %cst_156 : f32 to vector<48x1xf32>
    %604 = arith.subf %603, %602 : vector<48x1xf32>
    %cst_157 = arith.constant 1.000000e-07 : f32
    %605 = vector.broadcast %cst_157 : f32 to vector<48x1xf32>
    %606 = arith.maximumf %599, %605 : vector<48x1xf32>
    %607 = arith.divf %604, %606 : vector<48x1xf32>
    %c1_i32_158 = arith.constant 1 : i32
    %608 = tpu.dynamic_rotate %595 by %c1_i32_158 dim 1 : vector<48x128xf32>, i32 -> vector<48x128xf32>
    %609 = arith.mulf %608, %44 : vector<48x128xf32>
    %610 = vector.broadcast %607 : vector<48x1xf32> to vector<48x128xf32>
    %611 = arith.mulf %610, %609 : vector<48x128xf32>
    %612 = arith.addf %592, %611 : vector<48x128xf32>
    %613 = vector.broadcast %607 : vector<48x1xf32> to vector<48x128xf32>
    %614 = arith.mulf %613, %592 : vector<48x128xf32>
    %615 = arith.addf %609, %614 : vector<48x128xf32>
    %616 = arith.mulf %607, %607 : vector<48x1xf32>
    %cst_159 = arith.constant 1.000000e+00 : f32
    %617 = vector.broadcast %cst_159 : f32 to vector<48x1xf32>
    %618 = arith.subf %617, %616 : vector<48x1xf32>
    %619 = arith.mulf %618, %599 : vector<48x1xf32>
    %620 = arith.mulf %615, %31 : vector<48x128xf32>
    %cst_160 = arith.constant dense<0.000000e+00> : vector<48xf32>
    %621 = vector.multi_reduction <add>, %620, %cst_160 [1] : vector<48x128xf32> to vector<48xf32>
    %622 = vector.shape_cast %621 : vector<48xf32> to vector<48x1xf32>
    %cst_161 = arith.constant 0.000000e+00 : f32
    %623 = vector.broadcast %cst_161 : f32 to vector<48x1xf32>
    %624 = arith.subf %623, %622 : vector<48x1xf32>
    %cst_162 = arith.constant 1.000000e-07 : f32
    %625 = vector.broadcast %cst_162 : f32 to vector<48x1xf32>
    %626 = arith.maximumf %619, %625 : vector<48x1xf32>
    %627 = arith.divf %624, %626 : vector<48x1xf32>
    %c1_i32_163 = arith.constant 1 : i32
    %628 = tpu.dynamic_rotate %615 by %c1_i32_163 dim 1 : vector<48x128xf32>, i32 -> vector<48x128xf32>
    %629 = arith.mulf %628, %44 : vector<48x128xf32>
    %630 = vector.broadcast %627 : vector<48x1xf32> to vector<48x128xf32>
    %631 = arith.mulf %630, %629 : vector<48x128xf32>
    %632 = arith.addf %612, %631 : vector<48x128xf32>
    %633 = vector.broadcast %627 : vector<48x1xf32> to vector<48x128xf32>
    %634 = arith.mulf %633, %612 : vector<48x128xf32>
    %635 = arith.addf %629, %634 : vector<48x128xf32>
    %636 = arith.mulf %627, %627 : vector<48x1xf32>
    %cst_164 = arith.constant 1.000000e+00 : f32
    %637 = vector.broadcast %cst_164 : f32 to vector<48x1xf32>
    %638 = arith.subf %637, %636 : vector<48x1xf32>
    %639 = arith.mulf %638, %619 : vector<48x1xf32>
    %640 = arith.mulf %635, %31 : vector<48x128xf32>
    %cst_165 = arith.constant dense<0.000000e+00> : vector<48xf32>
    %641 = vector.multi_reduction <add>, %640, %cst_165 [1] : vector<48x128xf32> to vector<48xf32>
    %642 = vector.shape_cast %641 : vector<48xf32> to vector<48x1xf32>
    %cst_166 = arith.constant 0.000000e+00 : f32
    %643 = vector.broadcast %cst_166 : f32 to vector<48x1xf32>
    %644 = arith.subf %643, %642 : vector<48x1xf32>
    %cst_167 = arith.constant 1.000000e-07 : f32
    %645 = vector.broadcast %cst_167 : f32 to vector<48x1xf32>
    %646 = arith.maximumf %639, %645 : vector<48x1xf32>
    %647 = arith.divf %644, %646 : vector<48x1xf32>
    %c1_i32_168 = arith.constant 1 : i32
    %648 = tpu.dynamic_rotate %635 by %c1_i32_168 dim 1 : vector<48x128xf32>, i32 -> vector<48x128xf32>
    %649 = arith.mulf %648, %44 : vector<48x128xf32>
    %650 = vector.broadcast %647 : vector<48x1xf32> to vector<48x128xf32>
    %651 = arith.mulf %650, %649 : vector<48x128xf32>
    %652 = arith.addf %632, %651 : vector<48x128xf32>
    %653 = vector.broadcast %647 : vector<48x1xf32> to vector<48x128xf32>
    %654 = arith.mulf %653, %632 : vector<48x128xf32>
    %655 = arith.addf %649, %654 : vector<48x128xf32>
    %656 = arith.mulf %647, %647 : vector<48x1xf32>
    %cst_169 = arith.constant 1.000000e+00 : f32
    %657 = vector.broadcast %cst_169 : f32 to vector<48x1xf32>
    %658 = arith.subf %657, %656 : vector<48x1xf32>
    %659 = arith.mulf %658, %639 : vector<48x1xf32>
    %660 = arith.mulf %655, %31 : vector<48x128xf32>
    %cst_170 = arith.constant dense<0.000000e+00> : vector<48xf32>
    %661 = vector.multi_reduction <add>, %660, %cst_170 [1] : vector<48x128xf32> to vector<48xf32>
    %662 = vector.shape_cast %661 : vector<48xf32> to vector<48x1xf32>
    %cst_171 = arith.constant 0.000000e+00 : f32
    %663 = vector.broadcast %cst_171 : f32 to vector<48x1xf32>
    %664 = arith.subf %663, %662 : vector<48x1xf32>
    %cst_172 = arith.constant 1.000000e-07 : f32
    %665 = vector.broadcast %cst_172 : f32 to vector<48x1xf32>
    %666 = arith.maximumf %659, %665 : vector<48x1xf32>
    %667 = arith.divf %664, %666 : vector<48x1xf32>
    %c1_i32_173 = arith.constant 1 : i32
    %668 = tpu.dynamic_rotate %655 by %c1_i32_173 dim 1 : vector<48x128xf32>, i32 -> vector<48x128xf32>
    %669 = arith.mulf %668, %44 : vector<48x128xf32>
    %670 = vector.broadcast %667 : vector<48x1xf32> to vector<48x128xf32>
    %671 = arith.mulf %670, %669 : vector<48x128xf32>
    %672 = arith.addf %652, %671 : vector<48x128xf32>
    %c0_174 = arith.constant 0 : index
    %c0_175 = arith.constant 0 : index
    %673 = vector.load %arg5[%c0_174, %c0_175] : memref<128x256xf32, #tpu.memory_space<vmem>>, vector<128x256xf32>
    %cst_176 = arith.constant dense<0.000000e+00> : vector<48x256xf32>
    %674 = tpu.matmul %672, %673, %cst_176 {dimension_numbers = #tpu.dot_dimension_numbers<[1], [0], [0], [1], [0, 0, 1, 1], [], []>} : vector<48x128xf32>, vector<128x256xf32>, vector<48x256xf32> -> vector<48x256xf32>
    %675 = vector.extract_strided_slice %674 {offsets = [0, 0], sizes = [48, 128], strides = [1, 1]} : vector<48x256xf32> to vector<48x128xf32>
    %676 = vector.extract_strided_slice %674 {offsets = [0, 128], sizes = [48, 128], strides = [1, 1]} : vector<48x256xf32> to vector<48x128xf32>
    %677 = arith.mulf %675, %675 : vector<48x128xf32>
    %678 = arith.mulf %676, %676 : vector<48x128xf32>
    %679 = arith.addf %677, %678 : vector<48x128xf32>
    %cst_177 = arith.constant 9.99999982E-15 : f32
    %680 = vector.broadcast %cst_177 : f32 to vector<48x128xf32>
    %681 = arith.cmpf olt, %679, %680 : vector<48x128xf32>
    %cst_178 = arith.constant 9.99999982E-15 : f32
    %682 = vector.broadcast %cst_178 : f32 to vector<48x128xf32>
    %683 = arith.maximumf %679, %682 : vector<48x128xf32>
    %684 = math.rsqrt %683 : vector<48x128xf32>
    %cst_179 = arith.constant 1.000000e+00 : f32
    %685 = vector.broadcast %cst_179 : f32 to vector<48x128xf32>
    %686 = arith.select %681, %685, %684 : vector<48x128xi1>, vector<48x128xf32>
    %c0_180 = arith.constant 0 : index
    %c0_181 = arith.constant 0 : index
    %687 = vector.load %arg6[%c0_180, %c0_181] : memref<48x128xf32, #tpu.memory_space<vmem>>, vector<48x128xf32>
    tpu.vector_store %arg6[%c0_180, %c0_181], %686 {strides = array<i32>} : memref<48x128xf32, #tpu.memory_space<vmem>>, vector<48x128xf32>,
    %cst_182 = arith.constant 1.000000e-07 : f32
    %688 = vector.broadcast %cst_182 : f32 to vector<48x128xf32>
    %689 = arith.addf %686, %688 : vector<48x128xf32>
    %690 = tpu.reciprocal %689 {approx = true} : vector<48x128xf32> -> vector<48x128xf32>
    %c0_183 = arith.constant 0 : index
    %c0_184 = arith.constant 0 : index
    %691 = vector.load %arg7[%c0_183, %c0_184] : memref<48x128xf32, #tpu.memory_space<vmem>>, vector<48x128xf32>
    %692 = arith.mulf %691, %690 : vector<48x128xf32>
    %c0_185 = arith.constant 0 : index
    %c0_186 = arith.constant 0 : index
    %693 = vector.load %arg7[%c0_185, %c0_186] : memref<48x128xf32, #tpu.memory_space<vmem>>, vector<48x128xf32>
    tpu.vector_store %arg7[%c0_185, %c0_186], %692 {strides = array<i32>} : memref<48x128xf32, #tpu.memory_space<vmem>>, vector<48x128xf32>,
    %c0_187 = arith.constant 0 : index
    %c0_188 = arith.constant 0 : index
    %694 = vector.load %arg8[%c0_187, %c0_188] : memref<48x128xf32, #tpu.memory_space<vmem>>, vector<48x128xf32>
    %695 = arith.mulf %694, %690 : vector<48x128xf32>
    %c0_189 = arith.constant 0 : index
    %c0_190 = arith.constant 0 : index
    %696 = vector.load %arg8[%c0_189, %c0_190] : memref<48x128xf32, #tpu.memory_space<vmem>>, vector<48x128xf32>
    tpu.vector_store %arg8[%c0_189, %c0_190], %695 {strides = array<i32>} : memref<48x128xf32, #tpu.memory_space<vmem>>, vector<48x128xf32>,
    return
  }
}

module attributes {stable_mosaic.version = 11 : i64} {
  func.func @_synth_kernel(%arg0: memref<48x128xf32, #tpu.memory_space<vmem>>, %arg1: memref<48x128xf32, #tpu.memory_space<vmem>>, %arg2: memref<128x128xf32, #tpu.memory_space<vmem>>, %arg3: memref<128x128xf32, #tpu.memory_space<vmem>>, %arg4: memref<48x128xf32, #tpu.memory_space<vmem>>) attributes {dimension_semantics = [], scalar_prefetch = 0 : i64, scratch_operands = 0 : i64, tpu.core_type = #tpu.core_type<tc>} {
    %c0 = arith.constant 0 : index
    %c0_0 = arith.constant 0 : index
    %0 = vector.load %arg0[%c0, %c0_0] : memref<48x128xf32, #tpu.memory_space<vmem>>, vector<48x128xf32>
    %c0_1 = arith.constant 0 : index
    %c0_2 = arith.constant 0 : index
    %1 = vector.load %arg2[%c0_1, %c0_2] : memref<128x128xf32, #tpu.memory_space<vmem>>, vector<128x128xf32>
    %cst = arith.constant dense<0.000000e+00> : vector<48x128xf32>
    %2 = tpu.matmul %0, %1, %cst {dimension_numbers = #tpu.dot_dimension_numbers<[1], [0], [0], [1], [0, 0, 1, 1], [], []>} : vector<48x128xf32>, vector<128x128xf32>, vector<48x128xf32> -> vector<48x128xf32>
    %c0_3 = arith.constant 0 : index
    %c0_4 = arith.constant 0 : index
    %3 = vector.load %arg1[%c0_3, %c0_4] : memref<48x128xf32, #tpu.memory_space<vmem>>, vector<48x128xf32>
    %c0_5 = arith.constant 0 : index
    %c0_6 = arith.constant 0 : index
    %4 = vector.load %arg3[%c0_5, %c0_6] : memref<128x128xf32, #tpu.memory_space<vmem>>, vector<128x128xf32>
    %cst_7 = arith.constant dense<0.000000e+00> : vector<48x128xf32>
    %5 = tpu.matmul %3, %4, %cst_7 {dimension_numbers = #tpu.dot_dimension_numbers<[1], [0], [0], [1], [0, 0, 1, 1], [], []>} : vector<48x128xf32>, vector<128x128xf32>, vector<48x128xf32> -> vector<48x128xf32>
    %6 = arith.addf %2, %5 : vector<48x128xf32>
    %c0_8 = arith.constant 0 : index
    %c0_9 = arith.constant 0 : index
    %7 = vector.load %arg4[%c0_8, %c0_9] : memref<48x128xf32, #tpu.memory_space<vmem>>, vector<48x128xf32>
    tpu.vector_store %arg4[%c0_8, %c0_9], %6 {strides = array<i32>} : memref<48x128xf32, #tpu.memory_space<vmem>>, vector<48x128xf32>,
    return
  }
}

</mosaic_0001>

<bundles_post_ra>
// kernel: _augment_forward.5
= control target key start
LH: loop header
LB: loop body
LE: loop exit
PB: predicated region body
PF: predicated region fallthrough
CT: control target
= control target key end

     0   :  { %s348_s3 = inlined_call_operand.vmem [shape: f32[128,128], index: 3, kind: input, shape index: {}]   ;;  %s349_s2 = inlined_call_operand.vmem [shape: f32[128,128], index: 2, kind: input, shape index: {}]   ;;  %s350_s1 = inlined_call_operand.vmem [shape: f32[48,128], index: 1, kind: input, shape index: {}]   ;;  %s351_s0 = inlined_call_operand.vmem [shape: f32[48,128], index: 0, kind: input, shape index: {}]   ;;  %s352_s4 = inlined_call_operand.vmem [shape: f32[48,128], index: 4, kind: output, shape index: {}]  }
   0x1   :  { %v60_v0 = vld [vmem:[%s348_s3 + $0x78] sm:$0xff]  ;;  %v59_v2 = vld [vmem:[%s348_s3 + $0x70] sm:$0xff]  ;;  %v58_v4 = vld [vmem:[%s348_s3 + $0x68] sm:$0xff] }
   0x2   :  { %v38_v1 = vld [vmem:[%s349_s2 + $0x78] sm:$0xff]  ;;  %141 = vmatpush.msra.mxu2 %v60_v0  ;;  %v37_v3 = vld [vmem:[%s349_s2 + $0x70] sm:$0xff]  ;;  %v36_v5 = vld [vmem:[%s349_s2 + $0x68] sm:$0xff]  ;;  %61 = vmatpush.msra.mxu0 %v60_v0 }
   0x3   :  { %157 = vmatpush.msra.mxu3 %v38_v1  ;;  %96 = vmatpush.msra.mxu1 %v38_v1  ;;  %v57_v6 = vld [vmem:[%s348_s3 + $0x60] sm:$0xff]  ;;  %v56_v8 = vld [vmem:[%s348_s3 + $0x58] sm:$0xff]  ;;  %v55_v10 = vld [vmem:[%s348_s3 + $0x50] sm:$0xff] }
   0x4   :  { %142 = vmatpush.msra.mxu2 %v59_v2  ;;  %v35_v7 = vld [vmem:[%s349_s2 + $0x60] sm:$0xff]  ;;  %62 = vmatpush.msra.mxu0 %v59_v2  ;;  %v34_v9 = vld [vmem:[%s349_s2 + $0x58] sm:$0xff]  ;;  %v33_v11 = vld [vmem:[%s349_s2 + $0x50] sm:$0xff] }
   0x5   :  { %158 = vmatpush.msra.mxu3 %v37_v3  ;;  %97 = vmatpush.msra.mxu1 %v37_v3  ;;  %v54_v12 = vld [vmem:[%s348_s3 + $0x48] sm:$0xff]  ;;  %v53_v14 = vld [vmem:[%s348_s3 + $0x40] sm:$0xff]  ;;  %v52_v16 = vld [vmem:[%s348_s3 + $0x38] sm:$0xff] }
   0x6   :  { %143 = vmatpush.msra.mxu2 %v58_v4  ;;  %63 = vmatpush.msra.mxu0 %v58_v4  ;;  %v32_v13 = vld [vmem:[%s349_s2 + $0x48] sm:$0xff]  ;;  %v31_v15 = vld [vmem:[%s349_s2 + $0x40] sm:$0xff]  ;;  %v30_v17 = vld [vmem:[%s349_s2 + $0x38] sm:$0xff] }
   0x7   :  { %159 = vmatpush.msra.mxu3 %v36_v5  ;;  %98 = vmatpush.msra.mxu1 %v36_v5  ;;  %v51_v18 = vld [vmem:[%s348_s3 + $0x30] sm:$0xff]  ;;  %v50_v20 = vld [vmem:[%s348_s3 + $0x28] sm:$0xff]  ;;  %v49_v22 = vld [vmem:[%s348_s3 + $0x20] sm:$0xff] }
   0x8   :  { %144 = vmatpush.msra.mxu2 %v57_v6  ;;  %64 = vmatpush.msra.mxu0 %v57_v6  ;;  %v29_v19 = vld [vmem:[%s349_s2 + $0x30] sm:$0xff]  ;;  %v28_v21 = vld [vmem:[%s349_s2 + $0x28] sm:$0xff]  ;;  %v27_v23 = vld [vmem:[%s349_s2 + $0x20] sm:$0xff] }
   0x9   :  { %160 = vmatpush.msra.mxu3 %v35_v7  ;;  %99 = vmatpush.msra.mxu1 %v35_v7  ;;  %v48_v24 = vld [vmem:[%s348_s3 + $0x18] sm:$0xff]  ;;  %v47_v26 = vld [vmem:[%s348_s3 + $0x10] sm:$0xff]  ;;  %v46_v28 = vld [vmem:[%s348_s3 + $0x8] sm:$0xff] }
   0xa   :  { %145 = vmatpush.msra.mxu2 %v56_v8  ;;  %65 = vmatpush.msra.mxu0 %v56_v8  ;;  %v26_v25 = vld [vmem:[%s349_s2 + $0x18] sm:$0xff]  ;;  %v25_v27 = vld [vmem:[%s349_s2 + $0x10] sm:$0xff]  ;;  %v24_v29 = vld [vmem:[%s349_s2 + $0x8] sm:$0xff] }
   0xb   :  { %161 = vmatpush.msra.mxu3 %v34_v9  ;;  %100 = vmatpush.msra.mxu1 %v34_v9  ;;  %v45_v30 = vld [vmem:[%s348_s3] sm:$0xff]  ;;  %v42_v32 = vld [vmem:[%s350_s1 + $0x18] sm:$0xff]  ;;  %v40_v38 = vld [vmem:[%s350_s1 + $0x8] sm:$0xff] }
   0xc   :  { %146 = vmatpush.msra.mxu2 %v55_v10  ;;  %66 = vmatpush.msra.mxu0 %v55_v10  ;;  %v23_v31 = vld [vmem:[%s349_s2] sm:$0xff]  ;;  %v20_v33 = vld [vmem:[%s351_s0 + $0x18] sm:$0xff]  ;;  %v18_v39 = vld [vmem:[%s351_s0 + $0x8] sm:$0xff] }
   0xd   :  { %162 = vmatpush.msra.mxu3 %v33_v11  ;;  %101 = vmatpush.msra.mxu1 %v33_v11  ;;  %v39_v34 = vld [vmem:[%s350_s1] sm:$0xff]  ;;  %v44_v40 = vld [vmem:[%s350_s1 + $0x28] sm:$0xff]  ;;  %v41_v42 = vld [vmem:[%s350_s1 + $0x10] sm:$0xff] }
   0xe   :  { %147 = vmatpush.msra.mxu2 %v54_v12  ;;  %67 = vmatpush.msra.mxu0 %v54_v12  ;;  %v17_v35 = vld [vmem:[%s351_s0] sm:$0xff]  ;;  %v22_v41 = vld [vmem:[%s351_s0 + $0x28] sm:$0xff]  ;;  %v19_v43 = vld [vmem:[%s351_s0 + $0x10] sm:$0xff] }
   0xf   :  { %163 = vmatpush.msra.mxu3 %v32_v13  ;;  %102 = vmatpush.msra.mxu1 %v32_v13  ;;  %v43_v36 = vld [vmem:[%s350_s1 + $0x20] sm:$0xff] }
  0x10   :  { %148 = vmatpush.msra.mxu2 %v53_v14  ;;  %68 = vmatpush.msra.mxu0 %v53_v14  ;;  %v21_v37 = vld [vmem:[%s351_s0 + $0x20] sm:$0xff] }
  0x11   :  { %164 = vmatpush.msra.mxu3 %v31_v15  ;;  %103 = vmatpush.msra.mxu1 %v31_v15 }
  0x12   :  { %149 = vmatpush.msra.mxu2 %v52_v16  ;;  %69 = vmatpush.msra.mxu0 %v52_v16 }
  0x13   :  { %165 = vmatpush.msra.mxu3 %v30_v17  ;;  %104 = vmatpush.msra.mxu1 %v30_v17 }
  0x14   :  { %150 = vmatpush.msra.mxu2 %v51_v18  ;;  %70 = vmatpush.msra.mxu0 %v51_v18 }
  0x15   :  { %166 = vmatpush.msra.mxu3 %v29_v19  ;;  %105 = vmatpush.msra.mxu1 %v29_v19 }
  0x16   :  { %151 = vmatpush.msra.mxu2 %v50_v20  ;;  %71 = vmatpush.msra.mxu0 %v50_v20 }
  0x17   :  { %167 = vmatpush.msra.mxu3 %v28_v21  ;;  %106 = vmatpush.msra.mxu1 %v28_v21 }
  0x18   :  { %152 = vmatpush.msra.mxu2 %v49_v22  ;;  %72 = vmatpush.msra.mxu0 %v49_v22 }
  0x19   :  { %168 = vmatpush.msra.mxu3 %v27_v23  ;;  %107 = vmatpush.msra.mxu1 %v27_v23 }
  0x1a   :  { %153 = vmatpush.msra.mxu2 %v48_v24  ;;  %73 = vmatpush.msra.mxu0 %v48_v24 }
  0x1b   :  { %169 = vmatpush.msra.mxu3 %v26_v25  ;;  %108 = vmatpush.msra.mxu1 %v26_v25 }
  0x1c   :  { %154 = vmatpush.msra.mxu2 %v47_v26  ;;  %74 = vmatpush.msra.mxu0 %v47_v26 }
  0x1d   :  { %170 = vmatpush.msra.mxu3 %v25_v27  ;;  %109 = vmatpush.msra.mxu1 %v25_v27 }
  0x1e   :  { %155 = vmatpush.msra.mxu2 %v46_v28  ;;  %75 = vmatpush.msra.mxu0 %v46_v28 }
  0x1f   :  { %171 = vmatpush.msra.mxu3 %v24_v29  ;;  %110 = vmatpush.msra.mxu1 %v24_v29 }
  0x20   :  { %156 = vmatpush.msra.mxu2 %v45_v30  ;;  %76 = vmatpush.msra.mxu0 %v45_v30 }
  0x21   :  { %172 = vmatpush.msra.mxu3 %v23_v31  ;;  %86 = vmatmul.f32.vlgmr.msra.gmra.mxu2 %v42_v32 }
  0x22   :  { %121 = vmatmul.f32.vlgmr.msra.gmra.mxu3 %v20_v33  ;;  %111 = vmatpush.msra.mxu1 %v23_v31 }
  0x23   :  { %77 = vmatmul.f32.vlgmr.msra.gmra.mxu0 %v39_v34  ;;  %112 = vmatmul.f32.vlgmr.msra.gmra.mxu1 %v17_v35 }
  0x29   :  { %89 = vmatmul.f32.gmra.mxu2 %v43_v36 }
  0x2a   :  { %124 = vmatmul.f32.gmra.mxu3 %v21_v37 }
  0x2b   :  { %80 = vmatmul.f32.gmra.mxu0 %v40_v38  ;;  %115 = vmatmul.f32.gmra.mxu1 %v18_v39 }
  0x31   :  { %92 = vmatmul.f32.gmra.mxu2 %v44_v40 }
  0x32   :  { %127 = vmatmul.f32.gmra.mxu3 %v22_v41 }
  0x33   :  { %83 = vmatmul.f32.gmra.mxu0 %v41_v42  ;;  %118 = vmatmul.f32.gmra.mxu1 %v19_v43 }
  0xa0   :  { %v78_v44 = vpop.f32.mrf.mxu0  ;;  %v113_v45 = vpop.f32.mrf.mxu1 }
  0xa1   :  { %v114_v46 = vadd.f32 %v113_v45, %v78_v44 }
  0xa3   :  { %131 = vst [vmem:[%s352_s4] sm:$0xff] %v114_v46 }
  0xa4   :  { %v87_v47 = vpop.f32.mrf.mxu2 }
  0xa5   :  { %v122_v48 = vpop.f32.mrf.mxu3 }
  0xa6   :  { %v123_v49 = vadd.f32 %v122_v48, %v87_v47 }
  0xa8   :  { %134 = vst [vmem:[%s352_s4 + $0x18] sm:$0xff] %v123_v49  ;;  %v81_v50 = vpop.f32.mrf.mxu0  ;;  %v116_v51 = vpop.f32.mrf.mxu1 }
  0xa9   :  { %v117_v52 = vadd.f32 %v116_v51, %v81_v50 }
  0xab   :  { %132 = vst [vmem:[%s352_s4 + $0x8] sm:$0xff] %v117_v52 }
  0xac   :  { %v90_v53 = vpop.f32.mrf.mxu2 }
  0xad   :  { %v125_v54 = vpop.f32.mrf.mxu3 }
  0xae   :  { %v126_v55 = vadd.f32 %v125_v54, %v90_v53 }
  0xb0   :  { %135 = vst [vmem:[%s352_s4 + $0x20] sm:$0xff] %v126_v55  ;;  %v84_v56 = vpop.f32.mrf.mxu0  ;;  %v119_v57 = vpop.f32.mrf.mxu1 }
  0xb1   :  { %v120_v58 = vadd.f32 %v119_v57, %v84_v56 }
  0xb3   :  { %133 = vst [vmem:[%s352_s4 + $0x10] sm:$0xff] %v120_v58 }
  0xb4   :  { %v93_v59 = vpop.f32.mrf.mxu2 }
  0xb5   :  { %v128_v60 = vpop.f32.mrf.mxu3 }
  0xb6   :  { %v129_v61 = vadd.f32 %v128_v60, %v93_v59 }
  0xb8   :  { %136 = vst [vmem:[%s352_s4 + $0x28] sm:$0xff] %v129_v61 }

// kernel: _augment_forward.4
= control target key start
LH: loop header
LB: loop body
LE: loop exit
PB: predicated region body
PF: predicated region fallthrough
CT: control target
= control target key end

     0   :  { %s11841_s3 = inlined_call_operand.vmem [shape: f32[128,256], index: 3, kind: input, shape index: {}]   ;;  %s11842_s0 = inlined_call_operand.vmem [shape: f32[48,128], index: 0, kind: input, shape index: {}]   ;;  %s11843_s1 = inlined_call_operand.vmem [shape: f32[48,128], index: 1, kind: input, shape index: {}]   ;;  %s11844_s2 = inlined_call_operand.vmem [shape: f32[48,128], index: 2, kind: input, shape index: {}]   ;;  %s11845_s7 = inlined_call_operand.vmem [shape: f32[48,128], index: 7, kind: output, shape index: {1}]   ;;  %s11846_s8 = inlined_call_operand.vmem [shape: f32[48,128], index: 8, kind: output, shape index: {2}]   ;;  %s11847_s4 = inlined_call_operand.vmem [shape: f32[128,128], index: 4, kind: input, shape index: {}]   ;;  %s11848_s5 = inlined_call_operand.vmem [shape: f32[128,256], index: 5, kind: input, shape index: {}]   ;;  %s11849_s6 = inlined_call_operand.vmem [shape: f32[48,128], index: 6, kind: output, shape index: {0}]  }
   0x1   :  { %v62_v0 = vld [vmem:[%s11841_s3 + $0xf0] sm:$0xff]  ;;  %v60_v1 = vld [vmem:[%s11841_s3 + $0xe0] sm:$0xff]  ;;  %v63_v16 = vld [vmem:[%s11841_s3 + $0xf8] sm:$0xff] }
   0x2   :  { %7363 = vmatpush.msra.mxu1 %v62_v0  ;;  %64 = vmatpush.msra.mxu0 %v62_v0  ;;  %v58_v2 = vld [vmem:[%s11841_s3 + $0xd0] sm:$0xff]  ;;  %v56_v3 = vld [vmem:[%s11841_s3 + $0xc0] sm:$0xff]  ;;  %v61_v19 = vld [vmem:[%s11841_s3 + $0xe8] sm:$0xff] }
   0x3   :  { %v54_v4 = vld [vmem:[%s11841_s3 + $0xb0] sm:$0xff]  ;;  %v52_v5 = vld [vmem:[%s11841_s3 + $0xa0] sm:$0xff]  ;;  %v59_v20 = vld [vmem:[%s11841_s3 + $0xd8] sm:$0xff] }
   0x4   :  { %7364 = vmatpush.msra.mxu1 %v60_v1  ;;  %65 = vmatpush.msra.mxu0 %v60_v1  ;;  %v50_v6 = vld [vmem:[%s11841_s3 + $0x90] sm:$0xff]  ;;  %v48_v7 = vld [vmem:[%s11841_s3 + $0x80] sm:$0xff]  ;;  %v57_v21 = vld [vmem:[%s11841_s3 + $0xc8] sm:$0xff] }
   0x5   :  { %v46_v8 = vld [vmem:[%s11841_s3 + $0x70] sm:$0xff]  ;;  %v44_v9 = vld [vmem:[%s11841_s3 + $0x60] sm:$0xff]  ;;  %v55_v22 = vld [vmem:[%s11841_s3 + $0xb8] sm:$0xff] }
   0x6   :  { %7365 = vmatpush.msra.mxu1 %v58_v2  ;;  %66 = vmatpush.msra.mxu0 %v58_v2  ;;  %v42_v10 = vld [vmem:[%s11841_s3 + $0x50] sm:$0xff]  ;;  %v40_v11 = vld [vmem:[%s11841_s3 + $0x40] sm:$0xff]  ;;  %v27_v23 = vld [vmem:[%s11842_s0 + $0x8] sm:$0xff] }
   0x7   :  { %v38_v12 = vld [vmem:[%s11841_s3 + $0x30] sm:$0xff]  ;;  %v36_v13 = vld [vmem:[%s11841_s3 + $0x20] sm:$0xff]  ;;  %v31_v24 = vld [vmem:[%s11842_s0 + $0x28] sm:$0xff] }
   0x8   :  { %7366 = vmatpush.msra.mxu1 %v56_v3  ;;  %67 = vmatpush.msra.mxu0 %v56_v3  ;;  %v34_v14 = vld [vmem:[%s11841_s3 + $0x10] sm:$0xff]  ;;  %v32_v15 = vld [vmem:[%s11841_s3] sm:$0xff]  ;;  %v53_v25 = vld [vmem:[%s11841_s3 + $0xa8] sm:$0xff] }
   0x9   :  { %v30_v17 = vld [vmem:[%s11842_s0 + $0x20] sm:$0xff]  ;;  %v51_v26 = vld [vmem:[%s11841_s3 + $0x98] sm:$0xff]  ;;  %v49_v27 = vld [vmem:[%s11841_s3 + $0x88] sm:$0xff] }
   0xa   :  { %7367 = vmatpush.msra.mxu1 %v54_v4  ;;  %68 = vmatpush.msra.mxu0 %v54_v4  ;;  %v26_v18 = vld [vmem:[%s11842_s0] sm:$0xff]  ;;  %v47_v28 = vld [vmem:[%s11841_s3 + $0x78] sm:$0xff]  ;;  %v28_v29 = vld [vmem:[%s11842_s0 + $0x10] sm:$0xff] }
   0xb   :  { %v45_v30 = vld [vmem:[%s11841_s3 + $0x68] sm:$0xff]  ;;  %v43_v31 = vld [vmem:[%s11841_s3 + $0x58] sm:$0xff]  ;;  %v134_v41 = vld [vmem:[%s11843_s1] sm:$0xff] }
   0xc   :  { %7368 = vmatpush.msra.mxu1 %v52_v5  ;;  %69 = vmatpush.msra.mxu0 %v52_v5  ;;  %v41_v32 = vld [vmem:[%s11841_s3 + $0x48] sm:$0xff]  ;;  %v39_v33 = vld [vmem:[%s11841_s3 + $0x38] sm:$0xff]  ;;  %v140_v42 = vld [vmem:[%s11844_s2] sm:$0xff] }
   0xd   :  { %v29_v34 = vld [vmem:[%s11842_s0 + $0x18] sm:$0xff]  ;;  %v37_v35 = vld [vmem:[%s11841_s3 + $0x28] sm:$0xff]  ;;  %v136_v0 = vld [vmem:[%s11843_s1 + $0x10] sm:$0xff] }
   0xe   :  { %7369 = vmatpush.msra.mxu1 %v50_v6  ;;  %70 = vmatpush.msra.mxu0 %v50_v6  ;;  %v35_v36 = vld [vmem:[%s11841_s3 + $0x18] sm:$0xff]  ;;  %v33_v37 = vld [vmem:[%s11841_s3 + $0x8] sm:$0xff]  ;;  %v142_v1 = vld [vmem:[%s11844_s2 + $0x10] sm:$0xff]  ;;  %s7839_s3 = smov 1  }
   0xf   :  { %v135_v51 = vld [vmem:[%s11843_s1 + $0x8] sm:$0xff] }
  0x10   :  { %7370 = vmatpush.msra.mxu1 %v48_v7  ;;  %71 = vmatpush.msra.mxu0 %v48_v7  ;;  %v141_v52 = vld [vmem:[%s11844_s2 + $0x8] sm:$0xff] }
  0x12   :  { %7371 = vmatpush.msra.mxu1 %v46_v8  ;;  %72 = vmatpush.msra.mxu0 %v46_v8 }
  0x14   :  { %7372 = vmatpush.msra.mxu1 %v44_v9  ;;  %73 = vmatpush.msra.mxu0 %v44_v9 }
  0x16   :  { %7373 = vmatpush.msra.mxu1 %v42_v10  ;;  %74 = vmatpush.msra.mxu0 %v42_v10 }
  0x18   :  { %7374 = vmatpush.msra.mxu1 %v40_v11  ;;  %75 = vmatpush.msra.mxu0 %v40_v11 }
  0x1a   :  { %7375 = vmatpush.msra.mxu1 %v38_v12  ;;  %76 = vmatpush.msra.mxu0 %v38_v12 }
  0x1c   :  { %7376 = vmatpush.msra.mxu1 %v36_v13  ;;  %77 = vmatpush.msra.mxu0 %v36_v13 }
  0x1e   :  { %7377 = vmatpush.msra.mxu1 %v34_v14  ;;  %78 = vmatpush.msra.mxu0 %v34_v14 }
  0x20   :  { %7378 = vmatpush.msra.mxu1 %v32_v15  ;;  %79 = vmatpush.msra.mxu0 %v32_v15 }
  0x21   :  { %80 = vmatmul.f32.vlgmr.msra.gmra.mxu0 %v26_v18  ;;  %92 = vmatmul.f32.vlgmr.msra.gmra.mxu1 %v30_v17 }
  0x22   :  { %99 = vmatpush.msrb.mxu1 %v63_v16  ;;  %v137_v16 = vld [vmem:[%s11843_s1 + $0x18] sm:$0xff] }
  0x24   :  { %100 = vmatpush.msrb.mxu1 %v61_v19 }
  0x26   :  { %101 = vmatpush.msrb.mxu1 %v59_v20 }
  0x28   :  { %102 = vmatpush.msrb.mxu1 %v57_v21 }
  0x29   :  { %83 = vmatmul.f32.gmra.mxu0 %v27_v23  ;;  %95 = vmatmul.f32.gmra.mxu1 %v31_v24 }
  0x2a   :  { %103 = vmatpush.msrb.mxu1 %v55_v22 }
  0x2c   :  { %104 = vmatpush.msrb.mxu1 %v53_v25 }
  0x2e   :  { %105 = vmatpush.msrb.mxu1 %v51_v26 }
  0x30   :  { %106 = vmatpush.msrb.mxu1 %v49_v27 }
  0x31   :  { %86 = vmatmul.f32.gmra.mxu0 %v28_v29 }
  0x32   :  { %107 = vmatpush.msrb.mxu1 %v47_v28 }
  0x34   :  { %108 = vmatpush.msrb.mxu1 %v45_v30 }
  0x36   :  { %109 = vmatpush.msrb.mxu1 %v43_v31 }
  0x38   :  { %110 = vmatpush.msrb.mxu1 %v41_v32 }
  0x39   :  { %89 = vmatmul.f32.gmra.mxu0 %v29_v34 }
  0x3a   :  { %111 = vmatpush.msrb.mxu1 %v39_v33 }
  0x3c   :  { %112 = vmatpush.msrb.mxu1 %v37_v35 }
  0x3e   :  { %113 = vmatpush.msrb.mxu1 %v35_v36 }
  0x40   :  { %114 = vmatpush.msrb.mxu1 %v33_v37 }
  0x41   :  { %115 = vmatmul.f32.vlgmr.msrb.gmra.mxu1 %v26_v18 }
  0x49   :  { %118 = vmatmul.f32.gmra.mxu1 %v27_v23 }
  0x51   :  { %121 = vmatmul.f32.gmra.mxu1 %v28_v29 }
  0x59   :  { %124 = vmatmul.f32.gmra.mxu1 %v29_v34 }
  0x61   :  { %127 = vmatmul.f32.gmra.mxu1 %v30_v17  ;;  %v143_v17 = vld [vmem:[%s11844_s2 + $0x18] sm:$0xff] }
  0x69   :  { %130 = vmatmul.f32.gmra.mxu1 %v31_v24 }
  0x9e   :  { %v8002_v38 = vpop.f32.mrf.mxu1  ;;  %v81_v40 = vpop.f32.mrf.mxu0 }
  0x9f   :  { %v146_v43 = vmul.f32 %v134_v41, %v81_v40  ;;  %v164_v44 = vmul.f32 %v140_v42, %v81_v40  ;;  %v138_v40 = vld [vmem:[%s11843_s1 + $0x20] sm:$0xff] }
  0xa6   :  { %v8004_v39 = vpop.f32.mrf.mxu1  ;;  %v84_v46 = vpop.f32.mrf.mxu0 }
  0xa7   :  { %v147_v56 = vmul.f32 %v135_v51, %v84_v46  ;;  %v165_v57 = vmul.f32 %v141_v52, %v84_v46 }
  0xae   :  { %v87_v61 = vpop.f32.mrf.mxu0 }
  0xaf   :  { %v148_v6 = vmul.f32 %v136_v0, %v87_v61  ;;  %v166_v7 = vmul.f32 %v142_v1, %v87_v61 }
  0xb6   :  { %v90_v15 = vpop.f32.mrf.mxu0 }
  0xb7   :  { %v149_v24 = vmul.f32 %v137_v16, %v90_v15  ;;  %v167_v25 = vmul.f32 %v143_v17, %v90_v15 }
  0xbe   :  { %v116_v45 = vpop.f32.mrf.mxu1 }
  0xbf   :  { %v152_v47 = vmul.f32 %v140_v42, %v116_v45  ;;  %v170_v48 = vmul.f32 %v134_v41, %v116_v45 }
  0xc1   :  { %v158_v49 = vsub.f32 %v146_v43, %v152_v47  ;;  %v176_v50 = vadd.f32 %v170_v48, %v164_v44  ;;  %v144_v44 = vld [vmem:[%s11844_s2 + $0x20] sm:$0xff]  ;;  %v150_v48 = vmul.f32 %v138_v40, %v8002_v38 }
  0xc3   :  { %182 = vst [vmem:[%s11845_s7] sm:$0xff] %v158_v49  ;;  %v194_v53 = vmul.f32 %v158_v49, %v158_v49  ;;  %v200_v54 = vmul.f32 %v176_v50, %v176_v50 }
  0xc4   :  { %188 = vst [vmem:[%s11846_s8] sm:$0xff] %v176_v50 }
  0xc5   :  { %v8024_v55 = vadd.f32 %v200_v54, %v194_v53 }
  0xc6   :  { %v119_v58 = vpop.f32.mrf.mxu1 }
  0xc7   :  { %v153_v59 = vmul.f32 %v141_v52, %v119_v58  ;;  %v171_v60 = vmul.f32 %v135_v51, %v119_v58  ;;  %7406 = vrsqrt.f32 %v8024_v55  ;;  %vm219_vm0 = vcmp.eq.f32.partialorder %v8024_v55, inf }
  0xc8   :  { %v222_v35 = vand.u32 2147483648, %v8024_v55  ;;  %vm221_vm1 = vcmp.eq.f32.partialorder %v8024_v55, 0.0  ;;  %v168_v52 = vmul.f32 %v144_v44, %v8002_v38  ;;  %v139_v38 = vld [vmem:[%s11843_s1 + $0x28] sm:$0xff] }
  0xc9   :  { %v159_v62 = vsub.f32 %v147_v56, %v153_v59  ;;  %v177_v63 = vadd.f32 %v171_v60, %v165_v57 }
  0xcb   :  { %183 = vst [vmem:[%s11845_s7 + $0x8] sm:$0xff] %v159_v62  ;;  %v195_v2 = vmul.f32 %v159_v62, %v159_v62  ;;  %v201_v3 = vmul.f32 %v177_v63, %v177_v63 }
  0xcc   :  { %189 = vst [vmem:[%s11846_s8 + $0x8] sm:$0xff] %v177_v63 }
  0xcd   :  { %v7407_v4 = vpop.eup %7406  ;;  %v8039_v5 = vadd.f32 %v201_v3, %v195_v2  ;;  %v145_v2 = vld [vmem:[%s11844_s2 + $0x28] sm:$0xff] }
  0xce   :  { %v122_v8 = vpop.f32.mrf.mxu1  ;;  %v213_v9 = vmul.f32 %v7407_v4, %v8024_v55 }
  0xcf   :  { %v154_v10 = vmul.f32 %v142_v1, %v122_v8  ;;  %v172_v11 = vmul.f32 %v136_v0, %v122_v8  ;;  %7408 = vrsqrt.f32 %v8039_v5  ;;  %vm231_vm2 = vcmp.eq.f32.partialorder %v8039_v5, inf }
  0xd0   :  { %v214_v12 = vmul.f32 %v7407_v4, %v213_v9  ;;  %v234_v60 = vand.u32 2147483648, %v8039_v5  ;;  %vm233_vm3 = vcmp.eq.f32.partialorder %v8039_v5, 0.0  ;;  %v151_v9 = vmul.f32 %v139_v38, %v8004_v39 }
  0xd1   :  { %v160_v13 = vsub.f32 %v148_v6, %v154_v10  ;;  %v178_v14 = vadd.f32 %v172_v11, %v166_v7  ;;  %v340_v6 = vld [vmem:[%s11847_s4 + $0x70] sm:$0xff]  ;;  %v169_v11 = vmul.f32 %v145_v2, %v8004_v39 }
  0xd2   :  { %v215_v18 = vmul.f32 0.5, %v214_v12 }
  0xd3   :  { %184 = vst [vmem:[%s11845_s7 + $0x10] sm:$0xff] %v160_v13  ;;  %v196_v19 = vmul.f32 %v160_v13, %v160_v13  ;;  %v202_v20 = vmul.f32 %v178_v14, %v178_v14 }
  0xd4   :  { %190 = vst [vmem:[%s11846_s8 + $0x10] sm:$0xff] %v178_v14  ;;  %v216_v21 = vsub.f32 1.5, %v215_v18  ;;  %v339_v14 = vld [vmem:[%s11847_s4 + $0x68] sm:$0xff] }
  0xd5   :  { %v7409_v22 = vpop.eup %7408  ;;  %v8055_v23 = vadd.f32 %v202_v20, %v196_v19  ;;  %v338_v19 = vld [vmem:[%s11847_s4 + $0x60] sm:$0xff] }
  0xd6   :  { %v125_v26 = vpop.f32.mrf.mxu1  ;;  %v217_v27 = vmul.f32 %v7407_v4, %v216_v21  ;;  %v225_v28 = vmul.f32 %v7409_v22, %v8039_v5  ;;  %v341_v4 = vld [vmem:[%s11847_s4 + $0x78] sm:$0xff] }
  0xd7   :  { %v155_v29 = vmul.f32 %v143_v17, %v125_v26  ;;  %v173_v30 = vmul.f32 %v137_v16, %v125_v26  ;;  %7410 = vrsqrt.f32 %v8055_v23  ;;  %342 = vmatpush.msra.mxu2 %v341_v4  ;;  %vm243_vm4 = vcmp.eq.f32.partialorder %v8055_v23, inf  ;;  %v327_v4 = vld [vmem:[%s11847_s4 + $0x8] sm:$0xff] }
  0xd8   :  { %v218_v31 = vmul.f32 %v217_v27, %v8024_v55  ;;  %v226_v32 = vmul.f32 %v7409_v22, %v225_v28  ;;  %v246_v17 = vand.u32 2147483648, %v8055_v23  ;;  %vm245_vm5 = vcmp.eq.f32.partialorder %v8055_v23, 0.0 }
  0xd9   :  { %v161_v33 = vsub.f32 %v149_v24, %v155_v29  ;;  %v179_v34 = vadd.f32 %v173_v30, %v167_v25  ;;  %343 = vmatpush.msra.mxu2 %v340_v6  ;;  %v337_v25 = vld [vmem:[%s11847_s4 + $0x58] sm:$0xff]  ;;  %v336_v30 = vld [vmem:[%s11847_s4 + $0x50] sm:$0xff]  ;;  %v326_v6 = vld [vmem:[%s11847_s4] sm:$0xff] }
  0xda   :  { %v220_v36 = vsel %vm219_vm0, %v8024_v55, %v218_v31  ;;  %v227_v37 = vmul.f32 0.5, %v226_v32 }
  0xdb   :  { %185 = vst [vmem:[%s11845_s7 + $0x18] sm:$0xff] %v161_v33  ;;  %v197_v41 = vmul.f32 %v161_v33, %v161_v33  ;;  %v203_v42 = vmul.f32 %v179_v34, %v179_v34  ;;  %v223_v43 = vsel %vm221_vm1, %v222_v35, %v220_v36  ;;  %344 = vmatpush.msra.mxu2 %v339_v14  ;;  %v335_v35 = vld [vmem:[%s11847_s4 + $0x48] sm:$0xff] }
  0xdc   :  { %191 = vst [vmem:[%s11846_s8 + $0x18] sm:$0xff] %v179_v34  ;;  %284 = vadd.xlane.f32.xlu0 %v223_v43  ;;  %v228_v45 = vsub.f32 1.5, %v227_v37 }
  0xdd   :  { %v7411_v46 = vpop.eup %7410  ;;  %v8076_v47 = vadd.f32 %v203_v42, %v197_v41  ;;  %345 = vmatpush.msra.mxu2 %v338_v19  ;;  %v334_v41 = vld [vmem:[%s11847_s4 + $0x40] sm:$0xff] }
  0xde   :  { %v128_v49 = vpop.f32.mrf.mxu1  ;;  %v229_v50 = vmul.f32 %v7409_v22, %v228_v45  ;;  %v237_v51 = vmul.f32 %v7411_v46, %v8055_v23 }
  0xdf   :  { %v156_v53 = vmul.f32 %v144_v44, %v128_v49  ;;  %v174_v54 = vmul.f32 %v138_v40, %v128_v49  ;;  %7412 = vrsqrt.f32 %v8076_v47  ;;  %346 = vmatpush.msra.mxu2 %v337_v25  ;;  %vm255_vm6 = vcmp.eq.f32.partialorder %v8076_v47, inf }
  0xe0   :  { %v230_v56 = vmul.f32 %v229_v50, %v8039_v5  ;;  %v238_v57 = vmul.f32 %v7411_v46, %v237_v51  ;;  %v258_v36 = vand.u32 2147483648, %v8076_v47  ;;  %vm257_vm7 = vcmp.eq.f32.partialorder %v8076_v47, 0.0 }
  0xe1   :  { %v162_v58 = vsub.f32 %v150_v48, %v156_v53  ;;  %v180_v59 = vadd.f32 %v174_v54, %v168_v52  ;;  %347 = vmatpush.msra.mxu2 %v336_v30 }
  0xe2   :  { %v232_v61 = vsel %vm231_vm2, %v8039_v5, %v230_v56  ;;  %v239_v62 = vmul.f32 0.5, %v238_v57 }
  0xe3   :  { %186 = vst [vmem:[%s11845_s7 + $0x20] sm:$0xff] %v162_v58  ;;  %v198_v63 = vmul.f32 %v162_v58, %v162_v58  ;;  %v204_v0 = vmul.f32 %v180_v59, %v180_v59  ;;  %v235_v1 = vsel %vm233_vm3, %v234_v60, %v232_v61  ;;  %348 = vmatpush.msra.mxu2 %v335_v35 }
  0xe4   :  { %192 = vst [vmem:[%s11846_s8 + $0x20] sm:$0xff] %v180_v59  ;;  %286 = vadd.xlane.f32.xlu0 %v235_v1  ;;  %v240_v3 = vsub.f32 1.5, %v239_v62  ;;  %v333_v62 = vld [vmem:[%s11847_s4 + $0x38] sm:$0xff]  ;;  %v330_v1 = vld [vmem:[%s11847_s4 + $0x20] sm:$0xff] }
  0xe5   :  { %v7413_v7 = vpop.eup %7412  ;;  %v8105_v8 = vadd.f32 %v204_v0, %v198_v63  ;;  %349 = vmatpush.msra.mxu2 %v334_v41  ;;  %v332_v63 = vld [vmem:[%s11847_s4 + $0x30] sm:$0xff]  ;;  %v331_v0 = vld [vmem:[%s11847_s4 + $0x28] sm:$0xff] }
  0xe6   :  { %v131_v10 = vpop.f32.mrf.mxu1  ;;  %v241_v12 = vmul.f32 %v7411_v46, %v240_v3  ;;  %v249_v13 = vmul.f32 %v7413_v7, %v8076_v47  ;;  %v328_v3 = vld [vmem:[%s11847_s4 + $0x10] sm:$0xff] }
  0xe7   :  { %v157_v15 = vmul.f32 %v145_v2, %v131_v10  ;;  %v175_v16 = vmul.f32 %v139_v38, %v131_v10  ;;  %7414 = vrsqrt.f32 %v8105_v8  ;;  %vm267_vm8 = vcmp.eq.f32.partialorder %v8105_v8, inf  ;;  %350 = vmatpush.msra.mxu2 %v333_v62  ;;  %v329_v2 = vld [vmem:[%s11847_s4 + $0x18] sm:$0xff]  ;;  %s7838_s4 = smov 127  }
  0xe8   :  { %v242_v18 = vmul.f32 %v241_v12, %v8055_v23  ;;  %v250_v39 = vmul.f32 %v7413_v7, %v249_v13  ;;  %v270_v52 = vand.u32 2147483648, %v8105_v8  ;;  %vm269_vm9 = vcmp.eq.f32.partialorder %v8105_v8, 0.0 }
  0xe9   :  { %v163_v20 = vsub.f32 %v151_v9, %v157_v15  ;;  %v181_v21 = vadd.f32 %v175_v16, %v169_v11  ;;  %351 = vmatpush.msra.mxu2 %v332_v63 }
  0xea   :  { %v244_v22 = vsel %vm243_vm4, %v8055_v23, %v242_v18  ;;  %v251_v24 = vmul.f32 0.5, %v250_v39 }
  0xeb   :  { %187 = vst [vmem:[%s11845_s7 + $0x28] sm:$0xff] %v163_v20  ;;  %v199_v26 = vmul.f32 %v163_v20, %v163_v20  ;;  %v205_v27 = vmul.f32 %v181_v21, %v181_v21  ;;  %v247_v28 = vsel %vm245_vm5, %v246_v17, %v244_v22  ;;  %352 = vmatpush.msra.mxu2 %v331_v0 }
  0xec   :  { %193 = vst [vmem:[%s11846_s8 + $0x28] sm:$0xff] %v181_v21  ;;  %288 = vadd.xlane.f32.xlu1 %v247_v28  ;;  %v252_v29 = vsub.f32 1.5, %v251_v24 }
  0xed   :  { %v7415_v31 = vpop.eup %7414  ;;  %v8134_v32 = vadd.f32 %v205_v27, %v199_v26  ;;  %353 = vmatpush.msra.mxu2 %v330_v1 }
  0xee   :  { %v253_v33 = vmul.f32 %v7413_v7, %v252_v29  ;;  %v261_v34 = vmul.f32 %v7415_v31, %v8105_v8 }
  0xef   :  { %7416 = vrsqrt.f32 %v8134_v32  ;;  %vm279_vm10 = vcmp.eq.f32.partialorder %v8134_v32, inf  ;;  %v282_v60 = vand.u32 2147483648, %v8134_v32  ;;  %vm281_vm11 = vcmp.eq.f32.partialorder %v8134_v32, 0.0  ;;  %354 = vmatpush.msra.mxu2 %v329_v2 }
  0xf0   :  { %v254_v37 = vmul.f32 %v253_v33, %v8076_v47  ;;  %v262_v40 = vmul.f32 %v7415_v31, %v261_v34 }
  0xf1   :  { %355 = vmatpush.msra.mxu2 %v328_v3 }
  0xf2   :  { %v256_v42 = vsel %vm255_vm6, %v8076_v47, %v254_v37  ;;  %v263_v43 = vmul.f32 0.5, %v262_v40 }
  0xf3   :  { %v259_v44 = vsel %vm257_vm7, %v258_v36, %v256_v42  ;;  %356 = vmatpush.msra.mxu2 %v327_v4 }
  0xf4   :  { %290 = vadd.xlane.f32.xlu1 %v259_v44  ;;  %v264_v45 = vsub.f32 1.5, %v263_v43 }
  0xf5   :  { %v7417_v46 = vpop.eup %7416  ;;  %357 = vmatpush.msra.mxu2 %v326_v6 }
  0xf6   :  { %v265_v48 = vmul.f32 %v7415_v31, %v264_v45  ;;  %v273_v49 = vmul.f32 %v7417_v46, %v8134_v32 }
  0xf8   :  { %v266_v50 = vmul.f32 %v265_v48, %v8105_v8  ;;  %v274_v51 = vmul.f32 %v7417_v46, %v273_v49 }
  0xfa   :  { %v268_v53 = vsel %vm267_vm8, %v8105_v8, %v266_v50  ;;  %v275_v54 = vmul.f32 0.5, %v274_v51 }
  0xfb   :  { %v271_v56 = vsel %vm269_vm9, %v270_v52, %v268_v53 }
  0xfc   :  { %292 = vadd.xlane.f32.xlu2 %v271_v56  ;;  %v276_v57 = vsub.f32 1.5, %v275_v54  ;;  %v7840_v54 = vmov 1  }
  0xfd   :  { %7400 = vset.pattern.permute.xlu0 %v7840_v54  ;;  %7401 = vset.pattern.permute.xlu1 %v7840_v54 }
  0xfe   :  { %v277_v58 = vmul.f32 %v7417_v46, %v276_v57  ;;  %7402 = vset.pattern.permute.xlu2 %v7840_v54  ;;  %v389_v54 = vlaneseq }
 0x100   :  { %v278_v59 = vmul.f32 %v277_v58, %v8134_v32 }
 0x102   :  { %v280_v61 = vsel %vm279_vm10, %v8134_v32, %v278_v59 }
 0x103   :  { %v283_v38 = vsel %vm281_vm11, %v282_v60, %v280_v61 }
 0x104   :  { %294 = vadd.xlane.f32.xlu2 %v283_v38 }
 0x14f   :  { %v285_v7 = vpop.xlane.xlu0 %284 }
 0x150   :  { %v296_v9 = vmul.f32 0.015384615, %v285_v7 }
 0x152   :  { %v302_v10 = vmax.f32 %v296_v9, 1e-07 }
 0x154   :  { %v308_v11 = vmul.f32 %v302_v10, %v302_v10 }
 0x156   :  { %7418 = vrcp.f32 %v308_v11 }
 0x157   :  { %v287_v12 = vpop.xlane.xlu0 %286 }
 0x158   :  { %v297_v13 = vmul.f32 0.015384615, %v287_v12 }
 0x15a   :  { %v303_v14 = vmax.f32 %v297_v13, 1e-07 }
 0x15c   :  { %v7419_v15 = vpop.eup %7418  ;;  %v309_v16 = vmul.f32 %v303_v14, %v303_v14 }
 0x15d   :  { %v320_v17 = vmul.f32 %v7419_v15, %v8024_v55 }
 0x15e   :  { %7420 = vrcp.f32 %v309_v16 }
 0x15f   :  { %358 = vmatmul.f32.vlgmr.msra.gmra.mxu2 %v320_v17  ;;  %v289_v18 = vpop.xlane.xlu1 %288 }
 0x160   :  { %v298_v39 = vmul.f32 0.015384615, %v289_v18 }
 0x162   :  { %v304_v19 = vmax.f32 %v298_v39, 1e-07 }
 0x164   :  { %v7421_v20 = vpop.eup %7420  ;;  %v310_v21 = vmul.f32 %v304_v19, %v304_v19 }
 0x165   :  { %v321_v22 = vmul.f32 %v7421_v20, %v8039_v5 }
 0x166   :  { %7422 = vrcp.f32 %v310_v21 }
 0x167   :  { %361 = vmatmul.f32.gmra.mxu2 %v321_v22  ;;  %v291_v24 = vpop.xlane.xlu1 %290 }
 0x168   :  { %v299_v25 = vmul.f32 0.015384615, %v291_v24 }
 0x16a   :  { %v305_v26 = vmax.f32 %v299_v25, 1e-07 }
 0x16c   :  { %v7423_v27 = vpop.eup %7422  ;;  %v311_v28 = vmul.f32 %v305_v26, %v305_v26 }
 0x16d   :  { %v322_v29 = vmul.f32 %v7423_v27, %v8055_v23 }
 0x16e   :  { %7424 = vrcp.f32 %v311_v28 }
 0x16f   :  { %v293_v55 = vpop.xlane.xlu2 %292  ;;  %364 = vmatmul.f32.gmra.mxu2 %v322_v29 }
 0x170   :  { %v300_v30 = vmul.f32 0.015384615, %v293_v55 }
 0x172   :  { %v306_v31 = vmax.f32 %v300_v30, 1e-07 }
 0x174   :  { %v7425_v33 = vpop.eup %7424  ;;  %v312_v34 = vmul.f32 %v306_v31, %v306_v31 }
 0x175   :  { %v323_v35 = vmul.f32 %v7425_v33, %v8076_v47 }
 0x176   :  { %7426 = vrcp.f32 %v312_v34 }
 0x177   :  { %v295_v5 = vpop.xlane.xlu2 %294  ;;  %367 = vmatmul.f32.gmra.mxu2 %v323_v35 }
 0x178   :  { %v301_v36 = vmul.f32 0.015384615, %v295_v5 }
 0x17a   :  { %v307_v37 = vmax.f32 %v301_v36, 1e-07 }
 0x17c   :  { %v7427_v40 = vpop.eup %7426  ;;  %v313_v41 = vmul.f32 %v307_v37, %v307_v37 }
 0x17d   :  { %v324_v42 = vmul.f32 %v7427_v40, %v8105_v8 }
 0x17e   :  { %7428 = vrcp.f32 %v313_v41 }
 0x17f   :  { %370 = vmatmul.f32.gmra.mxu2 %v324_v42 }
 0x184   :  { %v7429_v23 = vpop.eup %7428 }
 0x185   :  { %v325_v43 = vmul.f32 %v7429_v23, %v8134_v32 }
 0x187   :  { %373 = vmatmul.f32.gmra.mxu2 %v325_v43 }
 0x1e2   :  { %v8190_v44 = vpop.f32.mrf.mxu2 }
 0x1e3   :  { %377 = vrot.lane.b32.xlu2 %v8190_v44, %s7838_s4  ;;  %v406_v47 = vmax.f32 %v8190_v44, 1e-07  ;;  %v400_v7 = vsub.f32 0.0, %v8190_v44 }
 0x1e5   :  { %418 = vrot.lane.b32.xlu0 %v406_v47, %s7839_s3 }
 0x1ea   :  { %v8196_v45 = vpop.f32.mrf.mxu2 }
 0x1eb   :  { %379 = vrot.lane.b32.xlu2 %v8196_v45, %s7838_s4  ;;  %v407_v8 = vmax.f32 %v8196_v45, 1e-07  ;;  %v401_v26 = vsub.f32 0.0, %v8196_v45 }
 0x1ed   :  { %420 = vrot.lane.b32.xlu1 %v407_v8, %s7839_s3 }
 0x1f2   :  { %v8202_v32 = vpop.f32.mrf.mxu2 }
 0x1f3   :  { %381 = vrot.lane.b32.xlu0 %v8202_v32, %s7838_s4  ;;  %v408_v46 = vmax.f32 %v8202_v32, 1e-07  ;;  %v402_v47 = vsub.f32 0.0, %v8202_v32 }
 0x1f5   :  { %422 = vrot.lane.b32.xlu2 %v408_v46, %s7839_s3 }
 0x1fa   :  { %v8208_v48 = vpop.f32.mrf.mxu2 }
 0x1fb   :  { %383 = vrot.lane.b32.xlu0 %v8208_v48, %s7838_s4  ;;  %v409_v49 = vmax.f32 %v8208_v48, 1e-07 }
 0x202   :  { %v8213_v50 = vpop.f32.mrf.mxu2 }
 0x203   :  { %424 = vrot.lane.b32.xlu0 %v409_v49, %s7839_s3  ;;  %v410_v51 = vmax.f32 %v8213_v50, 1e-07 }
 0x205   :  { %426 = vrot.lane.b32.xlu2 %v410_v51, %s7839_s3 }
 0x20a   :  { %v8218_v52 = vpop.f32.mrf.mxu2 }
 0x20b   :  { %385 = vrot.lane.b32.xlu0 %v8213_v50, %s7838_s4  ;;  %v411_v53 = vmax.f32 %v8218_v52, 1e-07 }
 0x20d   :  { %428 = vrot.lane.b32.xlu1 %v411_v53, %s7839_s3 }
 0x213   :  { %387 = vrot.lane.b32.xlu0 %v8218_v52, %s7838_s4 }
 0x23d   :  { %v8226_v56 = vpop.permute.xlu2 %377 }
 0x245   :  { %v8228_v58 = vpop.permute.xlu2 %379 }
 0x24f   :  { %v8230_v38 = vpop.permute.xlu2 %422 }
 0x250   :  { %v477_v34 = vand.u32 2147483648, %v8230_v38  ;;  %vm471_vm5 = vweird.f32 %v8230_v38  ;;  %v475_v5 = vand.u32 2147483647, %v8230_v38 }
 0x252   :  { %v478_v42 = vor.u32 1.1754944e-38, %v477_v34  ;;  %vm476_vm7 = vcmp.eq.f32.partialorder %v475_v5, 8.507059e+37 }
 0x257   :  { %v419_v57 = vpop.permute.xlu0 %418 }
 0x258   :  { %7430 = vrcp.f32 %v419_v57  ;;  %v447_v63 = vand.u32 2147483648, %v419_v57  ;;  %v445_v1 = vand.u32 2147483647, %v419_v57  ;;  %vm441_vm13 = vweird.f32 %v419_v57 }
 0x25a   :  { %v448_v4 = vor.u32 1.1754944e-38, %v447_v63  ;;  %vm446_vm15 = vcmp.eq.f32.partialorder %v445_v1, 8.507059e+37 }
 0x25e   :  { %v7431_v59 = vpop.eup %7430 }
 0x25f   :  { %v437_v60 = vmul.f32 %v7431_v59, %v419_v57  ;;  %v421_v61 = vpop.permute.xlu1 %420  ;;  %vm442_vm12 = vweird.f32 %v7431_v59  ;;  %v8237_v17 = vpop.permute.xlu2 %426 }
 0x260   :  { %7432 = vrcp.f32 %v421_v61  ;;  %vm443_vm14 = vmor %vm441_vm13, %vm442_vm12  ;;  %v462_v16 = vand.u32 2147483648, %v421_v61  ;;  %v460_v39 = vand.u32 2147483647, %v421_v61  ;;  %vm456_vm1 = vweird.f32 %v421_v61 }
 0x261   :  { %v438_v62 = vsub.f32 1.0, %v437_v60  ;;  %7434 = vrcp.f32 %v8230_v38  ;;  %v390_v60 = vand.u32 127, %v389_v54 }
 0x262   :  { %7436 = vrcp.f32 %v8237_v17  ;;  %v463_v22 = vor.u32 1.1754944e-38, %v462_v16  ;;  %vm461_vm3 = vcmp.eq.f32.partialorder %v460_v39, 8.507059e+37 }
 0x263   :  { %v439_v0 = vmul.f32 %v7431_v59, %v438_v62  ;;  %vm397_vm13 = vcmp.gt.s32.totalorder %v390_v60, 0 }
 0x265   :  { %v8233_v2 = vpop.permute.xlu0 %381  ;;  %v440_v3 = vadd.f32 %v7431_v59, %v439_v0 }
 0x266   :  { %v7433_v6 = vpop.eup %7432 }
 0x267   :  { %v444_v9 = vsel %vm443_vm14, %v7431_v59, %v440_v3  ;;  %v452_v10 = vmul.f32 %v7433_v6, %v421_v61  ;;  %v7435_v13 = vpop.eup %7434  ;;  %vm457_vm0 = vweird.f32 %v7433_v6  ;;  %v403_v61 = vsub.f32 0.0, %v8208_v48 }
 0x268   :  { %v449_v11 = vsel %vm446_vm15, %v448_v4, %v444_v9  ;;  %v467_v19 = vmul.f32 %v7435_v13, %v8230_v38  ;;  %vm458_vm2 = vmor %vm456_vm1, %vm457_vm0  ;;  %v8245_v29 = vpop.eup %7436  ;;  %vm472_vm4 = vweird.f32 %v7435_v13  ;;  %v507_v3 = vand.u32 2147483648, %v8237_v17 }
 0x269   :  { %v450_v12 = vmul.f32 %v449_v11, %v400_v7  ;;  %v453_v14 = vsub.f32 1.0, %v452_v10  ;;  %v497_v31 = vmul.f32 %v8245_v29, %v8237_v17  ;;  %vm473_vm6 = vmor %vm471_vm5, %vm472_vm4  ;;  %vm502_vm11 = vweird.f32 %v8245_v29 }
 0x26a   :  { %v468_v25 = vsub.f32 1.0, %v467_v19  ;;  %v7841_v4 = vmov 0.0   ;;  %vm501_vm14 = vweird.f32 %v8237_v17  ;;  %v505_v10 = vand.u32 2147483647, %v8237_v17 }
 0x26b   :  { %528 = vperm.xlu0 %7400, %v450_v12   ;;  %v580_v15 = vmul.f32 %v450_v12, %v8190_v44  ;;  %v454_v18 = vmul.f32 %v7433_v6, %v453_v14  ;;  %v498_v37 = vsub.f32 1.0, %v497_v31  ;;  %vm503_vm15 = vmor %vm501_vm14, %vm502_vm11  ;;  %vm391_vm5 = vcmp.eq.s32.totalorder %v390_v60, 0 }
 0x26c   :  { %v469_v30 = vmul.f32 %v7435_v13, %v468_v25  ;;  %vm506_vm0 = vcmp.eq.f32.partialorder %v505_v10, 8.507059e+37 }
 0x26d   :  { %v8240_v20 = vpop.permute.xlu0 %383  ;;  %592 = vrot.lane.b32.xlu1 %v580_v15, %s7838_s4  ;;  %v455_v21 = vadd.f32 %v7433_v6, %v454_v18  ;;  %v499_v49 = vmul.f32 %v8245_v29, %v498_v37  ;;  %v404_v18 = vsub.f32 0.0, %v8213_v50 }
 0x26e   :  { %v470_v33 = vadd.f32 %v7435_v13, %v469_v30 }
 0x26f   :  { %v459_v24 = vsel %vm458_vm2, %v7433_v6, %v455_v21  ;;  %v500_v62 = vadd.f32 %v8245_v29, %v499_v49  ;;  %v8260_v6 = vsel %vm397_vm13, 1.0, %v7841_v4 }
 0x270   :  { %v464_v27 = vsel %vm461_vm3, %v463_v22, %v459_v24  ;;  %v474_v41 = vsel %vm473_vm6, %v7435_v13, %v470_v33  ;;  %v508_v13 = vor.u32 1.1754944e-38, %v507_v3  ;;  %vm394_vm6 = vcmp.eq.s32.totalorder %v390_v60, 1 }
 0x271   :  { %v465_v28 = vmul.f32 %v464_v27, %v401_v26  ;;  %v479_v8 = vsel %vm476_vm7, %v478_v42, %v474_v41  ;;  %v504_v12 = vsel %vm503_vm15, %v8245_v29, %v500_v62  ;;  %v405_v27 = vsub.f32 0.0, %v8218_v52 }
 0x272   :  { %v480_v57 = vmul.f32 %v479_v8, %v402_v47  ;;  %v509_v16 = vsel %vm506_vm0, %v508_v13, %v504_v12  ;;  %v7360_v33 = vsel %vm391_vm5, 1.0, %v7841_v4  ;;  %v7361_v34 = vsel %vm394_vm6, 1.0, %v7841_v4 }
 0x273   :  { %v581_v35 = vmul.f32 %v465_v28, %v8196_v45  ;;  %v510_v21 = vmul.f32 %v509_v16, %v404_v18 }
 0x274   :  { %v582_v14 = vmul.f32 %v480_v57, %v8202_v32 }
 0x275   :  { %v425_v55 = vpop.permute.xlu0 %424  ;;  %533 = vperm.xlu1 %7401, %v465_v28   ;;  %v584_v29 = vmul.f32 %v510_v21, %v8213_v50 }
 0x276   :  { %7438 = vrcp.f32 %v425_v55  ;;  %v492_v46 = vand.u32 2147483648, %v425_v55  ;;  %v490_v53 = vand.u32 2147483647, %v425_v55  ;;  %vm486_vm9 = vweird.f32 %v425_v55 }
 0x278   :  { %v493_v38 = vor.u32 1.1754944e-38, %v492_v46  ;;  %vm491_vm12 = vcmp.eq.f32.partialorder %v490_v53, 8.507059e+37 }
 0x27c   :  { %v7439_v36 = vpop.eup %7438 }
 0x27d   :  { %v482_v40 = vmul.f32 %v7439_v36, %v425_v55  ;;  %594 = vrot.lane.b32.xlu1 %v581_v35, %s7838_s4  ;;  %vm487_vm8 = vweird.f32 %v7439_v36  ;;  %v8275_v30 = vpop.permute.xlu0 %385 }
 0x27e   :  { %vm488_vm10 = vmor %vm486_vm9, %vm487_vm8 }
 0x27f   :  { %v483_v23 = vsub.f32 1.0, %v482_v40  ;;  %v429_v43 = vpop.permute.xlu1 %428 }
 0x280   :  { %7440 = vrcp.f32 %v429_v43  ;;  %v522_v19 = vand.u32 2147483648, %v429_v43  ;;  %vm516_vm2 = vweird.f32 %v429_v43  ;;  %v520_v17 = vand.u32 2147483647, %v429_v43 }
 0x281   :  { %v484_v51 = vmul.f32 %v7439_v36, %v483_v23 }
 0x282   :  { %v523_v24 = vor.u32 1.1754944e-38, %v522_v19  ;;  %vm521_vm4 = vcmp.eq.f32.partialorder %v520_v17, 8.507059e+37 }
 0x283   :  { %v485_v59 = vadd.f32 %v7439_v36, %v484_v51 }
 0x285   :  { %538 = vperm.xlu1 %7401, %v480_v57   ;;  %v489_v63 = vsel %vm488_vm10, %v7439_v36, %v485_v59  ;;  %v8277_v31 = vpop.permute.xlu0 %387 }
 0x286   :  { %v7441_v0 = vpop.eup %7440  ;;  %v494_v1 = vsel %vm491_vm12, %v493_v38, %v489_v63 }
 0x287   :  { %v512_v7 = vmul.f32 %v7441_v0, %v429_v43  ;;  %v495_v9 = vmul.f32 %v494_v1, %v403_v61  ;;  %vm517_vm1 = vweird.f32 %v7441_v0 }
 0x288   :  { %vm518_vm3 = vmor %vm516_vm2, %vm517_vm1 }
 0x289   :  { %v513_v11 = vsub.f32 1.0, %v512_v7  ;;  %543 = vperm.xlu2 %7402, %v495_v9   ;;  %v583_v25 = vmul.f32 %v495_v9, %v8208_v48 }
 0x28b   :  { %v514_v15 = vmul.f32 %v7441_v0, %v513_v11 }
 0x28d   :  { %596 = vrot.lane.b32.xlu1 %v582_v14, %s7838_s4  ;;  %v515_v39 = vadd.f32 %v7441_v0, %v514_v15 }
 0x28f   :  { %v519_v22 = vsel %vm518_vm3, %v7441_v0, %v515_v39 }
 0x290   :  { %v524_v26 = vsel %vm521_vm4, %v523_v24, %v519_v22 }
 0x291   :  { %548 = vperm.xlu2 %7402, %v510_v21   ;;  %v525_v28 = vmul.f32 %v524_v26, %v405_v27  ;;  %v7842_v21 = vmov 0  }
 0x292   :  { %7405 = vset.pattern.permute.xlu1 %v7842_v21  ;;  %7404 = vset.pattern.permute.xlu0 %v7842_v21 }
 0x293   :  { %v585_v55 = vmul.f32 %v525_v28, %v8218_v52 }
 0x295   :  { %598 = vrot.lane.b32.xlu1 %v583_v25, %s7838_s4 }
 0x299   :  { %553 = vperm.xlu2 %7402, %v525_v28  }
 0x29d   :  { %600 = vrot.lane.b32.xlu1 %v584_v29, %s7838_s4 }
 0x2a1   :  { %602 = vrot.lane.b32.xlu2 %v585_v55, %s7838_s4 }
 0x2a2   :  { %7403 = vset.pattern.permute.xlu2 %v7842_v21 }
 0x2dd   :  { %v529_v35 = vpop.permute.xlu0 %528 }
 0x2de   :  { %v556_v5 = vmul.f32 %v7361_v34, %v529_v35  ;;  %v568_v36 = vmul.f32 %v7360_v33, %v529_v35 }
 0x2df   :  { %v593_v37 = vpop.permute.xlu1 %592 }
 0x2e0   :  { %v574_v40 = vadd.f32 %v7361_v34, %v568_v36  ;;  %v8279_v41 = vadd.f32 %v7360_v33, %v556_v5  ;;  %v8303_v39 = vadd.f32 %v593_v37, %v8190_v44 }
 0x2e2   :  { %736 = vrot.lane.b32.xlu0 %v574_v40, %s7839_s3  ;;  %v616_v42 = vmul.f32 %v574_v40, %v8226_v56  ;;  %v640_v19 = vmax.f32 %v8303_v39, 1e-07 }
 0x2e3   :  { %v544_v23 = vpop.permute.xlu2 %543 }
 0x2e4   :  { %v559_v43 = vmul.f32 %v7361_v34, %v544_v23  ;;  %622 = vadd.xlane.f32.xlu2 %v616_v42  ;;  %v571_v10 = vmul.f32 %v7360_v33, %v544_v23  ;;  %7442 = vrcp.f32 %v640_v19  ;;  %v657_v28 = vand.u32 2147483648, %v640_v19 }
 0x2e5   :  { %vm651_vm8 = vweird.f32 %v640_v19  ;;  %v655_v29 = vand.u32 2147483647, %v640_v19 }
 0x2e6   :  { %v8283_v47 = vadd.f32 %v7360_v33, %v559_v43  ;;  %v577_v11 = vadd.f32 %v7361_v34, %v571_v10 }
 0x2e7   :  { %v534_v8 = vpop.permute.xlu1 %533  ;;  %vm656_vm10 = vcmp.eq.f32.partialorder %v655_v29, 8.507059e+37 }
 0x2e8   :  { %v557_v46 = vmul.f32 %v7361_v34, %v534_v8  ;;  %v569_v49 = vmul.f32 %v7360_v33, %v534_v8  ;;  %v619_v15 = vmul.f32 %v577_v11, %v8240_v20 }
 0x2ea   :  { %v575_v51 = vadd.f32 %v7361_v34, %v569_v49  ;;  %v8285_v53 = vadd.f32 %v7360_v33, %v557_v46  ;;  %v7443_v17 = vpop.eup %7442 }
 0x2eb   :  { %v549_v54 = vpop.permute.xlu2 %548  ;;  %v647_v22 = vmul.f32 %v7443_v17, %v640_v19  ;;  %vm652_vm7 = vweird.f32 %v7443_v17 }
 0x2ec   :  { %v560_v57 = vmul.f32 %v7361_v34, %v549_v54  ;;  %738 = vrot.lane.b32.xlu1 %v575_v51, %s7839_s3  ;;  %v572_v12 = vmul.f32 %v7360_v33, %v549_v54  ;;  %v617_v13 = vmul.f32 %v575_v51, %v8228_v58  ;;  %vm653_vm9 = vmor %vm651_vm8, %vm652_vm7 }
 0x2ed   :  { %v648_v24 = vsub.f32 1.0, %v647_v22 }
 0x2ee   :  { %v8288_v59 = vadd.f32 %v7360_v33, %v560_v57  ;;  %v578_v14 = vadd.f32 %v7361_v34, %v572_v12 }
 0x2ef   :  { %v595_v60 = vpop.permute.xlu1 %594  ;;  %v649_v25 = vmul.f32 %v7443_v17, %v648_v24 }
 0x2f0   :  { %v620_v18 = vmul.f32 %v578_v14, %v8275_v30  ;;  %v8313_v40 = vadd.f32 %v595_v60, %v8196_v45 }
 0x2f1   :  { %v650_v27 = vadd.f32 %v7443_v17, %v649_v25 }
 0x2f2   :  { %v641_v42 = vmax.f32 %v8313_v40, 1e-07 }
 0x2f3   :  { %v554_v61 = vpop.permute.xlu2 %553  ;;  %v654_v44 = vsel %vm653_vm9, %v7443_v17, %v650_v27 }
 0x2f4   :  { %v561_v38 = vmul.f32 %v7361_v34, %v554_v61  ;;  %v573_v62 = vmul.f32 %v7360_v33, %v554_v61  ;;  %7444 = vrcp.f32 %v641_v42  ;;  %vm666_vm12 = vweird.f32 %v641_v42 }
 0x2f6   :  { %v579_v63 = vadd.f32 %v7361_v34, %v573_v62  ;;  %v8290_v0 = vadd.f32 %v7360_v33, %v561_v38 }
 0x2f7   :  { %v539_v1 = vpop.permute.xlu1 %538 }
 0x2f8   :  { %v558_v3 = vmul.f32 %v7361_v34, %v539_v1  ;;  %v570_v4 = vmul.f32 %v7360_v33, %v539_v1 }
 0x2fa   :  { %v576_v7 = vadd.f32 %v7361_v34, %v570_v4  ;;  %v8292_v9 = vadd.f32 %v7360_v33, %v558_v3  ;;  %v658_v33 = vor.u32 1.1754944e-38, %v657_v28  ;;  %v621_v34 = vmul.f32 %v579_v63, %v8277_v31  ;;  %v7445_v49 = vpop.eup %7444 }
 0x2fb   :  { %v8306_v26 = vpop.permute.xlu2 %602  ;;  %v662_v57 = vmul.f32 %v7445_v49, %v641_v42  ;;  %vm667_vm11 = vweird.f32 %v7445_v49 }
 0x2fc   :  { %740 = vrot.lane.b32.xlu2 %v576_v7, %s7839_s3  ;;  %v618_v16 = vmul.f32 %v576_v7, %v8233_v2  ;;  %v659_v36 = vsel %vm656_vm10, %v658_v33, %v654_v44  ;;  %v672_v7 = vand.u32 2147483648, %v641_v42  ;;  %vm668_vm13 = vmor %vm666_vm12, %vm667_vm11 }
 0x2fd   :  { %v663_v60 = vsub.f32 1.0, %v662_v57 }
 0x2ff   :  { %v597_v35 = vpop.permute.xlu1 %596 }
 0x300   :  { %v8320_v8 = vadd.f32 %v597_v35, %v8202_v32  ;;  %v664_v32 = vmul.f32 %v7445_v49, %v663_v60 }
 0x302   :  { %v642_v51 = vmax.f32 %v8320_v8, 1e-07  ;;  %v665_v3 = vadd.f32 %v7445_v49, %v664_v32 }
 0x304   :  { %742 = vrot.lane.b32.xlu2 %v577_v11, %s7839_s3  ;;  %v669_v12 = vsel %vm668_vm13, %v7445_v49, %v665_v3  ;;  %v687_v44 = vand.u32 2147483648, %v642_v51  ;;  %vm681_vm3 = vweird.f32 %v642_v51  ;;  %v685_v33 = vand.u32 2147483647, %v642_v51 }
 0x306   :  { %v688_v49 = vor.u32 1.1754944e-38, %v687_v44  ;;  %vm686_vm6 = vcmp.eq.f32.partialorder %v685_v33, 8.507059e+37 }
 0x307   :  { %v599_v23 = vpop.permute.xlu1 %598 }
 0x308   :  { %v8317_v43 = vadd.f32 %v599_v23, %v8208_v48 }
 0x30a   :  { %v643_v46 = vmax.f32 %v8317_v43, 1e-07 }
 0x30c   :  { %624 = vadd.xlane.f32.xlu0 %v617_v13  ;;  %744 = vrot.lane.b32.xlu2 %v578_v14, %s7839_s3  ;;  %7446 = vrcp.f32 %v643_v46  ;;  %v702_v25 = vand.u32 2147483648, %v643_v46  ;;  %vm696_vm1 = vweird.f32 %v643_v46  ;;  %v700_v27 = vand.u32 2147483647, %v643_v46 }
 0x30d   :  { %7448 = vrcp.f32 %v642_v51 }
 0x30e   :  { %v703_v35 = vor.u32 1.1754944e-38, %v702_v25  ;;  %vm701_vm5 = vcmp.eq.f32.partialorder %v700_v27, 8.507059e+37 }
 0x30f   :  { %v601_v54 = vpop.permute.xlu1 %600 }
 0x310   :  { %v8325_v45 = vadd.f32 %v601_v54, %v8213_v50  ;;  %v670_v50 = vand.u32 2147483647, %v641_v42 }
 0x312   :  { %v7447_v61 = vpop.eup %7446  ;;  %v8328_v48 = vmax.f32 %v8325_v45, 1e-07  ;;  %vm671_vm14 = vcmp.eq.f32.partialorder %v670_v50, 8.507059e+37 }
 0x313   :  { %v7449_v38 = vpop.eup %7448  ;;  %v692_v62 = vmul.f32 %v7447_v61, %v643_v46  ;;  %vm697_vm15 = vweird.f32 %v7447_v61 }
 0x314   :  { %628 = vadd.xlane.f32.xlu0 %v619_v15  ;;  %7450 = vrcp.f32 %v8328_v48  ;;  %v677_v1 = vmul.f32 %v7449_v38, %v642_v51  ;;  %v673_v15 = vor.u32 1.1754944e-38, %v672_v7  ;;  %vm682_vm0 = vweird.f32 %v7449_v38  ;;  %vm698_vm2 = vmor %vm696_vm1, %vm697_vm15 }
 0x315   :  { %v693_v4 = vsub.f32 1.0, %v692_v62  ;;  %vm683_vm4 = vmor %vm681_vm3, %vm682_vm0  ;;  %vm711_vm8 = vweird.f32 %v8328_v48 }
 0x316   :  { %626 = vadd.xlane.f32.xlu1 %v618_v16  ;;  %v678_v10 = vsub.f32 1.0, %v677_v1  ;;  %v674_v17 = vsel %vm671_vm14, %v673_v15, %v669_v12 }
 0x317   :  { %v694_v13 = vmul.f32 %v7447_v61, %v693_v4 }
 0x319   :  { %v695_v24 = vadd.f32 %v7447_v61, %v694_v13  ;;  %v8353_v13 = vadd.f32 %v8306_v26, %v8218_v52 }
 0x31a   :  { %v7451_v11 = vpop.eup %7450 }
 0x31b   :  { %v707_v19 = vmul.f32 %v7451_v11, %v8328_v48  ;;  %vm712_vm7 = vweird.f32 %v7451_v11 }
 0x31c   :  { %630 = vadd.xlane.f32.xlu0 %v620_v18  ;;  %v679_v18 = vmul.f32 %v7449_v38, %v678_v10  ;;  %vm713_vm9 = vmor %vm711_vm8, %vm712_vm7 }
 0x31d   :  { %v708_v29 = vsub.f32 1.0, %v707_v19 }
 0x31e   :  { %v680_v28 = vadd.f32 %v7449_v38, %v679_v18 }
 0x31f   :  { %v709_v42 = vmul.f32 %v7451_v11, %v708_v29 }
 0x321   :  { %v710_v51 = vadd.f32 %v7451_v11, %v709_v42 }
 0x323   :  { %v714_v3 = vsel %vm713_vm9, %v7451_v11, %v710_v51 }
 0x32f   :  { %746 = vrot.lane.b32.xlu1 %v579_v63, %s7839_s3 }
 0x354   :  { %v8331_v63 = vpop.permute.xlu0 %736 }
 0x355   :  { %v748_v11 = vmul.f32 %v8260_v6, %v8331_v63 }
 0x357   :  { %v623_v55 = vpop.xlane.xlu2 %622 }
 0x358   :  { %v634_v5 = vsub.f32 0.0, %v623_v55  ;;  %v699_v55 = vsel %vm698_vm2, %v7447_v61, %v695_v24  ;;  %v717_v61 = vand.u32 2147483648, %v8328_v48 }
 0x359   :  { %632 = vadd.xlane.f32.xlu1 %v621_v34  ;;  %v704_v23 = vsel %vm701_vm5, %v703_v35, %v699_v55 }
 0x35a   :  { %v8309_v37 = vmul.f32 %v659_v36, %v634_v5  ;;  %v684_v36 = vsel %vm683_vm4, %v7449_v38, %v680_v28  ;;  %v715_v38 = vand.u32 2147483647, %v8328_v48  ;;  %v718_v4 = vor.u32 1.1754944e-38, %v717_v61 }
 0x35b   :  { %v689_v60 = vsel %vm686_vm6, %v688_v49, %v684_v36 }
 0x35c   :  { %756 = vperm.xlu2 %7403, %v8309_v37   ;;  %vm716_vm10 = vcmp.eq.f32.partialorder %v715_v38, 8.507059e+37 }
 0x35d   :  { %v719_v7 = vsel %vm716_vm10, %v718_v4, %v714_v3 }
 0x35e   :  { %v8334_v21 = vpop.permute.xlu1 %738 }
 0x35f   :  { %v741_v10 = vpop.permute.xlu2 %740 }
 0x367   :  { %v743_v12 = vpop.permute.xlu2 %742 }
 0x368   :  { %v751_v51 = vmul.f32 %v8260_v6, %v743_v12 }
 0x36f   :  { %v745_v48 = vpop.permute.xlu2 %744 }
 0x37f   :  { %v625_v14 = vpop.xlane.xlu0 %624 }
 0x380   :  { %v635_v16 = vsub.f32 0.0, %v625_v14  ;;  %v645_v14 = vmax.f32 %v8353_v13, 1e-07 }
 0x382   :  { %v8336_v22 = vmul.f32 %v674_v17, %v635_v16  ;;  %7452 = vrcp.f32 %v645_v14  ;;  %v732_v29 = vand.u32 2147483648, %v645_v14  ;;  %vm726_vm12 = vweird.f32 %v645_v14 }
 0x383   :  { %v730_v63 = vand.u32 2147483647, %v645_v14 }
 0x384   :  { %761 = vperm.xlu2 %7403, %v8336_v22   ;;  %v733_v55 = vor.u32 1.1754944e-38, %v732_v29 }
 0x385   :  { %vm731_vm14 = vcmp.eq.f32.partialorder %v730_v63, 8.507059e+37 }
 0x387   :  { %v629_v34 = vpop.xlane.xlu0 %628 }
 0x388   :  { %v637_v5 = vsub.f32 0.0, %v629_v34  ;;  %v7453_v19 = vpop.eup %7452 }
 0x389   :  { %v627_v54 = vpop.xlane.xlu1 %626  ;;  %v722_v52 = vmul.f32 %v7453_v19, %v645_v14  ;;  %vm727_vm11 = vweird.f32 %v7453_v19 }
 0x38a   :  { %v8339_v57 = vmul.f32 %v704_v23, %v637_v5  ;;  %v636_v46 = vsub.f32 0.0, %v627_v54  ;;  %vm728_vm13 = vmor %vm726_vm12, %vm727_vm11  ;;  %v749_v5 = vmul.f32 %v8260_v6, %v8334_v21  ;;  %v750_v21 = vmul.f32 %v8260_v6, %v741_v10 }
 0x38b   :  { %v723_v26 = vsub.f32 1.0, %v722_v52  ;;  %v752_v10 = vmul.f32 %v8260_v6, %v745_v48  ;;  %v808_v48 = vmul.f32 %v8309_v37, %v8309_v37 }
 0x38c   :  { %v8341_v32 = vmul.f32 %v689_v60, %v636_v46  ;;  %771 = vperm.xlu1 %7405, %v8339_v57  }
 0x38d   :  { %v724_v25 = vmul.f32 %v7453_v19, %v723_v26 }
 0x38e   :  { %766 = vperm.xlu0 %7404, %v8341_v32  }
 0x38f   :  { %v631_v62 = vpop.xlane.xlu0 %630  ;;  %v725_v28 = vadd.f32 %v7453_v19, %v724_v25 }
 0x390   :  { %v638_v1 = vsub.f32 0.0, %v631_v62 }
 0x391   :  { %v729_v44 = vsel %vm728_vm13, %v7453_v19, %v725_v28  ;;  %v809_v28 = vmul.f32 %v8336_v22, %v8336_v22 }
 0x392   :  { %v8348_v50 = vmul.f32 %v719_v7, %v638_v1  ;;  %v734_v35 = vsel %vm731_vm14, %v733_v55, %v729_v44 }
 0x393   :  { %v815_v63 = vsub.f32 1.0, %v809_v28 }
 0x396   :  { %776 = vperm.xlu0 %7404, %v8348_v50  }
 0x3a1   :  { %v747_v27 = vpop.permute.xlu1 %746 }
 0x3b6   :  { %v757_v15 = vpop.permute.xlu2 %756 }
 0x3b7   :  { %v784_v16 = vmul.f32 %v757_v15, %v748_v11  ;;  %v796_v18 = vmul.f32 %v757_v15, %v8279_v41 }
 0x3b9   :  { %v802_v17 = vadd.f32 %v796_v18, %v748_v11  ;;  %v8360_v24 = vadd.f32 %v784_v16, %v8279_v41 }
 0x3bb   :  { %946 = vrot.lane.b32.xlu0 %v802_v17, %s7839_s3  ;;  %v826_v60 = vmul.f32 %v802_v17, %v8226_v56 }
 0x3cc   :  { %v633_v33 = vpop.xlane.xlu1 %632 }
 0x3cd   :  { %v639_v34 = vsub.f32 0.0, %v633_v33 }
 0x3cf   :  { %v8363_v41 = vmul.f32 %v734_v35, %v639_v34 }
 0x3d1   :  { %781 = vperm.xlu2 %7403, %v8363_v41  }
 0x3de   :  { %v762_v36 = vpop.permute.xlu2 %761 }
 0x3df   :  { %v785_v42 = vmul.f32 %v762_v36, %v749_v5  ;;  %v797_v23 = vmul.f32 %v762_v36, %v8285_v53 }
 0x3e1   :  { %v803_v49 = vadd.f32 %v797_v23, %v749_v5  ;;  %v8370_v54 = vadd.f32 %v785_v42, %v8285_v53  ;;  %v811_v23 = vmul.f32 %v8339_v57, %v8339_v57 }
 0x3e3   :  { %948 = vrot.lane.b32.xlu2 %v803_v49, %s7839_s3  ;;  %v827_v46 = vmul.f32 %v803_v49, %v8228_v58 }
 0x3e5   :  { %834 = vadd.xlane.f32.xlu1 %v827_v46  ;;  %832 = vadd.xlane.f32.xlu0 %v826_v60 }
 0x3fe   :  { %v772_v61 = vpop.permute.xlu1 %771 }
 0x3ff   :  { %v787_v38 = vmul.f32 %v772_v61, %v751_v51  ;;  %v799_v62 = vmul.f32 %v772_v61, %v8283_v47 }
 0x400   :  { %v767_v1 = vpop.permute.xlu0 %766 }
 0x401   :  { %v786_v3 = vmul.f32 %v767_v1, %v750_v21  ;;  %v798_v53 = vmul.f32 %v767_v1, %v8292_v9  ;;  %v805_v4 = vadd.f32 %v799_v62, %v751_v51  ;;  %v8380_v7 = vadd.f32 %v787_v38, %v8283_v47 }
 0x402   :  { %v810_v1 = vmul.f32 %v8341_v32, %v8341_v32 }
 0x403   :  { %v804_v14 = vadd.f32 %v798_v53, %v750_v21  ;;  %v829_v11 = vmul.f32 %v805_v4, %v8240_v20  ;;  %v8384_v15 = vadd.f32 %v786_v3, %v8292_v9  ;;  %v753_v9 = vmul.f32 %v8260_v6, %v747_v27 }
 0x404   :  { %v8408_v27 = vmul.f32 %v815_v63, %v8313_v40  ;;  %v816_v32 = vsub.f32 1.0, %v810_v1 }
 0x405   :  { %950 = vrot.lane.b32.xlu1 %v804_v14, %s7839_s3  ;;  %838 = vadd.xlane.f32.xlu0 %v829_v11  ;;  %v828_v18 = vmul.f32 %v804_v14, %v8233_v2 }
 0x406   :  { %v851_v37 = vmax.f32 %v8408_v27, 1e-07 }
 0x408   :  { %v777_v12 = vpop.permute.xlu0 %776  ;;  %v882_v62 = vand.u32 2147483648, %v851_v37  ;;  %vm876_vm3 = vweird.f32 %v851_v37  ;;  %v880_v57 = vand.u32 2147483647, %v851_v37 }
 0x409   :  { %v788_v16 = vmul.f32 %v777_v12, %v752_v10  ;;  %v800_v47 = vmul.f32 %v777_v12, %v8288_v59 }
 0x40a   :  { %v883_v12 = vor.u32 1.1754944e-38, %v882_v62  ;;  %vm881_vm6 = vcmp.eq.f32.partialorder %v880_v57, 8.507059e+37 }
 0x40b   :  { %v8390_v19 = vadd.f32 %v788_v16, %v8288_v59  ;;  %v806_v17 = vadd.f32 %v800_v47, %v752_v10  ;;  %v814_v59 = vsub.f32 1.0, %v808_v48  ;;  %v8436_v48 = vmul.f32 %v816_v32, %v8320_v8 }
 0x40c   :  { %836 = vadd.xlane.f32.xlu2 %v828_v18  ;;  %v813_v32 = vmul.f32 %v8363_v41, %v8363_v41 }
 0x40d   :  { %v830_v25 = vmul.f32 %v806_v17, %v8275_v30  ;;  %v8405_v44 = vmul.f32 %v814_v59, %v8303_v39 }
 0x40f   :  { %v850_v55 = vmax.f32 %v8405_v44, 1e-07 }
 0x411   :  { %7454 = vrcp.f32 %v850_v55  ;;  %vm861_vm1 = vweird.f32 %v850_v55  ;;  %v865_v21 = vand.u32 2147483647, %v850_v55  ;;  %v867_v38 = vand.u32 2147483648, %v850_v55 }
 0x412   :  { %7456 = vrcp.f32 %v851_v37 }
 0x413   :  { %vm866_vm5 = vcmp.eq.f32.partialorder %v865_v21, 8.507059e+37  ;;  %v868_v11 = vor.u32 1.1754944e-38, %v867_v38 }
 0x417   :  { %v7455_v33 = vpop.eup %7454 }
 0x418   :  { %v7457_v34 = vpop.eup %7456  ;;  %v857_v5 = vmul.f32 %v7455_v33, %v850_v55  ;;  %vm862_vm15 = vweird.f32 %v7455_v33 }
 0x419   :  { %954 = vrot.lane.b32.xlu0 %v806_v17, %s7839_s3  ;;  %v872_v36 = vmul.f32 %v7457_v34, %v851_v37  ;;  %vm877_vm0 = vweird.f32 %v7457_v34  ;;  %vm8421_vm2 = vmor %vm861_vm1, %vm862_vm15 }
 0x41a   :  { %v858_v42 = vsub.f32 1.0, %v857_v5  ;;  %vm878_vm4 = vmor %vm876_vm3, %vm877_vm0 }
 0x41b   :  { %v873_v40 = vsub.f32 1.0, %v872_v36 }
 0x41c   :  { %v859_v49 = vmul.f32 %v7455_v33, %v858_v42  ;;  %v812_v42 = vmul.f32 %v8348_v50, %v8348_v50 }
 0x41d   :  { %v874_v46 = vmul.f32 %v7457_v34, %v873_v40 }
 0x41e   :  { %v860_v51 = vadd.f32 %v7455_v33, %v859_v49  ;;  %v818_v21 = vsub.f32 1.0, %v812_v42 }
 0x41f   :  { %v875_v61 = vadd.f32 %v7457_v34, %v874_v46 }
 0x420   :  { %v8449_v50 = vmul.f32 %v818_v21, %v8325_v45 }
 0x421   :  { %v879_v14 = vsel %vm878_vm4, %v7457_v34, %v875_v61 }
 0x424   :  { %952 = vrot.lane.b32.xlu2 %v805_v4, %s7839_s3  ;;  %v864_v4 = vsel %vm8421_vm2, %v7455_v33, %v860_v51 }
 0x42b   :  { %v782_v52 = vpop.permute.xlu2 %781 }
 0x42c   :  { %v789_v26 = vmul.f32 %v782_v52, %v753_v9  ;;  %v801_v22 = vmul.f32 %v782_v52, %v8290_v0  ;;  %v884_v52 = vsel %vm881_vm6, %v883_v12, %v879_v14 }
 0x42d   :  { %v8417_v60 = vpop.permute.xlu0 %946 }
 0x42e   :  { %v8402_v29 = vadd.f32 %v789_v26, %v8290_v0  ;;  %v807_v35 = vadd.f32 %v801_v22, %v753_v9  ;;  %v817_v0 = vsub.f32 1.0, %v811_v23  ;;  %v869_v9 = vsel %vm866_vm5, %v868_v11, %v864_v4 }
 0x42f   :  { %840 = vadd.xlane.f32.xlu1 %v830_v25  ;;  %v852_v25 = vmax.f32 %v8436_v48, 1e-07  ;;  %v854_v11 = vmax.f32 %v8449_v50, 1e-07 }
 0x430   :  { %v831_v39 = vmul.f32 %v807_v35, %v8277_v31  ;;  %v8426_v53 = vmul.f32 %v817_v0, %v8317_v43 }
 0x431   :  { %v897_v61 = vand.u32 2147483648, %v852_v25  ;;  %vm891_vm12 = vweird.f32 %v852_v25  ;;  %v895_v38 = vand.u32 2147483647, %v852_v25  ;;  %vm921_vm0 = vweird.f32 %v854_v11 }
 0x432   :  { %v853_v17 = vmax.f32 %v8426_v53, 1e-07 }
 0x433   :  { %v898_v1 = vor.u32 1.1754944e-38, %v897_v61  ;;  %vm896_vm14 = vcmp.eq.f32.partialorder %v895_v38, 8.507059e+37 }
 0x434   :  { %7458 = vrcp.f32 %v853_v17  ;;  %vm906_vm8 = vweird.f32 %v853_v17  ;;  %v910_v8 = vand.u32 2147483647, %v853_v17 }
 0x435   :  { %7460 = vrcp.f32 %v852_v25 }
 0x436   :  { %vm911_vm10 = vcmp.eq.f32.partialorder %v910_v8, 8.507059e+37  ;;  %7462 = vrcp.f32 %v854_v11 }
 0x43a   :  { %v7459_v28 = vpop.eup %7458 }
 0x43b   :  { %v902_v59 = vmul.f32 %v7459_v28, %v853_v17  ;;  %v7461_v63 = vpop.eup %7460  ;;  %vm907_vm7 = vweird.f32 %v7459_v28 }
 0x43c   :  { %v887_v37 = vmul.f32 %v7461_v63, %v852_v25  ;;  %vm908_vm9 = vmor %vm906_vm8, %vm907_vm7  ;;  %vm892_vm11 = vweird.f32 %v7461_v63  ;;  %v925_v25 = vand.u32 2147483647, %v854_v11 }
 0x43d   :  { %v903_v55 = vsub.f32 1.0, %v902_v59  ;;  %v8441_v36 = vpop.permute.xlu2 %948  ;;  %vm893_vm13 = vmor %vm891_vm12, %vm892_vm11 }
 0x43e   :  { %v888_v33 = vsub.f32 1.0, %v887_v37  ;;  %vm926_vm2 = vcmp.eq.f32.partialorder %v925_v25, 8.507059e+37 }
 0x43f   :  { %v904_v22 = vmul.f32 %v7459_v28, %v903_v55 }
 0x440   :  { %v889_v5 = vmul.f32 %v7461_v63, %v888_v33 }
 0x441   :  { %v905_v34 = vadd.f32 %v7459_v28, %v904_v22 }
 0x442   :  { %v890_v0 = vadd.f32 %v7461_v63, %v889_v5 }
 0x444   :  { %v894_v62 = vsel %vm893_vm13, %v7461_v63, %v890_v0 }
 0x445   :  { %v899_v4 = vsel %vm896_vm14, %v898_v1, %v894_v62  ;;  %v958_v62 = vmul.f32 %v8260_v6, %v8417_v60  ;;  %v959_v1 = vmul.f32 %v8260_v6, %v8441_v36 }
 0x448   :  { %956 = vrot.lane.b32.xlu1 %v807_v35, %s7839_s3  ;;  %v912_v35 = vand.u32 2147483648, %v853_v17 }
 0x44a   :  { %v913_v40 = vor.u32 1.1754944e-38, %v912_v35 }
 0x44d   :  { %842 = vadd.xlane.f32.xlu2 %v831_v39  ;;  %v909_v39 = vsel %vm908_vm9, %v7459_v28, %v905_v34 }
 0x44e   :  { %v914_v46 = vsel %vm911_vm10, %v913_v40, %v909_v39 }
 0x458   :  { %v833_v10 = vpop.xlane.xlu0 %832  ;;  %v835_v16 = vpop.xlane.xlu1 %834 }
 0x459   :  { %v844_v18 = vsub.f32 0.0, %v833_v10  ;;  %v845_v47 = vsub.f32 0.0, %v835_v16  ;;  %v7463_v10 = vpop.eup %7462 }
 0x45a   :  { %v917_v12 = vmul.f32 %v7463_v10, %v854_v11  ;;  %vm922_vm15 = vweird.f32 %v7463_v10 }
 0x45b   :  { %v8431_v43 = vmul.f32 %v869_v9, %v844_v18  ;;  %v8433_v26 = vmul.f32 %v884_v52, %v845_v47  ;;  %v819_v47 = vsub.f32 1.0, %v813_v32  ;;  %v927_v52 = vand.u32 2147483648, %v854_v11  ;;  %vm923_vm1 = vmor %vm921_vm0, %vm922_vm15 }
 0x45c   :  { %v918_v16 = vsub.f32 1.0, %v917_v12 }
 0x45d   :  { %966 = vperm.xlu1 %7405, %v8431_v43   ;;  %971 = vperm.xlu0 %7404, %v8433_v26   ;;  %v8458_v9 = vmul.f32 %v819_v47, %v8353_v13  ;;  %v928_v63 = vor.u32 1.1754944e-38, %v927_v52 }
 0x45e   :  { %v919_v18 = vmul.f32 %v7463_v10, %v918_v16 }
 0x45f   :  { %v855_v59 = vmax.f32 %v8458_v9, 1e-07 }
 0x460   :  { %v920_v17 = vadd.f32 %v7463_v10, %v919_v18 }
 0x461   :  { %7464 = vrcp.f32 %v855_v59  ;;  %v942_v39 = vand.u32 2147483648, %v855_v59  ;;  %vm936_vm4 = vweird.f32 %v855_v59  ;;  %v940_v42 = vand.u32 2147483647, %v855_v59 }
 0x462   :  { %v924_v28 = vsel %vm923_vm1, %v7463_v10, %v920_v17 }
 0x463   :  { %v929_v41 = vsel %vm926_vm2, %v928_v63, %v924_v28  ;;  %vm941_vm6 = vcmp.eq.f32.partialorder %v940_v42, 8.507059e+37 }
 0x467   :  { %v7465_v33 = vpop.eup %7464 }
 0x468   :  { %v932_v13 = vmul.f32 %v7465_v33, %v855_v59  ;;  %vm937_vm3 = vweird.f32 %v7465_v33 }
 0x469   :  { %vm938_vm5 = vmor %vm936_vm4, %vm937_vm3 }
 0x46a   :  { %v933_v34 = vsub.f32 1.0, %v932_v13 }
 0x46c   :  { %v934_v35 = vmul.f32 %v7465_v33, %v933_v34 }
 0x46e   :  { %v935_v5 = vadd.f32 %v7465_v33, %v934_v35 }
 0x470   :  { %v939_v40 = vsel %vm938_vm5, %v7465_v33, %v935_v5 }
 0x477   :  { %v951_v45 = vpop.permute.xlu1 %950 }
 0x478   :  { %v839_v23 = vpop.xlane.xlu0 %838 }
 0x479   :  { %v847_v49 = vsub.f32 0.0, %v839_v23  ;;  %v943_v23 = vor.u32 1.1754944e-38, %v942_v39  ;;  %v1019_v39 = vmul.f32 %v8433_v26, %v8433_v26 }
 0x47b   :  { %v8445_v51 = vmul.f32 %v914_v46, %v847_v49  ;;  %v944_v0 = vsel %vm941_vm6, %v943_v23, %v939_v40  ;;  %v1025_v42 = vsub.f32 1.0, %v1019_v39 }
 0x47d   :  { %981 = vperm.xlu1 %7405, %v8445_v51   ;;  %v8506_v23 = vmul.f32 %v1025_v42, %v8408_v27 }
 0x47f   :  { %v837_v3 = vpop.xlane.xlu2 %836 }
 0x480   :  { %v846_v57 = vsub.f32 0.0, %v837_v3 }
 0x482   :  { %v8451_v14 = vmul.f32 %v899_v4, %v846_v57 }
 0x484   :  { %976 = vperm.xlu0 %7404, %v8451_v14  }
 0x487   :  { %v953_v8 = vpop.permute.xlu2 %952 }
 0x488   :  { %v961_v36 = vmul.f32 %v8260_v6, %v953_v8 }
 0x48b   :  { %v955_v21 = vpop.permute.xlu0 %954 }
 0x4a2   :  { %v841_v55 = vpop.xlane.xlu1 %840 }
 0x4a3   :  { %v848_v37 = vsub.f32 0.0, %v841_v55 }
 0x4a5   :  { %v8461_v22 = vmul.f32 %v929_v41, %v848_v37  ;;  %v962_v41 = vmul.f32 %v8260_v6, %v955_v21 }
 0x4a7   :  { %986 = vperm.xlu2 %7403, %v8461_v22  }
 0x4ba   :  { %v957_v38 = vpop.permute.xlu1 %956 }
 0x4c0   :  { %v843_v49 = vpop.xlane.xlu2 %842 }
 0x4c1   :  { %v849_v46 = vsub.f32 0.0, %v843_v49 }
 0x4c3   :  { %v8464_v61 = vmul.f32 %v944_v0, %v849_v46 }
 0x4c5   :  { %991 = vperm.xlu0 %7404, %v8464_v61  }
 0x4cf   :  { %v972_v3 = vpop.permute.xlu0 %971  ;;  %v967_v57 = vpop.permute.xlu1 %966 }
 0x4d0   :  { %v995_v4 = vmul.f32 %v972_v3, %v959_v1  ;;  %v1007_v11 = vmul.f32 %v972_v3, %v8370_v54  ;;  %v994_v10 = vmul.f32 %v967_v57, %v958_v62  ;;  %v1006_v12 = vmul.f32 %v967_v57, %v8360_v24 }
 0x4d2   :  { %v1013_v16 = vadd.f32 %v1007_v11, %v959_v1  ;;  %v1012_v32 = vadd.f32 %v1006_v12, %v958_v62  ;;  %v8474_v18 = vadd.f32 %v995_v4, %v8370_v54  ;;  %v8477_v47 = vadd.f32 %v994_v10, %v8360_v24 }
 0x4d3   :  { %v960_v54 = vmul.f32 %v8260_v6, %v951_v45 }
 0x4d4   :  { %1158 = vrot.lane.b32.xlu0 %v1013_v16, %s7839_s3  ;;  %1156 = vrot.lane.b32.xlu2 %v1012_v32, %s7839_s3  ;;  %v1037_v60 = vmul.f32 %v1013_v16, %v8228_v58  ;;  %v1036_v37 = vmul.f32 %v1012_v32, %v8226_v56 }
 0x4d6   :  { %1044 = vadd.xlane.f32.xlu1 %v1037_v60 }
 0x4ef   :  { %v982_v17 = vpop.permute.xlu1 %981 }
 0x4f0   :  { %v997_v52 = vmul.f32 %v982_v17, %v961_v36 }
 0x4f2   :  { %v8484_v25 = vadd.f32 %v997_v52, %v8380_v7 }
 0x4f6   :  { %v977_v28 = vpop.permute.xlu0 %976 }
 0x4f7   :  { %v996_v59 = vmul.f32 %v977_v28, %v960_v54  ;;  %v1008_v24 = vmul.f32 %v977_v28, %v8384_v15 }
 0x4f9   :  { %v1014_v63 = vadd.f32 %v1008_v24, %v960_v54  ;;  %v8489_v55 = vadd.f32 %v996_v59, %v8384_v15  ;;  %v1009_v15 = vmul.f32 %v982_v17, %v8380_v7  ;;  %v963_v7 = vmul.f32 %v8260_v6, %v957_v38 }
 0x4fa   :  { %v1018_v38 = vmul.f32 %v8431_v43, %v8431_v43 }
 0x4fb   :  { %1160 = vrot.lane.b32.xlu0 %v1014_v63, %s7839_s3  ;;  %v1015_v8 = vadd.f32 %v1009_v15, %v961_v36  ;;  %v1038_v5 = vmul.f32 %v1014_v63, %v8233_v2 }
 0x4fc   :  { %v1024_v4 = vsub.f32 1.0, %v1018_v38 }
 0x4fd   :  { %1042 = vadd.xlane.f32.xlu2 %v1036_v37  ;;  %v1039_v26 = vmul.f32 %v1015_v8, %v8240_v20 }
 0x501   :  { %v987_v33 = vpop.permute.xlu2 %986 }
 0x502   :  { %v998_v13 = vmul.f32 %v987_v33, %v962_v41  ;;  %v1010_v34 = vmul.f32 %v987_v33, %v8390_v19 }
 0x504   :  { %v1016_v45 = vadd.f32 %v1010_v34, %v962_v41  ;;  %v8496_v35 = vadd.f32 %v998_v13, %v8390_v19  ;;  %v1061_v19 = vmax.f32 %v8506_v23, 1e-07  ;;  %v1020_v13 = vmul.f32 %v8451_v14, %v8451_v14 }
 0x506   :  { %1164 = vrot.lane.b32.xlu1 %v1016_v45, %s7839_s3  ;;  %v1040_v40 = vmul.f32 %v1016_v45, %v8275_v30  ;;  %7466 = vrcp.f32 %v1061_v19  ;;  %v1092_v10 = vand.u32 2147483648, %v1061_v19  ;;  %vm1086_vm8 = vweird.f32 %v1061_v19 }
 0x507   :  { %v1090_v16 = vand.u32 2147483647, %v1061_v19 }
 0x508   :  { %v1093_v36 = vor.u32 1.1754944e-38, %v1092_v10 }
 0x509   :  { %vm1091_vm10 = vcmp.eq.f32.partialorder %v1090_v16, 8.507059e+37 }
 0x50c   :  { %v7467_v27 = vpop.eup %7466 }
 0x50d   :  { %v1082_v1 = vmul.f32 %v7467_v27, %v1061_v19  ;;  %vm1087_vm7 = vweird.f32 %v7467_v27  ;;  %v1022_v19 = vmul.f32 %v8461_v22, %v8461_v22 }
 0x50e   :  { %vm1088_vm9 = vmor %vm1086_vm8, %vm1087_vm7 }
 0x50f   :  { %v1083_v3 = vsub.f32 1.0, %v1082_v1 }
 0x511   :  { %v1084_v57 = vmul.f32 %v7467_v27, %v1083_v3 }
 0x513   :  { %v1085_v11 = vadd.f32 %v7467_v27, %v1084_v57 }
 0x515   :  { %1162 = vrot.lane.b32.xlu2 %v1015_v8, %s7839_s3  ;;  %v1089_v32 = vsel %vm1088_vm9, %v7467_v27, %v1085_v11 }
 0x516   :  { %v1094_v52 = vsel %vm1091_vm10, %v1093_v36, %v1089_v32 }
 0x525   :  { %1046 = vadd.xlane.f32.xlu0 %v1038_v5  ;;  %v1026_v5 = vsub.f32 1.0, %v1020_v13 }
 0x52e   :  { %v8526_v63 = vpop.permute.xlu2 %1156 }
 0x530   :  { %1050 = vadd.xlane.f32.xlu1 %v1040_v40  ;;  %v8534_v40 = vmul.f32 %v1026_v5, %v8436_v48 }
 0x532   :  { %v1062_v14 = vmax.f32 %v8534_v40, 1e-07 }
 0x534   :  { %v1107_v10 = vand.u32 2147483648, %v1062_v14  ;;  %vm1101_vm0 = vweird.f32 %v1062_v14 }
 0x536   :  { %v1108_v32 = vor.u32 1.1754944e-38, %v1107_v10 }
 0x537   :  { %v992_v49 = vpop.permute.xlu0 %991 }
 0x538   :  { %v999_v46 = vmul.f32 %v992_v49, %v963_v7  ;;  %v1011_v0 = vmul.f32 %v992_v49, %v8402_v29 }
 0x53a   :  { %v1017_v21 = vadd.f32 %v1011_v0, %v963_v7  ;;  %v8512_v62 = vadd.f32 %v999_v46, %v8402_v29  ;;  %v8519_v29 = vmul.f32 %v1024_v4, %v8405_v44  ;;  %v1028_v7 = vsub.f32 1.0, %v1022_v19 }
 0x53c   :  { %1166 = vrot.lane.b32.xlu0 %v1017_v21, %s7839_s3  ;;  %v1060_v17 = vmax.f32 %v8519_v29, 1e-07  ;;  %v1041_v44 = vmul.f32 %v1017_v21, %v8277_v31  ;;  %v8540_v49 = vmul.f32 %v1028_v7, %v8449_v50  ;;  %v1021_v21 = vmul.f32 %v8445_v51, %v8445_v51 }
 0x53d   :  { %v1105_v51 = vand.u32 2147483647, %v1062_v14 }
 0x53e   :  { %1048 = vadd.xlane.f32.xlu2 %v1039_v26  ;;  %7468 = vrcp.f32 %v1060_v17  ;;  %v1077_v41 = vand.u32 2147483648, %v1060_v17  ;;  %vm1071_vm12 = vweird.f32 %v1060_v17  ;;  %v1075_v33 = vand.u32 2147483647, %v1060_v17 }
 0x53f   :  { %7470 = vrcp.f32 %v1062_v14  ;;  %v1064_v0 = vmax.f32 %v8540_v49, 1e-07  ;;  %v1027_v48 = vsub.f32 1.0, %v1021_v21  ;;  %vm1106_vm2 = vcmp.eq.f32.partialorder %v1105_v51, 8.507059e+37 }
 0x540   :  { %v1078_v45 = vor.u32 1.1754944e-38, %v1077_v41  ;;  %vm1076_vm14 = vcmp.eq.f32.partialorder %v1075_v33, 8.507059e+37 }
 0x541   :  { %7472 = vrcp.f32 %v1064_v0  ;;  %v8548_v3 = vmul.f32 %v1027_v48, %v8426_v53  ;;  %vm1131_vm4 = vweird.f32 %v1064_v0 }
 0x543   :  { %v1063_v4 = vmax.f32 %v8548_v3, 1e-07 }
 0x544   :  { %v7469_v54 = vpop.eup %7468 }
 0x545   :  { %v1067_v28 = vmul.f32 %v7469_v54, %v1060_v17  ;;  %vm1072_vm11 = vweird.f32 %v7469_v54  ;;  %v7471_v46 = vpop.eup %7470  ;;  %7474 = vrcp.f32 %v1063_v4  ;;  %vm1116_vm8 = vweird.f32 %v1063_v4 }
 0x546   :  { %vm1073_vm13 = vmor %vm1071_vm12, %vm1072_vm11  ;;  %v1097_v26 = vmul.f32 %v7471_v46, %v1062_v14  ;;  %v8545_v27 = vpop.permute.xlu0 %1158  ;;  %vm1102_vm15 = vweird.f32 %v7471_v46  ;;  %v1122_v14 = vand.u32 2147483648, %v1063_v4  ;;  %v1120_v7 = vand.u32 2147483647, %v1063_v4 }
 0x547   :  { %v1068_v59 = vsub.f32 1.0, %v1067_v28  ;;  %v7473_v22 = vpop.eup %7472  ;;  %vm1103_vm1 = vmor %vm1101_vm0, %vm1102_vm15 }
 0x548   :  { %v1098_v1 = vsub.f32 1.0, %v1097_v26  ;;  %v1127_v50 = vmul.f32 %v7473_v22, %v1064_v0  ;;  %vm1132_vm3 = vweird.f32 %v7473_v22  ;;  %v1123_v21 = vor.u32 1.1754944e-38, %v1122_v14 }
 0x549   :  { %v1045_v12 = vpop.xlane.xlu1 %1044  ;;  %v1069_v24 = vmul.f32 %v7469_v54, %v1068_v59  ;;  %vm1133_vm5 = vmor %vm1131_vm4, %vm1132_vm3  ;;  %vm1121_vm10 = vcmp.eq.f32.partialorder %v1120_v7, 8.507059e+37 }
 0x54a   :  { %v1055_v60 = vsub.f32 0.0, %v1045_v12  ;;  %v1099_v38 = vmul.f32 %v7471_v46, %v1098_v1  ;;  %v1128_v12 = vsub.f32 1.0, %v1127_v50 }
 0x54b   :  { %v1070_v37 = vadd.f32 %v7469_v54, %v1069_v24  ;;  %v7475_v28 = vpop.eup %7474  ;;  %v1135_v24 = vand.u32 2147483647, %v1064_v0 }
 0x54c   :  { %v8522_v43 = vmul.f32 %v1094_v52, %v1055_v60  ;;  %v1100_v11 = vadd.f32 %v7471_v46, %v1099_v38  ;;  %v1129_v17 = vmul.f32 %v7473_v22, %v1128_v12  ;;  %vm1117_vm7 = vweird.f32 %v7475_v28 }
 0x54d   :  { %v1074_v34 = vsel %vm1073_vm13, %v7469_v54, %v1070_v37  ;;  %v1112_v37 = vmul.f32 %v7475_v28, %v1063_v4  ;;  %vm1136_vm6 = vcmp.eq.f32.partialorder %v1135_v24, 8.507059e+37  ;;  %vm1118_vm9 = vmor %vm1116_vm8, %vm1117_vm7  ;;  %v1169_v4 = vmul.f32 %v8260_v6, %v8545_v27 }
 0x54e   :  { %v1079_v39 = vsel %vm1076_vm14, %v1078_v45, %v1074_v34  ;;  %v1104_v16 = vsel %vm1103_vm1, %v7471_v46, %v1100_v11  ;;  %v1130_v59 = vadd.f32 %v7473_v22, %v1129_v17  ;;  %v1023_v46 = vmul.f32 %v8464_v61, %v8464_v61 }
 0x54f   :  { %v1109_v36 = vsel %vm1106_vm2, %v1108_v32, %v1104_v16  ;;  %v1113_v45 = vsub.f32 1.0, %v1112_v37 }
 0x550   :  { %v1134_v41 = vsel %vm1133_vm5, %v7473_v22, %v1130_v59  ;;  %v1029_v1 = vsub.f32 1.0, %v1023_v46 }
 0x551   :  { %v1114_v5 = vmul.f32 %v7475_v28, %v1113_v45 }
 0x552   :  { %v8569_v50 = vmul.f32 %v1029_v1, %v8458_v9 }
 0x553   :  { %v1115_v19 = vadd.f32 %v7475_v28, %v1114_v5 }
 0x554   :  { %v1065_v10 = vmax.f32 %v8569_v50, 1e-07 }
 0x556   :  { %1181 = vperm.xlu2 %7403, %v8522_v43   ;;  %7476 = vrcp.f32 %v1065_v10  ;;  %v1152_v9 = vand.u32 2147483648, %v1065_v10  ;;  %vm1146_vm12 = vweird.f32 %v1065_v10  ;;  %v1150_v27 = vand.u32 2147483647, %v1065_v10 }
 0x558   :  { %v1153_v59 = vor.u32 1.1754944e-38, %v1152_v9  ;;  %vm1151_vm14 = vcmp.eq.f32.partialorder %v1150_v27, 8.507059e+37 }
 0x55c   :  { %v7477_v12 = vpop.eup %7476 }
 0x55d   :  { %v1142_v16 = vmul.f32 %v7477_v12, %v1065_v10  ;;  %vm1147_vm11 = vweird.f32 %v7477_v12 }
 0x55e   :  { %vm1148_vm13 = vmor %vm1146_vm12, %vm1147_vm11 }
 0x55f   :  { %v1143_v32 = vsub.f32 1.0, %v1142_v16 }
 0x566   :  { %1052 = vadd.xlane.f32.xlu0 %v1041_v44  ;;  %v1137_v44 = vand.u32 2147483648, %v1064_v0  ;;  %v1119_v0 = vsel %vm1118_vm9, %v7475_v28, %v1115_v19 }
 0x567   :  { %v1124_v22 = vsel %vm1121_vm10, %v1123_v21, %v1119_v0 }
 0x568   :  { %v1138_v33 = vor.u32 1.1754944e-38, %v1137_v44 }
 0x56d   :  { %v8550_v57 = vpop.permute.xlu0 %1160 }
 0x570   :  { %v1043_v15 = vpop.xlane.xlu2 %1042 }
 0x571   :  { %v1054_v8 = vsub.f32 0.0, %v1043_v15  ;;  %v1139_v15 = vsel %vm1136_vm6, %v1138_v33, %v1134_v41 }
 0x573   :  { %v8530_v42 = vmul.f32 %v1079_v39, %v1054_v8 }
 0x575   :  { %1176 = vperm.xlu1 %7405, %v8530_v42   ;;  %v1228_v27 = vmul.f32 %v8530_v42, %v8530_v42 }
 0x578   :  { %v8553_v52 = vpop.permute.xlu1 %1164  ;;  %v8561_v39 = vpop.permute.xlu2 %1162 }
 0x579   :  { %v1172_v14 = vmul.f32 %v8260_v6, %v8553_v52 }
 0x598   :  { %v1047_v60 = vpop.xlane.xlu0 %1046 }
 0x599   :  { %v1056_v53 = vsub.f32 0.0, %v1047_v60  ;;  %v1144_v60 = vmul.f32 %v7477_v12, %v1143_v32 }
 0x59b   :  { %v8555_v54 = vmul.f32 %v1109_v36, %v1056_v53  ;;  %v1145_v36 = vadd.f32 %v7477_v12, %v1144_v60 }
 0x59d   :  { %1186 = vperm.xlu1 %7405, %v8555_v54   ;;  %v1149_v28 = vsel %vm1148_vm13, %v7477_v12, %v1145_v36 }
 0x59e   :  { %v1154_v41 = vsel %vm1151_vm14, %v1153_v59, %v1149_v28  ;;  %v1234_v28 = vsub.f32 1.0, %v1228_v27 }
 0x5a0   :  { %v8626_v59 = vmul.f32 %v1234_v28, %v8519_v29 }
 0x5a3   :  { %v1051_v13 = vpop.xlane.xlu1 %1050 }
 0x5a4   :  { %v1058_v34 = vsub.f32 0.0, %v1051_v13 }
 0x5a6   :  { %v8558_v8 = vmul.f32 %v1139_v15, %v1058_v34 }
 0x5a8   :  { %1196 = vperm.xlu2 %7403, %v8558_v8  }
 0x5ae   :  { %v1167_v53 = vpop.permute.xlu0 %1166 }
 0x5af   :  { %v1173_v32 = vmul.f32 %v8260_v6, %v1167_v53  ;;  %v1229_v53 = vmul.f32 %v8522_v43, %v8522_v43 }
 0x5b1   :  { %v1049_v26 = vpop.xlane.xlu2 %1048 }
 0x5b2   :  { %v1057_v48 = vsub.f32 0.0, %v1049_v26  ;;  %v1170_v26 = vmul.f32 %v8260_v6, %v8550_v57 }
 0x5b4   :  { %v8565_v38 = vmul.f32 %v1124_v22, %v1057_v48 }
 0x5b6   :  { %1191 = vperm.xlu0 %7404, %v8565_v38  }
 0x5b9   :  { %v1182_v11 = vpop.permute.xlu2 %1181 }
 0x5ba   :  { %v1205_v61 = vmul.f32 %v1182_v11, %v1169_v4  ;;  %v1217_v17 = vmul.f32 %v1182_v11, %v8474_v18 }
 0x5bc   :  { %v8575_v51 = vadd.f32 %v1205_v61, %v8474_v18  ;;  %v1223_v37 = vadd.f32 %v1217_v17, %v1169_v4  ;;  %v1168_v18 = vmul.f32 %v8260_v6, %v8526_v63 }
 0x5be   :  { %v1247_v13 = vmul.f32 %v1223_v37, %v8228_v58 }
 0x5d9   :  { %v1053_v44 = vpop.xlane.xlu0 %1052 }
 0x5da   :  { %v1059_v24 = vsub.f32 0.0, %v1053_v44  ;;  %v1235_v44 = vsub.f32 1.0, %v1229_v53 }
 0x5dc   :  { %v8578_v33 = vmul.f32 %v1154_v41, %v1059_v24  ;;  %v1270_v24 = vmax.f32 %v8626_v59, 1e-07 }
 0x5de   :  { %1201 = vperm.xlu1 %7405, %v8578_v33   ;;  %7478 = vrcp.f32 %v1270_v24  ;;  %vm1281_vm0 = vweird.f32 %v1270_v24 }
 0x5e0   :  { %1254 = vadd.xlane.f32.xlu0 %v1247_v13 }
 0x5e4   :  { %v7479_v13 = vpop.eup %7478 }
 0x5e5   :  { %v1277_v29 = vmul.f32 %v7479_v13, %v1270_v24  ;;  %vm1282_vm15 = vweird.f32 %v7479_v13 }
 0x5e6   :  { %1368 = vrot.lane.b32.xlu1 %v1223_v37, %s7839_s3  ;;  %v1230_v37 = vmul.f32 %v8555_v54, %v8555_v54  ;;  %vm1283_vm1 = vmor %vm1281_vm0, %vm1282_vm15 }
 0x5e7   :  { %v1177_v34 = vpop.permute.xlu1 %1176 }
 0x5e8   :  { %v1204_v45 = vmul.f32 %v1177_v34, %v1168_v18  ;;  %v1216_v15 = vmul.f32 %v1177_v34, %v8477_v47  ;;  %v1236_v41 = vsub.f32 1.0, %v1230_v37  ;;  %v1232_v34 = vmul.f32 %v8558_v8, %v8558_v8 }
 0x5e9   :  { %v1285_v8 = vand.u32 2147483647, %v1270_v24 }
 0x5ea   :  { %v1222_v5 = vadd.f32 %v1216_v15, %v1168_v18  ;;  %v8587_v19 = vadd.f32 %v1204_v45, %v8477_v47  ;;  %v8636_v43 = vmul.f32 %v1236_v41, %v8534_v40  ;;  %v1238_v54 = vsub.f32 1.0, %v1232_v34 }
 0x5eb   :  { %vm1286_vm2 = vcmp.eq.f32.partialorder %v1285_v8, 8.507059e+37 }
 0x5ec   :  { %1366 = vrot.lane.b32.xlu2 %v1222_v5, %s7839_s3  ;;  %v1246_v4 = vmul.f32 %v1222_v5, %v8226_v56  ;;  %v1272_v18 = vmax.f32 %v8636_v43, 1e-07  ;;  %v8645_v40 = vmul.f32 %v1238_v54, %v8540_v49 }
 0x5ee   :  { %v1317_v37 = vand.u32 2147483648, %v1272_v18  ;;  %vm1311_vm8 = vweird.f32 %v1272_v18 }
 0x602   :  { %v1197_v7 = vpop.permute.xlu2 %1196 }
 0x603   :  { %v1208_v46 = vmul.f32 %v1197_v7, %v1172_v14  ;;  %v1220_v0 = vmul.f32 %v1197_v7, %v8496_v35 }
 0x605   :  { %v1226_v63 = vadd.f32 %v1220_v0, %v1172_v14  ;;  %v8594_v21 = vadd.f32 %v1208_v46, %v8496_v35  ;;  %v1171_v35 = vmul.f32 %v8260_v6, %v8561_v39 }
 0x607   :  { %1374 = vrot.lane.b32.xlu0 %v1226_v63, %s7839_s3 }
 0x60f   :  { %v1187_v47 = vpop.permute.xlu1 %1186 }
 0x610   :  { %v1206_v48 = vmul.f32 %v1187_v47, %v1170_v26  ;;  %v1218_v1 = vmul.f32 %v1187_v47, %v8489_v55  ;;  %v1274_v47 = vmax.f32 %v8645_v40, 1e-07 }
 0x612   :  { %v1224_v22 = vadd.f32 %v1218_v1, %v1170_v26  ;;  %v8601_v52 = vadd.f32 %v1206_v48, %v8489_v55  ;;  %v1250_v55 = vmul.f32 %v1226_v63, %v8275_v30  ;;  %v1287_v26 = vand.u32 2147483648, %v1270_v24 }
 0x613   :  { %vm1341_vm12 = vweird.f32 %v1274_v47 }
 0x614   :  { %v1248_v11 = vmul.f32 %v1224_v22, %v8233_v2 }
 0x615   :  { %1252 = vadd.xlane.f32.xlu2 %v1246_v4  ;;  %v1288_v4 = vor.u32 1.1754944e-38, %v1287_v26 }
 0x616   :  { %1256 = vadd.xlane.f32.xlu1 %v1248_v11 }
 0x628   :  { %v1192_v61 = vpop.permute.xlu0 %1191 }
 0x629   :  { %v1207_v10 = vmul.f32 %v1192_v61, %v1171_v35  ;;  %v1219_v12 = vmul.f32 %v1192_v61, %v8484_v25 }
 0x62b   :  { %v8608_v57 = vadd.f32 %v1207_v10, %v8484_v25  ;;  %v1225_v16 = vadd.f32 %v1219_v12, %v1171_v35 }
 0x62d   :  { %1370 = vrot.lane.b32.xlu2 %v1224_v22, %s7839_s3  ;;  %v1249_v25 = vmul.f32 %v1225_v16, %v8240_v20 }
 0x631   :  { %1260 = vadd.xlane.f32.xlu0 %v1250_v55 }
 0x635   :  { %1372 = vrot.lane.b32.xlu2 %v1225_v16, %s7839_s3 }
 0x646   :  { %v8642_v7 = vpop.permute.xlu2 %1366 }
 0x650   :  { %v1202_v60 = vpop.permute.xlu1 %1201 }
 0x651   :  { %v1209_v36 = vmul.f32 %v1202_v60, %v1173_v32  ;;  %v1221_v39 = vmul.f32 %v1202_v60, %v8512_v62 }
 0x653   :  { %v1227_v9 = vadd.f32 %v1221_v39, %v1173_v32  ;;  %v8617_v17 = vadd.f32 %v1209_v36, %v8512_v62  ;;  %v8630_v62 = vmul.f32 %v1235_v44, %v8506_v23  ;;  %v1278_v23 = vsub.f32 1.0, %v1277_v29  ;;  %v1255_v55 = vpop.xlane.xlu0 %1254 }
 0x654   :  { %v1265_v36 = vsub.f32 0.0, %v1255_v55  ;;  %v1233_v55 = vmul.f32 %v8578_v33, %v8578_v33 }
 0x655   :  { %1376 = vrot.lane.b32.xlu1 %v1227_v9, %s7839_s3  ;;  %v1271_v42 = vmax.f32 %v8630_v62, 1e-07  ;;  %v1251_v15 = vmul.f32 %v1227_v9, %v8277_v31  ;;  %v1279_v14 = vmul.f32 %v7479_v13, %v1278_v23  ;;  %v1318_v23 = vor.u32 1.1754944e-38, %v1317_v37 }
 0x657   :  { %7480 = vrcp.f32 %v1271_v42  ;;  %v1280_v0 = vadd.f32 %v7479_v13, %v1279_v14  ;;  %v1302_v16 = vand.u32 2147483648, %v1271_v42  ;;  %vm1296_vm4 = vweird.f32 %v1271_v42 }
 0x658   :  { %7482 = vrcp.f32 %v1272_v18  ;;  %v8650_v32 = vpop.permute.xlu1 %1368  ;;  %v1300_v60 = vand.u32 2147483647, %v1271_v42 }
 0x659   :  { %v1284_v1 = vsel %vm1283_vm1, %v7479_v13, %v1280_v0  ;;  %7484 = vrcp.f32 %v1274_v47  ;;  %v1303_v27 = vor.u32 1.1754944e-38, %v1302_v16  ;;  %v1315_v13 = vand.u32 2147483647, %v1272_v18 }
 0x65a   :  { %v1289_v49 = vsel %vm1286_vm2, %v1288_v4, %v1284_v1  ;;  %vm1301_vm6 = vcmp.eq.f32.partialorder %v1300_v60, 8.507059e+37  ;;  %v1231_v1 = vmul.f32 %v8565_v38, %v8565_v38  ;;  %v1239_v60 = vsub.f32 1.0, %v1233_v55 }
 0x65b   :  { %vm1316_vm10 = vcmp.eq.f32.partialorder %v1315_v13, 8.507059e+37 }
 0x65c   :  { %v1237_v4 = vsub.f32 1.0, %v1231_v1 }
 0x65d   :  { %v7481_v45 = vpop.eup %7480 }
 0x65e   :  { %1258 = vadd.xlane.f32.xlu2 %v1249_v25  ;;  %v1292_v5 = vmul.f32 %v7481_v45, %v1271_v42  ;;  %v7483_v63 = vpop.eup %7482  ;;  %vm1297_vm3 = vweird.f32 %v7481_v45 }
 0x65f   :  { %v1307_v22 = vmul.f32 %v7483_v63, %v1272_v18  ;;  %vm1298_vm5 = vmor %vm1296_vm4, %vm1297_vm3  ;;  %v7485_v25 = vpop.eup %7484  ;;  %vm1312_vm7 = vweird.f32 %v7483_v63  ;;  %v1345_v18 = vand.u32 2147483647, %v1274_v47 }
 0x660   :  { %v1293_v46 = vsub.f32 1.0, %v1292_v5  ;;  %v1337_v24 = vmul.f32 %v7485_v25, %v1274_v47  ;;  %vm1313_vm9 = vmor %vm1311_vm8, %vm1312_vm7  ;;  %vm1342_vm11 = vweird.f32 %v7485_v25 }
 0x661   :  { %v1308_v12 = vsub.f32 1.0, %v1307_v22  ;;  %vm1343_vm13 = vmor %vm1341_vm12, %vm1342_vm11  ;;  %vm1346_vm14 = vcmp.eq.f32.partialorder %v1345_v18, 8.507059e+37 }
 0x662   :  { %v1294_v48 = vmul.f32 %v7481_v45, %v1293_v46  ;;  %v1338_v34 = vsub.f32 1.0, %v1337_v24  ;;  %v1347_v46 = vand.u32 2147483648, %v1274_v47 }
 0x663   :  { %v1309_v9 = vmul.f32 %v7483_v63, %v1308_v12 }
 0x664   :  { %v1295_v61 = vadd.f32 %v7481_v45, %v1294_v48  ;;  %v1339_v54 = vmul.f32 %v7485_v25, %v1338_v34  ;;  %v1348_v26 = vor.u32 1.1754944e-38, %v1347_v46 }
 0x665   :  { %v1310_v44 = vadd.f32 %v7483_v63, %v1309_v9  ;;  %v8677_v9 = vmul.f32 %v1239_v60, %v8569_v50 }
 0x666   :  { %v1299_v39 = vsel %vm1298_vm5, %v7481_v45, %v1295_v61  ;;  %v1340_v14 = vadd.f32 %v7485_v25, %v1339_v54 }
 0x667   :  { %v1304_v28 = vsel %vm1301_vm6, %v1303_v27, %v1299_v39  ;;  %v1314_v42 = vsel %vm1313_vm9, %v7483_v63, %v1310_v44  ;;  %v1275_v33 = vmax.f32 %v8677_v9, 1e-07 }
 0x668   :  { %v8653_v53 = vmul.f32 %v1304_v28, %v1265_v36  ;;  %v1319_v45 = vsel %vm1316_vm10, %v1318_v23, %v1314_v42  ;;  %v1344_v0 = vsel %vm1343_vm13, %v7485_v25, %v1340_v14 }
 0x669   :  { %v1349_v48 = vsel %vm1346_vm14, %v1348_v26, %v1344_v0  ;;  %v1362_v23 = vand.u32 2147483648, %v1275_v33  ;;  %vm1356_vm4 = vweird.f32 %v1275_v33  ;;  %v1378_v26 = vmul.f32 %v8260_v6, %v8642_v7 }
 0x66a   :  { %v1379_v7 = vmul.f32 %v8260_v6, %v8650_v32 }
 0x66b   :  { %v1363_v14 = vor.u32 1.1754944e-38, %v1362_v23 }
 0x679   :  { %v8658_v5 = vpop.permute.xlu0 %1374 }
 0x67f   :  { %1262 = vadd.xlane.f32.xlu1 %v1251_v15 }
 0x688   :  { %v1253_v11 = vpop.xlane.xlu2 %1252 }
 0x689   :  { %v1264_v35 = vsub.f32 0.0, %v1253_v11  ;;  %v1257_v41 = vpop.xlane.xlu1 %1256  ;;  %v8667_v11 = vmul.f32 %v1237_v4, %v8548_v3  ;;  %v1382_v4 = vmul.f32 %v8260_v6, %v8658_v5 }
 0x68a   :  { %v1266_v29 = vsub.f32 0.0, %v1257_v41 }
 0x68b   :  { %v8648_v10 = vmul.f32 %v1289_v49, %v1264_v35  ;;  %v1273_v47 = vmax.f32 %v8667_v11, 1e-07 }
 0x68c   :  { %v8656_v15 = vmul.f32 %v1319_v45, %v1266_v29  ;;  %v1360_v45 = vand.u32 2147483647, %v1275_v33 }
 0x68d   :  { %1386 = vperm.xlu0 %7404, %v8648_v10   ;;  %7486 = vrcp.f32 %v1273_v47  ;;  %v1332_v39 = vand.u32 2147483648, %v1273_v47  ;;  %vm1326_vm0 = vweird.f32 %v1273_v47  ;;  %v1330_v3 = vand.u32 2147483647, %v1273_v47 }
 0x68e   :  { %7488 = vrcp.f32 %v1275_v33  ;;  %vm1361_vm6 = vcmp.eq.f32.partialorder %v1360_v45, 8.507059e+37  ;;  %v1438_v23 = vmul.f32 %v8648_v10, %v8648_v10 }
 0x68f   :  { %v1333_v27 = vor.u32 1.1754944e-38, %v1332_v39  ;;  %vm1331_vm2 = vcmp.eq.f32.partialorder %v1330_v3, 8.507059e+37 }
 0x690   :  { %v8670_v49 = vpop.permute.xlu2 %1370  ;;  %v1444_v45 = vsub.f32 1.0, %v1438_v23 }
 0x693   :  { %v7487_v35 = vpop.eup %7486 }
 0x694   :  { %v1322_v61 = vmul.f32 %v7487_v35, %v1273_v47  ;;  %vm1327_vm15 = vweird.f32 %v7487_v35  ;;  %v7489_v41 = vpop.eup %7488 }
 0x695   :  { %1391 = vperm.xlu0 %7404, %v8653_v53   ;;  %vm1328_vm1 = vmor %vm1326_vm0, %vm1327_vm15  ;;  %v1352_v13 = vmul.f32 %v7489_v41, %v1275_v33  ;;  %vm1357_vm3 = vweird.f32 %v7489_v41 }
 0x696   :  { %v1323_v12 = vsub.f32 1.0, %v1322_v61  ;;  %vm1358_vm5 = vmor %vm1356_vm4, %vm1357_vm3 }
 0x697   :  { %v1353_v42 = vsub.f32 1.0, %v1352_v13 }
 0x698   :  { %v1324_v38 = vmul.f32 %v7487_v35, %v1323_v12  ;;  %v8674_v16 = vpop.permute.xlu2 %1372 }
 0x699   :  { %v1354_v29 = vmul.f32 %v7489_v41, %v1353_v42 }
 0x69a   :  { %v1325_v36 = vadd.f32 %v7487_v35, %v1324_v38 }
 0x69b   :  { %v1355_v50 = vadd.f32 %v7489_v41, %v1354_v29 }
 0x69c   :  { %v1329_v25 = vsel %vm1328_vm1, %v7487_v35, %v1325_v36 }
 0x69d   :  { %1396 = vperm.xlu0 %7404, %v8656_v15   ;;  %v1334_v24 = vsel %vm1331_vm2, %v1333_v27, %v1329_v25  ;;  %v1359_v54 = vsel %vm1358_vm5, %v7489_v41, %v1355_v50  ;;  %v1380_v25 = vmul.f32 %v8260_v6, %v8670_v49  ;;  %v1381_v49 = vmul.f32 %v8260_v6, %v8674_v16 }
 0x69e   :  { %v1364_v0 = vsel %vm1361_vm6, %v1363_v14, %v1359_v54  ;;  %v1439_v16 = vmul.f32 %v8653_v53, %v8653_v53  ;;  %v8732_v54 = vmul.f32 %v1444_v45, %v8626_v59 }
 0x6a0   :  { %v1445_v14 = vsub.f32 1.0, %v1439_v16 }
 0x6a4   :  { %v1261_v63 = vpop.xlane.xlu0 %1260 }
 0x6a5   :  { %v1268_v8 = vsub.f32 0.0, %v1261_v63 }
 0x6a7   :  { %v8663_v22 = vmul.f32 %v1349_v48, %v1268_v8 }
 0x6a9   :  { %1406 = vperm.xlu2 %7403, %v8663_v22  }
 0x6c7   :  { %v8683_v34 = vpop.permute.xlu1 %1376 }
 0x6d1   :  { %v1259_v28 = vpop.xlane.xlu2 %1258 }
 0x6d2   :  { %v1267_v44 = vsub.f32 0.0, %v1259_v28 }
 0x6d4   :  { %v8680_v37 = vmul.f32 %v1334_v24, %v1267_v44 }
 0x6d6   :  { %1401 = vperm.xlu1 %7405, %v8680_v37  }
 0x6f2   :  { %v1263_v46 = vpop.xlane.xlu1 %1262 }
 0x6f3   :  { %v1269_v18 = vsub.f32 0.0, %v1263_v46  ;;  %v1480_v46 = vmax.f32 %v8732_v54, 1e-07 }
 0x6f5   :  { %v8685_v63 = vmul.f32 %v1364_v0, %v1269_v18  ;;  %7490 = vrcp.f32 %v1480_v46  ;;  %v1383_v0 = vmul.f32 %v8260_v6, %v8683_v34  ;;  %vm1491_vm8 = vweird.f32 %v1480_v46 }
 0x6f7   :  { %1411 = vperm.xlu0 %7404, %v8685_v63  }
 0x6fb   :  { %v7491_v10 = vpop.eup %7490 }
 0x6fc   :  { %vm1492_vm7 = vweird.f32 %v7491_v10 }
 0x6fd   :  { %vm1493_vm9 = vmor %vm1491_vm8, %vm1492_vm7 }
 0x6ff   :  { %v1387_v8 = vpop.permute.xlu0 %1386 }
 0x700   :  { %v1414_v48 = vmul.f32 %v1387_v8, %v1378_v26  ;;  %v1426_v1 = vmul.f32 %v1387_v8, %v8587_v19 }
 0x702   :  { %v1432_v47 = vadd.f32 %v1426_v1, %v1378_v26  ;;  %v8694_v35 = vadd.f32 %v1414_v48, %v8587_v19  ;;  %v1487_v26 = vmul.f32 %v7491_v10, %v1480_v46 }
 0x703   :  { %v1407_v61 = vpop.permute.xlu2 %1406 }
 0x704   :  { %v1418_v12 = vmul.f32 %v1407_v61, %v1382_v4  ;;  %1576 = vrot.lane.b32.xlu0 %v1432_v47, %s7839_s3  ;;  %v1456_v55 = vmul.f32 %v1432_v47, %v8226_v56  ;;  %v1430_v33 = vmul.f32 %v1407_v61, %v8594_v21  ;;  %v1488_v1 = vsub.f32 1.0, %v1487_v26 }
 0x706   :  { %1462 = vadd.xlane.f32.xlu2 %v1456_v55  ;;  %v8701_v38 = vadd.f32 %v1418_v12, %v8594_v21  ;;  %v1436_v41 = vadd.f32 %v1430_v33, %v1382_v4  ;;  %v1489_v47 = vmul.f32 %v7491_v10, %v1488_v1 }
 0x707   :  { %v1392_v60 = vpop.permute.xlu0 %1391 }
 0x708   :  { %v1415_v36 = vmul.f32 %v1392_v60, %v1379_v7  ;;  %v1427_v5 = vmul.f32 %v1392_v60, %v8575_v51  ;;  %v1460_v21 = vmul.f32 %v1436_v41, %v8275_v30  ;;  %v1490_v55 = vadd.f32 %v7491_v10, %v1489_v47 }
 0x709   :  { %v1495_v60 = vand.u32 2147483647, %v1480_v46 }
 0x70a   :  { %v1433_v39 = vadd.f32 %v1427_v5, %v1379_v7  ;;  %v8705_v19 = vadd.f32 %v1415_v36, %v8575_v51  ;;  %v1497_v7 = vand.u32 2147483648, %v1480_v46  ;;  %v1440_v36 = vmul.f32 %v8656_v15, %v8656_v15 }
 0x70b   :  { %vm1496_vm10 = vcmp.eq.f32.partialorder %v1495_v60, 8.507059e+37 }
 0x70c   :  { %v1457_v3 = vmul.f32 %v1433_v39, %v8228_v58 }
 0x70e   :  { %1464 = vadd.xlane.f32.xlu1 %v1457_v3 }
 0x70f   :  { %v1397_v27 = vpop.permute.xlu0 %1396 }
 0x710   :  { %v1416_v32 = vmul.f32 %v1397_v27, %v1380_v25  ;;  %v1428_v44 = vmul.f32 %v1397_v27, %v8601_v52  ;;  %v1446_v27 = vsub.f32 1.0, %v1440_v36 }
 0x712   :  { %v8711_v28 = vadd.f32 %v1416_v32, %v8601_v52  ;;  %v1434_v24 = vadd.f32 %v1428_v44, %v1380_v25 }
 0x714   :  { %v1458_v51 = vmul.f32 %v1434_v24, %v8233_v2 }
 0x71e   :  { %1578 = vrot.lane.b32.xlu2 %v1433_v39, %s7839_s3  ;;  %v1498_v39 = vor.u32 1.1754944e-38, %v1497_v7 }
 0x727   :  { %1580 = vrot.lane.b32.xlu1 %v1434_v24, %s7839_s3 }
 0x72e   :  { %1466 = vadd.xlane.f32.xlu0 %v1458_v51 }
 0x742   :  { %1584 = vrot.lane.b32.xlu0 %v1436_v41, %s7839_s3  ;;  %v8754_v41 = vmul.f32 %v1446_v27, %v8636_v43 }
 0x748   :  { %v1402_v13 = vpop.permute.xlu1 %1401 }
 0x749   :  { %v1417_v42 = vmul.f32 %v1402_v13, %v1381_v49  ;;  %v1429_v29 = vmul.f32 %v1402_v13, %v8608_v57 }
 0x74b   :  { %v1435_v50 = vadd.f32 %v1429_v29, %v1381_v49  ;;  %v8723_v52 = vadd.f32 %v1417_v42, %v8608_v57  ;;  %v8736_v57 = vmul.f32 %v1445_v14, %v8630_v62 }
 0x74d   :  { %1582 = vrot.lane.b32.xlu2 %v1435_v50, %s7839_s3  ;;  %v1481_v18 = vmax.f32 %v8736_v57, 1e-07  ;;  %v1459_v12 = vmul.f32 %v1435_v50, %v8240_v20  ;;  %v1482_v50 = vmax.f32 %v8754_v41, 1e-07 }
 0x74f   :  { %7492 = vrcp.f32 %v1481_v18  ;;  %v1512_v33 = vand.u32 2147483648, %v1481_v18  ;;  %vm1506_vm12 = vweird.f32 %v1481_v18  ;;  %v1510_v15 = vand.u32 2147483647, %v1481_v18 }
 0x750   :  { %7494 = vrcp.f32 %v1482_v50  ;;  %vm1521_vm0 = vweird.f32 %v1482_v50 }
 0x751   :  { %1470 = vadd.xlane.f32.xlu1 %v1460_v21  ;;  %v1513_v13 = vor.u32 1.1754944e-38, %v1512_v33  ;;  %vm1511_vm14 = vcmp.eq.f32.partialorder %v1510_v15, 8.507059e+37  ;;  %v1443_v33 = vmul.f32 %v8685_v63, %v8685_v63 }
 0x755   :  { %v7493_v62 = vpop.eup %7492 }
 0x756   :  { %v1502_v61 = vmul.f32 %v7493_v62, %v1481_v18  ;;  %vm1507_vm11 = vweird.f32 %v7493_v62  ;;  %v7495_v45 = vpop.eup %7494  ;;  %v1442_v18 = vmul.f32 %v8663_v22, %v8663_v22 }
 0x757   :  { %vm1508_vm13 = vmor %vm1506_vm12, %vm1507_vm11  ;;  %v1517_v16 = vmul.f32 %v7495_v45, %v1482_v50  ;;  %vm1522_vm15 = vweird.f32 %v7495_v45 }
 0x758   :  { %v1503_v34 = vsub.f32 1.0, %v1502_v61  ;;  %v1448_v26 = vsub.f32 1.0, %v1442_v18  ;;  %vm1523_vm1 = vmor %vm1521_vm0, %vm1522_vm15 }
 0x759   :  { %v1518_v14 = vsub.f32 1.0, %v1517_v16 }
 0x75a   :  { %v1504_v5 = vmul.f32 %v7493_v62, %v1503_v34  ;;  %v8765_v1 = vmul.f32 %v1448_v26, %v8645_v40  ;;  %v1441_v40 = vmul.f32 %v8680_v37, %v8680_v37 }
 0x75b   :  { %v1519_v46 = vmul.f32 %v7495_v45, %v1518_v14 }
 0x75c   :  { %v1505_v51 = vadd.f32 %v7493_v62, %v1504_v5  ;;  %v1484_v22 = vmax.f32 %v8765_v1, 1e-07 }
 0x75e   :  { %v1509_v49 = vsel %vm1508_vm13, %v7493_v62, %v1505_v51  ;;  %7496 = vrcp.f32 %v1484_v22  ;;  %vm1551_vm4 = vweird.f32 %v1484_v22  ;;  %v1555_v5 = vand.u32 2147483647, %v1484_v22 }
 0x75f   :  { %v1514_v23 = vsel %vm1511_vm14, %v1513_v13, %v1509_v49  ;;  %v1449_v49 = vsub.f32 1.0, %v1443_v33 }
 0x760   :  { %vm1556_vm6 = vcmp.eq.f32.partialorder %v1555_v5, 8.507059e+37 }
 0x761   :  { %v8785_v13 = vmul.f32 %v1449_v49, %v8677_v9 }
 0x769   :  { %v1412_v8 = vpop.permute.xlu0 %1411 }
 0x76a   :  { %v1419_v53 = vmul.f32 %v1412_v8, %v1383_v0  ;;  %v1431_v59 = vmul.f32 %v1412_v8, %v8617_v17  ;;  %v1525_v8 = vand.u32 2147483647, %v1482_v50 }
 0x76c   :  { %v1437_v48 = vadd.f32 %v1431_v59, %v1383_v0  ;;  %v8743_v4 = vadd.f32 %v1419_v53, %v8617_v17  ;;  %v1494_v17 = vsel %vm1493_vm9, %v7491_v10, %v1490_v55  ;;  %v1520_v10 = vadd.f32 %v7495_v45, %v1519_v46 }
 0x76d   :  { %v1499_v32 = vsel %vm1496_vm10, %v1498_v39, %v1494_v17  ;;  %v1527_v0 = vand.u32 2147483648, %v1482_v50  ;;  %vm1526_vm2 = vcmp.eq.f32.partialorder %v1525_v8, 8.507059e+37  ;;  %v1557_v17 = vand.u32 2147483648, %v1484_v22 }
 0x76e   :  { %1586 = vrot.lane.b32.xlu1 %v1437_v48, %s7839_s3  ;;  %v1461_v24 = vmul.f32 %v1437_v48, %v8277_v31  ;;  %v1524_v53 = vsel %vm1523_vm1, %v7495_v45, %v1520_v10  ;;  %v1447_v39 = vsub.f32 1.0, %v1441_v40 }
 0x76f   :  { %v1528_v59 = vor.u32 1.1754944e-38, %v1527_v0 }
 0x770   :  { %v8776_v51 = vmul.f32 %v1447_v39, %v8667_v11 }
 0x771   :  { %v1529_v47 = vsel %vm1526_vm2, %v1528_v59, %v1524_v53 }
 0x772   :  { %v1483_v15 = vmax.f32 %v8776_v51, 1e-07 }
 0x774   :  { %7498 = vrcp.f32 %v1483_v15  ;;  %v1542_v10 = vand.u32 2147483648, %v1483_v15  ;;  %vm1536_vm8 = vweird.f32 %v1483_v15  ;;  %v1540_v0 = vand.u32 2147483647, %v1483_v15 }
 0x776   :  { %1468 = vadd.xlane.f32.xlu2 %v1459_v12  ;;  %v8760_v43 = vpop.permute.xlu0 %1576  ;;  %v7497_v12 = vpop.eup %7496  ;;  %v1543_v53 = vor.u32 1.1754944e-38, %v1542_v10  ;;  %vm1541_vm10 = vcmp.eq.f32.partialorder %v1540_v0, 8.507059e+37 }
 0x777   :  { %v1547_v55 = vmul.f32 %v7497_v12, %v1484_v22  ;;  %vm1552_vm3 = vweird.f32 %v7497_v12 }
 0x778   :  { %vm1553_vm5 = vmor %vm1551_vm4, %vm1552_vm3 }
 0x779   :  { %v1463_v3 = vpop.xlane.xlu2 %1462  ;;  %v1548_v34 = vsub.f32 1.0, %v1547_v55 }
 0x77a   :  { %v1474_v25 = vsub.f32 0.0, %v1463_v3 }
 0x77b   :  { %v1549_v7 = vmul.f32 %v7497_v12, %v1548_v34  ;;  %v1588_v34 = vmul.f32 %v8260_v6, %v8760_v43 }
 0x77c   :  { %v8749_v44 = vmul.f32 %v1499_v32, %v1474_v25  ;;  %v1558_v25 = vor.u32 1.1754944e-38, %v1557_v17 }
 0x77d   :  { %v1550_v36 = vadd.f32 %v7497_v12, %v1549_v7 }
 0x77e   :  { %1596 = vperm.xlu1 %7405, %v8749_v44   ;;  %1472 = vadd.xlane.f32.xlu2 %v1461_v24 }
 0x77f   :  { %v1554_v3 = vsel %vm1553_vm5, %v7497_v12, %v1550_v36 }
 0x780   :  { %v1559_v24 = vsel %vm1556_vm6, %v1558_v25, %v1554_v3 }
 0x781   :  { %v1465_v42 = vpop.xlane.xlu1 %1464  ;;  %v1579_v50 = vpop.permute.xlu2 %1578 }
 0x782   :  { %v1475_v29 = vsub.f32 0.0, %v1465_v42  ;;  %v1485_v42 = vmax.f32 %v8785_v13, 1e-07  ;;  %v1589_v43 = vmul.f32 %v8260_v6, %v1579_v50 }
 0x784   :  { %v8757_v21 = vmul.f32 %v1514_v23, %v1475_v29  ;;  %v7499_v29 = vpop.eup %7498  ;;  %7500 = vrcp.f32 %v1485_v42  ;;  %v1572_v12 = vand.u32 2147483648, %v1485_v42  ;;  %vm1566_vm12 = vweird.f32 %v1485_v42 }
 0x785   :  { %v1532_v11 = vmul.f32 %v7499_v29, %v1483_v15  ;;  %vm1537_vm7 = vweird.f32 %v7499_v29  ;;  %v1570_v55 = vand.u32 2147483647, %v1485_v42 }
 0x786   :  { %1601 = vperm.xlu0 %7404, %v8757_v21   ;;  %vm1538_vm9 = vmor %vm1536_vm8, %vm1537_vm7  ;;  %v1573_v39 = vor.u32 1.1754944e-38, %v1572_v12 }
 0x787   :  { %v1533_v23 = vsub.f32 1.0, %v1532_v11  ;;  %vm1571_vm14 = vcmp.eq.f32.partialorder %v1570_v55, 8.507059e+37 }
 0x789   :  { %v1534_v63 = vmul.f32 %v7499_v29, %v1533_v23 }
 0x78a   :  { %v7501_v45 = vpop.eup %7500 }
 0x78b   :  { %v1562_v16 = vmul.f32 %v7501_v45, %v1485_v42  ;;  %v1535_v46 = vadd.f32 %v7499_v29, %v1534_v63  ;;  %vm1567_vm11 = vweird.f32 %v7501_v45 }
 0x78c   :  { %vm1568_vm13 = vmor %vm1566_vm12, %vm1567_vm11 }
 0x78d   :  { %v1563_v18 = vsub.f32 1.0, %v1562_v16  ;;  %v1539_v26 = vsel %vm1538_vm9, %v7499_v29, %v1535_v46 }
 0x78f   :  { %v1564_v8 = vmul.f32 %v7501_v45, %v1563_v18 }
 0x791   :  { %v1565_v22 = vadd.f32 %v7501_v45, %v1564_v8 }
 0x793   :  { %v1569_v36 = vsel %vm1568_vm13, %v7501_v45, %v1565_v22 }
 0x799   :  { %v8771_v60 = vpop.permute.xlu1 %1580 }
 0x79a   :  { %v1590_v23 = vmul.f32 %v8260_v6, %v8771_v60 }
 0x7a1   :  { %v1467_v48 = vpop.xlane.xlu0 %1466 }
 0x7a2   :  { %v1476_v62 = vsub.f32 0.0, %v1467_v48 }
 0x7a4   :  { %v8767_v61 = vmul.f32 %v1529_v47, %v1476_v62  ;;  %v1544_v62 = vsel %vm1541_vm10, %v1543_v53, %v1539_v26 }
 0x7a6   :  { %1606 = vperm.xlu0 %7404, %v8767_v61  }
 0x7a7   :  { %v8788_v14 = vpop.permute.xlu2 %1582 }
 0x7b4   :  { %v1585_v7 = vpop.permute.xlu0 %1584 }
 0x7c4   :  { %v1471_v27 = vpop.xlane.xlu1 %1470 }
 0x7c5   :  { %v1478_v32 = vsub.f32 0.0, %v1471_v27  ;;  %v1574_v27 = vsel %vm1571_vm14, %v1573_v39, %v1569_v36 }
 0x7c7   :  { %v8780_v37 = vmul.f32 %v1559_v24, %v1478_v32 }
 0x7c9   :  { %1616 = vperm.xlu2 %7403, %v8780_v37  }
 0x7e0   :  { %v8790_v9 = vpop.permute.xlu1 %1586 }
 0x7e9   :  { %v1469_v59 = vpop.xlane.xlu2 %1468 }
 0x7ea   :  { %v1477_v48 = vsub.f32 0.0, %v1469_v59  ;;  %v1591_v59 = vmul.f32 %v8260_v6, %v8788_v14 }
 0x7ec   :  { %v8792_v47 = vmul.f32 %v1544_v62, %v1477_v48 }
 0x7ee   :  { %1611 = vperm.xlu1 %7405, %v8792_v47  }
 0x7f0   :  { %v1597_v40 = vpop.permute.xlu1 %1596 }
 0x7f1   :  { %v1624_v17 = vmul.f32 %v1597_v40, %v1588_v34  ;;  %v1636_v5 = vmul.f32 %v1597_v40, %v8694_v35  ;;  %v1473_v3 = vpop.xlane.xlu2 %1472 }
 0x7f2   :  { %v1479_v25 = vsub.f32 0.0, %v1473_v3 }
 0x7f3   :  { %v1642_v32 = vadd.f32 %v1636_v5, %v1588_v34  ;;  %v8799_v24 = vadd.f32 %v1624_v17, %v8694_v35  ;;  %v1593_v34 = vmul.f32 %v8260_v6, %v8790_v9 }
 0x7f4   :  { %v8801_v33 = vmul.f32 %v1574_v27, %v1479_v25 }
 0x7f5   :  { %1786 = vrot.lane.b32.xlu2 %v1642_v32, %s7839_s3  ;;  %v1666_v18 = vmul.f32 %v1642_v32, %v8226_v56 }
 0x7f6   :  { %1621 = vperm.xlu0 %7404, %v8801_v33  }
 0x7f8   :  { %v1602_v15 = vpop.permute.xlu0 %1601 }
 0x7f9   :  { %v1625_v49 = vmul.f32 %v1602_v15, %v1589_v43  ;;  %v1637_v42 = vmul.f32 %v1602_v15, %v8705_v19 }
 0x7fb   :  { %v1643_v29 = vadd.f32 %v1637_v42, %v1589_v43  ;;  %v8808_v11 = vadd.f32 %v1625_v49, %v8705_v19  ;;  %v1592_v19 = vmul.f32 %v8260_v6, %v1585_v7 }
 0x7fd   :  { %v1667_v35 = vmul.f32 %v1643_v29, %v8228_v58 }
 0x7fe   :  { %1788 = vrot.lane.b32.xlu0 %v1643_v29, %s7839_s3 }
 0x818   :  { %1674 = vadd.xlane.f32.xlu1 %v1667_v35  ;;  %v1607_v45 = vpop.permute.xlu0 %1606 }
 0x819   :  { %v1626_v63 = vmul.f32 %v1607_v45, %v1590_v23  ;;  %v1638_v50 = vmul.f32 %v1607_v45, %v8711_v28 }
 0x81b   :  { %v1644_v16 = vadd.f32 %v1638_v50, %v1590_v23  ;;  %v8816_v46 = vadd.f32 %v1626_v63, %v8711_v28 }
 0x81d   :  { %1790 = vrot.lane.b32.xlu0 %v1644_v16, %s7839_s3  ;;  %v1668_v28 = vmul.f32 %v1644_v16, %v8233_v2 }
 0x81e   :  { %1672 = vadd.xlane.f32.xlu2 %v1666_v18 }
 0x823   :  { %v1617_v10 = vpop.permute.xlu2 %1616 }
 0x824   :  { %v1628_v0 = vmul.f32 %v1617_v10, %v1592_v19  ;;  %v1640_v26 = vmul.f32 %v1617_v10, %v8701_v38 }
 0x826   :  { %v8822_v60 = vadd.f32 %v1628_v0, %v8701_v38  ;;  %v1646_v8 = vadd.f32 %v1640_v26, %v1592_v19  ;;  %v1648_v38 = vmul.f32 %v8749_v44, %v8749_v44  ;;  %v1649_v44 = vmul.f32 %v8757_v21, %v8757_v21 }
 0x828   :  { %v1670_v53 = vmul.f32 %v1646_v8, %v8275_v30  ;;  %v1654_v36 = vsub.f32 1.0, %v1648_v38  ;;  %v1655_v9 = vsub.f32 1.0, %v1649_v44 }
 0x82a   :  { %v8851_v25 = vmul.f32 %v1655_v9, %v8736_v57  ;;  %v1650_v57 = vmul.f32 %v8767_v61, %v8767_v61 }
 0x82c   :  { %v1656_v18 = vsub.f32 1.0, %v1650_v57 }
 0x82e   :  { %v8864_v26 = vmul.f32 %v1656_v18, %v8754_v41  ;;  %v1652_v41 = vmul.f32 %v8780_v37, %v8780_v37 }
 0x831   :  { %1794 = vrot.lane.b32.xlu1 %v1646_v8, %s7839_s3  ;;  %v1692_v8 = vmax.f32 %v8864_v26, 1e-07 }
 0x833   :  { %vm1731_vm8 = vweird.f32 %v1692_v8 }
 0x847   :  { %1676 = vadd.xlane.f32.xlu0 %v1668_v28 }
 0x84f   :  { %v8854_v15 = vpop.permute.xlu2 %1786 }
 0x85b   :  { %1680 = vadd.xlane.f32.xlu1 %v1670_v53 }
 0x860   :  { %v1612_v48 = vpop.permute.xlu1 %1611 }
 0x861   :  { %v1627_v62 = vmul.f32 %v1612_v48, %v1591_v59  ;;  %v1639_v22 = vmul.f32 %v1612_v48, %v8723_v52 }
 0x863   :  { %v1645_v12 = vadd.f32 %v1639_v22, %v1591_v59  ;;  %v8832_v55 = vadd.f32 %v1627_v62, %v8723_v52  ;;  %v8845_v52 = vmul.f32 %v1654_v36, %v8732_v54 }
 0x865   :  { %1792 = vrot.lane.b32.xlu2 %v1645_v12, %s7839_s3  ;;  %v1690_v39 = vmax.f32 %v8845_v52, 1e-07  ;;  %v1669_v54 = vmul.f32 %v1645_v12, %v8240_v20 }
 0x867   :  { %7502 = vrcp.f32 %v1690_v39  ;;  %v1707_v29 = vand.u32 2147483648, %v1690_v39  ;;  %vm1701_vm0 = vweird.f32 %v1690_v39  ;;  %v1705_v21 = vand.u32 2147483647, %v1690_v39 }
 0x868   :  { %v1622_v7 = vpop.permute.xlu0 %1621 }
 0x869   :  { %v1629_v40 = vmul.f32 %v1622_v7, %v1593_v34  ;;  %v1641_v14 = vmul.f32 %v1622_v7, %v8743_v4  ;;  %v1708_v45 = vor.u32 1.1754944e-38, %v1707_v29  ;;  %vm1706_vm2 = vcmp.eq.f32.partialorder %v1705_v21, 8.507059e+37 }
 0x86b   :  { %v1647_v17 = vadd.f32 %v1641_v14, %v1593_v34  ;;  %v8841_v5 = vadd.f32 %v1629_v40, %v8743_v4  ;;  %v1691_v4 = vmax.f32 %v8851_v25, 1e-07  ;;  %v1658_v40 = vsub.f32 1.0, %v1652_v41 }
 0x86d   :  { %1796 = vrot.lane.b32.xlu0 %v1647_v17, %s7839_s3  ;;  %v7503_v3 = vpop.eup %7502  ;;  %7504 = vrcp.f32 %v1691_v4  ;;  %v1671_v0 = vmul.f32 %v1647_v17, %v8277_v31  ;;  %v1722_v53 = vand.u32 2147483648, %v1691_v4  ;;  %vm1716_vm4 = vweird.f32 %v1691_v4 }
 0x86e   :  { %v1697_v27 = vmul.f32 %v7503_v3, %v1690_v39  ;;  %vm1702_vm15 = vweird.f32 %v7503_v3  ;;  %v1720_v48 = vand.u32 2147483647, %v1691_v4  ;;  %7506 = vrcp.f32 %v1692_v8 }
 0x86f   :  { %vm1703_vm1 = vmor %vm1701_vm0, %vm1702_vm15  ;;  %v1723_v12 = vor.u32 1.1754944e-38, %v1722_v53  ;;  %v8875_v17 = vmul.f32 %v1658_v40, %v8765_v1 }
 0x870   :  { %v1698_v32 = vsub.f32 1.0, %v1697_v27  ;;  %vm1721_vm6 = vcmp.eq.f32.partialorder %v1720_v48, 8.507059e+37  ;;  %v8872_v36 = vpop.permute.xlu0 %1788  ;;  %v1737_v27 = vand.u32 2147483648, %v1692_v8  ;;  %v1653_v48 = vmul.f32 %v8801_v33, %v8801_v33 }
 0x871   :  { %v1694_v44 = vmax.f32 %v8875_v17, 1e-07 }
 0x872   :  { %v1699_v43 = vmul.f32 %v7503_v3, %v1698_v32 }
 0x873   :  { %v7505_v42 = vpop.eup %7504  ;;  %7508 = vrcp.f32 %v1694_v44  ;;  %vm1761_vm12 = vweird.f32 %v1694_v44 }
 0x874   :  { %v1700_v49 = vadd.f32 %v7503_v3, %v1699_v43  ;;  %v1712_v35 = vmul.f32 %v7505_v42, %v1691_v4  ;;  %vm1717_vm3 = vweird.f32 %v7505_v42  ;;  %v7507_v7 = vpop.eup %7506  ;;  %v1735_v4 = vand.u32 2147483647, %v1692_v8 }
 0x875   :  { %vm1718_vm5 = vmor %vm1716_vm4, %vm1717_vm3  ;;  %v1727_v14 = vmul.f32 %v7507_v7, %v1692_v8  ;;  %vm1732_vm7 = vweird.f32 %v7507_v7 }
 0x876   :  { %v1704_v23 = vsel %vm1703_vm1, %v7503_v3, %v1700_v49  ;;  %v1713_v19 = vsub.f32 1.0, %v1712_v35  ;;  %vm1733_vm9 = vmor %vm1731_vm8, %vm1732_vm7  ;;  %vm1736_vm10 = vcmp.eq.f32.partialorder %v1735_v4, 8.507059e+37 }
 0x877   :  { %v1709_v16 = vsel %vm1706_vm2, %v1708_v45, %v1704_v23  ;;  %v1728_v39 = vsub.f32 1.0, %v1727_v14 }
 0x878   :  { %v1714_v61 = vmul.f32 %v7505_v42, %v1713_v19 }
 0x879   :  { %v1729_v9 = vmul.f32 %v7507_v7, %v1728_v39  ;;  %v7509_v43 = vpop.eup %7508 }
 0x87a   :  { %v1715_v28 = vadd.f32 %v7505_v42, %v1714_v61  ;;  %v1757_v21 = vmul.f32 %v7509_v43, %v1694_v44  ;;  %vm1762_vm11 = vweird.f32 %v7509_v43 }
 0x87b   :  { %v1730_v37 = vadd.f32 %v7507_v7, %v1729_v9  ;;  %vm1763_vm13 = vmor %vm1761_vm12, %vm1762_vm11 }
 0x87c   :  { %v1719_v62 = vsel %vm1718_vm5, %v7505_v42, %v1715_v28  ;;  %v1758_v57 = vsub.f32 1.0, %v1757_v21  ;;  %v1651_v28 = vmul.f32 %v8792_v47, %v8792_v47 }
 0x87d   :  { %v1724_v38 = vsel %vm1721_vm6, %v1723_v12, %v1719_v62  ;;  %v1734_v32 = vsel %vm1733_vm9, %v7507_v7, %v1730_v37 }
 0x87e   :  { %v1759_v35 = vmul.f32 %v7509_v43, %v1758_v57  ;;  %v1657_v53 = vsub.f32 1.0, %v1651_v28  ;;  %v1798_v57 = vmul.f32 %v8260_v6, %v8854_v15 }
 0x880   :  { %v1760_v45 = vadd.f32 %v7509_v43, %v1759_v35 }
 0x88b   :  { %v1675_v59 = vpop.xlane.xlu1 %1674 }
 0x88c   :  { %v1685_v22 = vsub.f32 0.0, %v1675_v59  ;;  %v8891_v59 = vmul.f32 %v1657_v53, %v8776_v51 }
 0x88e   :  { %1678 = vadd.xlane.f32.xlu2 %v1669_v54  ;;  %v8869_v34 = vmul.f32 %v1724_v38, %v1685_v22  ;;  %v1738_v54 = vor.u32 1.1754944e-38, %v1737_v27  ;;  %v1693_v62 = vmax.f32 %v8891_v59, 1e-07  ;;  %v1659_v22 = vsub.f32 1.0, %v1653_v48 }
 0x88f   :  { %v8878_v3 = vpop.permute.xlu0 %1790 }
 0x890   :  { %v1739_v42 = vsel %vm1736_vm10, %v1738_v54, %v1734_v32  ;;  %7510 = vrcp.f32 %v1693_v62  ;;  %v8897_v12 = vmul.f32 %v1659_v22, %v8785_v13  ;;  %v1752_v33 = vand.u32 2147483648, %v1693_v62 }
 0x891   :  { %v1673_v63 = vpop.xlane.xlu2 %1672  ;;  %vm1746_vm0 = vweird.f32 %v1693_v62  ;;  %v1750_v37 = vand.u32 2147483647, %v1693_v62 }
 0x892   :  { %v1684_v50 = vsub.f32 0.0, %v1673_v63  ;;  %v1767_v63 = vand.u32 2147483648, %v1694_v44  ;;  %v1695_v38 = vmax.f32 %v8897_v12, 1e-07  ;;  %v1753_v27 = vor.u32 1.1754944e-38, %v1752_v33 }
 0x893   :  { %vm1751_vm2 = vcmp.eq.f32.partialorder %v1750_v37, 8.507059e+37 }
 0x894   :  { %v8859_v10 = vmul.f32 %v1709_v16, %v1684_v50  ;;  %v1765_v50 = vand.u32 2147483647, %v1694_v44  ;;  %v1764_v16 = vsel %vm1763_vm13, %v7509_v43, %v1760_v45  ;;  %v1768_v18 = vor.u32 1.1754944e-38, %v1767_v63 }
 0x895   :  { %7512 = vrcp.f32 %v1695_v38  ;;  %v1782_v21 = vand.u32 2147483648, %v1695_v38  ;;  %vm1776_vm4 = vweird.f32 %v1695_v38  ;;  %v1780_v35 = vand.u32 2147483647, %v1695_v38 }
 0x896   :  { %1806 = vperm.xlu1 %7405, %v8859_v10   ;;  %vm1766_vm14 = vcmp.eq.f32.partialorder %v1765_v50, 8.507059e+37  ;;  %v7511_v41 = vpop.eup %7510  ;;  %v1799_v45 = vmul.f32 %v8260_v6, %v8872_v36 }
 0x897   :  { %1682 = vadd.xlane.f32.xlu0 %v1671_v0  ;;  %v1769_v61 = vsel %vm1766_vm14, %v1768_v18, %v1764_v16  ;;  %v1742_v7 = vmul.f32 %v7511_v41, %v1693_v62  ;;  %vm1747_vm15 = vweird.f32 %v7511_v41  ;;  %vm1781_vm6 = vcmp.eq.f32.partialorder %v1780_v35, 8.507059e+37 }
 0x898   :  { %vm1748_vm1 = vmor %vm1746_vm0, %vm1747_vm15 }
 0x899   :  { %v1743_v47 = vsub.f32 1.0, %v1742_v7 }
 0x89b   :  { %v7513_v40 = vpop.eup %7512  ;;  %v1744_v14 = vmul.f32 %v7511_v41, %v1743_v47 }
 0x89c   :  { %v1772_v39 = vmul.f32 %v7513_v40, %v1695_v38  ;;  %vm1777_vm3 = vweird.f32 %v7513_v40 }
 0x89d   :  { %v1745_v44 = vadd.f32 %v7511_v41, %v1744_v14  ;;  %vm1778_vm5 = vmor %vm1776_vm4, %vm1777_vm3  ;;  %v1800_v14 = vmul.f32 %v8260_v6, %v8878_v3 }
 0x89e   :  { %v1773_v9 = vsub.f32 1.0, %v1772_v39 }
 0x89f   :  { %v1749_v13 = vsel %vm1748_vm1, %v7511_v41, %v1745_v44 }
 0x8a0   :  { %v1774_v32 = vmul.f32 %v7513_v40, %v1773_v9 }
 0x8a3   :  { %v8883_v23 = vpop.permute.xlu1 %1794 }
 0x8a4   :  { %v1802_v7 = vmul.f32 %v8260_v6, %v8883_v23 }
 0x8a6   :  { %1811 = vperm.xlu2 %7403, %v8869_v34  }
 0x8ba   :  { %v1677_v49 = vpop.xlane.xlu0 %1676 }
 0x8bb   :  { %v1686_v1 = vsub.f32 0.0, %v1677_v49  ;;  %v1754_v49 = vsel %vm1751_vm2, %v1753_v27, %v1749_v13 }
 0x8bd   :  { %v8880_v29 = vmul.f32 %v1739_v42, %v1686_v1  ;;  %v1775_v42 = vadd.f32 %v7513_v40, %v1774_v32 }
 0x8bf   :  { %1816 = vperm.xlu1 %7405, %v8880_v29   ;;  %v8900_v51 = vpop.permute.xlu2 %1792 }
 0x8c0   :  { %v1801_v32 = vmul.f32 %v8260_v6, %v8900_v51 }
 0x8ce   :  { %v1681_v19 = vpop.xlane.xlu1 %1680 }
 0x8cf   :  { %v1688_v0 = vsub.f32 0.0, %v1681_v19  ;;  %v1779_v19 = vsel %vm1778_vm5, %v7513_v40, %v1775_v42 }
 0x8d1   :  { %v8885_v8 = vmul.f32 %v1769_v61, %v1688_v0  ;;  %v1783_v61 = vor.u32 1.1754944e-38, %v1782_v21 }
 0x8d3   :  { %1826 = vperm.xlu2 %7403, %v8885_v8   ;;  %v1784_v62 = vsel %vm1781_vm6, %v1783_v61, %v1779_v19 }
 0x8df   :  { %v8902_v43 = vpop.permute.xlu0 %1796 }
 0x8e0   :  { %v1803_v35 = vmul.f32 %v8260_v6, %v8902_v43  ;;  %v1860_v43 = vmul.f32 %v8880_v29, %v8880_v29 }
 0x901   :  { %v1679_v4 = vpop.xlane.xlu2 %1678 }
 0x902   :  { %v1687_v54 = vsub.f32 0.0, %v1679_v4 }
 0x904   :  { %v8904_v1 = vmul.f32 %v1754_v49, %v1687_v54 }
 0x906   :  { %1821 = vperm.xlu0 %7404, %v8904_v1  }
 0x908   :  { %v1807_v63 = vpop.permute.xlu1 %1806 }
 0x909   :  { %v1834_v50 = vmul.f32 %v1807_v63, %v1798_v57  ;;  %v1846_v16 = vmul.f32 %v1807_v63, %v8799_v24  ;;  %v1812_v18 = vpop.permute.xlu2 %1811 }
 0x90a   :  { %v1835_v0 = vmul.f32 %v1812_v18, %v1799_v45  ;;  %v1683_v28 = vpop.xlane.xlu0 %1682  ;;  %v1847_v38 = vmul.f32 %v1812_v18, %v8808_v11 }
 0x90b   :  { %v1689_v53 = vsub.f32 0.0, %v1683_v28  ;;  %v1852_v48 = vadd.f32 %v1846_v16, %v1798_v57  ;;  %v8913_v15 = vadd.f32 %v1834_v50, %v8799_v24  ;;  %v1858_v57 = vmul.f32 %v8859_v10, %v8859_v10 }
 0x90c   :  { %v8916_v22 = vadd.f32 %v1835_v0, %v8808_v11  ;;  %v1853_v41 = vadd.f32 %v1847_v38, %v1799_v45  ;;  %v1866_v28 = vsub.f32 1.0, %v1860_v43 }
 0x90d   :  { %v8918_v36 = vmul.f32 %v1784_v62, %v1689_v53  ;;  %1996 = vrot.lane.b32.xlu2 %v1852_v48, %s7839_s3  ;;  %v1876_v11 = vmul.f32 %v1852_v48, %v8226_v56  ;;  %v1864_v63 = vsub.f32 1.0, %v1858_v57 }
 0x90e   :  { %v1877_v40 = vmul.f32 %v1853_v41, %v8228_v58 }
 0x90f   :  { %1831 = vperm.xlu1 %7405, %v8918_v36   ;;  %v8960_v16 = vmul.f32 %v1864_v63, %v8845_v52  ;;  %v8971_v52 = vmul.f32 %v1866_v28, %v8864_v26 }
 0x911   :  { %v1900_v19 = vmax.f32 %v8960_v16, 1e-07 }
 0x913   :  { %7514 = vrcp.f32 %v1900_v19  ;;  %v1917_v26 = vand.u32 2147483648, %v1900_v19  ;;  %vm1911_vm8 = vweird.f32 %v1900_v19 }
 0x917   :  { %1998 = vrot.lane.b32.xlu1 %v1853_v41, %s7839_s3 }
 0x919   :  { %v7515_v53 = vpop.eup %7514 }
 0x91a   :  { %v1907_v48 = vmul.f32 %v7515_v53, %v1900_v19  ;;  %vm1912_vm7 = vweird.f32 %v7515_v53 }
 0x91b   :  { %vm1913_vm9 = vmor %vm1911_vm8, %vm1912_vm7 }
 0x91c   :  { %v1908_v62 = vsub.f32 1.0, %v1907_v48 }
 0x91e   :  { %v1909_v41 = vmul.f32 %v7515_v53, %v1908_v62 }
 0x92d   :  { %v1827_v24 = vpop.permute.xlu2 %1826 }
 0x92e   :  { %v1838_v47 = vmul.f32 %v1827_v24, %v1802_v7  ;;  %v1850_v13 = vmul.f32 %v1827_v24, %v8822_v60  ;;  %v1910_v24 = vadd.f32 %v7515_v53, %v1909_v41 }
 0x930   :  { %1884 = vadd.xlane.f32.xlu0 %v1877_v40  ;;  %v8930_v39 = vadd.f32 %v1838_v47, %v8822_v60  ;;  %v1856_v3 = vadd.f32 %v1850_v13, %v1802_v7 }
 0x931   :  { %v1817_v44 = vpop.permute.xlu1 %1816 }
 0x932   :  { %v1836_v33 = vmul.f32 %v1817_v44, %v1800_v14  ;;  %v1848_v23 = vmul.f32 %v1817_v44, %v8816_v46  ;;  %v1880_v4 = vmul.f32 %v1856_v3, %v8275_v30 }
 0x934   :  { %v8934_v9 = vadd.f32 %v1836_v33, %v8816_v46  ;;  %v1854_v37 = vadd.f32 %v1848_v23, %v1800_v14  ;;  %v1915_v14 = vand.u32 2147483647, %v1900_v19  ;;  %v1914_v33 = vsel %vm1913_vm9, %v7515_v53, %v1910_v24 }
 0x935   :  { %v1918_v23 = vor.u32 1.1754944e-38, %v1917_v26 }
 0x936   :  { %1882 = vadd.xlane.f32.xlu2 %v1876_v11  ;;  %v1878_v27 = vmul.f32 %v1854_v37, %v8233_v2  ;;  %vm1916_vm10 = vcmp.eq.f32.partialorder %v1915_v14, 8.507059e+37 }
 0x941   :  { %1886 = vadd.xlane.f32.xlu1 %v1878_v27  ;;  %v1919_v27 = vsel %vm1916_vm10, %v1918_v23, %v1914_v33 }
 0x944   :  { %2004 = vrot.lane.b32.xlu0 %v1856_v3, %s7839_s3 }
 0x94e   :  { %2000 = vrot.lane.b32.xlu2 %v1854_v37, %s7839_s3 }
 0x96e   :  { %1890 = vadd.xlane.f32.xlu0 %v1880_v4 }
 0x978   :  { %v1822_v54 = vpop.permute.xlu0 %1821 }
 0x979   :  { %v1837_v49 = vmul.f32 %v1822_v54, %v1801_v32  ;;  %v1849_v46 = vmul.f32 %v1822_v54, %v8832_v55 }
 0x97b   :  { %v1855_v42 = vadd.f32 %v1849_v46, %v1801_v32  ;;  %v8946_v60 = vadd.f32 %v1837_v49, %v8832_v55  ;;  %v1859_v55 = vmul.f32 %v8869_v34, %v8869_v34 }
 0x97d   :  { %2002 = vrot.lane.b32.xlu1 %v1855_v42, %s7839_s3  ;;  %v1879_v21 = vmul.f32 %v1855_v42, %v8240_v20  ;;  %v1865_v18 = vsub.f32 1.0, %v1859_v55 }
 0x97f   :  { %1888 = vadd.xlane.f32.xlu2 %v1879_v21  ;;  %v8964_v10 = vmul.f32 %v1865_v18, %v8851_v25  ;;  %v1902_v25 = vmax.f32 %v8971_v52, 1e-07 }
 0x981   :  { %v1832_v51 = vpop.permute.xlu1 %1831  ;;  %v1901_v61 = vmax.f32 %v8964_v10, 1e-07  ;;  %v1947_v18 = vand.u32 2147483648, %v1902_v25  ;;  %vm1941_vm0 = vweird.f32 %v1902_v25  ;;  %v1945_v43 = vand.u32 2147483647, %v1902_v25 }
 0x982   :  { %v1839_v45 = vmul.f32 %v1832_v51, %v1803_v35  ;;  %v1851_v0 = vmul.f32 %v1832_v51, %v8841_v5 }
 0x983   :  { %7516 = vrcp.f32 %v1901_v61  ;;  %v1932_v46 = vand.u32 2147483648, %v1901_v61  ;;  %vm1926_vm12 = vweird.f32 %v1901_v61  ;;  %v1930_v42 = vand.u32 2147483647, %v1901_v61 }
 0x984   :  { %v8955_v50 = vadd.f32 %v1839_v45, %v8841_v5  ;;  %v1857_v34 = vadd.f32 %v1851_v0, %v1803_v35  ;;  %7518 = vrcp.f32 %v1902_v25  ;;  %v8975_v5 = vpop.permute.xlu2 %1996  ;;  %v1862_v0 = vmul.f32 %v8885_v8, %v8885_v8 }
 0x985   :  { %v1933_v51 = vor.u32 1.1754944e-38, %v1932_v46  ;;  %vm1931_vm14 = vcmp.eq.f32.partialorder %v1930_v42, 8.507059e+37  ;;  %v1948_v53 = vor.u32 1.1754944e-38, %v1947_v18  ;;  %vm1946_vm2 = vcmp.eq.f32.partialorder %v1945_v43, 8.507059e+37 }
 0x986   :  { %v1881_v40 = vmul.f32 %v1857_v34, %v8277_v31  ;;  %v1861_v8 = vmul.f32 %v8904_v1, %v8904_v1 }
 0x989   :  { %v7517_v38 = vpop.eup %7516  ;;  %v8980_v54 = vpop.permute.xlu1 %1998 }
 0x98a   :  { %v1922_v29 = vmul.f32 %v7517_v38, %v1901_v61  ;;  %v7519_v47 = vpop.eup %7518  ;;  %vm1927_vm11 = vweird.f32 %v7517_v38 }
 0x98b   :  { %v1937_v11 = vmul.f32 %v7519_v47, %v1902_v25  ;;  %vm1928_vm13 = vmor %vm1926_vm12, %vm1927_vm11  ;;  %vm1942_vm15 = vweird.f32 %v7519_v47 }
 0x98c   :  { %v1923_v7 = vsub.f32 1.0, %v1922_v29  ;;  %vm1943_vm1 = vmor %vm1941_vm0, %vm1942_vm15  ;;  %v1867_v29 = vsub.f32 1.0, %v1861_v8 }
 0x98d   :  { %v1938_v32 = vsub.f32 1.0, %v1937_v11 }
 0x98e   :  { %v1924_v44 = vmul.f32 %v7517_v38, %v1923_v7  ;;  %v8998_v7 = vmul.f32 %v1867_v29, %v8891_v59 }
 0x98f   :  { %v1939_v35 = vmul.f32 %v7519_v47, %v1938_v32 }
 0x990   :  { %v1925_v3 = vadd.f32 %v7517_v38, %v1924_v44 }
 0x991   :  { %v1940_v55 = vadd.f32 %v7519_v47, %v1939_v35  ;;  %v1863_v35 = vmul.f32 %v8918_v36, %v8918_v36 }
 0x992   :  { %v1929_v57 = vsel %vm1928_vm13, %v7517_v38, %v1925_v3 }
 0x993   :  { %v1934_v45 = vsel %vm1931_vm14, %v1933_v51, %v1929_v57  ;;  %v1944_v61 = vsel %vm1943_vm1, %v7519_v47, %v1940_v55  ;;  %v1903_v47 = vmax.f32 %v8998_v7, 1e-07 }
 0x994   :  { %v1949_v48 = vsel %vm1946_vm2, %v1948_v53, %v1944_v61 }
 0x995   :  { %vm1956_vm8 = vweird.f32 %v1903_v47  ;;  %v1960_v57 = vand.u32 2147483647, %v1903_v47 }
 0x997   :  { %2006 = vrot.lane.b32.xlu2 %v1857_v34, %s7839_s3  ;;  %v1868_v34 = vsub.f32 1.0, %v1862_v0  ;;  %vm1961_vm10 = vcmp.eq.f32.partialorder %v1960_v57, 8.507059e+37 }
 0x999   :  { %v8992_v38 = vmul.f32 %v1868_v34, %v8875_v17 }
 0x99b   :  { %v1904_v25 = vmax.f32 %v8992_v38, 1e-07 }
 0x99d   :  { %7520 = vrcp.f32 %v1904_v25  ;;  %v1977_v44 = vand.u32 2147483648, %v1904_v25  ;;  %vm1971_vm4 = vweird.f32 %v1904_v25  ;;  %v1975_v11 = vand.u32 2147483647, %v1904_v25 }
 0x99e   :  { %7522 = vrcp.f32 %v1903_v47 }
 0x99f   :  { %vm1976_vm6 = vcmp.eq.f32.partialorder %v1975_v11, 8.507059e+37 }
 0x9a3   :  { %v1885_v49 = vpop.xlane.xlu0 %1884  ;;  %v7521_v41 = vpop.eup %7520 }
 0x9a4   :  { %v1895_v21 = vsub.f32 0.0, %v1885_v49  ;;  %v1967_v24 = vmul.f32 %v7521_v41, %v1904_v25  ;;  %vm1972_vm3 = vweird.f32 %v7521_v41  ;;  %v7523_v33 = vpop.eup %7522 }
 0x9a5   :  { %vm1973_vm5 = vmor %vm1971_vm4, %vm1972_vm3  ;;  %v1952_v59 = vmul.f32 %v7523_v33, %v1903_v47  ;;  %vm1957_vm7 = vweird.f32 %v7523_v33 }
 0x9a6   :  { %v8983_v63 = vmul.f32 %v1934_v45, %v1895_v21  ;;  %v1962_v21 = vand.u32 2147483648, %v1903_v47  ;;  %vm1958_vm9 = vmor %vm1956_vm8, %vm1957_vm7 }
 0x9a7   :  { %1892 = vadd.xlane.f32.xlu1 %v1881_v40  ;;  %v1968_v40 = vsub.f32 1.0, %v1967_v24  ;;  %v1953_v32 = vsub.f32 1.0, %v1952_v59  ;;  %v2009_v59 = vmul.f32 %v8260_v6, %v8980_v54 }
 0x9a8   :  { %v1963_v45 = vor.u32 1.1754944e-38, %v1962_v21 }
 0x9a9   :  { %v1883_v37 = vpop.xlane.xlu2 %1882  ;;  %v1969_v26 = vmul.f32 %v7521_v41, %v1968_v40  ;;  %v1954_v49 = vmul.f32 %v7523_v33, %v1953_v32 }
 0x9aa   :  { %v1894_v13 = vsub.f32 0.0, %v1883_v37  ;;  %v1978_v37 = vor.u32 1.1754944e-38, %v1977_v44  ;;  %v2008_v44 = vmul.f32 %v8260_v6, %v8975_v5 }
 0x9ab   :  { %v1970_v17 = vadd.f32 %v7521_v41, %v1969_v26  ;;  %v1955_v42 = vadd.f32 %v7523_v33, %v1954_v49 }
 0x9ac   :  { %v8978_v4 = vmul.f32 %v1919_v27, %v1894_v13 }
 0x9ad   :  { %v1974_v1 = vsel %vm1973_vm5, %v7521_v41, %v1970_v17  ;;  %v1959_v51 = vsel %vm1958_vm9, %v7523_v33, %v1955_v42 }
 0x9ae   :  { %2016 = vperm.xlu0 %7404, %v8978_v4   ;;  %v1979_v27 = vsel %vm1976_vm6, %v1978_v37, %v1974_v1  ;;  %v1964_v43 = vsel %vm1961_vm10, %v1963_v45, %v1959_v51 }
 0x9b1   :  { %v2001_v46 = vpop.permute.xlu2 %2000 }
 0x9b4   :  { %v1887_v19 = vpop.xlane.xlu1 %1886 }
 0x9b5   :  { %v1896_v28 = vsub.f32 0.0, %v1887_v19  ;;  %v1869_v19 = vsub.f32 1.0, %v1863_v35 }
 0x9b6   :  { %2021 = vperm.xlu0 %7404, %v8983_v63   ;;  %v9001_v14 = vpop.permute.xlu0 %2004 }
 0x9b7   :  { %v8988_v62 = vmul.f32 %v1949_v48, %v1896_v28  ;;  %v9012_v61 = vmul.f32 %v1869_v19, %v8897_v12 }
 0x9b9   :  { %v1905_v28 = vmax.f32 %v9012_v61, 1e-07 }
 0x9bb   :  { %7524 = vrcp.f32 %v1905_v28  ;;  %v1992_v29 = vand.u32 2147483648, %v1905_v28  ;;  %vm1986_vm12 = vweird.f32 %v1905_v28  ;;  %v1990_v41 = vand.u32 2147483647, %v1905_v28 }
 0x9bd   :  { %v1993_v47 = vor.u32 1.1754944e-38, %v1992_v29  ;;  %vm1991_vm14 = vcmp.eq.f32.partialorder %v1990_v41, 8.507059e+37 }
 0x9be   :  { %2026 = vperm.xlu0 %7404, %v8988_v62  }
 0x9c1   :  { %v7525_v53 = vpop.eup %7524 }
 0x9c2   :  { %v1982_v36 = vmul.f32 %v7525_v53, %v1905_v28  ;;  %vm1987_vm11 = vweird.f32 %v7525_v53 }
 0x9c3   :  { %vm1988_vm13 = vmor %vm1986_vm12, %vm1987_vm11 }
 0x9c4   :  { %v1983_v34 = vsub.f32 1.0, %v1982_v36 }
 0x9c6   :  { %v1984_v48 = vmul.f32 %v7525_v53, %v1983_v34 }
 0x9c8   :  { %v1985_v8 = vadd.f32 %v7525_v53, %v1984_v48 }
 0x9ca   :  { %v1989_v24 = vsel %vm1988_vm13, %v7525_v53, %v1985_v8 }
 0x9cb   :  { %v1994_v26 = vsel %vm1991_vm14, %v1993_v47, %v1989_v24 }
 0x9e1   :  { %v1891_v23 = vpop.xlane.xlu0 %1890 }
 0x9e2   :  { %v1898_v13 = vsub.f32 0.0, %v1891_v23 }
 0x9e4   :  { %v9003_v3 = vmul.f32 %v1979_v27, %v1898_v13 }
 0x9e6   :  { %2036 = vperm.xlu1 %7405, %v9003_v3  }
 0x9ef   :  { %v2003_v25 = vpop.permute.xlu1 %2002 }
 0x9f2   :  { %v1889_v55 = vpop.xlane.xlu2 %1888 }
 0x9f3   :  { %v1897_v18 = vsub.f32 0.0, %v1889_v55 }
 0x9f5   :  { %v9008_v0 = vmul.f32 %v1964_v43, %v1897_v18 }
 0x9f7   :  { %2031 = vperm.xlu2 %7403, %v9008_v0  }
 0x9fa   :  { %v2007_v54 = vpop.permute.xlu2 %2006 }
 0x9fb   :  { %v2013_v29 = vmul.f32 %v8260_v6, %v2007_v54 }
 0xa1a   :  { %v1893_v40 = vpop.xlane.xlu1 %1892 }
 0xa1b   :  { %v1899_v12 = vsub.f32 0.0, %v1893_v40 }
 0xa1d   :  { %v9015_v17 = vmul.f32 %v1994_v26, %v1899_v12  ;;  %v2068_v26 = vmul.f32 %v8978_v4, %v8978_v4 }
 0xa1f   :  { %2041 = vperm.xlu0 %7404, %v9015_v17  }
 0xa20   :  { %v2017_v33 = vpop.permute.xlu0 %2016 }
 0xa21   :  { %v2044_v11 = vmul.f32 %v2017_v33, %v2008_v44  ;;  %v2056_v1 = vmul.f32 %v2017_v33, %v8913_v15  ;;  %v2069_v33 = vmul.f32 %v8983_v63, %v8983_v63 }
 0xa23   :  { %v2062_v23 = vadd.f32 %v2056_v1, %v2008_v44  ;;  %v9022_v37 = vadd.f32 %v2044_v11, %v8913_v15  ;;  %v2010_v15 = vmul.f32 %v8260_v6, %v2001_v46  ;;  %v2074_v44 = vsub.f32 1.0, %v2068_v26 }
 0xa24   :  { %v2070_v1 = vmul.f32 %v8988_v62, %v8988_v62 }
 0xa25   :  { %2206 = vrot.lane.b32.xlu1 %v2062_v23, %s7839_s3  ;;  %v2086_v45 = vmul.f32 %v2062_v23, %v8226_v56  ;;  %v9067_v11 = vmul.f32 %v2074_v44, %v8960_v16  ;;  %v2075_v23 = vsub.f32 1.0, %v2069_v33 }
 0xa28   :  { %v2022_v13 = vpop.permute.xlu0 %2021 }
 0xa29   :  { %v2045_v27 = vmul.f32 %v2022_v13, %v2009_v59  ;;  %v2057_v32 = vmul.f32 %v2022_v13, %v8916_v22  ;;  %v9073_v13 = vmul.f32 %v2075_v23, %v8964_v10 }
 0xa2b   :  { %v2063_v5 = vadd.f32 %v2057_v32, %v2009_v59  ;;  %v9029_v49 = vadd.f32 %v2045_v27, %v8916_v22  ;;  %v2011_v22 = vmul.f32 %v8260_v6, %v2003_v25  ;;  %v2076_v59 = vsub.f32 1.0, %v2070_v1 }
 0xa2c   :  { %v2111_v27 = vmax.f32 %v9073_v13, 1e-07 }
 0xa2d   :  { %2208 = vrot.lane.b32.xlu0 %v2063_v5, %s7839_s3  ;;  %v2087_v42 = vmul.f32 %v2063_v5, %v8228_v58  ;;  %v9076_v4 = vmul.f32 %v2076_v59, %v8971_v52 }
 0xa2e   :  { %vm2136_vm5 = vweird.f32 %v2111_v27 }
 0xa2f   :  { %2094 = vadd.xlane.f32.xlu2 %v2087_v42  ;;  %v2112_v16 = vmax.f32 %v9076_v4, 1e-07 }
 0xa30   :  { %v2027_v21 = vpop.permute.xlu0 %2026 }
 0xa31   :  { %v2046_v57 = vmul.f32 %v2027_v21, %v2010_v15  ;;  %v2058_v51 = vmul.f32 %v2027_v21, %v8934_v9  ;;  %vm2151_vm7 = vweird.f32 %v2112_v16 }
 0xa33   :  { %v9035_v35 = vadd.f32 %v2046_v57, %v8934_v9  ;;  %v2064_v55 = vadd.f32 %v2058_v51, %v2010_v15  ;;  %v2012_v9 = vmul.f32 %v8260_v6, %v9001_v14 }
 0xa35   :  { %v2088_v53 = vmul.f32 %v2064_v55, %v8233_v2 }
 0xa4f   :  { %2092 = vadd.xlane.f32.xlu1 %v2086_v45 }
 0xa51   :  { %v2032_v18 = vpop.permute.xlu2 %2031 }
 0xa52   :  { %v2047_v19 = vmul.f32 %v2032_v18, %v2011_v22  ;;  %v2059_v43 = vmul.f32 %v2032_v18, %v8946_v60 }
 0xa54   :  { %v2065_v46 = vadd.f32 %v2059_v43, %v2011_v22  ;;  %v9042_v28 = vadd.f32 %v2047_v19, %v8946_v60 }
 0xa56   :  { %2212 = vrot.lane.b32.xlu2 %v2065_v46, %s7839_s3  ;;  %v2089_v14 = vmul.f32 %v2065_v46, %v8240_v20 }
 0xa57   :  { %2096 = vadd.xlane.f32.xlu0 %v2088_v53 }
 0xa58   :  { %v2037_v36 = vpop.permute.xlu1 %2036 }
 0xa59   :  { %v2048_v34 = vmul.f32 %v2037_v36, %v2012_v9  ;;  %v2060_v25 = vmul.f32 %v2037_v36, %v8930_v39 }
 0xa5b   :  { %v9049_v48 = vadd.f32 %v2048_v34, %v8930_v39  ;;  %v2066_v8 = vadd.f32 %v2060_v25, %v2012_v9 }
 0xa5d   :  { %v2090_v60 = vmul.f32 %v2066_v8, %v8275_v30 }
 0xa68   :  { %2210 = vrot.lane.b32.xlu1 %v2064_v55, %s7839_s3 }
 0xa6b   :  { %2214 = vrot.lane.b32.xlu0 %v2066_v8, %s7839_s3 }
 0xa7f   :  { %2100 = vadd.xlane.f32.xlu2 %v2090_v60  ;;  %v2142_v60 = vand.u32 2147483648, %v2111_v27 }
 0xa81   :  { %v2143_v33 = vor.u32 1.1754944e-38, %v2142_v60 }
 0xa91   :  { %v2042_v41 = vpop.permute.xlu0 %2041 }
 0xa92   :  { %v2049_v24 = vmul.f32 %v2042_v41, %v2013_v29  ;;  %v2061_v47 = vmul.f32 %v2042_v41, %v8955_v50  ;;  %2098 = vadd.xlane.f32.xlu1 %v2089_v14  ;;  %v2157_v14 = vand.u32 2147483648, %v2112_v16 }
 0xa94   :  { %v2067_v40 = vadd.f32 %v2061_v47, %v2013_v29  ;;  %v9059_v39 = vadd.f32 %v2049_v24, %v8955_v50  ;;  %v2110_v50 = vmax.f32 %v9067_v11, 1e-07  ;;  %v2140_v24 = vand.u32 2147483647, %v2111_v27 }
 0xa95   :  { %v2155_v47 = vand.u32 2147483647, %v2112_v16  ;;  %v2158_v1 = vor.u32 1.1754944e-38, %v2157_v14 }
 0xa96   :  { %v2091_v12 = vmul.f32 %v2067_v40, %v8277_v31  ;;  %7526 = vrcp.f32 %v2110_v50  ;;  %v2127_v45 = vand.u32 2147483648, %v2110_v50  ;;  %vm2121_vm0 = vweird.f32 %v2110_v50 }
 0xa97   :  { %7528 = vrcp.f32 %v2111_v27  ;;  %v9081_v57 = vpop.permute.xlu1 %2206  ;;  %v2125_v22 = vand.u32 2147483647, %v2110_v50  ;;  %vm2141_vm9 = vcmp.eq.f32.partialorder %v2140_v24, 8.507059e+37  ;;  %vm2156_vm10 = vcmp.eq.f32.partialorder %v2155_v47, 8.507059e+37 }
 0xa98   :  { %2102 = vadd.xlane.f32.xlu0 %v2091_v12  ;;  %7530 = vrcp.f32 %v2112_v16  ;;  %v2128_v46 = vor.u32 1.1754944e-38, %v2127_v45 }
 0xa99   :  { %vm2126_vm2 = vcmp.eq.f32.partialorder %v2125_v22, 8.507059e+37 }
 0xa9c   :  { %v7527_v63 = vpop.eup %7526 }
 0xa9d   :  { %v2117_v62 = vmul.f32 %v7527_v63, %v2110_v50  ;;  %v7529_v32 = vpop.eup %7528  ;;  %vm2122_vm15 = vweird.f32 %v7527_v63 }
 0xa9e   :  { %v7531_v42 = vpop.eup %7530  ;;  %v2132_v15 = vmul.f32 %v7529_v32, %v2111_v27  ;;  %vm2123_vm1 = vmor %vm2121_vm0, %vm2122_vm15  ;;  %vm2137_vm3 = vweird.f32 %v7529_v32 }
 0xa9f   :  { %v2118_v5 = vsub.f32 1.0, %v2117_v62  ;;  %v2147_v21 = vmul.f32 %v7531_v42, %v2112_v16  ;;  %v9083_v43 = vpop.permute.xlu0 %2208  ;;  %vm2152_vm4 = vweird.f32 %v7531_v42  ;;  %vm9087_vm6 = vmor %vm2136_vm5, %vm2137_vm3 }
 0xaa0   :  { %v2133_v52 = vsub.f32 1.0, %v2132_v15  ;;  %vm2153_vm8 = vmor %vm2151_vm7, %vm2152_vm4 }
 0xaa1   :  { %v2119_v10 = vmul.f32 %v7527_v63, %v2118_v5  ;;  %v2148_v51 = vsub.f32 1.0, %v2147_v21  ;;  %v2071_v5 = vmul.f32 %v9008_v0, %v9008_v0 }
 0xaa2   :  { %v2134_v55 = vmul.f32 %v7529_v32, %v2133_v52  ;;  %v2095_v29 = vpop.xlane.xlu2 %2094 }
 0xaa3   :  { %v2120_v54 = vadd.f32 %v7527_v63, %v2119_v10  ;;  %v2149_v19 = vmul.f32 %v7531_v42, %v2148_v51  ;;  %v2105_v26 = vsub.f32 0.0, %v2095_v29  ;;  %v2077_v15 = vsub.f32 1.0, %v2071_v5 }
 0xaa4   :  { %v2135_v34 = vadd.f32 %v7529_v32, %v2134_v55  ;;  %v2073_v10 = vmul.f32 %v9015_v17, %v9015_v17 }
 0xaa5   :  { %v2124_v18 = vsel %vm2123_vm1, %v7527_v63, %v2120_v54  ;;  %v2150_v8 = vadd.f32 %v7531_v42, %v2149_v19  ;;  %v9111_v52 = vmul.f32 %v2077_v15, %v8998_v7 }
 0xaa6   :  { %v2129_v36 = vsel %vm2126_vm2, %v2128_v46, %v2124_v18  ;;  %v2139_v12 = vsel %vm9087_vm6, %v7529_v32, %v2135_v34  ;;  %v2079_v54 = vsub.f32 1.0, %v2073_v10 }
 0xaa7   :  { %v2154_v44 = vsel %vm2153_vm8, %v7531_v42, %v2150_v8  ;;  %v2144_v27 = vsel %vm2141_vm9, %v2143_v33, %v2139_v12 }
 0xaa8   :  { %v2159_v63 = vsel %vm2156_vm10, %v2158_v1, %v2154_v44  ;;  %v9096_v62 = vmul.f32 %v2144_v27, %v2105_v26  ;;  %v9115_v45 = vmul.f32 %v2079_v54, %v9012_v61 }
 0xaaa   :  { %v2115_v0 = vmax.f32 %v9115_v45, 1e-07 }
 0xaab   :  { %2216 = vrot.lane.b32.xlu1 %v2067_v40, %s7839_s3  ;;  %v2072_v40 = vmul.f32 %v9003_v3, %v9003_v3 }
 0xaac   :  { %vm2196_vm4 = vweird.f32 %v2115_v0 }
 0xaad   :  { %v2078_v59 = vsub.f32 1.0, %v2072_v40 }
 0xaaf   :  { %v9103_v3 = vmul.f32 %v2078_v59, %v8992_v38  ;;  %v2113_v38 = vmax.f32 %v9111_v52, 1e-07 }
 0xab0   :  { %v9117_v55 = vpop.permute.xlu2 %2212 }
 0xab1   :  { %v2114_v32 = vmax.f32 %v9103_v3, 1e-07  ;;  %v2172_v12 = vand.u32 2147483648, %v2113_v38  ;;  %vm2166_vm0 = vweird.f32 %v2113_v38  ;;  %v2170_v26 = vand.u32 2147483647, %v2113_v38 }
 0xab3   :  { %7532 = vrcp.f32 %v2114_v32  ;;  %v2187_v17 = vand.u32 2147483648, %v2114_v32  ;;  %vm2181_vm12 = vweird.f32 %v2114_v32  ;;  %v2185_v19 = vand.u32 2147483647, %v2114_v32 }
 0xab4   :  { %7534 = vrcp.f32 %v2113_v38  ;;  %vm2171_vm2 = vcmp.eq.f32.partialorder %v2170_v26, 8.507059e+37 }
 0xab5   :  { %7536 = vrcp.f32 %v2115_v0  ;;  %vm2186_vm14 = vcmp.eq.f32.partialorder %v2185_v19, 8.507059e+37 }
 0xab9   :  { %v7533_v42 = vpop.eup %7532 }
 0xaba   :  { %v2177_v21 = vmul.f32 %v7533_v42, %v2114_v32  ;;  %vm2182_vm11 = vweird.f32 %v7533_v42  ;;  %v7535_v7 = vpop.eup %7534  ;;  %v2202_v32 = vand.u32 2147483648, %v2115_v0 }
 0xabb   :  { %vm2183_vm13 = vmor %vm2181_vm12, %vm2182_vm11  ;;  %v2162_v34 = vmul.f32 %v7535_v7, %v2113_v38  ;;  %v7537_v60 = vpop.eup %7536  ;;  %vm2167_vm15 = vweird.f32 %v7535_v7 }
 0xabc   :  { %v2178_v51 = vsub.f32 1.0, %v2177_v21  ;;  %v2192_v14 = vmul.f32 %v7537_v60, %v2115_v0  ;;  %vm2168_vm1 = vmor %vm2166_vm0, %vm2167_vm15  ;;  %vm2197_vm3 = vweird.f32 %v7537_v60  ;;  %v2203_v10 = vor.u32 1.1754944e-38, %v2202_v32 }
 0xabd   :  { %v2163_v29 = vsub.f32 1.0, %v2162_v34  ;;  %vm2198_vm5 = vmor %vm2196_vm4, %vm2197_vm3 }
 0xabe   :  { %v2179_v22 = vmul.f32 %v7533_v42, %v2178_v51  ;;  %v2193_v47 = vsub.f32 1.0, %v2192_v14 }
 0xabf   :  { %v2164_v41 = vmul.f32 %v7535_v7, %v2163_v29 }
 0xac0   :  { %v2180_v18 = vadd.f32 %v7533_v42, %v2179_v22  ;;  %v2194_v44 = vmul.f32 %v7537_v60, %v2193_v47  ;;  %v2218_v22 = vmul.f32 %v8260_v6, %v9081_v57 }
 0xac1   :  { %v2165_v40 = vadd.f32 %v7535_v7, %v2164_v41 }
 0xac2   :  { %v2093_v53 = vpop.xlane.xlu1 %2092  ;;  %v2184_v46 = vsel %vm2183_vm13, %v7533_v42, %v2180_v18  ;;  %v2195_v27 = vadd.f32 %v7537_v60, %v2194_v44  ;;  %v2200_v42 = vand.u32 2147483647, %v2115_v0 }
 0xac3   :  { %v2104_v9 = vsub.f32 0.0, %v2093_v53  ;;  %v2188_v53 = vor.u32 1.1754944e-38, %v2187_v17  ;;  %v2169_v1 = vsel %vm2168_vm1, %v7535_v7, %v2165_v40 }
 0xac4   :  { %v2199_v15 = vsel %vm2198_vm5, %v7537_v60, %v2195_v27  ;;  %vm2201_vm6 = vcmp.eq.f32.partialorder %v2200_v42, 8.507059e+37 }
 0xac5   :  { %v9085_v25 = vmul.f32 %v2129_v36, %v2104_v9  ;;  %v2189_v36 = vsel %vm2186_vm14, %v2188_v53, %v2184_v46  ;;  %v2204_v51 = vsel %vm2201_vm6, %v2203_v10, %v2199_v15  ;;  %v2219_v46 = vmul.f32 %v8260_v6, %v9083_v43 }
 0xac7   :  { %2226 = vperm.xlu2 %7403, %v9085_v25  }
 0xaca   :  { %v2097_v23 = vpop.xlane.xlu0 %2096 }
 0xacb   :  { %v2106_v50 = vsub.f32 0.0, %v2097_v23  ;;  %v2173_v23 = vor.u32 1.1754944e-38, %v2172_v12 }
 0xacd   :  { %v9098_v16 = vmul.f32 %v2159_v63, %v2106_v50  ;;  %v2174_v63 = vsel %vm2171_vm2, %v2173_v23, %v2169_v1  ;;  %v2221_v23 = vmul.f32 %v8260_v6, %v9117_v55 }
 0xacf   :  { %2236 = vperm.xlu0 %7404, %v9098_v16   ;;  %2231 = vperm.xlu2 %7403, %v9096_v62  }
 0xada   :  { %v2211_v24 = vpop.permute.xlu1 %2210 }
 0xadd   :  { %v2215_v33 = vpop.permute.xlu0 %2214 }
 0xade   :  { %v2222_v47 = vmul.f32 %v8260_v6, %v2215_v33 }
 0xaf2   :  { %v2101_v9 = vpop.xlane.xlu2 %2100 }
 0xaf3   :  { %v2108_v61 = vsub.f32 0.0, %v2101_v9 }
 0xaf5   :  { %v9120_v8 = vmul.f32 %v2189_v36, %v2108_v61 }
 0xaf7   :  { %2246 = vperm.xlu2 %7403, %v9120_v8  }
 0xb05   :  { %v2099_v50 = vpop.xlane.xlu1 %2098 }
 0xb06   :  { %v2107_v59 = vsub.f32 0.0, %v2099_v50 }
 0xb08   :  { %v9123_v5 = vmul.f32 %v2174_v63, %v2107_v59 }
 0xb0a   :  { %2241 = vperm.xlu1 %7405, %v9123_v5  }
 0xb0b   :  { %v2103_v21 = vpop.xlane.xlu0 %2102 }
 0xb0c   :  { %v2109_v54 = vsub.f32 0.0, %v2103_v21 }
 0xb0e   :  { %v9126_v38 = vmul.f32 %v2204_v51, %v2109_v54  ;;  %v2279_v54 = vmul.f32 %v9096_v62, %v9096_v62  ;;  %v2278_v51 = vmul.f32 %v9085_v25, %v9085_v25 }
 0xb10   :  { %2251 = vperm.xlu0 %7404, %v9126_v38  }
 0xb1d   :  { %v2217_v1 = vpop.permute.xlu1 %2216 }
 0xb21   :  { %v2227_v18 = vpop.permute.xlu2 %2226 }
 0xb22   :  { %v2254_v17 = vmul.f32 %v2227_v18, %v2218_v22  ;;  %v2266_v0 = vmul.f32 %v2227_v18, %v9022_v37  ;;  %v2284_v18 = vsub.f32 1.0, %v2278_v51 }
 0xb24   :  { %v2272_v19 = vadd.f32 %v2266_v0, %v2218_v22  ;;  %v9133_v7 = vadd.f32 %v2254_v17, %v9022_v37  ;;  %v2220_v37 = vmul.f32 %v8260_v6, %v2211_v24  ;;  %v9181_v0 = vmul.f32 %v2284_v18, %v9067_v11 }
 0xb25   :  { %v2280_v11 = vmul.f32 %v9098_v16, %v9098_v16 }
 0xb26   :  { %2416 = vrot.lane.b32.xlu2 %v2272_v19, %s7839_s3 }
 0xb29   :  { %v2232_v53 = vpop.permute.xlu2 %2231 }
 0xb2a   :  { %v2255_v9 = vmul.f32 %v2232_v53, %v2219_v46  ;;  %v2267_v61 = vmul.f32 %v2232_v53, %v9029_v49 }
 0xb2c   :  { %v2273_v36 = vadd.f32 %v2267_v61, %v2219_v46  ;;  %v9140_v57 = vadd.f32 %v2255_v9, %v9029_v49  ;;  %v2296_v49 = vmul.f32 %v2272_v19, %v8226_v56 }
 0xb2e   :  { %2418 = vrot.lane.b32.xlu0 %v2273_v36, %s7839_s3  ;;  %v2297_v34 = vmul.f32 %v2273_v36, %v8228_v58 }
 0xb34   :  { %2304 = vadd.xlane.f32.xlu1 %v2297_v34 }
 0xb41   :  { %v2237_v60 = vpop.permute.xlu0 %2236 }
 0xb42   :  { %v2256_v29 = vmul.f32 %v2237_v60, %v2220_v37  ;;  %v2268_v14 = vmul.f32 %v2237_v60, %v9035_v35 }
 0xb44   :  { %v2274_v43 = vadd.f32 %v2268_v14, %v2220_v37  ;;  %v9147_v41 = vadd.f32 %v2256_v29, %v9035_v35 }
 0xb46   :  { %2420 = vrot.lane.b32.xlu0 %v2274_v43, %s7839_s3  ;;  %v2298_v35 = vmul.f32 %v2274_v43, %v8233_v2 }
 0xb4f   :  { %2302 = vadd.xlane.f32.xlu2 %v2296_v49 }
 0xb51   :  { %v2247_v40 = vpop.permute.xlu2 %2246 }
 0xb52   :  { %v2258_v12 = vmul.f32 %v2247_v40, %v2222_v47  ;;  %v2270_v26 = vmul.f32 %v2247_v40, %v9049_v48  ;;  %v2286_v40 = vsub.f32 1.0, %v2280_v11 }
 0xb54   :  { %v2276_v24 = vadd.f32 %v2270_v26, %v2222_v47  ;;  %v9154_v44 = vadd.f32 %v2258_v12, %v9049_v48  ;;  %v2223_v48 = vmul.f32 %v8260_v6, %v2217_v1 }
 0xb56   :  { %2424 = vrot.lane.b32.xlu1 %v2276_v24, %s7839_s3  ;;  %v2300_v27 = vmul.f32 %v2276_v24, %v8275_v30 }
 0xb70   :  { %2306 = vadd.xlane.f32.xlu0 %v2298_v35 }
 0xb7c   :  { %v2242_v50 = vpop.permute.xlu1 %2241 }
 0xb7d   :  { %v2257_v59 = vmul.f32 %v2242_v50, %v2221_v23  ;;  %v2269_v33 = vmul.f32 %v2242_v50, %v9042_v28 }
 0xb7f   :  { %v2275_v63 = vadd.f32 %v2269_v33, %v2221_v23  ;;  %v9163_v32 = vadd.f32 %v2257_v59, %v9042_v28  ;;  %v2285_v28 = vsub.f32 1.0, %v2279_v54  ;;  %v9193_v23 = vmul.f32 %v2286_v40, %v9076_v4 }
 0xb80   :  { %2310 = vadd.xlane.f32.xlu1 %v2300_v27  ;;  %v9188_v14 = vpop.permute.xlu2 %2416 }
 0xb81   :  { %2422 = vrot.lane.b32.xlu2 %v2275_v63, %s7839_s3  ;;  %v9177_v22 = vmul.f32 %v2285_v28, %v9073_v13  ;;  %v2299_v19 = vmul.f32 %v2275_v63, %v8240_v20 }
 0xb82   :  { %v2252_v42 = vpop.permute.xlu0 %2251 }
 0xb83   :  { %v2259_v15 = vmul.f32 %v2252_v42, %v2223_v48  ;;  %v2271_v10 = vmul.f32 %v2252_v42, %v9059_v39  ;;  %v2321_v17 = vmax.f32 %v9177_v22, 1e-07 }
 0xb85   :  { %v2277_v55 = vadd.f32 %v2271_v10, %v2223_v48  ;;  %v9169_v21 = vadd.f32 %v2259_v15, %v9059_v39  ;;  %7538 = vrcp.f32 %v2321_v17  ;;  %v2320_v39 = vmax.f32 %v9181_v0, 1e-07 }
 0xb86   :  { %v2352_v37 = vand.u32 2147483648, %v2321_v17  ;;  %vm2346_vm8 = vweird.f32 %v2321_v17  ;;  %v2350_v43 = vand.u32 2147483647, %v2321_v17  ;;  %v2322_v48 = vmax.f32 %v9193_v23, 1e-07 }
 0xb87   :  { %2426 = vrot.lane.b32.xlu0 %v2277_v55, %s7839_s3  ;;  %7540 = vrcp.f32 %v2320_v39  ;;  %v2301_v25 = vmul.f32 %v2277_v55, %v8277_v31  ;;  %v2337_v24 = vand.u32 2147483648, %v2320_v39  ;;  %vm2331_vm12 = vweird.f32 %v2320_v39 }
 0xb88   :  { %v2353_v12 = vor.u32 1.1754944e-38, %v2352_v37  ;;  %vm2351_vm11 = vcmp.eq.f32.partialorder %v2350_v43, 8.507059e+37  ;;  %v2335_v1 = vand.u32 2147483647, %v2320_v39  ;;  %7542 = vrcp.f32 %v2322_v48 }
 0xb89   :  { %v2338_v33 = vor.u32 1.1754944e-38, %v2337_v24  ;;  %v2282_v15 = vmul.f32 %v9120_v8, %v9120_v8  ;;  %vm2361_vm0 = vweird.f32 %v2322_v48  ;;  %v2365_v8 = vand.u32 2147483647, %v2322_v48 }
 0xb8a   :  { %vm2336_vm14 = vcmp.eq.f32.partialorder %v2335_v1, 8.507059e+37 }
 0xb8b   :  { %v7539_v62 = vpop.eup %7538  ;;  %v2288_v4 = vsub.f32 1.0, %v2282_v15  ;;  %vm2366_vm2 = vcmp.eq.f32.partialorder %v2365_v8, 8.507059e+37 }
 0xb8c   :  { %v2342_v46 = vmul.f32 %v7539_v62, %v2321_v17  ;;  %vm2347_vm7 = vweird.f32 %v7539_v62 }
 0xb8d   :  { %v7541_v53 = vpop.eup %7540  ;;  %vm2348_vm9 = vmor %vm2346_vm8, %vm2347_vm7  ;;  %v9203_v55 = vmul.f32 %v2288_v4, %v9103_v3 }
 0xb8e   :  { %v2343_v13 = vsub.f32 1.0, %v2342_v46  ;;  %v2327_v9 = vmul.f32 %v7541_v53, %v2320_v39  ;;  %vm2332_vm10 = vweird.f32 %v7541_v53  ;;  %v7543_v10 = vpop.eup %7542  ;;  %v2367_v46 = vand.u32 2147483648, %v2322_v48 }
 0xb8f   :  { %vm2333_vm13 = vmor %vm2331_vm12, %vm2332_vm10  ;;  %v2357_v54 = vmul.f32 %v7543_v10, %v2322_v48  ;;  %v2324_v51 = vmax.f32 %v9203_v55, 1e-07  ;;  %vm2362_vm15 = vweird.f32 %v7543_v10 }
 0xb90   :  { %v2344_v61 = vmul.f32 %v7539_v62, %v2343_v13  ;;  %v2328_v36 = vsub.f32 1.0, %v2327_v9  ;;  %vm2363_vm1 = vmor %vm2361_vm0, %vm2362_vm15 }
 0xb91   :  { %v2358_v18 = vsub.f32 1.0, %v2357_v54  ;;  %7544 = vrcp.f32 %v2324_v51  ;;  %vm2391_vm4 = vweird.f32 %v2324_v51  ;;  %v2395_v43 = vand.u32 2147483647, %v2324_v51 }
 0xb92   :  { %v2345_v34 = vadd.f32 %v7539_v62, %v2344_v61  ;;  %v2329_v29 = vmul.f32 %v7541_v53, %v2328_v36 }
 0xb93   :  { %v2359_v17 = vmul.f32 %v7543_v10, %v2358_v18  ;;  %vm2396_vm6 = vcmp.eq.f32.partialorder %v2395_v43, 8.507059e+37 }
 0xb94   :  { %v2349_v49 = vsel %vm2348_vm9, %v7539_v62, %v2345_v34  ;;  %v2330_v26 = vadd.f32 %v7541_v53, %v2329_v29  ;;  %v2397_v29 = vand.u32 2147483648, %v2324_v51 }
 0xb95   :  { %v2354_v35 = vsel %vm2351_vm11, %v2353_v12, %v2349_v49 }
 0xb96   :  { %v2334_v50 = vsel %vm2333_vm13, %v7541_v53, %v2330_v26  ;;  %v2398_v40 = vor.u32 1.1754944e-38, %v2397_v29 }
 0xb97   :  { %v2339_v63 = vsel %vm2336_vm14, %v2338_v33, %v2334_v50  ;;  %v7545_v62 = vpop.eup %7544  ;;  %v2283_v50 = vmul.f32 %v9126_v38, %v9126_v38 }
 0xb98   :  { %v2387_v3 = vmul.f32 %v7545_v62, %v2324_v51  ;;  %vm2392_vm3 = vweird.f32 %v7545_v62 }
 0xb99   :  { %vm2393_vm5 = vmor %vm2391_vm4, %vm2392_vm3  ;;  %v2289_v33 = vsub.f32 1.0, %v2283_v50 }
 0xb9a   :  { %v2388_v34 = vsub.f32 1.0, %v2387_v3 }
 0xb9c   :  { %v2389_v11 = vmul.f32 %v7545_v62, %v2388_v34 }
 0xba0   :  { %v9205_v28 = vpop.permute.xlu0 %2418 }
 0xba7   :  { %v2305_v60 = vpop.xlane.xlu1 %2304 }
 0xba8   :  { %v2315_v47 = vsub.f32 0.0, %v2305_v60  ;;  %v2390_v60 = vadd.f32 %v7545_v62, %v2389_v11 }
 0xbaa   :  { %2308 = vadd.xlane.f32.xlu2 %v2299_v19  ;;  %v9190_v16 = vmul.f32 %v2354_v35, %v2315_v47  ;;  %v2360_v19 = vadd.f32 %v7543_v10, %v2359_v17  ;;  %v2394_v49 = vsel %vm2393_vm5, %v7545_v62, %v2390_v60  ;;  %v2281_v47 = vmul.f32 %v9123_v5, %v9123_v5 }
 0xbab   :  { %v2399_v24 = vsel %vm2396_vm6, %v2398_v40, %v2394_v49  ;;  %v9227_v5 = vmul.f32 %v2289_v33, %v9115_v45  ;;  %v2429_v60 = vmul.f32 %v8260_v6, %v9205_v28  ;;  %v2428_v28 = vmul.f32 %v8260_v6, %v9188_v14 }
 0xbac   :  { %v2364_v53 = vsel %vm2363_vm1, %v7543_v10, %v2360_v19  ;;  %v2287_v1 = vsub.f32 1.0, %v2281_v47 }
 0xbb1   :  { %2312 = vadd.xlane.f32.xlu0 %v2301_v25  ;;  %v2368_v25 = vor.u32 1.1754944e-38, %v2367_v46 }
 0xbb3   :  { %v2369_v61 = vsel %vm2366_vm2, %v2368_v25, %v2364_v53 }
 0xbb8   :  { %v9208_v39 = vpop.permute.xlu0 %2420 }
 0xbc2   :  { %v2303_v59 = vpop.xlane.xlu2 %2302  ;;  %2441 = vperm.xlu2 %7403, %v9190_v16  }
 0xbc3   :  { %v2314_v27 = vsub.f32 0.0, %v2303_v59  ;;  %v9223_v59 = vmul.f32 %v2287_v1, %v9111_v52 }
 0xbc5   :  { %v9197_v42 = vmul.f32 %v2339_v63, %v2314_v27  ;;  %v2323_v27 = vmax.f32 %v9223_v59, 1e-07  ;;  %v2325_v63 = vmax.f32 %v9227_v5, 1e-07 }
 0xbc7   :  { %2436 = vperm.xlu1 %7405, %v9197_v42   ;;  %7546 = vrcp.f32 %v2323_v27  ;;  %v2382_v17 = vand.u32 2147483648, %v2323_v27  ;;  %vm2376_vm8 = vweird.f32 %v2323_v27  ;;  %v2380_v19 = vand.u32 2147483647, %v2323_v27 }
 0xbc8   :  { %v9213_v37 = vpop.permute.xlu1 %2424  ;;  %7548 = vrcp.f32 %v2325_v63  ;;  %vm2406_vm12 = vweird.f32 %v2325_v63  ;;  %v2410_v34 = vand.u32 2147483647, %v2325_v63 }
 0xbc9   :  { %v2383_v8 = vor.u32 1.1754944e-38, %v2382_v17  ;;  %vm2381_vm10 = vcmp.eq.f32.partialorder %v2380_v19, 8.507059e+37 }
 0xbca   :  { %vm2411_vm14 = vcmp.eq.f32.partialorder %v2410_v34, 8.507059e+37 }
 0xbcd   :  { %v7547_v48 = vpop.eup %7546 }
 0xbce   :  { %v2372_v15 = vmul.f32 %v7547_v48, %v2323_v27  ;;  %v7549_v4 = vpop.eup %7548  ;;  %vm2377_vm7 = vweird.f32 %v7547_v48 }
 0xbcf   :  { %v2402_v54 = vmul.f32 %v7549_v4, %v2325_v63  ;;  %vm2378_vm9 = vmor %vm2376_vm8, %vm2377_vm7  ;;  %vm2407_vm11 = vweird.f32 %v7549_v4 }
 0xbd0   :  { %v2373_v10 = vsub.f32 1.0, %v2372_v15  ;;  %vm2408_vm13 = vmor %vm2406_vm12, %vm2407_vm11 }
 0xbd1   :  { %v2403_v52 = vsub.f32 1.0, %v2402_v54 }
 0xbd2   :  { %v2374_v51 = vmul.f32 %v7547_v48, %v2373_v10 }
 0xbd3   :  { %v2404_v45 = vmul.f32 %v7549_v4, %v2403_v52 }
 0xbd4   :  { %v2375_v18 = vadd.f32 %v7547_v48, %v2374_v51  ;;  %v2430_v51 = vmul.f32 %v8260_v6, %v9208_v39 }
 0xbd6   :  { %v2379_v46 = vsel %vm2378_vm9, %v7547_v48, %v2375_v18 }
 0xbd7   :  { %v2384_v25 = vsel %vm2381_vm10, %v2383_v8, %v2379_v46 }
 0xbdb   :  { %v9230_v38 = vpop.permute.xlu2 %2422 }
 0xbdc   :  { %v2431_v39 = vmul.f32 %v8260_v6, %v9230_v38 }
 0xbe3   :  { %v2307_v13 = vpop.xlane.xlu0 %2306 }
 0xbe4   :  { %v2316_v9 = vsub.f32 0.0, %v2307_v13  ;;  %v2405_v13 = vadd.f32 %v7549_v4, %v2404_v45 }
 0xbe6   :  { %v9210_v36 = vmul.f32 %v2369_v61, %v2316_v9  ;;  %v2412_v61 = vand.u32 2147483648, %v2325_v63  ;;  %v2409_v11 = vsel %vm2408_vm13, %v7549_v4, %v2405_v13 }
 0xbe8   :  { %2446 = vperm.xlu1 %7405, %v9210_v36   ;;  %v2413_v29 = vor.u32 1.1754944e-38, %v2412_v61 }
 0xbea   :  { %v2414_v40 = vsel %vm2411_vm14, %v2413_v29, %v2409_v11 }
 0xbf3   :  { %v2311_v12 = vpop.xlane.xlu1 %2310 }
 0xbf4   :  { %v2318_v26 = vsub.f32 0.0, %v2311_v12 }
 0xbf6   :  { %v9217_v35 = vmul.f32 %v2399_v24, %v2318_v26 }
 0xbf8   :  { %2456 = vperm.xlu2 %7403, %v9217_v35  }
 0xbf9   :  { %v9232_v62 = vpop.permute.xlu0 %2426 }
 0xc1d   :  { %v2309_v53 = vpop.xlane.xlu2 %2308 }
 0xc1e   :  { %v2317_v3 = vsub.f32 0.0, %v2309_v53 }
 0xc20   :  { %v9234_v9 = vmul.f32 %v2384_v25, %v2317_v3 }
 0xc22   :  { %2451 = vperm.xlu0 %7404, %v9234_v9  }
 0xc24   :  { %v2313_v43 = vpop.xlane.xlu0 %2312 }
 0xc25   :  { %v2319_v49 = vsub.f32 0.0, %v2313_v43  ;;  %v2442_v47 = vpop.permute.xlu2 %2441 }
 0xc26   :  { %v2465_v12 = vmul.f32 %v2442_v47, %v2429_v60  ;;  %v2477_v1 = vmul.f32 %v2442_v47, %v9140_v57 }
 0xc27   :  { %v9239_v26 = vmul.f32 %v2414_v40, %v2319_v49 }
 0xc28   :  { %v9242_v24 = vadd.f32 %v2465_v12, %v9140_v57  ;;  %v2483_v50 = vadd.f32 %v2477_v1, %v2429_v60  ;;  %v2432_v57 = vmul.f32 %v8260_v6, %v9213_v37  ;;  %v2489_v12 = vmul.f32 %v9190_v16, %v9190_v16 }
 0xc29   :  { %2461 = vperm.xlu1 %7405, %v9239_v26  }
 0xc2a   :  { %v2507_v4 = vmul.f32 %v2483_v50, %v8228_v58 }
 0xc31   :  { %2628 = vrot.lane.b32.xlu1 %v2483_v50, %s7839_s3  ;;  %v2495_v50 = vsub.f32 1.0, %v2489_v12 }
 0xc39   :  { %v2437_v33 = vpop.permute.xlu1 %2436 }
 0xc3a   :  { %v2464_v27 = vmul.f32 %v2437_v33, %v2428_v28  ;;  %v2476_v63 = vmul.f32 %v2437_v33, %v9133_v7 }
 0xc3c   :  { %v2482_v48 = vadd.f32 %v2476_v63, %v2428_v28  ;;  %v9251_v15 = vadd.f32 %v2464_v27, %v9133_v7  ;;  %v9301_v28 = vmul.f32 %v2495_v50, %v9177_v22 }
 0xc3e   :  { %2626 = vrot.lane.b32.xlu2 %v2482_v48, %s7839_s3  ;;  %v2506_v37 = vmul.f32 %v2482_v48, %v8226_v56  ;;  %v2531_v33 = vmax.f32 %v9301_v28, 1e-07 }
 0xc40   :  { %vm2556_vm8 = vweird.f32 %v2531_v33 }
 0xc4c   :  { %2514 = vadd.xlane.f32.xlu0 %v2507_v4 }
 0xc52   :  { %v2457_v10 = vpop.permute.xlu2 %2456 }
 0xc53   :  { %v2468_v54 = vmul.f32 %v2457_v10, %v2432_v57  ;;  %v2480_v46 = vmul.f32 %v2457_v10, %v9154_v44 }
 0xc55   :  { %v9258_v14 = vadd.f32 %v2468_v54, %v9154_v44  ;;  %v2486_v8 = vadd.f32 %v2480_v46, %v2432_v57  ;;  %v2433_v44 = vmul.f32 %v8260_v6, %v9232_v62  ;;  %v2488_v62 = vmul.f32 %v9197_v42, %v9197_v42 }
 0xc57   :  { %v2494_v40 = vsub.f32 1.0, %v2488_v62  ;;  %v2562_v62 = vand.u32 2147483648, %v2531_v33 }
 0xc59   :  { %v9297_v1 = vmul.f32 %v2494_v40, %v9181_v0  ;;  %v2560_v40 = vand.u32 2147483647, %v2531_v33  ;;  %v2563_v50 = vor.u32 1.1754944e-38, %v2562_v62 }
 0xc5a   :  { %v2447_v52 = vpop.permute.xlu1 %2446 }
 0xc5b   :  { %v2466_v18 = vmul.f32 %v2447_v52, %v2430_v51  ;;  %v2478_v7 = vmul.f32 %v2447_v52, %v9147_v41  ;;  %vm2561_vm10 = vcmp.eq.f32.partialorder %v2560_v40, 8.507059e+37 }
 0xc5d   :  { %v2484_v17 = vadd.f32 %v2478_v7, %v2430_v51  ;;  %v9264_v19 = vadd.f32 %v2466_v18, %v9147_v41 }
 0xc5f   :  { %v2508_v45 = vmul.f32 %v2484_v17, %v8233_v2 }
 0xc61   :  { %2516 = vadd.xlane.f32.xlu1 %v2508_v45 }
 0xc67   :  { %2512 = vadd.xlane.f32.xlu2 %v2506_v37 }
 0xc7a   :  { %2634 = vrot.lane.b32.xlu1 %v2486_v8, %s7839_s3 }
 0xc7f   :  { %2630 = vrot.lane.b32.xlu2 %v2484_v17, %s7839_s3 }
 0xc94   :  { %v2452_v53 = vpop.permute.xlu0 %2451 }
 0xc95   :  { %v2467_v3 = vmul.f32 %v2452_v53, %v2431_v39  ;;  %v2479_v41 = vmul.f32 %v2452_v53, %v9163_v32 }
 0xc97   :  { %v2485_v25 = vadd.f32 %v2479_v41, %v2431_v39  ;;  %v9275_v13 = vadd.f32 %v2467_v3, %v9163_v32  ;;  %v2490_v32 = vmul.f32 %v9210_v36, %v9210_v36  ;;  %v2530_v36 = vmax.f32 %v9297_v1, 1e-07 }
 0xc98   :  { %v9308_v7 = vpop.permute.xlu2 %2626 }
 0xc99   :  { %2632 = vrot.lane.b32.xlu0 %v2485_v25, %s7839_s3  ;;  %v2509_v43 = vmul.f32 %v2485_v25, %v8240_v20  ;;  %v2496_v49 = vsub.f32 1.0, %v2490_v32  ;;  %v2547_v3 = vand.u32 2147483648, %v2530_v36  ;;  %vm2541_vm4 = vweird.f32 %v2530_v36 }
 0xc9a   :  { %v2545_v25 = vand.u32 2147483647, %v2530_v36 }
 0xc9b   :  { %v2462_v61 = vpop.permute.xlu1 %2461  ;;  %v9291_v47 = vmul.f32 %v2496_v49, %v9193_v23  ;;  %v2510_v23 = vmul.f32 %v2486_v8, %v8275_v30 }
 0xc9c   :  { %v2469_v34 = vmul.f32 %v2462_v61, %v2433_v44  ;;  %v2481_v11 = vmul.f32 %v2462_v61, %v9169_v21  ;;  %vm2546_vm6 = vcmp.eq.f32.partialorder %v2545_v25, 8.507059e+37 }
 0xc9e   :  { %v2487_v60 = vadd.f32 %v2481_v11, %v2433_v44  ;;  %v9282_v38 = vadd.f32 %v2469_v34, %v9169_v21  ;;  %v2532_v21 = vmax.f32 %v9291_v47, 1e-07  ;;  %v2548_v34 = vor.u32 1.1754944e-38, %v2547_v3 }
 0xca0   :  { %v2511_v29 = vmul.f32 %v2487_v60, %v8277_v31  ;;  %7550 = vrcp.f32 %v2532_v21  ;;  %v2577_v51 = vand.u32 2147483648, %v2532_v21  ;;  %vm2571_vm0 = vweird.f32 %v2532_v21 }
 0xca1   :  { %7552 = vrcp.f32 %v2530_v36  ;;  %v2575_v52 = vand.u32 2147483647, %v2532_v21 }
 0xca2   :  { %7554 = vrcp.f32 %v2531_v33  ;;  %v2578_v37 = vor.u32 1.1754944e-38, %v2577_v51 }
 0xca3   :  { %v9306_v4 = vpop.permute.xlu1 %2628  ;;  %vm2576_vm2 = vcmp.eq.f32.partialorder %v2575_v52, 8.507059e+37 }
 0xca4   :  { %2522 = vadd.xlane.f32.xlu1 %v2511_v29 }
 0xca6   :  { %v7551_v42 = vpop.eup %7550 }
 0xca7   :  { %v2567_v16 = vmul.f32 %v7551_v42, %v2532_v21  ;;  %v7553_v27 = vpop.eup %7552  ;;  %vm2572_vm15 = vweird.f32 %v7551_v42 }
 0xca8   :  { %2518 = vadd.xlane.f32.xlu2 %v2509_v43  ;;  %v2537_v63 = vmul.f32 %v7553_v27, %v2530_v36  ;;  %v7555_v57 = vpop.eup %7554  ;;  %vm2573_vm1 = vmor %vm2571_vm0, %vm2572_vm15  ;;  %vm2542_vm3 = vweird.f32 %v7553_v27 }
 0xca9   :  { %v2568_v0 = vsub.f32 1.0, %v2567_v16  ;;  %v2552_v54 = vmul.f32 %v7555_v57, %v2531_v33  ;;  %vm2543_vm5 = vmor %vm2541_vm4, %vm2542_vm3  ;;  %vm2557_vm7 = vweird.f32 %v7555_v57  ;;  %v2491_v16 = vmul.f32 %v9234_v9, %v9234_v9 }
 0xcaa   :  { %v2538_v22 = vsub.f32 1.0, %v2537_v63  ;;  %vm2558_vm9 = vmor %vm2556_vm8, %vm2557_vm7  ;;  %v2492_v9 = vmul.f32 %v9217_v35, %v9217_v35 }
 0xcab   :  { %v2569_v48 = vmul.f32 %v7551_v42, %v2568_v0  ;;  %v2553_v45 = vsub.f32 1.0, %v2552_v54  ;;  %v2497_v33 = vsub.f32 1.0, %v2491_v16 }
 0xcac   :  { %v2539_v18 = vmul.f32 %v7553_v27, %v2538_v22 }
 0xcad   :  { %v2570_v10 = vadd.f32 %v7551_v42, %v2569_v48  ;;  %v2554_v44 = vmul.f32 %v7555_v57, %v2553_v45  ;;  %v9327_v63 = vmul.f32 %v2497_v33, %v9223_v59 }
 0xcae   :  { %v2540_v39 = vadd.f32 %v7553_v27, %v2539_v18  ;;  %v2498_v18 = vsub.f32 1.0, %v2492_v9 }
 0xcaf   :  { %v2574_v17 = vsel %vm2573_vm1, %v7551_v42, %v2570_v10  ;;  %v2555_v43 = vadd.f32 %v7555_v57, %v2554_v44 }
 0xcb0   :  { %v2579_v53 = vsel %vm2576_vm2, %v2578_v37, %v2574_v17  ;;  %v2544_v61 = vsel %vm2543_vm5, %v7553_v27, %v2540_v39  ;;  %v9336_v37 = vmul.f32 %v2498_v18, %v9203_v55 }
 0xcb1   :  { %v2549_v29 = vsel %vm2546_vm6, %v2548_v34, %v2544_v61  ;;  %v2559_v12 = vsel %vm2558_vm9, %v7555_v57, %v2555_v43  ;;  %v2533_v57 = vmax.f32 %v9327_v63, 1e-07 }
 0xcb2   :  { %v2564_v36 = vsel %vm2561_vm10, %v2563_v50, %v2559_v12  ;;  %v2534_v35 = vmax.f32 %v9336_v37, 1e-07 }
 0xcb3   :  { %v2592_v61 = vand.u32 2147483648, %v2533_v57  ;;  %vm2586_vm0 = vweird.f32 %v2533_v57 }
 0xcb4   :  { %v2607_v33 = vand.u32 2147483648, %v2534_v35  ;;  %vm2601_vm4 = vweird.f32 %v2534_v35 }
 0xcb5   :  { %v2593_v43 = vor.u32 1.1754944e-38, %v2592_v61 }
 0xcbf   :  { %v2515_v49 = vpop.xlane.xlu0 %2514 }
 0xcc0   :  { %2636 = vrot.lane.b32.xlu2 %v2487_v60, %s7839_s3  ;;  %v2525_v21 = vsub.f32 0.0, %v2515_v49 }
 0xcc2   :  { %v9316_v42 = vmul.f32 %v2564_v36, %v2525_v21 }
 0xcc3   :  { %2520 = vadd.xlane.f32.xlu0 %v2510_v23  ;;  %v2493_v23 = vmul.f32 %v9239_v26, %v9239_v26 }
 0xcc5   :  { %v2499_v27 = vsub.f32 1.0, %v2493_v23 }
 0xcc7   :  { %v9324_v0 = vmul.f32 %v2499_v27, %v9227_v5 }
 0xcc9   :  { %v2535_v48 = vmax.f32 %v9324_v0, 1e-07 }
 0xccb   :  { %7556 = vrcp.f32 %v2535_v48  ;;  %vm2616_vm12 = vweird.f32 %v2535_v48  ;;  %v2620_v39 = vand.u32 2147483647, %v2535_v48 }
 0xccc   :  { %7558 = vrcp.f32 %v2533_v57 }
 0xccd   :  { %vm2621_vm15 = vcmp.eq.f32.partialorder %v2620_v39, 8.507059e+37  ;;  %7560 = vrcp.f32 %v2534_v35 }
 0xcd1   :  { %v7557_v22 = vpop.eup %7556 }
 0xcd2   :  { %v2612_v10 = vmul.f32 %v7557_v22, %v2535_v48  ;;  %v7559_v26 = vpop.eup %7558  ;;  %vm2617_vm11 = vweird.f32 %v7557_v22 }
 0xcd3   :  { %v2582_v51 = vmul.f32 %v7559_v26, %v2533_v57  ;;  %vm2618_vm13 = vmor %vm2616_vm12, %vm2617_vm11  ;;  %vm2587_vm14 = vweird.f32 %v7559_v26  ;;  %v7561_v12 = vpop.eup %7560 }
 0xcd4   :  { %v2517_v46 = vpop.xlane.xlu1 %2516  ;;  %v2613_v54 = vsub.f32 1.0, %v2612_v10  ;;  %vm2588_vm1 = vmor %vm2586_vm0, %vm2587_vm14  ;;  %v2597_v50 = vmul.f32 %v7561_v12, %v2534_v35  ;;  %vm2602_vm3 = vweird.f32 %v7561_v12  ;;  %v2608_v10 = vor.u32 1.1754944e-38, %v2607_v33 }
 0xcd5   :  { %v2526_v8 = vsub.f32 0.0, %v2517_v46  ;;  %v2583_v5 = vsub.f32 1.0, %v2582_v51  ;;  %vm2603_vm5 = vmor %vm2601_vm4, %vm2602_vm3 }
 0xcd6   :  { %v2614_v52 = vmul.f32 %v7557_v22, %v2613_v54  ;;  %v2598_v36 = vsub.f32 1.0, %v2597_v50 }
 0xcd7   :  { %v9310_v41 = vmul.f32 %v2579_v53, %v2526_v8  ;;  %v2584_v45 = vmul.f32 %v7559_v26, %v2583_v5  ;;  %v2622_v8 = vand.u32 2147483648, %v2535_v48  ;;  %v2605_v48 = vand.u32 2147483647, %v2534_v35 }
 0xcd8   :  { %v2615_v59 = vadd.f32 %v7557_v22, %v2614_v52  ;;  %v2599_v23 = vmul.f32 %v7561_v12, %v2598_v36 }
 0xcd9   :  { %2656 = vperm.xlu1 %7405, %v9310_v41   ;;  %v2585_v3 = vadd.f32 %v7559_v26, %v2584_v45  ;;  %v2623_v25 = vor.u32 1.1754944e-38, %v2622_v8  ;;  %vm2606_vm6 = vcmp.eq.f32.partialorder %v2605_v48, 8.507059e+37 }
 0xcda   :  { %v2513_v11 = vpop.xlane.xlu2 %2512  ;;  %v2619_v53 = vsel %vm2618_vm13, %v7557_v22, %v2615_v59  ;;  %v2600_v27 = vadd.f32 %v7561_v12, %v2599_v23  ;;  %v2638_v59 = vmul.f32 %v8260_v6, %v9308_v7 }
 0xcdb   :  { %v2524_v60 = vsub.f32 0.0, %v2513_v11  ;;  %v2590_v11 = vand.u32 2147483647, %v2533_v57 }
 0xcdc   :  { %v2604_v57 = vsel %vm2603_vm5, %v7561_v12, %v2600_v27 }
 0xcdd   :  { %v9313_v32 = vmul.f32 %v2549_v29, %v2524_v60  ;;  %v2624_v60 = vsel %vm2621_vm15, %v2623_v25, %v2619_v53  ;;  %v2589_v29 = vsel %vm2588_vm1, %v7559_v26, %v2585_v3  ;;  %vm2591_vm2 = vcmp.eq.f32.partialorder %v2590_v11, 8.507059e+37 }
 0xcde   :  { %v2594_v40 = vsel %vm2591_vm2, %v2593_v43, %v2589_v29  ;;  %v2609_v54 = vsel %vm2606_vm6, %v2608_v10, %v2604_v57 }
 0xcdf   :  { %2646 = vperm.xlu0 %7404, %v9313_v32  }
 0xce2   :  { %v2631_v46 = vpop.permute.xlu2 %2630 }
 0xce3   :  { %v2640_v9 = vmul.f32 %v8260_v6, %v2631_v46  ;;  %v2639_v46 = vmul.f32 %v8260_v6, %v9306_v4 }
 0xce7   :  { %2651 = vperm.xlu0 %7404, %v9316_v42  }
 0xcec   :  { %v9333_v17 = vpop.permute.xlu1 %2634 }
 0xced   :  { %v2642_v27 = vmul.f32 %v8260_v6, %v9333_v17 }
 0xd0b   :  { %v2633_v16 = vpop.permute.xlu0 %2632 }
 0xd0c   :  { %v2641_v4 = vmul.f32 %v8260_v6, %v2633_v16 }
 0xd17   :  { %v2523_v44 = vpop.xlane.xlu1 %2522 }
 0xd18   :  { %v2529_v34 = vsub.f32 0.0, %v2523_v44 }
 0xd1a   :  { %v9339_v55 = vmul.f32 %v2624_v60, %v2529_v34 }
 0xd1b   :  { %v2519_v49 = vpop.xlane.xlu2 %2518 }
 0xd1c   :  { %v2527_v62 = vsub.f32 0.0, %v2519_v49  ;;  %2671 = vperm.xlu1 %7405, %v9339_v55  }
 0xd1e   :  { %v9342_v21 = vmul.f32 %v2594_v40, %v2527_v62 }
 0xd20   :  { %2661 = vperm.xlu2 %7403, %v9342_v21  }
 0xd36   :  { %v2521_v22 = vpop.xlane.xlu0 %2520 }
 0xd37   :  { %v2528_v26 = vsub.f32 0.0, %v2521_v22 }
 0xd39   :  { %v9345_v51 = vmul.f32 %v2609_v54, %v2528_v26 }
 0xd3b   :  { %2666 = vperm.xlu0 %7404, %v9345_v51  }
 0xd4b   :  { %v2657_v52 = vpop.permute.xlu1 %2656 }
 0xd4c   :  { %v2676_v5 = vmul.f32 %v2657_v52, %v2640_v9  ;;  %v2688_v11 = vmul.f32 %v2657_v52, %v9264_v19 }
 0xd4e   :  { %v9350_v18 = vadd.f32 %v2676_v5, %v9264_v19  ;;  %v2694_v60 = vadd.f32 %v2688_v11, %v2640_v9 }
 0xd50   :  { %v2718_v19 = vmul.f32 %v2694_v60, %v8233_v2 }
 0xd51   :  { %v2647_v45 = vpop.permute.xlu0 %2646 }
 0xd52   :  { %v2674_v8 = vmul.f32 %v2647_v45, %v2638_v59  ;;  %v2686_v39 = vmul.f32 %v2647_v45, %v9251_v15 }
 0xd54   :  { %v2692_v53 = vadd.f32 %v2686_v39, %v2638_v59  ;;  %v9356_v3 = vadd.f32 %v2674_v8, %v9251_v15  ;;  %v2637_v15 = vpop.permute.xlu2 %2636 }
 0xd55   :  { %v2643_v50 = vmul.f32 %v8260_v6, %v2637_v15 }
 0xd56   :  { %2836 = vrot.lane.b32.xlu0 %v2692_v53, %s7839_s3  ;;  %v2716_v62 = vmul.f32 %v2692_v53, %v8226_v56 }
 0xd59   :  { %v2652_v35 = vpop.permute.xlu0 %2651 }
 0xd5a   :  { %v2675_v25 = vmul.f32 %v2652_v35, %v2639_v46  ;;  %v2687_v44 = vmul.f32 %v2652_v35, %v9242_v24  ;;  %v2700_v35 = vmul.f32 %v9310_v41, %v9310_v41 }
 0xd5c   :  { %v2693_v61 = vadd.f32 %v2687_v44, %v2639_v46  ;;  %v9363_v7 = vadd.f32 %v2675_v25, %v9242_v24  ;;  %v2706_v15 = vsub.f32 1.0, %v2700_v35 }
 0xd5e   :  { %2838 = vrot.lane.b32.xlu1 %v2693_v61, %s7839_s3  ;;  %v2717_v34 = vmul.f32 %v2693_v61, %v8228_v58 }
 0xd60   :  { %2724 = vadd.xlane.f32.xlu2 %v2717_v34 }
 0xd78   :  { %2840 = vrot.lane.b32.xlu2 %v2694_v60, %s7839_s3 }
 0xd7a   :  { %v2662_v29 = vpop.permute.xlu2 %2661 }
 0xd7b   :  { %v2677_v43 = vmul.f32 %v2662_v29, %v2641_v4  ;;  %v2689_v24 = vmul.f32 %v2662_v29, %v9275_v13 }
 0xd7d   :  { %v9371_v49 = vadd.f32 %v2677_v43, %v9275_v13  ;;  %v2695_v40 = vadd.f32 %v2689_v24, %v2641_v4  ;;  %v2699_v13 = vmul.f32 %v9316_v42, %v9316_v42  ;;  %v9412_v43 = vmul.f32 %v2706_v15, %v9291_v47 }
 0xd7f   :  { %v2719_v12 = vmul.f32 %v2695_v40, %v8240_v20  ;;  %v2705_v33 = vsub.f32 1.0, %v2699_v13 }
 0xd80   :  { %2722 = vadd.xlane.f32.xlu0 %v2716_v62 }
 0xd81   :  { %v9391_v54 = vmul.f32 %v2705_v33, %v9301_v28 }
 0xd83   :  { %v2741_v42 = vmax.f32 %v9391_v54, 1e-07 }
 0xd85   :  { %7562 = vrcp.f32 %v2741_v42  ;;  %v2772_v46 = vand.u32 2147483648, %v2741_v42  ;;  %vm2766_vm8 = vweird.f32 %v2741_v42 }
 0xd87   :  { %v2773_v61 = vor.u32 1.1754944e-38, %v2772_v46 }
 0xd88   :  { %2728 = vadd.xlane.f32.xlu0 %v2719_v12  ;;  %2726 = vadd.xlane.f32.xlu1 %v2718_v19 }
 0xd8b   :  { %v7563_v17 = vpop.eup %7562 }
 0xd8c   :  { %v2762_v5 = vmul.f32 %v7563_v17, %v2741_v42  ;;  %vm2767_vm7 = vweird.f32 %v7563_v17 }
 0xd8d   :  { %vm2768_vm9 = vmor %vm2766_vm8, %vm2767_vm7 }
 0xd8e   :  { %v2672_v36 = vpop.permute.xlu1 %2671  ;;  %v2763_v45 = vsub.f32 1.0, %v2762_v5 }
 0xd8f   :  { %v2679_v23 = vmul.f32 %v2672_v36, %v2643_v50  ;;  %v2691_v52 = vmul.f32 %v2672_v36, %v9282_v38 }
 0xd90   :  { %v2764_v8 = vmul.f32 %v7563_v17, %v2763_v45 }
 0xd91   :  { %v9379_v16 = vadd.f32 %v2679_v23, %v9282_v38  ;;  %v2697_v59 = vadd.f32 %v2691_v52, %v2643_v50  ;;  %v2770_v38 = vand.u32 2147483647, %v2741_v42 }
 0xd92   :  { %v2765_v53 = vadd.f32 %v7563_v17, %v2764_v8 }
 0xd93   :  { %v2721_v28 = vmul.f32 %v2697_v59, %v8277_v31  ;;  %vm2771_vm10 = vcmp.eq.f32.partialorder %v2770_v38, 8.507059e+37 }
 0xd94   :  { %v2769_v44 = vsel %vm2768_vm9, %v7563_v17, %v2765_v53 }
 0xd95   :  { %v2774_v29 = vsel %vm2771_vm10, %v2773_v61, %v2769_v44 }
 0xda1   :  { %2842 = vrot.lane.b32.xlu1 %v2695_v40, %s7839_s3 }
 0xdad   :  { %v2667_v48 = vpop.permute.xlu0 %2666 }
 0xdae   :  { %v2678_v57 = vmul.f32 %v2667_v48, %v2642_v27  ;;  %v2690_v22 = vmul.f32 %v2667_v48, %v9258_v14 }
 0xdb0   :  { %v2696_v10 = vadd.f32 %v2690_v22, %v2642_v27  ;;  %v9388_v26 = vadd.f32 %v2678_v57, %v9258_v14  ;;  %v2698_v14 = vmul.f32 %v9313_v32, %v9313_v32  ;;  %v2701_v32 = vmul.f32 %v9342_v21, %v9342_v21 }
 0xdb1   :  { %v2742_v21 = vmax.f32 %v9412_v43, 1e-07 }
 0xdb2   :  { %2844 = vrot.lane.b32.xlu0 %v2696_v10, %s7839_s3  ;;  %v2720_v9 = vmul.f32 %v2696_v10, %v8275_v30  ;;  %v2704_v39 = vsub.f32 1.0, %v2698_v14  ;;  %v2707_v4 = vsub.f32 1.0, %v2701_v32 }
 0xdb3   :  { %vm2781_vm1 = vweird.f32 %v2742_v21  ;;  %v2785_v35 = vand.u32 2147483647, %v2742_v21 }
 0xdb4   :  { %2730 = vadd.xlane.f32.xlu2 %v2720_v9  ;;  %v9404_v25 = vmul.f32 %v2704_v39, %v9297_v1  ;;  %v9416_v1 = vmul.f32 %v2707_v4, %v9327_v63  ;;  %v2787_v39 = vand.u32 2147483648, %v2742_v21  ;;  %v2702_v4 = vmul.f32 %v9345_v51, %v9345_v51 }
 0xdb5   :  { %vm2786_vm6 = vcmp.eq.f32.partialorder %v2785_v35, 8.507059e+37  ;;  %v2703_v51 = vmul.f32 %v9339_v55, %v9339_v55 }
 0xdb6   :  { %v2740_v60 = vmax.f32 %v9404_v25, 1e-07  ;;  %v2743_v24 = vmax.f32 %v9416_v1, 1e-07 }
 0xdb8   :  { %7564 = vrcp.f32 %v2740_v60  ;;  %v2757_v48 = vand.u32 2147483648, %v2740_v60  ;;  %vm2751_vm12 = vweird.f32 %v2740_v60  ;;  %v2755_v57 = vand.u32 2147483647, %v2740_v60 }
 0xdb9   :  { %7566 = vrcp.f32 %v2742_v21  ;;  %v2802_v8 = vand.u32 2147483648, %v2743_v24  ;;  %vm2796_vm2 = vweird.f32 %v2743_v24  ;;  %v2800_v53 = vand.u32 2147483647, %v2743_v24 }
 0xdba   :  { %7568 = vrcp.f32 %v2743_v24  ;;  %v2758_v17 = vor.u32 1.1754944e-38, %v2757_v48  ;;  %vm2756_vm14 = vcmp.eq.f32.partialorder %v2755_v57, 8.507059e+37 }
 0xdbb   :  { %v2803_v44 = vor.u32 1.1754944e-38, %v2802_v8  ;;  %vm2801_vm5 = vcmp.eq.f32.partialorder %v2800_v53, 8.507059e+37 }
 0xdbe   :  { %v7565_v62 = vpop.eup %7564 }
 0xdbf   :  { %v2747_v40 = vmul.f32 %v7565_v62, %v2740_v60  ;;  %v7567_v12 = vpop.eup %7566  ;;  %vm2752_vm11 = vweird.f32 %v7565_v62 }
 0xdc0   :  { %v7569_v50 = vpop.eup %7568  ;;  %v2777_v23 = vmul.f32 %v7567_v12, %v2742_v21  ;;  %vm2753_vm13 = vmor %vm2751_vm12, %vm2752_vm11  ;;  %vm2782_vm15 = vweird.f32 %v7567_v12 }
 0xdc1   :  { %v2748_v19 = vsub.f32 1.0, %v2747_v40  ;;  %v2792_v47 = vmul.f32 %v7569_v50, %v2743_v24  ;;  %vm2797_vm0 = vweird.f32 %v7569_v50  ;;  %vm9427_vm3 = vmor %vm2781_vm1, %vm2782_vm15  ;;  %v2708_v40 = vsub.f32 1.0, %v2702_v4 }
 0xdc2   :  { %v2778_v33 = vsub.f32 1.0, %v2777_v23  ;;  %vm2798_vm4 = vmor %vm2796_vm2, %vm2797_vm0 }
 0xdc3   :  { %v2749_v36 = vmul.f32 %v7565_v62, %v2748_v19  ;;  %v2793_v63 = vsub.f32 1.0, %v2792_v47  ;;  %v2709_v47 = vsub.f32 1.0, %v2703_v51 }
 0xdc4   :  { %v2779_v9 = vmul.f32 %v7567_v12, %v2778_v33 }
 0xdc5   :  { %v2750_v27 = vadd.f32 %v7565_v62, %v2749_v36  ;;  %v2794_v10 = vmul.f32 %v7569_v50, %v2793_v63 }
 0xdc7   :  { %v2754_v22 = vsel %vm2753_vm13, %v7565_v62, %v2750_v27  ;;  %v2795_v14 = vadd.f32 %v7569_v50, %v2794_v10  ;;  %v9448_v27 = vmul.f32 %v2709_v47, %v9324_v0 }
 0xdc8   :  { %v9420_v13 = vpop.permute.xlu0 %2836 }
 0xdc9   :  { %v2799_v38 = vsel %vm2798_vm4, %v7569_v50, %v2795_v14  ;;  %v2745_v48 = vmax.f32 %v9448_v27, 1e-07  ;;  %v2848_v51 = vmul.f32 %v8260_v6, %v9420_v13 }
 0xdcb   :  { %2732 = vadd.xlane.f32.xlu1 %v2721_v28  ;;  %v2780_v28 = vadd.f32 %v7567_v12, %v2779_v9  ;;  %v2832_v53 = vand.u32 2147483648, %v2745_v48  ;;  %vm2826_vm12 = vweird.f32 %v2745_v48  ;;  %v2830_v46 = vand.u32 2147483647, %v2745_v48 }
 0xdcc   :  { %2846 = vrot.lane.b32.xlu2 %v2697_v59, %s7839_s3  ;;  %v2759_v59 = vsel %vm2756_vm14, %v2758_v17, %v2754_v22 }
 0xdcd   :  { %v2784_v32 = vsel %vm9427_vm3, %v7567_v12, %v2780_v28  ;;  %v9442_v12 = vmul.f32 %v2708_v40, %v9336_v37  ;;  %vm2831_vm14 = vcmp.eq.f32.partialorder %v2830_v46, 8.507059e+37 }
 0xdcf   :  { %v2744_v19 = vmax.f32 %v9442_v12, 1e-07 }
 0xdd0   :  { %v9422_v42 = vpop.permute.xlu1 %2838 }
 0xdd1   :  { %7570 = vrcp.f32 %v2744_v19  ;;  %v2817_v37 = vand.u32 2147483648, %v2744_v19  ;;  %vm2811_vm8 = vweird.f32 %v2744_v19  ;;  %v2815_v22 = vand.u32 2147483647, %v2744_v19 }
 0xdd2   :  { %7572 = vrcp.f32 %v2745_v48 }
 0xdd3   :  { %v2725_v34 = vpop.xlane.xlu2 %2724  ;;  %v2818_v9 = vor.u32 1.1754944e-38, %v2817_v37  ;;  %vm2816_vm10 = vcmp.eq.f32.partialorder %v2815_v22, 8.507059e+37 }
 0xdd4   :  { %v2735_v11 = vsub.f32 0.0, %v2725_v34  ;;  %v2788_v34 = vor.u32 1.1754944e-38, %v2787_v39 }
 0xdd6   :  { %v9409_v41 = vmul.f32 %v2774_v29, %v2735_v11  ;;  %v2804_v29 = vsel %vm2801_vm5, %v2803_v44, %v2799_v38  ;;  %v2789_v24 = vsel %vm2786_vm6, %v2788_v34, %v2784_v32  ;;  %v2833_v38 = vor.u32 1.1754944e-38, %v2832_v53 }
 0xdd7   :  { %v7571_v50 = vpop.eup %7570 }
 0xdd8   :  { %2861 = vperm.xlu0 %7404, %v9409_v41   ;;  %v2807_v36 = vmul.f32 %v7571_v50, %v2744_v19  ;;  %vm2812_vm7 = vweird.f32 %v7571_v50 }
 0xdd9   :  { %vm2813_vm9 = vmor %vm2811_vm8, %vm2812_vm7 }
 0xdda   :  { %v2808_v23 = vsub.f32 1.0, %v2807_v36 }
 0xddb   :  { %v2841_v33 = vpop.permute.xlu2 %2840 }
 0xddc   :  { %v2809_v63 = vmul.f32 %v7571_v50, %v2808_v23  ;;  %v2850_v13 = vmul.f32 %v8260_v6, %v2841_v33 }
 0xdde   :  { %v2810_v57 = vadd.f32 %v7571_v50, %v2809_v63 }
 0xde0   :  { %v2814_v10 = vsel %vm2813_vm9, %v7571_v50, %v2810_v57 }
 0xdf3   :  { %v2723_v52 = vpop.xlane.xlu0 %2722 }
 0xdf4   :  { %v2734_v5 = vsub.f32 0.0, %v2723_v52  ;;  %v2819_v52 = vsel %vm2816_vm10, %v2818_v9, %v2814_v10 }
 0xdf6   :  { %v9424_v45 = vmul.f32 %v2759_v59, %v2734_v5  ;;  %v7573_v5 = vpop.eup %7572 }
 0xdf7   :  { %v2822_v59 = vmul.f32 %v7573_v5, %v2745_v48  ;;  %vm2827_vm11 = vweird.f32 %v7573_v5 }
 0xdf8   :  { %2856 = vperm.xlu2 %7403, %v9424_v45   ;;  %vm2828_vm13 = vmor %vm2826_vm12, %vm2827_vm11 }
 0xdf9   :  { %v2823_v14 = vsub.f32 1.0, %v2822_v59 }
 0xdfb   :  { %v2729_v61 = vpop.xlane.xlu0 %2728  ;;  %v2727_v15 = vpop.xlane.xlu1 %2726  ;;  %v2824_v28 = vmul.f32 %v7573_v5, %v2823_v14 }
 0xdfc   :  { %v2737_v11 = vsub.f32 0.0, %v2729_v61  ;;  %v2736_v60 = vsub.f32 0.0, %v2727_v15 }
 0xdfd   :  { %v2825_v39 = vadd.f32 %v7573_v5, %v2824_v28 }
 0xdfe   :  { %v9435_v62 = vmul.f32 %v2804_v29, %v2737_v11  ;;  %v9437_v21 = vmul.f32 %v2789_v24, %v2736_v60  ;;  %v2849_v11 = vmul.f32 %v8260_v6, %v9422_v42 }
 0xdff   :  { %v2829_v35 = vsel %vm2828_vm13, %v7573_v5, %v2825_v39  ;;  %v2909_v39 = vmul.f32 %v9409_v41, %v9409_v41 }
 0xe00   :  { %2871 = vperm.xlu2 %7403, %v9435_v62   ;;  %2866 = vperm.xlu0 %7404, %v9437_v21   ;;  %v2834_v61 = vsel %vm2831_vm14, %v2833_v38, %v2829_v35 }
 0xe01   :  { %v2915_v35 = vsub.f32 1.0, %v2909_v39 }
 0xe03   :  { %v9497_v38 = vmul.f32 %v2915_v35, %v9391_v54 }
 0xe13   :  { %v2843_v8 = vpop.permute.xlu1 %2842 }
 0xe24   :  { %v2845_v15 = vpop.permute.xlu0 %2844 }
 0xe25   :  { %v2852_v14 = vmul.f32 %v8260_v6, %v2845_v15 }
 0xe27   :  { %v2731_v55 = vpop.xlane.xlu2 %2730 }
 0xe28   :  { %v2738_v17 = vsub.f32 0.0, %v2731_v55 }
 0xe2a   :  { %v9451_v0 = vmul.f32 %v2819_v52, %v2738_v17 }
 0xe2c   :  { %2876 = vperm.xlu1 %7405, %v9451_v0  }
 0xe2f   :  { %v2847_v60 = vpop.permute.xlu2 %2846 }
 0xe3e   :  { %v2733_v32 = vpop.xlane.xlu1 %2732 }
 0xe3f   :  { %v2739_v44 = vsub.f32 0.0, %v2733_v32  ;;  %v2951_v32 = vmax.f32 %v9497_v38, 1e-07 }
 0xe41   :  { %v9454_v34 = vmul.f32 %v2834_v61, %v2739_v44  ;;  %7574 = vrcp.f32 %v2951_v32  ;;  %v2853_v44 = vmul.f32 %v8260_v6, %v2847_v60  ;;  %vm2976_vm0 = vweird.f32 %v2951_v32 }
 0xe43   :  { %2881 = vperm.xlu0 %7404, %v9454_v34  }
 0xe4a   :  { %v2862_v4 = vpop.permute.xlu0 %2861 }
 0xe4b   :  { %v2885_v29 = vmul.f32 %v2862_v4, %v2849_v11  ;;  %v2897_v24 = vmul.f32 %v2862_v4, %v9363_v7 }
 0xe4d   :  { %v2903_v40 = vadd.f32 %v2897_v24, %v2849_v11  ;;  %v9461_v19 = vadd.f32 %v2885_v29, %v9363_v7  ;;  %v2851_v7 = vmul.f32 %v8260_v6, %v2843_v8 }
 0xe4f   :  { %3048 = vrot.lane.b32.xlu0 %v2903_v40, %s7839_s3  ;;  %v2927_v50 = vmul.f32 %v2903_v40, %v8228_v58  ;;  %v2910_v40 = vmul.f32 %v9437_v21, %v9437_v21 }
 0xe51   :  { %2934 = vadd.xlane.f32.xlu2 %v2927_v50  ;;  %v2916_v50 = vsub.f32 1.0, %v2910_v40 }
 0xe52   :  { %v2857_v36 = vpop.permute.xlu2 %2856 }
 0xe53   :  { %v2884_v47 = vmul.f32 %v2857_v36, %v2848_v51  ;;  %v2896_v42 = vmul.f32 %v2857_v36, %v9356_v3  ;;  %v2982_v36 = vand.u32 2147483648, %v2951_v32 }
 0xe55   :  { %v2902_v23 = vadd.f32 %v2896_v42, %v2848_v51  ;;  %v9469_v63 = vadd.f32 %v2884_v47, %v9356_v3  ;;  %v2980_v42 = vand.u32 2147483647, %v2951_v32 }
 0xe57   :  { %3046 = vrot.lane.b32.xlu1 %v2902_v23, %s7839_s3  ;;  %v2926_v5 = vmul.f32 %v2902_v23, %v8226_v56  ;;  %v9512_v23 = vmul.f32 %v2916_v50, %v9412_v43  ;;  %vm2981_vm2 = vcmp.eq.f32.partialorder %v2980_v42, 8.507059e+37 }
 0xe5a   :  { %v2872_v48 = vpop.permute.xlu2 %2871 }
 0xe5b   :  { %v2887_v57 = vmul.f32 %v2872_v48, %v2851_v7  ;;  %v2899_v52 = vmul.f32 %v2872_v48, %v9371_v49 }
 0xe5d   :  { %v9474_v37 = vadd.f32 %v2887_v57, %v9371_v49  ;;  %v2905_v59 = vadd.f32 %v2899_v52, %v2851_v7  ;;  %v2983_v57 = vor.u32 1.1754944e-38, %v2982_v36 }
 0xe5f   :  { %v2929_v33 = vmul.f32 %v2905_v59, %v8240_v20 }
 0xe72   :  { %v2867_v22 = vpop.permute.xlu0 %2866 }
 0xe73   :  { %v2886_v10 = vmul.f32 %v2867_v22, %v2850_v13  ;;  %v2898_v9 = vmul.f32 %v2867_v22, %v9350_v18  ;;  %v2952_v22 = vmax.f32 %v9512_v23, 1e-07 }
 0xe75   :  { %v2904_v55 = vadd.f32 %v2898_v9, %v2850_v13  ;;  %v9479_v17 = vadd.f32 %v2886_v10, %v9350_v18  ;;  %7576 = vrcp.f32 %v2952_v22  ;;  %vm2991_vm4 = vweird.f32 %v2952_v22 }
 0xe77   :  { %3050 = vrot.lane.b32.xlu2 %v2904_v55, %s7839_s3  ;;  %v2928_v3 = vmul.f32 %v2904_v55, %v8233_v2 }
 0xe79   :  { %2936 = vadd.xlane.f32.xlu0 %v2928_v3 }
 0xe81   :  { %2932 = vadd.xlane.f32.xlu1 %v2926_v5 }
 0xe89   :  { %2938 = vadd.xlane.f32.xlu1 %v2929_v33 }
 0xe8d   :  { %3052 = vrot.lane.b32.xlu0 %v2905_v59, %s7839_s3 }
 0xe9e   :  { %v2877_v18 = vpop.permute.xlu1 %2876 }
 0xe9f   :  { %v2888_v28 = vmul.f32 %v2877_v18, %v2852_v14  ;;  %v2900_v8 = vmul.f32 %v2877_v18, %v9388_v26 }
 0xea1   :  { %v2906_v53 = vadd.f32 %v2900_v8, %v2852_v14  ;;  %v9492_v49 = vadd.f32 %v2888_v28, %v9388_v26  ;;  %v7575_v26 = vpop.eup %7574 }
 0xea2   :  { %v2972_v24 = vmul.f32 %v7575_v26, %v2951_v32  ;;  %vm2977_vm15 = vweird.f32 %v7575_v26  ;;  %v7577_v3 = vpop.eup %7576 }
 0xea3   :  { %3054 = vrot.lane.b32.xlu1 %v2906_v53, %s7839_s3  ;;  %v2930_v46 = vmul.f32 %v2906_v53, %v8275_v30  ;;  %vm2978_vm1 = vmor %vm2976_vm0, %vm2977_vm15  ;;  %v2987_v5 = vmul.f32 %v7577_v3, %v2952_v22  ;;  %vm2992_vm3 = vweird.f32 %v7577_v3  ;;  %v2997_v53 = vand.u32 2147483648, %v2952_v22 }
 0xea4   :  { %v2973_v54 = vsub.f32 1.0, %v2972_v24  ;;  %vm2993_vm5 = vmor %vm2991_vm4, %vm2992_vm3 }
 0xea5   :  { %2940 = vadd.xlane.f32.xlu2 %v2930_v46  ;;  %v2988_v33 = vsub.f32 1.0, %v2987_v5  ;;  %v2995_v46 = vand.u32 2147483647, %v2952_v22 }
 0xea6   :  { %v2974_v60 = vmul.f32 %v7575_v26, %v2973_v54 }
 0xea7   :  { %vm2996_vm6 = vcmp.eq.f32.partialorder %v2995_v46, 8.507059e+37 }
 0xea8   :  { %v2975_v51 = vadd.f32 %v7575_v26, %v2974_v60 }
 0xeaa   :  { %v2979_v7 = vsel %vm2978_vm1, %v7575_v26, %v2975_v51  ;;  %v2912_v26 = vmul.f32 %v9451_v0, %v9451_v0 }
 0xeab   :  { %v2984_v21 = vsel %vm2981_vm2, %v2983_v57, %v2979_v7 }
 0xeac   :  { %v2918_v50 = vsub.f32 1.0, %v2912_v26 }
 0xeae   :  { %v9538_v0 = vmul.f32 %v2918_v50, %v9442_v12 }
 0xeb0   :  { %v2954_v22 = vmax.f32 %v9538_v0, 1e-07 }
 0xeb2   :  { %vm3021_vm0 = vweird.f32 %v2954_v22 }
 0xeb5   :  { %v2882_v61 = vpop.permute.xlu0 %2881 }
 0xeb6   :  { %v2889_v41 = vmul.f32 %v2882_v61, %v2853_v44  ;;  %v2901_v15 = vmul.f32 %v2882_v61, %v9379_v16  ;;  %v2998_v61 = vor.u32 1.1754944e-38, %v2997_v53 }
 0xeb8   :  { %v2907_v11 = vadd.f32 %v2901_v15, %v2853_v44  ;;  %v9503_v4 = vadd.f32 %v2889_v41, %v9379_v16  ;;  %v2908_v16 = vmul.f32 %v9424_v45, %v9424_v45  ;;  %v2911_v45 = vmul.f32 %v9435_v62, %v9435_v62 }
 0xeba   :  { %v2931_v29 = vmul.f32 %v2907_v11, %v8277_v31  ;;  %v2914_v13 = vsub.f32 1.0, %v2908_v16  ;;  %v2917_v55 = vsub.f32 1.0, %v2911_v45 }
 0xebc   :  { %2942 = vadd.xlane.f32.xlu0 %v2931_v29  ;;  %v9519_v9 = vmul.f32 %v2914_v13, %v9404_v25  ;;  %v9525_v52 = vmul.f32 %v2917_v55, %v9416_v1  ;;  %v2989_v25 = vmul.f32 %v7577_v3, %v2988_v33 }
 0xebd   :  { %3056 = vrot.lane.b32.xlu2 %v2907_v11, %s7839_s3 }
 0xebe   :  { %v2950_v43 = vmax.f32 %v9519_v9, 1e-07  ;;  %v2953_v59 = vmax.f32 %v9525_v52, 1e-07  ;;  %v2990_v62 = vadd.f32 %v7577_v3, %v2989_v25 }
 0xec0   :  { %7578 = vrcp.f32 %v2950_v43  ;;  %v2994_v1 = vsel %vm2993_vm5, %v7577_v3, %v2990_v62  ;;  %v2967_v40 = vand.u32 2147483648, %v2950_v43  ;;  %vm2961_vm8 = vweird.f32 %v2950_v43 }
 0xec1   :  { %7580 = vrcp.f32 %v2953_v59  ;;  %v9528_v28 = vpop.permute.xlu0 %3048  ;;  %v2999_v11 = vsel %vm2996_vm6, %v2998_v61, %v2994_v1  ;;  %v2965_v60 = vand.u32 2147483647, %v2950_v43  ;;  %vm3006_vm12 = vweird.f32 %v2953_v59 }
 0xec2   :  { %v3010_v13 = vand.u32 2147483647, %v2953_v59  ;;  %7582 = vrcp.f32 %v2954_v22  ;;  %v3027_v1 = vand.u32 2147483648, %v2954_v22 }
 0xec3   :  { %vm2966_vm10 = vcmp.eq.f32.partialorder %v2965_v60, 8.507059e+37 }
 0xec4   :  { %v2935_v47 = vpop.xlane.xlu2 %2934  ;;  %vm3011_vm14 = vcmp.eq.f32.partialorder %v3010_v13, 8.507059e+37  ;;  %v3028_v61 = vor.u32 1.1754944e-38, %v3027_v1 }
 0xec5   :  { %v2945_v48 = vsub.f32 0.0, %v2935_v47  ;;  %v2968_v47 = vor.u32 1.1754944e-38, %v2967_v40 }
 0xec6   :  { %v7579_v14 = vpop.eup %7578 }
 0xec7   :  { %v9515_v10 = vmul.f32 %v2984_v21, %v2945_v48  ;;  %v2957_v18 = vmul.f32 %v7579_v14, %v2950_v43  ;;  %v7581_v39 = vpop.eup %7580  ;;  %vm2962_vm7 = vweird.f32 %v7579_v14  ;;  %v3012_v21 = vand.u32 2147483648, %v2953_v59 }
 0xec8   :  { %v3002_v32 = vmul.f32 %v7581_v39, %v2953_v59  ;;  %vm2963_vm9 = vmor %vm2961_vm8, %vm2962_vm7  ;;  %vm3007_vm11 = vweird.f32 %v7581_v39  ;;  %v7583_v33 = vpop.eup %7582 }
 0xec9   :  { %v2958_v8 = vsub.f32 1.0, %v2957_v18  ;;  %v9530_v44 = vpop.permute.xlu1 %3046  ;;  %vm3008_vm13 = vmor %vm3006_vm12, %vm3007_vm11  ;;  %v3013_v43 = vor.u32 1.1754944e-38, %v3012_v21  ;;  %v3017_v25 = vmul.f32 %v7583_v33, %v2954_v22  ;;  %vm3022_vm15 = vweird.f32 %v7583_v33 }
 0xeca   :  { %v3003_v54 = vsub.f32 1.0, %v3002_v32  ;;  %vm3023_vm1 = vmor %vm3021_vm0, %vm3022_vm15  ;;  %v3059_v21 = vmul.f32 %v8260_v6, %v9528_v28 }
 0xecb   :  { %v2959_v35 = vmul.f32 %v7579_v14, %v2958_v8  ;;  %v3018_v18 = vsub.f32 1.0, %v3017_v25 }
 0xecc   :  { %v3004_v36 = vmul.f32 %v7581_v39, %v3003_v54 }
 0xecd   :  { %v2960_v24 = vadd.f32 %v7579_v14, %v2959_v35  ;;  %v3019_v8 = vmul.f32 %v7583_v33, %v3018_v18  ;;  %v3025_v35 = vand.u32 2147483647, %v2954_v22 }
 0xece   :  { %v3005_v57 = vadd.f32 %v7581_v39, %v3004_v36 }
 0xecf   :  { %v2964_v51 = vsel %vm2963_vm9, %v7579_v14, %v2960_v24  ;;  %v2913_v14 = vmul.f32 %v9454_v34, %v9454_v34  ;;  %v3020_v46 = vadd.f32 %v7583_v33, %v3019_v8  ;;  %vm3026_vm2 = vcmp.eq.f32.partialorder %v3025_v35, 8.507059e+37 }
 0xed0   :  { %3071 = vperm.xlu0 %7404, %v9515_v10   ;;  %v2969_v7 = vsel %vm2966_vm10, %v2968_v47, %v2964_v51  ;;  %v3009_v45 = vsel %vm3008_vm13, %v7581_v39, %v3005_v57 }
 0xed1   :  { %v3014_v12 = vsel %vm3011_vm14, %v3013_v43, %v3009_v45  ;;  %v2919_v59 = vsub.f32 1.0, %v2913_v14  ;;  %v3051_v39 = vpop.permute.xlu2 %3050  ;;  %v3024_v32 = vsel %vm3023_vm1, %v7583_v33, %v3020_v46 }
 0xed2   :  { %v3060_v1 = vmul.f32 %v8260_v6, %v3051_v39 }
 0xed3   :  { %v9550_v62 = vmul.f32 %v2919_v59, %v9448_v27 }
 0xed5   :  { %v2955_v53 = vmax.f32 %v9550_v62, 1e-07 }
 0xed7   :  { %7584 = vrcp.f32 %v2955_v53  ;;  %v3042_v50 = vand.u32 2147483648, %v2955_v53  ;;  %vm3036_vm4 = vweird.f32 %v2955_v53  ;;  %v3040_v51 = vand.u32 2147483647, %v2955_v53 }
 0xed9   :  { %vm3041_vm6 = vcmp.eq.f32.partialorder %v3040_v51, 8.507059e+37 }
 0xedd   :  { %v7585_v26 = vpop.eup %7584 }
 0xede   :  { %vm3037_vm3 = vweird.f32 %v7585_v26 }
 0xedf   :  { %vm3038_vm5 = vmor %vm3036_vm4, %vm3037_vm3 }
 0xeec   :  { %v2937_v41 = vpop.xlane.xlu0 %2936 }
 0xeed   :  { %v2946_v15 = vsub.f32 0.0, %v2937_v41 }
 0xeef   :  { %v9534_v29 = vmul.f32 %v2999_v11, %v2946_v15  ;;  %v3029_v15 = vsel %vm3026_vm2, %v3028_v61, %v3024_v32  ;;  %v3032_v11 = vmul.f32 %v7585_v26, %v2955_v53 }
 0xef1   :  { %3076 = vperm.xlu1 %7405, %v9534_v29   ;;  %v3033_v24 = vsub.f32 1.0, %v3032_v11 }
 0xef3   :  { %v3034_v54 = vmul.f32 %v7585_v26, %v3033_v24 }
 0xef4   :  { %v2933_v42 = vpop.xlane.xlu1 %2932 }
 0xef5   :  { %v2944_v16 = vsub.f32 0.0, %v2933_v42  ;;  %v3035_v60 = vadd.f32 %v7585_v26, %v3034_v54  ;;  %v3043_v42 = vor.u32 1.1754944e-38, %v3042_v50 }
 0xef7   :  { %v9540_v48 = vmul.f32 %v2969_v7, %v2944_v16  ;;  %v3039_v36 = vsel %vm3038_vm5, %v7585_v26, %v3035_v60 }
 0xef8   :  { %v3044_v7 = vsel %vm3041_vm6, %v3043_v42, %v3039_v36 }
 0xef9   :  { %3066 = vperm.xlu2 %7403, %v9540_v48   ;;  %v3118_v50 = vmul.f32 %v9540_v48, %v9540_v48  ;;  %v3120_v48 = vmul.f32 %v9534_v29, %v9534_v29  ;;  %v3119_v29 = vmul.f32 %v9515_v10, %v9515_v10 }
 0xefc   :  { %v2939_v55 = vpop.xlane.xlu1 %2938 }
 0xefd   :  { %v2947_v3 = vsub.f32 0.0, %v2939_v55 }
 0xeff   :  { %v9544_v5 = vmul.f32 %v3014_v12, %v2947_v3  ;;  %v3053_v40 = vpop.permute.xlu0 %3052  ;;  %v3058_v12 = vmul.f32 %v8260_v6, %v9530_v44 }
 0xf01   :  { %3081 = vperm.xlu2 %7403, %v9544_v5  }
 0xf15   :  { %v3055_v8 = vpop.permute.xlu1 %3054 }
 0xf16   :  { %v3062_v39 = vmul.f32 %v8260_v6, %v3055_v8 }
 0xf18   :  { %v2941_v34 = vpop.xlane.xlu2 %2940 }
 0xf19   :  { %v2948_v41 = vsub.f32 0.0, %v2941_v34 }
 0xf1b   :  { %v9553_v27 = vmul.f32 %v3029_v15, %v2948_v41 }
 0xf1d   :  { %3086 = vperm.xlu0 %7404, %v9553_v27  }
 0xf20   :  { %v3057_v3 = vpop.permute.xlu2 %3056 }
 0xf21   :  { %v3063_v51 = vmul.f32 %v8260_v6, %v3057_v3  ;;  %v3126_v3 = vsub.f32 1.0, %v3120_v48 }
 0xf2f   :  { %v2943_v47 = vpop.xlane.xlu0 %2942 }
 0xf30   :  { %v2949_v16 = vsub.f32 0.0, %v2943_v47  ;;  %v3124_v47 = vsub.f32 1.0, %v3118_v50 }
 0xf32   :  { %v9556_v57 = vmul.f32 %v3044_v7, %v2949_v16 }
 0xf34   :  { %3091 = vperm.xlu1 %7405, %v9556_v57  }
 0xf42   :  { %v3072_v13 = vpop.permute.xlu0 %3071 }
 0xf43   :  { %v3095_v22 = vmul.f32 %v3072_v13, %v3059_v21  ;;  %v3107_v45 = vmul.f32 %v3072_v13, %v9461_v19 }
 0xf45   :  { %v3113_v43 = vadd.f32 %v3107_v45, %v3059_v21  ;;  %v9563_v55 = vadd.f32 %v3095_v22, %v9461_v19  ;;  %v3061_v19 = vmul.f32 %v8260_v6, %v3053_v40 }
 0xf47   :  { %3258 = vrot.lane.b32.xlu1 %v3113_v43, %s7839_s3  ;;  %v3137_v11 = vmul.f32 %v3113_v43, %v8228_v58 }
 0xf53   :  { %v3067_v33 = vpop.permute.xlu2 %3066 }
 0xf54   :  { %v3094_v14 = vmul.f32 %v3067_v33, %v3058_v12  ;;  %v3106_v25 = vmul.f32 %v3067_v33, %v9469_v63 }
 0xf56   :  { %v3112_v59 = vadd.f32 %v3106_v25, %v3058_v12  ;;  %v9570_v28 = vadd.f32 %v3094_v14, %v9469_v63 }
 0xf58   :  { %3256 = vrot.lane.b32.xlu2 %v3112_v59, %s7839_s3  ;;  %v3136_v18 = vmul.f32 %v3112_v59, %v8226_v56 }
 0xf5a   :  { %3142 = vadd.xlane.f32.xlu0 %v3136_v18 }
 0xf5b   :  { %v3082_v53 = vpop.permute.xlu2 %3081 }
 0xf5c   :  { %v3097_v46 = vmul.f32 %v3082_v53, %v3061_v19  ;;  %v3109_v34 = vmul.f32 %v3082_v53, %v9474_v37 }
 0xf5e   :  { %v9576_v44 = vadd.f32 %v3097_v46, %v9474_v37  ;;  %v3115_v15 = vadd.f32 %v3109_v34, %v3061_v19  ;;  %v3125_v46 = vsub.f32 1.0, %v3119_v29 }
 0xf60   :  { %v3139_v12 = vmul.f32 %v3115_v15, %v8240_v20 }
 0xf63   :  { %v3077_v35 = vpop.permute.xlu1 %3076 }
 0xf64   :  { %v3096_v32 = vmul.f32 %v3077_v35, %v3060_v1  ;;  %v3108_v61 = vmul.f32 %v3077_v35, %v9479_v17 }
 0xf66   :  { %v9580_v63 = vadd.f32 %v3096_v32, %v9479_v17  ;;  %v3114_v41 = vadd.f32 %v3108_v61, %v3060_v1  ;;  %v9619_v61 = vmul.f32 %v3125_v46, %v9497_v38  ;;  %v3122_v38 = vmul.f32 %v9553_v27, %v9553_v27 }
 0xf68   :  { %v3138_v26 = vmul.f32 %v3114_v41, %v8233_v2  ;;  %v3161_v34 = vmax.f32 %v9619_v61, 1e-07 }
 0xf6a   :  { %vm3186_vm0 = vweird.f32 %v3161_v34 }
 0xf6e   :  { %3262 = vrot.lane.b32.xlu0 %v3115_v15, %s7839_s3 }
 0xf71   :  { %3146 = vadd.xlane.f32.xlu1 %v3138_v26 }
 0xf81   :  { %3144 = vadd.xlane.f32.xlu2 %v3137_v11 }
 0xf8f   :  { %v3087_v24 = vpop.permute.xlu0 %3086 }
 0xf90   :  { %v3098_v54 = vmul.f32 %v3087_v24, %v3062_v39  ;;  %v3110_v40 = vmul.f32 %v3087_v24, %v9492_v49 }
 0xf92   :  { %v3116_v60 = vadd.f32 %v3110_v40, %v3062_v39  ;;  %v9590_v17 = vadd.f32 %v3098_v54, %v9492_v49  ;;  %v9602_v49 = vmul.f32 %v3124_v47, %v9519_v9  ;;  %v9611_v9 = vmul.f32 %v3126_v3, %v9512_v23 }
 0xf94   :  { %3264 = vrot.lane.b32.xlu1 %v3116_v60, %s7839_s3  ;;  %v3140_v37 = vmul.f32 %v3116_v60, %v8275_v30  ;;  %v3160_v7 = vmax.f32 %v9602_v49, 1e-07 }
 0xf96   :  { %7586 = vrcp.f32 %v3160_v7  ;;  %v3177_v59 = vand.u32 2147483648, %v3160_v7  ;;  %vm3171_vm8 = vweird.f32 %v3160_v7  ;;  %v3175_v18 = vand.u32 2147483647, %v3160_v7 }
 0xf98   :  { %3150 = vadd.xlane.f32.xlu0 %v3140_v37  ;;  %v3178_v53 = vor.u32 1.1754944e-38, %v3177_v59  ;;  %vm3176_vm10 = vcmp.eq.f32.partialorder %v3175_v18, 8.507059e+37 }
 0xf99   :  { %3260 = vrot.lane.b32.xlu2 %v3114_v41, %s7839_s3 }
 0xf9c   :  { %v7587_v22 = vpop.eup %7586 }
 0xf9d   :  { %v3167_v43 = vmul.f32 %v7587_v22, %v3160_v7  ;;  %vm3172_vm7 = vweird.f32 %v7587_v22 }
 0xf9e   :  { %vm3173_vm9 = vmor %vm3171_vm8, %vm3172_vm7 }
 0xf9f   :  { %v3168_v33 = vsub.f32 1.0, %v3167_v43  ;;  %v3190_v43 = vand.u32 2147483647, %v3161_v34 }
 0xfa1   :  { %v3169_v14 = vmul.f32 %v7587_v22, %v3168_v33  ;;  %vm3191_vm2 = vcmp.eq.f32.partialorder %v3190_v43, 8.507059e+37 }
 0xfa3   :  { %v3170_v25 = vadd.f32 %v7587_v22, %v3169_v14 }
 0xfa5   :  { %v3174_v19 = vsel %vm3173_vm9, %v7587_v22, %v3170_v25 }
 0xfa6   :  { %v3092_v36 = vpop.permute.xlu1 %3091  ;;  %v3179_v1 = vsel %vm3176_vm10, %v3178_v53, %v3174_v19  ;;  %v3123_v53 = vmul.f32 %v9556_v57, %v9556_v57 }
 0xfa7   :  { %v3099_v42 = vmul.f32 %v3092_v36, %v3063_v51  ;;  %v3111_v21 = vmul.f32 %v3092_v36, %v9503_v4 }
 0xfa9   :  { %v9599_v16 = vadd.f32 %v3099_v42, %v9503_v4  ;;  %v3117_v13 = vadd.f32 %v3111_v21, %v3063_v51  ;;  %v3162_v4 = vmax.f32 %v9611_v9, 1e-07  ;;  %v3128_v51 = vsub.f32 1.0, %v3122_v38 }
 0xfab   :  { %v3141_v45 = vmul.f32 %v3117_v13, %v8277_v31  ;;  %7588 = vrcp.f32 %v3162_v4  ;;  %v3207_v24 = vand.u32 2147483648, %v3162_v4  ;;  %vm3201_vm12 = vweird.f32 %v3162_v4 }
 0xfac   :  { %7590 = vrcp.f32 %v3161_v34  ;;  %v3205_v54 = vand.u32 2147483647, %v3162_v4  ;;  %v9631_v21 = vmul.f32 %v3128_v51, %v9538_v0 }
 0xfad   :  { %v3208_v37 = vor.u32 1.1754944e-38, %v3207_v24 }
 0xfae   :  { %vm3206_vm14 = vcmp.eq.f32.partialorder %v3205_v54, 8.507059e+37  ;;  %v3164_v22 = vmax.f32 %v9631_v21, 1e-07 }
 0xfb0   :  { %7592 = vrcp.f32 %v3164_v22  ;;  %v3237_v46 = vand.u32 2147483648, %v3164_v22  ;;  %vm3231_vm4 = vweird.f32 %v3164_v22 }
 0xfb1   :  { %v7589_v35 = vpop.eup %7588 }
 0xfb2   :  { %v3197_v10 = vmul.f32 %v7589_v35, %v3162_v4  ;;  %vm3202_vm11 = vweird.f32 %v7589_v35  ;;  %v7591_v39 = vpop.eup %7590 }
 0xfb3   :  { %vm3203_vm13 = vmor %vm3201_vm12, %vm3202_vm11  ;;  %v3182_v60 = vmul.f32 %v7591_v39, %v3161_v34  ;;  %vm3187_vm15 = vweird.f32 %v7591_v39 }
 0xfb4   :  { %v3198_v41 = vsub.f32 1.0, %v3197_v10  ;;  %vm3188_vm1 = vmor %vm3186_vm0, %vm3187_vm15  ;;  %v3129_v10 = vsub.f32 1.0, %v3123_v53 }
 0xfb5   :  { %v3183_v7 = vsub.f32 1.0, %v3182_v60 }
 0xfb6   :  { %v3199_v15 = vmul.f32 %v7589_v35, %v3198_v41  ;;  %v7593_v4 = vpop.eup %7592  ;;  %v9649_v38 = vmul.f32 %v3129_v10, %v9550_v62 }
 0xfb7   :  { %v3184_v27 = vmul.f32 %v7591_v39, %v3183_v7  ;;  %v3227_v59 = vmul.f32 %v7593_v4, %v3164_v22  ;;  %vm3232_vm3 = vweird.f32 %v7593_v4 }
 0xfb8   :  { %v3200_v11 = vadd.f32 %v7589_v35, %v3199_v15  ;;  %vm3233_vm5 = vmor %vm3231_vm4, %vm3232_vm3  ;;  %v3165_v54 = vmax.f32 %v9649_v38, 1e-07 }
 0xfb9   :  { %v9624_v26 = vpop.permute.xlu1 %3258  ;;  %v3185_v48 = vadd.f32 %v7591_v39, %v3184_v27  ;;  %v3228_v29 = vsub.f32 1.0, %v3227_v59 }
 0xfba   :  { %v3204_v40 = vsel %vm3203_vm13, %v7589_v35, %v3200_v11  ;;  %v3121_v35 = vmul.f32 %v9544_v5, %v9544_v5  ;;  %7594 = vrcp.f32 %v3165_v54  ;;  %vm3246_vm8 = vweird.f32 %v3165_v54 }
 0xfbb   :  { %v3209_v47 = vsel %vm3206_vm14, %v3208_v37, %v3204_v40  ;;  %v3189_v3 = vsel %vm3188_vm1, %v7591_v39, %v3185_v48  ;;  %v3229_v18 = vmul.f32 %v7593_v4, %v3228_v29  ;;  %v3250_v48 = vand.u32 2147483647, %v3165_v54 }
 0xfbc   :  { %v3127_v24 = vsub.f32 1.0, %v3121_v35 }
 0xfbd   :  { %vm3251_vm11 = vcmp.eq.f32.partialorder %v3250_v48, 8.507059e+37 }
 0xfbe   :  { %3152 = vadd.xlane.f32.xlu1 %v3141_v45  ;;  %v3192_v45 = vand.u32 2147483648, %v3161_v34  ;;  %v3238_v34 = vor.u32 1.1754944e-38, %v3237_v46  ;;  %v9653_v57 = vmul.f32 %v3127_v24, %v9525_v52  ;;  %v3252_v52 = vand.u32 2147483648, %v3165_v54 }
 0xfc0   :  { %v3163_v5 = vmax.f32 %v9653_v57, 1e-07  ;;  %v7595_v40 = vpop.eup %7594 }
 0xfc1   :  { %v3242_v60 = vmul.f32 %v7595_v40, %v3165_v54  ;;  %vm3247_vm7 = vweird.f32 %v7595_v40 }
 0xfc2   :  { %3148 = vadd.xlane.f32.xlu2 %v3139_v12  ;;  %v3193_v12 = vor.u32 1.1754944e-38, %v3192_v45  ;;  %7596 = vrcp.f32 %v3163_v5  ;;  %vm3248_vm9 = vmor %vm3246_vm8, %vm3247_vm7  ;;  %vm3216_vm12 = vweird.f32 %v3163_v5 }
 0xfc4   :  { %v3194_v14 = vsel %vm3191_vm2, %v3193_v12, %v3189_v3  ;;  %v3253_v3 = vor.u32 1.1754944e-38, %v3252_v52 }
 0xfc8   :  { %v7597_v37 = vpop.eup %7596 }
 0xfc9   :  { %v3212_v51 = vmul.f32 %v7597_v37, %v3163_v5  ;;  %vm3217_vm10 = vweird.f32 %v7597_v37 }
 0xfca   :  { %vm3218_vm13 = vmor %vm3216_vm12, %vm3217_vm10 }
 0xfcd   :  { %v3143_v8 = vpop.xlane.xlu0 %3142 }
 0xfce   :  { %v3154_v23 = vsub.f32 0.0, %v3143_v8  ;;  %v3230_v8 = vadd.f32 %v7593_v4, %v3229_v18 }
 0xfd0   :  { %v9616_v32 = vmul.f32 %v3179_v1, %v3154_v23  ;;  %v3235_v23 = vand.u32 2147483647, %v3164_v22  ;;  %v3234_v1 = vsel %vm3233_vm5, %v7593_v4, %v3230_v8 }
 0xfd2   :  { %3276 = vperm.xlu0 %7404, %v9616_v32   ;;  %vm3236_vm6 = vcmp.eq.f32.partialorder %v3235_v23, 8.507059e+37 }
 0xfd3   :  { %v3239_v11 = vsel %vm3236_vm6, %v3238_v34, %v3234_v1 }
 0xfda   :  { %3266 = vrot.lane.b32.xlu2 %v3117_v13, %s7839_s3  ;;  %v9634_v13 = vpop.permute.xlu2 %3256 }
 0xfdb   :  { %v3268_v1 = vmul.f32 %v8260_v6, %v9634_v13  ;;  %v3269_v13 = vmul.f32 %v8260_v6, %v9624_v26 }
 0xfe0   :  { %v9640_v19 = vpop.permute.xlu0 %3262 }
 0xfe1   :  { %v3271_v48 = vmul.f32 %v8260_v6, %v9640_v19 }
 0xfe4   :  { %v3147_v50 = vpop.xlane.xlu1 %3146 }
 0xfe5   :  { %v3156_v36 = vsub.f32 0.0, %v3147_v50  ;;  %v3243_v50 = vsub.f32 1.0, %v3242_v60 }
 0xfe7   :  { %v9628_v42 = vmul.f32 %v3209_v47, %v3156_v36  ;;  %v3244_v36 = vmul.f32 %v7595_v40, %v3243_v50  ;;  %v3213_v47 = vsub.f32 1.0, %v3212_v51 }
 0xfe9   :  { %3286 = vperm.xlu1 %7405, %v9628_v42   ;;  %v3245_v7 = vadd.f32 %v7595_v40, %v3244_v36  ;;  %v3214_v27 = vmul.f32 %v7597_v37, %v3213_v47 }
 0xfeb   :  { %v3249_v45 = vsel %vm3248_vm9, %v7595_v40, %v3245_v7  ;;  %v3215_v43 = vadd.f32 %v7597_v37, %v3214_v27 }
 0xfec   :  { %v3254_v4 = vsel %vm3251_vm11, %v3253_v3, %v3249_v45 }
 0xfed   :  { %v3219_v29 = vsel %vm3218_vm13, %v7597_v37, %v3215_v43 }
 0xff4   :  { %v3145_v33 = vpop.xlane.xlu2 %3144 }
 0xff5   :  { %v3155_v0 = vsub.f32 0.0, %v3145_v33  ;;  %v3222_v33 = vand.u32 2147483648, %v3163_v5 }
 0xff7   :  { %v9637_v25 = vmul.f32 %v3194_v14, %v3155_v0  ;;  %v3220_v14 = vand.u32 2147483647, %v3163_v5  ;;  %v3223_v18 = vor.u32 1.1754944e-38, %v3222_v33 }
 0xff9   :  { %3281 = vperm.xlu0 %7404, %v9637_v25   ;;  %vm3221_vm14 = vcmp.eq.f32.partialorder %v3220_v14, 8.507059e+37 }
 0xffa   :  { %v3224_v46 = vsel %vm3221_vm14, %v3223_v18, %v3219_v29 }
 0xffc   :  { %v3261_v22 = vpop.permute.xlu2 %3260 }
0x1006   :  { %v3265_v62 = vpop.permute.xlu1 %3264 }
0x1007   :  { %v3272_v47 = vmul.f32 %v8260_v6, %v3265_v62 }
0x100b   :  { %v3151_v41 = vpop.xlane.xlu0 %3150 }
0x100c   :  { %v3158_v15 = vsub.f32 0.0, %v3151_v41 }
0x100e   :  { %v9646_v39 = vmul.f32 %v3239_v11, %v3158_v15  ;;  %v3270_v11 = vmul.f32 %v8260_v6, %v3261_v22 }
0x1010   :  { %3296 = vperm.xlu0 %7404, %v9646_v39  }
0x1031   :  { %v3153_v12 = vpop.xlane.xlu1 %3152 }
0x1032   :  { %v3159_v0 = vsub.f32 0.0, %v3153_v12 }
0x1034   :  { %v9657_v59 = vmul.f32 %v3254_v4, %v3159_v0 }
0x1035   :  { %v3149_v8 = vpop.xlane.xlu2 %3148 }
0x1036   :  { %v3157_v53 = vsub.f32 0.0, %v3149_v8  ;;  %3301 = vperm.xlu1 %7405, %v9657_v59   ;;  %v3329_v8 = vmul.f32 %v9637_v25, %v9637_v25 }
0x1038   :  { %v9660_v23 = vmul.f32 %v3224_v46, %v3157_v53  ;;  %v3328_v53 = vmul.f32 %v9616_v32, %v9616_v32  ;;  %v3335_v46 = vsub.f32 1.0, %v3329_v8 }
0x103a   :  { %3291 = vperm.xlu2 %7403, %v9660_v23  }
0x1044   :  { %v3277_v35 = vpop.permute.xlu0 %3276 }
0x1045   :  { %v3304_v10 = vmul.f32 %v3277_v35, %v3268_v1  ;;  %v3316_v34 = vmul.f32 %v3277_v35, %v9570_v28 }
0x1047   :  { %v3322_v41 = vadd.f32 %v3316_v34, %v3268_v1  ;;  %v9667_v15 = vadd.f32 %v3304_v10, %v9570_v28  ;;  %v9710_v1 = vmul.f32 %v3335_v46, %v9619_v61 }
0x1049   :  { %3466 = vrot.lane.b32.xlu0 %v3322_v41, %s7839_s3  ;;  %v3346_v36 = vmul.f32 %v3322_v41, %v8226_v56  ;;  %v3371_v34 = vmax.f32 %v9710_v1, 1e-07 }
0x104b   :  { %7598 = vrcp.f32 %v3371_v34  ;;  %vm3396_vm1 = vweird.f32 %v3371_v34 }
0x1051   :  { %v7599_v32 = vpop.eup %7598 }
0x1052   :  { %vm3397_vm15 = vweird.f32 %v7599_v32 }
0x1053   :  { %vm3398_vm2 = vmor %vm3396_vm1, %vm3397_vm15 }
0x105b   :  { %v3287_v24 = vpop.permute.xlu1 %3286 }
0x105c   :  { %v3306_v54 = vmul.f32 %v3287_v24, %v3270_v11  ;;  %v3318_v27 = vmul.f32 %v3287_v24, %v9580_v63  ;;  %v3392_v24 = vmul.f32 %v7599_v32, %v3371_v34 }
0x105e   :  { %v9672_v5 = vadd.f32 %v3306_v54, %v9580_v63  ;;  %v3324_v52 = vadd.f32 %v3318_v27, %v3270_v11  ;;  %v3393_v61 = vsub.f32 1.0, %v3392_v24  ;;  %v3331_v27 = vmul.f32 %v9660_v23, %v9660_v23 }
0x1060   :  { %v3348_v63 = vmul.f32 %v3324_v52, %v8233_v2 }
0x106b   :  { %v3282_v40 = vpop.permute.xlu0 %3281 }
0x106c   :  { %v3305_v60 = vmul.f32 %v3282_v40, %v3269_v13  ;;  %v3317_v37 = vmul.f32 %v3282_v40, %v9563_v55  ;;  %v3394_v40 = vmul.f32 %v7599_v32, %v3393_v61 }
0x106e   :  { %v3323_v50 = vadd.f32 %v3317_v37, %v3269_v13  ;;  %v9678_v28 = vadd.f32 %v3305_v60, %v9563_v55  ;;  %v3267_v55 = vpop.permute.xlu2 %3266  ;;  %v3395_v37 = vadd.f32 %v7599_v32, %v3394_v40 }
0x106f   :  { %v3273_v0 = vmul.f32 %v8260_v6, %v3267_v55 }
0x1070   :  { %3468 = vrot.lane.b32.xlu1 %v3323_v50, %s7839_s3  ;;  %v3347_v51 = vmul.f32 %v3323_v50, %v8228_v58  ;;  %v3402_v50 = vand.u32 2147483648, %v3371_v34 }
0x1072   :  { %3354 = vadd.xlane.f32.xlu2 %v3347_v51  ;;  %v3403_v55 = vor.u32 1.1754944e-38, %v3402_v50 }
0x1073   :  { %3352 = vadd.xlane.f32.xlu0 %v3346_v36  ;;  %v3400_v36 = vand.u32 2147483647, %v3371_v34 }
0x1075   :  { %vm3401_vm5 = vcmp.eq.f32.partialorder %v3400_v36, 8.507059e+37 }
0x1082   :  { %v3297_v7 = vpop.permute.xlu0 %3296 }
0x1083   :  { %v3308_v26 = vmul.f32 %v3297_v7, %v3272_v47  ;;  %v3320_v4 = vmul.f32 %v3297_v7, %v9590_v17  ;;  %v3330_v7 = vmul.f32 %v9628_v42, %v9628_v42  ;;  %v3337_v42 = vsub.f32 1.0, %v3331_v27 }
0x1085   :  { %v9686_v22 = vadd.f32 %v3308_v26, %v9590_v17  ;;  %v3326_v18 = vadd.f32 %v3320_v4, %v3272_v47  ;;  %v3334_v17 = vsub.f32 1.0, %v3328_v53 }
0x1087   :  { %v9713_v35 = vmul.f32 %v3334_v17, %v9602_v49  ;;  %v3332_v17 = vmul.f32 %v9646_v39, %v9646_v39 }
0x1089   :  { %v3370_v41 = vmax.f32 %v9713_v35, 1e-07 }
0x108a   :  { %3470 = vrot.lane.b32.xlu2 %v3324_v52, %s7839_s3  ;;  %v3399_v52 = vsel %vm3398_vm2, %v7599_v32, %v3395_v37 }
0x108b   :  { %7600 = vrcp.f32 %v3370_v41  ;;  %v3387_v47 = vand.u32 2147483648, %v3370_v41  ;;  %vm3381_vm3 = vweird.f32 %v3370_v41  ;;  %v3385_v26 = vand.u32 2147483647, %v3370_v41 }
0x108d   :  { %vm3386_vm6 = vcmp.eq.f32.partialorder %v3385_v26, 8.507059e+37 }
0x1091   :  { %v7601_v25 = vpop.eup %7600 }
0x1092   :  { %v3377_v54 = vmul.f32 %v7601_v25, %v3370_v41  ;;  %vm3382_vm0 = vweird.f32 %v7601_v25 }
0x1093   :  { %vm3383_vm4 = vmor %vm3381_vm3, %vm3382_vm0 }
0x1094   :  { %v3292_v45 = vpop.permute.xlu2 %3291  ;;  %v3378_v13 = vsub.f32 1.0, %v3377_v54 }
0x1095   :  { %v3307_v43 = vmul.f32 %v3292_v45, %v3271_v48  ;;  %v3319_v3 = vmul.f32 %v3292_v45, %v9576_v44 }
0x1097   :  { %v3325_v12 = vadd.f32 %v3319_v3, %v3271_v48  ;;  %v9693_v62 = vadd.f32 %v3307_v43, %v9576_v44  ;;  %v3350_v44 = vmul.f32 %v3326_v18, %v8275_v30  ;;  %v3388_v3 = vor.u32 1.1754944e-38, %v3387_v47 }
0x1099   :  { %v3349_v33 = vmul.f32 %v3325_v12, %v8240_v20 }
0x109a   :  { %3356 = vadd.xlane.f32.xlu1 %v3348_v63  ;;  %v3336_v63 = vsub.f32 1.0, %v3330_v7 }
0x109b   :  { %3358 = vadd.xlane.f32.xlu0 %v3349_v33  ;;  %v3404_v33 = vsel %vm3401_vm5, %v3403_v55, %v3399_v52 }
0x109c   :  { %v9732_v23 = vmul.f32 %v3336_v63, %v9611_v9  ;;  %v3338_v9 = vsub.f32 1.0, %v3332_v17 }
0x109e   :  { %v9743_v32 = vmul.f32 %v3338_v9, %v9631_v21 }
0x10a0   :  { %v3374_v54 = vmax.f32 %v9743_v32, 1e-07 }
0x10a2   :  { %vm3441_vm0 = vweird.f32 %v3374_v54 }
0x10a8   :  { %v3302_v14 = vpop.permute.xlu1 %3301 }
0x10a9   :  { %v3309_v19 = vmul.f32 %v3302_v14, %v3273_v0  ;;  %v3321_v10 = vmul.f32 %v3302_v14, %v9599_v16 }
0x10ab   :  { %v9700_v29 = vadd.f32 %v3309_v19, %v9599_v16  ;;  %v3327_v11 = vadd.f32 %v3321_v10, %v3273_v0  ;;  %v3379_v16 = vmul.f32 %v7601_v25, %v3378_v13 }
0x10ad   :  { %v3351_v49 = vmul.f32 %v3327_v11, %v8277_v31  ;;  %v3380_v51 = vadd.f32 %v7601_v25, %v3379_v16 }
0x10af   :  { %3474 = vrot.lane.b32.xlu0 %v3326_v18, %s7839_s3  ;;  %v3384_v45 = vsel %vm3383_vm4, %v7601_v25, %v3380_v51  ;;  %v9736_v18 = vmul.f32 %v3337_v42, %v9653_v57  ;;  %v3445_v42 = vand.u32 2147483647, %v3374_v54 }
0x10b0   :  { %v3389_v4 = vsel %vm3386_vm6, %v3388_v3, %v3384_v45 }
0x10b1   :  { %v3373_v8 = vmax.f32 %v9736_v18, 1e-07  ;;  %vm3446_vm2 = vcmp.eq.f32.partialorder %v3445_v42, 8.507059e+37 }
0x10b3   :  { %3360 = vadd.xlane.f32.xlu2 %v3350_v44  ;;  %3472 = vrot.lane.b32.xlu1 %v3325_v12, %s7839_s3  ;;  %v3372_v44 = vmax.f32 %v9732_v23, 1e-07  ;;  %v3432_v40 = vand.u32 2147483648, %v3373_v8  ;;  %vm3426_vm11 = vweird.f32 %v3373_v8  ;;  %v3430_v16 = vand.u32 2147483647, %v3373_v8 }
0x10b5   :  { %7602 = vrcp.f32 %v3372_v44  ;;  %v3417_v13 = vand.u32 2147483648, %v3372_v44  ;;  %vm3411_vm9 = vweird.f32 %v3372_v44  ;;  %v3415_v39 = vand.u32 2147483647, %v3372_v44 }
0x10b6   :  { %7604 = vrcp.f32 %v3373_v8  ;;  %v3433_v47 = vor.u32 1.1754944e-38, %v3432_v40  ;;  %vm3431_vm14 = vcmp.eq.f32.partialorder %v3430_v16, 8.507059e+37 }
0x10b7   :  { %7606 = vrcp.f32 %v3374_v54  ;;  %v3418_v37 = vor.u32 1.1754944e-38, %v3417_v13  ;;  %vm3416_vm13 = vcmp.eq.f32.partialorder %v3415_v39, 8.507059e+37 }
0x10bb   :  { %v9720_v60 = vpop.permute.xlu0 %3466  ;;  %v7603_v53 = vpop.eup %7602 }
0x10bc   :  { %v7605_v46 = vpop.eup %7604  ;;  %v3407_v10 = vmul.f32 %v7603_v53, %v3372_v44  ;;  %vm3412_vm7 = vweird.f32 %v7603_v53  ;;  %v3333_v44 = vmul.f32 %v9657_v59, %v9657_v59 }
0x10bd   :  { %v3422_v34 = vmul.f32 %v7605_v46, %v3373_v8  ;;  %vm3427_vm8 = vweird.f32 %v7605_v46  ;;  %vm3413_vm10 = vmor %vm3411_vm9, %vm3412_vm7  ;;  %v7607_v45 = vpop.eup %7606 }
0x10be   :  { %v3408_v41 = vsub.f32 1.0, %v3407_v10  ;;  %vm3428_vm12 = vmor %vm3426_vm11, %vm3427_vm8  ;;  %vm3442_vm15 = vweird.f32 %v7607_v45 }
0x10bf   :  { %vm3443_vm1 = vmor %vm3441_vm0, %vm3442_vm15 }
0x10c0   :  { %v3409_v57 = vmul.f32 %v7603_v53, %v3408_v41 }
0x10c2   :  { %v3410_v61 = vadd.f32 %v7603_v53, %v3409_v57 }
0x10c4   :  { %v3414_v21 = vsel %vm3413_vm10, %v7603_v53, %v3410_v61 }
0x10c5   :  { %v3419_v26 = vsel %vm3416_vm13, %v3418_v37, %v3414_v21 }
0x10cb   :  { %3476 = vrot.lane.b32.xlu2 %v3327_v11, %s7839_s3  ;;  %v3423_v11 = vsub.f32 1.0, %v3422_v34  ;;  %v3339_v34 = vsub.f32 1.0, %v3333_v44 }
0x10cd   :  { %v3424_v24 = vmul.f32 %v7605_v46, %v3423_v11  ;;  %v9762_v9 = vmul.f32 %v3339_v34, %v9649_v38 }
0x10cf   :  { %v3375_v41 = vmax.f32 %v9762_v9, 1e-07 }
0x10d1   :  { %7608 = vrcp.f32 %v3375_v41  ;;  %v3462_v37 = vand.u32 2147483648, %v3375_v41  ;;  %vm3456_vm4 = vweird.f32 %v3375_v41 }
0x10d7   :  { %v7609_v11 = vpop.eup %7608 }
0x10d8   :  { %v3452_v59 = vmul.f32 %v7609_v11, %v3375_v41  ;;  %vm3457_vm3 = vweird.f32 %v7609_v11 }
0x10d9   :  { %vm3458_vm5 = vmor %vm3456_vm4, %vm3457_vm3 }
0x10dd   :  { %3362 = vadd.xlane.f32.xlu1 %v3351_v49  ;;  %v3425_v49 = vadd.f32 %v7605_v46, %v3424_v24  ;;  %v3453_v24 = vsub.f32 1.0, %v3452_v59 }
0x10df   :  { %v3429_v51 = vsel %vm3428_vm12, %v7605_v46, %v3425_v49  ;;  %v3454_v39 = vmul.f32 %v7609_v11, %v3453_v24 }
0x10e0   :  { %v3434_v55 = vsel %vm3431_vm14, %v3433_v47, %v3429_v51 }
0x10e1   :  { %v3455_v21 = vadd.f32 %v7609_v11, %v3454_v39 }
0x10e2   :  { %v9745_v25 = vpop.permute.xlu1 %3468 }
0x10e3   :  { %v3459_v51 = vsel %vm3458_vm5, %v7609_v11, %v3455_v21 }
0x10e5   :  { %v3355_v48 = vpop.xlane.xlu2 %3354 }
0x10e6   :  { %v3365_v43 = vsub.f32 0.0, %v3355_v48  ;;  %v3353_v12 = vpop.xlane.xlu0 %3352 }
0x10e7   :  { %v3364_v0 = vsub.f32 0.0, %v3353_v12 }
0x10e8   :  { %v9726_v14 = vmul.f32 %v3404_v33, %v3365_v43  ;;  %v3437_v43 = vmul.f32 %v7607_v45, %v3374_v54 }
0x10e9   :  { %v9728_v19 = vmul.f32 %v3389_v4, %v3364_v0  ;;  %v3447_v0 = vand.u32 2147483648, %v3374_v54  ;;  %v3478_v54 = vmul.f32 %v8260_v6, %v9720_v60  ;;  %v3463_v60 = vor.u32 1.1754944e-38, %v3462_v37 }
0x10ea   :  { %3491 = vperm.xlu0 %7404, %v9726_v14   ;;  %v3438_v3 = vsub.f32 1.0, %v3437_v43 }
0x10eb   :  { %3486 = vperm.xlu2 %7403, %v9728_v19   ;;  %v3448_v8 = vor.u32 1.1754944e-38, %v3447_v0 }
0x10ec   :  { %v3439_v12 = vmul.f32 %v7607_v45, %v3438_v3 }
0x10ed   :  { %v9754_v63 = vpop.permute.xlu2 %3470 }
0x10ee   :  { %v3440_v33 = vadd.f32 %v7607_v45, %v3439_v12 }
0x10f0   :  { %v3444_v4 = vsel %vm3443_vm1, %v7607_v45, %v3440_v33 }
0x10f1   :  { %v3449_v17 = vsel %vm3446_vm2, %v3448_v8, %v3444_v4  ;;  %v3480_v8 = vmul.f32 %v8260_v6, %v9754_v63 }
0x110d   :  { %v3357_v50 = vpop.xlane.xlu1 %3356 }
0x110e   :  { %v3366_v36 = vsub.f32 0.0, %v3357_v50  ;;  %v3359_v7 = vpop.xlane.xlu0 %3358  ;;  %v3460_v50 = vand.u32 2147483647, %v3375_v41 }
0x110f   :  { %v3367_v27 = vsub.f32 0.0, %v3359_v7 }
0x1110   :  { %v9748_v52 = vmul.f32 %v3419_v26, %v3366_v36  ;;  %vm3461_vm6 = vcmp.eq.f32.partialorder %v3460_v50, 8.507059e+37 }
0x1111   :  { %v9750_v48 = vmul.f32 %v3434_v55, %v3367_v27  ;;  %v3464_v7 = vsel %vm3461_vm6, %v3463_v60, %v3459_v51 }
0x1112   :  { %3496 = vperm.xlu0 %7404, %v9748_v52  }
0x1113   :  { %3501 = vperm.xlu2 %7403, %v9750_v48  }
0x1121   :  { %v3475_v27 = vpop.permute.xlu0 %3474 }
0x1122   :  { %v3482_v59 = vmul.f32 %v8260_v6, %v3475_v27 }
0x1125   :  { %v3473_v40 = vpop.permute.xlu1 %3472 }
0x1126   :  { %v3361_v53 = vpop.xlane.xlu2 %3360  ;;  %v3481_v0 = vmul.f32 %v8260_v6, %v3473_v40 }
0x1127   :  { %v3368_v46 = vsub.f32 0.0, %v3361_v53 }
0x1129   :  { %v9758_v10 = vmul.f32 %v3449_v17, %v3368_v46 }
0x112b   :  { %3506 = vperm.xlu1 %7405, %v9758_v10  }
0x112e   :  { %v9765_v57 = vpop.permute.xlu2 %3476 }
0x1145   :  { %v3487_v61 = vpop.permute.xlu2 %3486 }
0x1146   :  { %v3514_v13 = vmul.f32 %v3487_v61, %v3478_v54  ;;  %v3526_v49 = vmul.f32 %v3487_v61, %v9667_v15 }
0x1148   :  { %v3532_v16 = vadd.f32 %v3526_v49, %v3478_v54  ;;  %v9771_v38 = vadd.f32 %v3514_v13, %v9667_v15  ;;  %v3479_v15 = vmul.f32 %v8260_v6, %v9745_v25  ;;  %v3539_v49 = vmul.f32 %v9726_v14, %v9726_v14 }
0x1149   :  { %v3483_v14 = vmul.f32 %v8260_v6, %v9765_v57 }
0x114a   :  { %3676 = vrot.lane.b32.xlu1 %v3532_v16, %s7839_s3  ;;  %v3556_v25 = vmul.f32 %v3532_v16, %v8226_v56  ;;  %v3545_v39 = vsub.f32 1.0, %v3539_v49  ;;  %v3538_v16 = vmul.f32 %v9728_v19, %v9728_v19 }
0x114c   :  { %v9810_v40 = vmul.f32 %v3545_v39, %v9710_v1  ;;  %v3544_v37 = vsub.f32 1.0, %v3538_v16 }
0x114e   :  { %v3581_v21 = vmax.f32 %v9810_v40, 1e-07 }
0x1150   :  { %v3363_v36 = vpop.xlane.xlu1 %3362  ;;  %7610 = vrcp.f32 %v3581_v21  ;;  %vm3606_vm8 = vweird.f32 %v3581_v21 }
0x1151   :  { %v3369_v47 = vsub.f32 0.0, %v3363_v36 }
0x1153   :  { %v9774_v26 = vmul.f32 %v3464_v7, %v3369_v47 }
0x1155   :  { %3511 = vperm.xlu0 %7404, %v9774_v26  }
0x1156   :  { %v7611_v36 = vpop.eup %7610 }
0x1157   :  { %v3602_v27 = vmul.f32 %v7611_v36, %v3581_v21  ;;  %vm3607_vm7 = vweird.f32 %v7611_v36 }
0x1158   :  { %vm3608_vm9 = vmor %vm3606_vm8, %vm3607_vm7 }
0x1159   :  { %v3603_v57 = vsub.f32 1.0, %v3602_v27 }
0x115c   :  { %v3492_v55 = vpop.permute.xlu0 %3491 }
0x115d   :  { %v3515_v45 = vmul.f32 %v3492_v55, %v3479_v15  ;;  %v3527_v43 = vmul.f32 %v3492_v55, %v9678_v28  ;;  %v3540_v55 = vmul.f32 %v9748_v52, %v9748_v52 }
0x115f   :  { %v3533_v3 = vadd.f32 %v3527_v43, %v3479_v15  ;;  %v9781_v12 = vadd.f32 %v3515_v45, %v9678_v28  ;;  %v3604_v45 = vmul.f32 %v7611_v36, %v3603_v57 }
0x1161   :  { %3678 = vrot.lane.b32.xlu0 %v3533_v3, %s7839_s3  ;;  %v3557_v33 = vmul.f32 %v3533_v3, %v8228_v58  ;;  %v3546_v3 = vsub.f32 1.0, %v3540_v55 }
0x1163   :  { %3564 = vadd.xlane.f32.xlu2 %v3557_v33  ;;  %v3605_v33 = vadd.f32 %v7611_v36, %v3604_v45 }
0x116d   :  { %v3502_v42 = vpop.permute.xlu2 %3501 }
0x116e   :  { %v3517_v4 = vmul.f32 %v3502_v42, %v3481_v0  ;;  %v3529_v11 = vmul.f32 %v3502_v42, %v9693_v62  ;;  %v3610_v42 = vand.u32 2147483647, %v3581_v21 }
0x1170   :  { %v9787_v44 = vadd.f32 %v3517_v4, %v9693_v62  ;;  %v3535_v24 = vadd.f32 %v3529_v11, %v3481_v0  ;;  %vm3611_vm10 = vcmp.eq.f32.partialorder %v3610_v42, 8.507059e+37 }
0x1172   :  { %v3559_v62 = vmul.f32 %v3535_v24, %v8240_v20 }
0x1174   :  { %3562 = vadd.xlane.f32.xlu1 %v3556_v25  ;;  %v9831_v25 = vmul.f32 %v3546_v3, %v9732_v23 }
0x1184   :  { %v3497_v28 = vpop.permute.xlu0 %3496 }
0x1185   :  { %v3516_v53 = vmul.f32 %v3497_v28, %v3480_v8  ;;  %v3528_v46 = vmul.f32 %v3497_v28, %v9672_v5 }
0x1187   :  { %v3534_v17 = vadd.f32 %v3528_v46, %v3480_v8  ;;  %v9794_v34 = vadd.f32 %v3516_v53, %v9672_v5  ;;  %v3609_v8 = vsel %vm3608_vm9, %v7611_v36, %v3605_v33  ;;  %v3543_v33 = vmul.f32 %v9774_v26, %v9774_v26 }
0x1189   :  { %v3558_v41 = vmul.f32 %v3534_v17, %v8233_v2 }
0x118b   :  { %3566 = vadd.xlane.f32.xlu0 %v3558_v41  ;;  %v3582_v41 = vmax.f32 %v9831_v25, 1e-07 }
0x118d   :  { %3680 = vrot.lane.b32.xlu1 %v3534_v17, %s7839_s3  ;;  %vm3621_vm0 = vweird.f32 %v3582_v41 }
0x119d   :  { %v3507_v54 = vpop.permute.xlu1 %3506 }
0x119e   :  { %v3518_v63 = vmul.f32 %v3507_v54, %v3482_v59  ;;  %v3530_v61 = vmul.f32 %v3507_v54, %v9686_v22 }
0x119f   :  { %3682 = vrot.lane.b32.xlu0 %v3535_v24, %s7839_s3 }
0x11a0   :  { %v3536_v13 = vadd.f32 %v3530_v61, %v3482_v59  ;;  %v9803_v5 = vadd.f32 %v3518_v63, %v9686_v22  ;;  %v9816_v22 = vmul.f32 %v3544_v37, %v9713_v35 }
0x11a2   :  { %3684 = vrot.lane.b32.xlu2 %v3536_v13, %s7839_s3  ;;  %v3580_v1 = vmax.f32 %v9816_v22, 1e-07  ;;  %v3560_v47 = vmul.f32 %v3536_v13, %v8275_v30 }
0x11a4   :  { %7612 = vrcp.f32 %v3580_v1  ;;  %v3597_v24 = vand.u32 2147483648, %v3580_v1  ;;  %vm3591_vm12 = vweird.f32 %v3580_v1  ;;  %v3595_v23 = vand.u32 2147483647, %v3580_v1 }
0x11a5   :  { %7614 = vrcp.f32 %v3582_v41 }
0x11a6   :  { %v3598_v63 = vor.u32 1.1754944e-38, %v3597_v24  ;;  %vm3596_vm14 = vcmp.eq.f32.partialorder %v3595_v23, 8.507059e+37 }
0x11aa   :  { %v7613_v15 = vpop.eup %7612 }
0x11ab   :  { %v3587_v43 = vmul.f32 %v7613_v15, %v3580_v1  ;;  %vm3592_vm11 = vweird.f32 %v7613_v15 }
0x11ac   :  { %vm3593_vm13 = vmor %vm3591_vm12, %vm3592_vm11 }
0x11ad   :  { %v3588_v4 = vsub.f32 1.0, %v3587_v43  ;;  %v3542_v43 = vmul.f32 %v9758_v10, %v9758_v10 }
0x11af   :  { %v3589_v46 = vmul.f32 %v7613_v15, %v3588_v4 }
0x11b1   :  { %v3590_v59 = vadd.f32 %v7613_v15, %v3589_v46 }
0x11b3   :  { %v3594_v54 = vsel %vm3593_vm13, %v7613_v15, %v3590_v59 }
0x11b4   :  { %v3599_v49 = vsel %vm3596_vm14, %v3598_v63, %v3594_v54 }
0x11b7   :  { %3568 = vadd.xlane.f32.xlu1 %v3559_v62  ;;  %v7615_v62 = vpop.eup %7614 }
0x11b8   :  { %v3617_v16 = vmul.f32 %v7615_v62, %v3582_v41  ;;  %vm3622_vm15 = vweird.f32 %v7615_v62 }
0x11b9   :  { %vm3623_vm1 = vmor %vm3621_vm0, %vm3622_vm15 }
0x11bc   :  { %v9833_v52 = vpop.permute.xlu1 %3676 }
0x11c7   :  { %v3512_v50 = vpop.permute.xlu0 %3511 }
0x11c8   :  { %v3519_v51 = vmul.f32 %v3512_v50, %v3483_v14  ;;  %v3531_v60 = vmul.f32 %v3512_v50, %v9700_v29 }
0x11ca   :  { %v3537_v19 = vadd.f32 %v3531_v60, %v3483_v14  ;;  %v9824_v7 = vadd.f32 %v3519_v51, %v9700_v29  ;;  %v3612_v29 = vand.u32 2147483648, %v3581_v21  ;;  %v3618_v21 = vsub.f32 1.0, %v3617_v16 }
0x11cb   :  { %3570 = vadd.xlane.f32.xlu2 %v3560_v47  ;;  %v3627_v51 = vand.u32 2147483648, %v3582_v41  ;;  %v3625_v60 = vand.u32 2147483647, %v3582_v41 }
0x11cc   :  { %v3561_v35 = vmul.f32 %v3537_v19, %v8277_v31  ;;  %v3613_v53 = vor.u32 1.1754944e-38, %v3612_v29  ;;  %v3619_v37 = vmul.f32 %v7615_v62, %v3618_v21 }
0x11cd   :  { %v3628_v1 = vor.u32 1.1754944e-38, %v3627_v51  ;;  %vm3626_vm2 = vcmp.eq.f32.partialorder %v3625_v60, 8.507059e+37 }
0x11ce   :  { %3572 = vadd.xlane.f32.xlu0 %v3561_v35  ;;  %v3614_v17 = vsel %vm3611_vm10, %v3613_v53, %v3609_v8  ;;  %v3620_v50 = vadd.f32 %v7615_v62, %v3619_v37  ;;  %v3541_v35 = vmul.f32 %v9750_v48, %v9750_v48  ;;  %v3548_v48 = vsub.f32 1.0, %v3542_v43 }
0x11d0   :  { %3686 = vrot.lane.b32.xlu1 %v3537_v19, %s7839_s3  ;;  %v3624_v36 = vsel %vm3623_vm1, %v7615_v62, %v3620_v50  ;;  %v3547_v15 = vsub.f32 1.0, %v3541_v35  ;;  %v9858_v42 = vmul.f32 %v3548_v48, %v9743_v32 }
0x11d1   :  { %v3629_v27 = vsel %vm3626_vm2, %v3628_v1, %v3624_v36 }
0x11d2   :  { %v9850_v55 = vmul.f32 %v3547_v15, %v9736_v18  ;;  %v3584_v8 = vmax.f32 %v9858_v42, 1e-07 }
0x11d3   :  { %v9842_v14 = vpop.permute.xlu0 %3678 }
0x11d4   :  { %v3583_v45 = vmax.f32 %v9850_v55, 1e-07  ;;  %v3657_v60 = vand.u32 2147483648, %v3584_v8  ;;  %vm3651_vm8 = vweird.f32 %v3584_v8  ;;  %v3655_v36 = vand.u32 2147483647, %v3584_v8 }
0x11d6   :  { %v3565_v0 = vpop.xlane.xlu2 %3564  ;;  %7616 = vrcp.f32 %v3583_v45  ;;  %v3642_v26 = vand.u32 2147483648, %v3583_v45  ;;  %vm3636_vm4 = vweird.f32 %v3583_v45  ;;  %v3658_v35 = vor.u32 1.1754944e-38, %v3657_v60 }
0x11d7   :  { %v3575_v28 = vsub.f32 0.0, %v3565_v0  ;;  %v3549_v0 = vsub.f32 1.0, %v3543_v33  ;;  %7618 = vrcp.f32 %v3584_v8  ;;  %vm3656_vm12 = vcmp.eq.f32.partialorder %v3655_v36, 8.507059e+37 }
0x11d8   :  { %v3643_v59 = vor.u32 1.1754944e-38, %v3642_v26 }
0x11d9   :  { %v9836_v11 = vmul.f32 %v3614_v17, %v3575_v28  ;;  %v9861_v18 = vmul.f32 %v3549_v0, %v9762_v9  ;;  %v3640_v17 = vand.u32 2147483647, %v3583_v45 }
0x11db   :  { %v3585_v10 = vmax.f32 %v9861_v18, 1e-07  ;;  %vm3641_vm6 = vcmp.eq.f32.partialorder %v3640_v17, 8.507059e+37 }
0x11dc   :  { %v7617_v3 = vpop.eup %7616 }
0x11dd   :  { %v3632_v29 = vmul.f32 %v7617_v3, %v3583_v45  ;;  %vm3637_vm3 = vweird.f32 %v7617_v3  ;;  %7620 = vrcp.f32 %v3585_v10  ;;  %v7619_v41 = vpop.eup %7618  ;;  %vm3666_vm11 = vweird.f32 %v3585_v10 }
0x11de   :  { %vm3638_vm5 = vmor %vm3636_vm4, %vm3637_vm3  ;;  %vm3652_vm7 = vweird.f32 %v7619_v41  ;;  %v3670_v15 = vand.u32 2147483647, %v3585_v10 }
0x11df   :  { %v3633_v4 = vsub.f32 1.0, %v3632_v29  ;;  %vm3653_vm9 = vmor %vm3651_vm8, %vm3652_vm7 }
0x11e0   :  { %vm3671_vm14 = vcmp.eq.f32.partialorder %v3670_v15, 8.507059e+37 }
0x11e1   :  { %v3634_v28 = vmul.f32 %v7617_v3, %v3633_v4 }
0x11e2   :  { %3701 = vperm.xlu0 %7404, %v9836_v11  }
0x11e3   :  { %v3635_v46 = vadd.f32 %v7617_v3, %v3634_v28  ;;  %v7621_v54 = vpop.eup %7620  ;;  %v3688_v28 = vmul.f32 %v8260_v6, %v9833_v52 }
0x11e4   :  { %vm3667_vm10 = vweird.f32 %v7621_v54 }
0x11e5   :  { %v3639_v32 = vsel %vm3638_vm5, %v7617_v3, %v3635_v46  ;;  %vm3668_vm13 = vmor %vm3666_vm11, %vm3667_vm10 }
0x11e6   :  { %v3644_v23 = vsel %vm3641_vm6, %v3643_v59, %v3639_v32 }
0x11e7   :  { %v3563_v61 = vpop.xlane.xlu1 %3562 }
0x11e8   :  { %v3574_v13 = vsub.f32 0.0, %v3563_v61  ;;  %v3647_v61 = vmul.f32 %v7619_v41, %v3584_v8 }
0x11ea   :  { %v9839_v39 = vmul.f32 %v3599_v49, %v3574_v13  ;;  %v3662_v13 = vmul.f32 %v7621_v54, %v3585_v10  ;;  %v3648_v49 = vsub.f32 1.0, %v3647_v61 }
0x11ec   :  { %3696 = vperm.xlu2 %7403, %v9839_v39   ;;  %v3663_v62 = vsub.f32 1.0, %v3662_v13  ;;  %v3649_v16 = vmul.f32 %v7619_v41, %v3648_v49 }
0x11ee   :  { %v3664_v37 = vmul.f32 %v7621_v54, %v3663_v62  ;;  %v3650_v51 = vadd.f32 %v7619_v41, %v3649_v16 }
0x11f0   :  { %v3665_v1 = vadd.f32 %v7621_v54, %v3664_v37 }
0x11f2   :  { %v3669_v3 = vsel %vm3668_vm13, %v7621_v54, %v3665_v1 }
0x11fc   :  { %v9870_v21 = vpop.permute.xlu2 %3684 }
0x11fe   :  { %v3567_v47 = vpop.xlane.xlu0 %3566 }
0x11ff   :  { %v3576_v19 = vsub.f32 0.0, %v3567_v47  ;;  %v9864_v53 = vpop.permute.xlu1 %3680  ;;  %v3654_v47 = vsel %vm3653_vm9, %v7619_v41, %v3650_v51  ;;  %v3689_v41 = vmul.f32 %v8260_v6, %v9842_v14 }
0x1200   :  { %v3659_v43 = vsel %vm3656_vm12, %v3658_v35, %v3654_v47 }
0x1201   :  { %v9846_v57 = vmul.f32 %v3629_v27, %v3576_v19  ;;  %v3672_v19 = vand.u32 2147483648, %v3585_v10 }
0x1203   :  { %3706 = vperm.xlu2 %7403, %v9846_v57   ;;  %v3673_v29 = vor.u32 1.1754944e-38, %v3672_v19 }
0x1205   :  { %v3674_v4 = vsel %vm3671_vm14, %v3673_v29, %v3669_v3 }
0x1211   :  { %v3683_v50 = vpop.permute.xlu0 %3682 }
0x122a   :  { %v3569_v9 = vpop.xlane.xlu1 %3568 }
0x122b   :  { %v3577_v24 = vsub.f32 0.0, %v3569_v9 }
0x122d   :  { %v9867_v63 = vmul.f32 %v3644_v23, %v3577_v24 }
0x122f   :  { %3711 = vperm.xlu1 %7405, %v9867_v63  }
0x123e   :  { %v3571_v27 = vpop.xlane.xlu2 %3570 }
0x123f   :  { %v3578_v45 = vsub.f32 0.0, %v3571_v27 }
0x1241   :  { %v9872_v33 = vmul.f32 %v3659_v43, %v3578_v45  ;;  %v3573_v48 = vpop.xlane.xlu0 %3572  ;;  %v3749_v43 = vmul.f32 %v9836_v11, %v9836_v11 }
0x1242   :  { %v3579_v0 = vsub.f32 0.0, %v3573_v48  ;;  %v3687_v37 = vpop.permute.xlu1 %3686 }
0x1243   :  { %3716 = vperm.xlu0 %7404, %v9872_v33   ;;  %v3693_v51 = vmul.f32 %v8260_v6, %v3687_v37 }
0x1244   :  { %v9875_v8 = vmul.f32 %v3674_v4, %v3579_v0 }
0x1246   :  { %3721 = vperm.xlu2 %7403, %v9875_v8   ;;  %v3697_v10 = vpop.permute.xlu2 %3696 }
0x1247   :  { %v3724_v46 = vmul.f32 %v3697_v10, %v3688_v28  ;;  %v3736_v26 = vmul.f32 %v3697_v10, %v9771_v38  ;;  %v3748_v10 = vmul.f32 %v9839_v39, %v9839_v39 }
0x1249   :  { %v3742_v17 = vadd.f32 %v3736_v26, %v3688_v28  ;;  %v9882_v32 = vadd.f32 %v3724_v46, %v9771_v38  ;;  %v3690_v38 = vmul.f32 %v8260_v6, %v9864_v53  ;;  %v3691_v53 = vmul.f32 %v8260_v6, %v3683_v50 }
0x124a   :  { %v3692_v50 = vmul.f32 %v8260_v6, %v9870_v21  ;;  %v3754_v26 = vsub.f32 1.0, %v3748_v10 }
0x124b   :  { %3886 = vrot.lane.b32.xlu0 %v3742_v17, %s7839_s3 }
0x1254   :  { %v3702_v59 = vpop.permute.xlu0 %3701 }
0x1255   :  { %v3725_v9 = vmul.f32 %v3702_v59, %v3689_v41  ;;  %v3737_v24 = vmul.f32 %v3702_v59, %v9781_v12 }
0x1257   :  { %v3743_v52 = vadd.f32 %v3737_v24, %v3689_v41  ;;  %v9889_v23 = vadd.f32 %v3725_v9, %v9781_v12  ;;  %v3766_v12 = vmul.f32 %v3742_v17, %v8226_v56  ;;  %v9932_v41 = vmul.f32 %v3754_v26, %v9816_v22 }
0x1259   :  { %3888 = vrot.lane.b32.xlu2 %v3743_v52, %s7839_s3  ;;  %v3767_v54 = vmul.f32 %v3743_v52, %v8228_v58  ;;  %v3790_v9 = vmax.f32 %v9932_v41, 1e-07 }
0x125b   :  { %3774 = vadd.xlane.f32.xlu1 %v3767_v54  ;;  %vm3801_vm4 = vweird.f32 %v3790_v9 }
0x125d   :  { %v3707_v61 = vpop.permute.xlu2 %3706 }
0x125e   :  { %v3726_v13 = vmul.f32 %v3707_v61, %v3690_v38  ;;  %v3738_v14 = vmul.f32 %v3707_v61, %v9794_v34 }
0x1260   :  { %v3744_v49 = vadd.f32 %v3738_v14, %v3690_v38  ;;  %v9897_v62 = vadd.f32 %v3726_v13, %v9794_v34 }
0x1262   :  { %3890 = vrot.lane.b32.xlu2 %v3744_v49, %s7839_s3  ;;  %v3768_v16 = vmul.f32 %v3744_v49, %v8233_v2 }
0x1275   :  { %3772 = vadd.xlane.f32.xlu0 %v3766_v12 }
0x128b   :  { %3776 = vadd.xlane.f32.xlu2 %v3768_v16 }
0x12a0   :  { %v3722_v60 = vpop.permute.xlu2 %3721 }
0x12a1   :  { %v3729_v36 = vmul.f32 %v3722_v60, %v3693_v51  ;;  %v3741_v1 = vmul.f32 %v3722_v60, %v9824_v7  ;;  %v3712_v47 = vpop.permute.xlu1 %3711 }
0x12a2   :  { %v3727_v34 = vmul.f32 %v3712_v47, %v3691_v53  ;;  %v3739_v19 = vmul.f32 %v3712_v47, %v9787_v44 }
0x12a3   :  { %v3747_v35 = vadd.f32 %v3741_v1, %v3693_v51  ;;  %v9907_v27 = vadd.f32 %v3729_v36, %v9824_v7 }
0x12a4   :  { %v3745_v15 = vadd.f32 %v3739_v19, %v3691_v53  ;;  %v9910_v45 = vadd.f32 %v3727_v34, %v9787_v44  ;;  %v3755_v44 = vsub.f32 1.0, %v3749_v43 }
0x12a5   :  { %3896 = vrot.lane.b32.xlu2 %v3747_v35, %s7839_s3  ;;  %v3771_v11 = vmul.f32 %v3747_v35, %v8277_v31 }
0x12a6   :  { %3892 = vrot.lane.b32.xlu0 %v3745_v15, %s7839_s3  ;;  %v9924_v4 = vmul.f32 %v3755_v44, %v9810_v40  ;;  %v3750_v40 = vmul.f32 %v9846_v57, %v9846_v57 }
0x12a8   :  { %v3791_v28 = vmax.f32 %v9924_v4, 1e-07  ;;  %v3756_v24 = vsub.f32 1.0, %v3750_v40 }
0x12aa   :  { %7622 = vrcp.f32 %v3791_v28  ;;  %v3822_v39 = vand.u32 2147483648, %v3791_v28  ;;  %vm3816_vm0 = vweird.f32 %v3791_v28  ;;  %v3820_v38 = vand.u32 2147483647, %v3791_v28 }
0x12ab   :  { %7624 = vrcp.f32 %v3790_v9  ;;  %v9938_v61 = vmul.f32 %v3756_v24, %v9831_v25  ;;  %v3751_v24 = vmul.f32 %v9867_v63, %v9867_v63 }
0x12ac   :  { %v3823_v14 = vor.u32 1.1754944e-38, %v3822_v39  ;;  %vm3821_vm2 = vcmp.eq.f32.partialorder %v3820_v38, 8.507059e+37 }
0x12ad   :  { %v3792_v49 = vmax.f32 %v9938_v61, 1e-07  ;;  %v3757_v39 = vsub.f32 1.0, %v3751_v24 }
0x12af   :  { %7626 = vrcp.f32 %v3792_v49  ;;  %vm3831_vm8 = vweird.f32 %v3792_v49  ;;  %v3835_v10 = vand.u32 2147483647, %v3792_v49  ;;  %v9965_v38 = vmul.f32 %v3757_v39, %v9850_v55 }
0x12b0   :  { %v7623_v21 = vpop.eup %7622 }
0x12b1   :  { %v3812_v46 = vmul.f32 %v7623_v21, %v3791_v28  ;;  %vm3817_vm15 = vweird.f32 %v7623_v21  ;;  %v7625_v37 = vpop.eup %7624  ;;  %vm3836_vm10 = vcmp.eq.f32.partialorder %v3835_v10, 8.507059e+37 }
0x12b2   :  { %vm3818_vm1 = vmor %vm3816_vm0, %vm3817_vm15  ;;  %v3797_v51 = vmul.f32 %v7625_v37, %v3790_v9  ;;  %vm3802_vm3 = vweird.f32 %v7625_v37 }
0x12b3   :  { %v3813_v17 = vsub.f32 1.0, %v3812_v46  ;;  %v9945_v60 = vpop.permute.xlu2 %3888  ;;  %vm3803_vm5 = vmor %vm3801_vm4, %vm3802_vm3 }
0x12b4   :  { %v3798_v53 = vsub.f32 1.0, %v3797_v51 }
0x12b5   :  { %v3717_v3 = vpop.permute.xlu0 %3716  ;;  %v3814_v59 = vmul.f32 %v7623_v21, %v3813_v17  ;;  %v7627_v25 = vpop.eup %7626 }
0x12b6   :  { %v3728_v48 = vmul.f32 %v3717_v3, %v3692_v50  ;;  %v3740_v29 = vmul.f32 %v3717_v3, %v9803_v5  ;;  %v3799_v1 = vmul.f32 %v7625_v37, %v3798_v53  ;;  %v3827_v47 = vmul.f32 %v7627_v25, %v3792_v49 }
0x12b7   :  { %v3815_v52 = vadd.f32 %v7623_v21, %v3814_v59  ;;  %vm3832_vm7 = vweird.f32 %v7627_v25 }
0x12b8   :  { %v3746_v7 = vadd.f32 %v3740_v29, %v3692_v50  ;;  %v9920_v0 = vadd.f32 %v3728_v48, %v9803_v5  ;;  %v3769_v5 = vmul.f32 %v3745_v15, %v8240_v20  ;;  %v3800_v34 = vadd.f32 %v7625_v37, %v3799_v1  ;;  %vm3833_vm9 = vmor %vm3831_vm8, %vm3832_vm7 }
0x12b9   :  { %v3819_v22 = vsel %vm3818_vm1, %v7623_v21, %v3815_v52  ;;  %v3828_v19 = vsub.f32 1.0, %v3827_v47  ;;  %v3807_v15 = vand.u32 2147483648, %v3790_v9  ;;  %v3805_v50 = vand.u32 2147483647, %v3790_v9 }
0x12ba   :  { %3894 = vrot.lane.b32.xlu1 %v3746_v7, %s7839_s3  ;;  %v3824_v57 = vsel %vm3821_vm2, %v3823_v14, %v3819_v22  ;;  %v3770_v16 = vmul.f32 %v3746_v7, %v8275_v30  ;;  %v3804_v48 = vsel %vm3803_vm5, %v7625_v37, %v3800_v34  ;;  %v3753_v9 = vmul.f32 %v9875_v8, %v9875_v8 }
0x12bb   :  { %v3829_v29 = vmul.f32 %v7627_v25, %v3828_v19  ;;  %v3808_v7 = vor.u32 1.1754944e-38, %v3807_v15  ;;  %vm3806_vm6 = vcmp.eq.f32.partialorder %v3805_v50, 8.507059e+37  ;;  %v3752_v8 = vmul.f32 %v9872_v33, %v9872_v33 }
0x12bc   :  { %v9949_v43 = vpop.permute.xlu2 %3890  ;;  %v3759_v52 = vsub.f32 1.0, %v3753_v9 }
0x12bd   :  { %v9947_v36 = vpop.permute.xlu0 %3886  ;;  %v3809_v44 = vsel %vm3806_vm6, %v3808_v7, %v3804_v48  ;;  %v3830_v21 = vadd.f32 %v7627_v25, %v3829_v29 }
0x12ce   :  { %3782 = vadd.xlane.f32.xlu2 %v3771_v11  ;;  %v3775_v54 = vpop.xlane.xlu1 %3774  ;;  %v3837_v11 = vand.u32 2147483648, %v3792_v49  ;;  %v3758_v49 = vsub.f32 1.0, %v3752_v8 }
0x12cf   :  { %v3785_v13 = vsub.f32 0.0, %v3775_v54  ;;  %v9962_v54 = vmul.f32 %v3759_v52, %v9861_v18 }
0x12d0   :  { %3778 = vadd.xlane.f32.xlu0 %v3769_v5  ;;  %v3834_v5 = vsel %vm3833_vm9, %v7627_v25, %v3830_v21  ;;  %v3838_v17 = vor.u32 1.1754944e-38, %v3837_v11  ;;  %v9972_v18 = vmul.f32 %v3758_v49, %v9858_v42 }
0x12d1   :  { %v9941_v12 = vmul.f32 %v3824_v57, %v3785_v13  ;;  %v3795_v22 = vmax.f32 %v9962_v54, 1e-07  ;;  %v3793_v13 = vmax.f32 %v9965_v38, 1e-07 }
0x12d2   :  { %v3839_v40 = vsel %vm3836_vm10, %v3838_v17, %v3834_v5  ;;  %v3794_v53 = vmax.f32 %v9972_v18, 1e-07 }
0x12d3   :  { %7628 = vrcp.f32 %v3795_v22  ;;  %v3882_v33 = vand.u32 2147483648, %v3795_v22  ;;  %vm3876_vm12 = vweird.f32 %v3795_v22  ;;  %v3880_v19 = vand.u32 2147483647, %v3795_v22 }
0x12d4   :  { %7630 = vrcp.f32 %v3793_v13  ;;  %v3852_v42 = vand.u32 2147483648, %v3793_v13  ;;  %vm3846_vm15 = vweird.f32 %v3793_v13  ;;  %v3850_v50 = vand.u32 2147483647, %v3793_v13 }
0x12d5   :  { %7632 = vrcp.f32 %v3794_v53  ;;  %vm3881_vm1 = vcmp.eq.f32.partialorder %v3880_v19, 8.507059e+37  ;;  %vm3861_vm4 = vweird.f32 %v3794_v53 }
0x12d6   :  { %v3853_v11 = vor.u32 1.1754944e-38, %v3852_v42  ;;  %vm3851_vm2 = vcmp.eq.f32.partialorder %v3850_v50, 8.507059e+37  ;;  %v3900_v50 = vmul.f32 %v8260_v6, %v9949_v43 }
0x12d9   :  { %v7629_v14 = vpop.eup %7628 }
0x12da   :  { %v7631_v57 = vpop.eup %7630  ;;  %v3872_v63 = vmul.f32 %v7629_v14, %v3795_v22  ;;  %vm3877_vm11 = vweird.f32 %v7629_v14  ;;  %v3867_v22 = vand.u32 2147483648, %v3794_v53 }
0x12db   :  { %vm3847_vm13 = vweird.f32 %v7631_v57  ;;  %vm3878_vm14 = vmor %vm3876_vm12, %vm3877_vm11 }
0x12dc   :  { %v3873_v37 = vsub.f32 1.0, %v3872_v63  ;;  %vm3848_vm0 = vmor %vm3846_vm15, %vm3847_vm13 }
0x12de   :  { %v3874_v51 = vmul.f32 %v7629_v14, %v3873_v37 }
0x12e0   :  { %v3875_v34 = vadd.f32 %v7629_v14, %v3874_v51 }
0x12e2   :  { %v3879_v15 = vsel %vm3878_vm14, %v7629_v14, %v3875_v34  ;;  %v3899_v14 = vmul.f32 %v8260_v6, %v9945_v60  ;;  %v3898_v60 = vmul.f32 %v8260_v6, %v9947_v36 }
0x12e4   :  { %3780 = vadd.xlane.f32.xlu1 %v3770_v16  ;;  %3911 = vperm.xlu0 %7404, %v9941_v12   ;;  %v3842_v16 = vmul.f32 %v7631_v57, %v3793_v13  ;;  %v3865_v13 = vand.u32 2147483647, %v3794_v53 }
0x12e6   :  { %v3843_v55 = vsub.f32 1.0, %v3842_v16  ;;  %v3868_v16 = vor.u32 1.1754944e-38, %v3867_v22  ;;  %vm3866_vm6 = vcmp.eq.f32.partialorder %v3865_v13, 8.507059e+37 }
0x12e8   :  { %v3773_v35 = vpop.xlane.xlu0 %3772  ;;  %v3844_v1 = vmul.f32 %v7631_v57, %v3843_v55 }
0x12e9   :  { %v3784_v3 = vsub.f32 0.0, %v3773_v35 }
0x12ea   :  { %v3845_v35 = vadd.f32 %v7631_v57, %v3844_v1 }
0x12eb   :  { %v9951_v28 = vmul.f32 %v3809_v44, %v3784_v3  ;;  %v3883_v3 = vor.u32 1.1754944e-38, %v3882_v33  ;;  %v7633_v44 = vpop.eup %7632 }
0x12ec   :  { %v3849_v7 = vsel %vm3848_vm0, %v7631_v57, %v3845_v35  ;;  %vm3862_vm3 = vweird.f32 %v7633_v44 }
0x12ed   :  { %v3884_v21 = vsel %vm3881_vm1, %v3883_v3, %v3879_v15  ;;  %vm3863_vm5 = vmor %vm3861_vm4, %vm3862_vm3 }
0x12fd   :  { %3906 = vperm.xlu1 %7405, %v9951_v28  }
0x12fe   :  { %v3777_v46 = vpop.xlane.xlu2 %3776 }
0x12ff   :  { %v3786_v26 = vsub.f32 0.0, %v3777_v46 }
0x1301   :  { %v9954_v59 = vmul.f32 %v3839_v40, %v3786_v26  ;;  %v3854_v26 = vsel %vm3851_vm2, %v3853_v11, %v3849_v7  ;;  %v3857_v40 = vmul.f32 %v7633_v44, %v3794_v53 }
0x1303   :  { %v3858_v9 = vsub.f32 1.0, %v3857_v40 }
0x1305   :  { %3916 = vperm.xlu1 %7405, %v9954_v59   ;;  %v3859_v24 = vmul.f32 %v7633_v44, %v3858_v9 }
0x1306   :  { %v9975_v25 = vpop.permute.xlu2 %3896 }
0x1307   :  { %v3860_v39 = vadd.f32 %v7633_v44, %v3859_v24  ;;  %v3903_v40 = vmul.f32 %v8260_v6, %v9975_v25 }
0x1309   :  { %v3864_v57 = vsel %vm3863_vm5, %v7633_v44, %v3860_v39 }
0x130a   :  { %v3869_v1 = vsel %vm3866_vm6, %v3868_v16, %v3864_v57  ;;  %v3960_v57 = vmul.f32 %v9954_v59, %v9954_v59 }
0x1318   :  { %v9977_v47 = vpop.permute.xlu0 %3892 }
0x132c   :  { %v3895_v52 = vpop.permute.xlu1 %3894 }
0x132d   :  { %v3902_v25 = vmul.f32 %v8260_v6, %v3895_v52 }
0x1341   :  { %v3783_v48 = vpop.xlane.xlu2 %3782 }
0x1342   :  { %v3789_v29 = vsub.f32 0.0, %v3783_v48 }
0x1343   :  { %v3779_v10 = vpop.xlane.xlu0 %3778 }
0x1344   :  { %v9979_v46 = vmul.f32 %v3884_v21, %v3789_v29  ;;  %v3787_v5 = vsub.f32 0.0, %v3779_v10  ;;  %v3901_v21 = vmul.f32 %v8260_v6, %v9977_v47  ;;  %v3959_v47 = vmul.f32 %v9941_v12, %v9941_v12 }
0x1346   :  { %v9981_v17 = vmul.f32 %v3854_v26, %v3787_v5  ;;  %3931 = vperm.xlu1 %7405, %v9979_v46   ;;  %v3965_v22 = vsub.f32 1.0, %v3959_v47 }
0x1348   :  { %3921 = vperm.xlu2 %7403, %v9981_v17  }
0x1356   :  { %v3912_v8 = vpop.permute.xlu0 %3911 }
0x1357   :  { %v3935_v63 = vmul.f32 %v3912_v8, %v3899_v14  ;;  %v3947_v49 = vmul.f32 %v3912_v8, %v9889_v23  ;;  %v3781_v37 = vpop.xlane.xlu1 %3780 }
0x1358   :  { %v3788_v55 = vsub.f32 0.0, %v3781_v37 }
0x1359   :  { %v3953_v51 = vadd.f32 %v3947_v49, %v3899_v14  ;;  %v9989_v34 = vadd.f32 %v3935_v63, %v9889_v23 }
0x135a   :  { %v9991_v33 = vmul.f32 %v3869_v1, %v3788_v55 }
0x135b   :  { %4098 = vrot.lane.b32.xlu1 %v3953_v51, %s7839_s3  ;;  %v3977_v19 = vmul.f32 %v3953_v51, %v8228_v58 }
0x135c   :  { %3926 = vperm.xlu0 %7404, %v9991_v33  }
0x136f   :  { %v3907_v53 = vpop.permute.xlu1 %3906 }
0x1370   :  { %v3934_v35 = vmul.f32 %v3907_v53, %v3898_v60  ;;  %v3946_v42 = vmul.f32 %v3907_v53, %v9882_v32 }
0x1371   :  { %3984 = vadd.xlane.f32.xlu2 %v3977_v19 }
0x1372   :  { %v3952_v15 = vadd.f32 %v3946_v42, %v3898_v60  ;;  %v10000_v23 = vadd.f32 %v3934_v35, %v9882_v32 }
0x1374   :  { %4096 = vrot.lane.b32.xlu0 %v3952_v15, %s7839_s3  ;;  %v3976_v32 = vmul.f32 %v3952_v15, %v8226_v56 }
0x1377   :  { %v3917_v3 = vpop.permute.xlu1 %3916 }
0x1378   :  { %v3936_v48 = vmul.f32 %v3917_v3, %v3900_v50  ;;  %v3948_v29 = vmul.f32 %v3917_v3, %v9897_v62 }
0x137a   :  { %v10006_v36 = vadd.f32 %v3936_v48, %v9897_v62  ;;  %v3954_v7 = vadd.f32 %v3948_v29, %v3900_v50 }
0x137c   :  { %v3978_v44 = vmul.f32 %v3954_v7, %v8233_v2 }
0x1385   :  { %3986 = vadd.xlane.f32.xlu1 %v3978_v44 }
0x1389   :  { %4100 = vrot.lane.b32.xlu2 %v3954_v7, %s7839_s3 }
0x139e   :  { %3982 = vadd.xlane.f32.xlu0 %v3976_v32 }
0x13a2   :  { %v3922_v43 = vpop.permute.xlu2 %3921 }
0x13a3   :  { %v3937_v11 = vmul.f32 %v3922_v43, %v3901_v21  ;;  %v3949_v10 = vmul.f32 %v3922_v43, %v9910_v45 }
0x13a5   :  { %v3955_v5 = vadd.f32 %v3949_v10, %v3901_v21  ;;  %v10016_v26 = vadd.f32 %v3937_v11, %v9910_v45  ;;  %v10028_v45 = vmul.f32 %v3965_v22, %v9924_v4 }
0x13a7   :  { %4102 = vrot.lane.b32.xlu1 %v3955_v5, %s7839_s3  ;;  %v3979_v62 = vmul.f32 %v3955_v5, %v8240_v20  ;;  %v4001_v13 = vmax.f32 %v10028_v45, 1e-07  ;;  %v3961_v5 = vmul.f32 %v9981_v17, %v9981_v17 }
0x13a9   :  { %3988 = vadd.xlane.f32.xlu0 %v3979_v62  ;;  %7634 = vrcp.f32 %v4001_v13  ;;  %v4032_v35 = vand.u32 2147483648, %v4001_v13  ;;  %vm4026_vm8 = vweird.f32 %v4001_v13 }
0x13ab   :  { %v4033_v3 = vor.u32 1.1754944e-38, %v4032_v35 }
0x13af   :  { %v7635_v37 = vpop.eup %7634 }
0x13b0   :  { %v4022_v51 = vmul.f32 %v7635_v37, %v4001_v13  ;;  %vm4027_vm7 = vweird.f32 %v7635_v37 }
0x13b1   :  { %vm4028_vm9 = vmor %vm4026_vm8, %vm4027_vm7 }
0x13b2   :  { %v4023_v1 = vsub.f32 1.0, %v4022_v51 }
0x13b4   :  { %v4024_v53 = vmul.f32 %v7635_v37, %v4023_v1 }
0x13b6   :  { %v4025_v19 = vadd.f32 %v7635_v37, %v4024_v53 }
0x13b8   :  { %v3932_v9 = vpop.permute.xlu1 %3931  ;;  %v4029_v42 = vsel %vm4028_vm9, %v7635_v37, %v4025_v19 }
0x13b9   :  { %v3939_v24 = vmul.f32 %v3932_v9, %v3903_v40  ;;  %v3951_v14 = vmul.f32 %v3932_v9, %v9907_v27 }
0x13bb   :  { %v10025_v39 = vadd.f32 %v3939_v24, %v9907_v27  ;;  %v3957_v8 = vadd.f32 %v3951_v14, %v3903_v40  ;;  %v3966_v27 = vsub.f32 1.0, %v3960_v57  ;;  %v3967_v24 = vsub.f32 1.0, %v3961_v5 }
0x13bd   :  { %v3981_v16 = vmul.f32 %v3957_v8, %v8277_v31  ;;  %v10043_v59 = vmul.f32 %v3966_v27, %v9938_v61  ;;  %v3958_v61 = vmul.f32 %v9951_v28, %v9951_v28  ;;  %v10061_v14 = vmul.f32 %v3967_v24, %v9965_v38 }
0x13bf   :  { %v4002_v60 = vmax.f32 %v10043_v59, 1e-07  ;;  %v3964_v32 = vsub.f32 1.0, %v3958_v61  ;;  %v4003_v57 = vmax.f32 %v10061_v14, 1e-07 }
0x13c1   :  { %7636 = vrcp.f32 %v4002_v60  ;;  %v10053_v43 = vmul.f32 %v3964_v32, %v9932_v41  ;;  %v4047_v40 = vand.u32 2147483648, %v4002_v60  ;;  %vm4041_vm12 = vweird.f32 %v4002_v60 }
0x13c2   :  { %v4045_v9 = vand.u32 2147483647, %v4002_v60  ;;  %vm4056_vm4 = vweird.f32 %v4003_v57 }
0x13c3   :  { %v4000_v28 = vmax.f32 %v10053_v43, 1e-07  ;;  %v4048_v22 = vor.u32 1.1754944e-38, %v4047_v40 }
0x13c4   :  { %vm4046_vm14 = vcmp.eq.f32.partialorder %v4045_v9, 8.507059e+37 }
0x13c5   :  { %7638 = vrcp.f32 %v4000_v28  ;;  %v4017_v38 = vand.u32 2147483648, %v4000_v28  ;;  %vm4011_vm0 = vweird.f32 %v4000_v28 }
0x13c6   :  { %7640 = vrcp.f32 %v4003_v57 }
0x13c7   :  { %v7637_v15 = vpop.eup %7636 }
0x13c8   :  { %v4037_v44 = vmul.f32 %v7637_v15, %v4002_v60  ;;  %vm4042_vm11 = vweird.f32 %v7637_v15  ;;  %v4018_v60 = vor.u32 1.1754944e-38, %v4017_v38 }
0x13c9   :  { %vm4043_vm13 = vmor %vm4041_vm12, %vm4042_vm11 }
0x13ca   :  { %v4038_v21 = vsub.f32 1.0, %v4037_v44 }
0x13cc   :  { %v4039_v11 = vmul.f32 %v7637_v15, %v4038_v21 }
0x13cd   :  { %v10055_v10 = vpop.permute.xlu1 %4098 }
0x13ce   :  { %v3927_v63 = vpop.permute.xlu0 %3926  ;;  %v4040_v62 = vadd.f32 %v7637_v15, %v4039_v11  ;;  %v3962_v11 = vmul.f32 %v9991_v33, %v9991_v33 }
0x13cf   :  { %v3938_v12 = vmul.f32 %v3927_v63, %v3902_v25  ;;  %v3950_v49 = vmul.f32 %v3927_v63, %v9920_v0 }
0x13d0   :  { %v4044_v47 = vsel %vm4043_vm13, %v7637_v15, %v4040_v62  ;;  %v3968_v40 = vsub.f32 1.0, %v3962_v11 }
0x13d1   :  { %v3956_v4 = vadd.f32 %v3950_v49, %v3902_v25  ;;  %3992 = vadd.xlane.f32.xlu1 %v3981_v16  ;;  %v10038_v55 = vadd.f32 %v3938_v12, %v9920_v0  ;;  %v4030_v0 = vand.u32 2147483647, %v4001_v13  ;;  %v7639_v25 = vpop.eup %7638 }
0x13d2   :  { %v4007_v63 = vmul.f32 %v7639_v25, %v4000_v28  ;;  %v7641_v49 = vpop.eup %7640  ;;  %vm4012_vm15 = vweird.f32 %v7639_v25  ;;  %v10084_v9 = vmul.f32 %v3968_v40, %v9972_v18 }
0x13d3   :  { %4104 = vrot.lane.b32.xlu0 %v3956_v4, %s7839_s3  ;;  %v3980_v52 = vmul.f32 %v3956_v4, %v8275_v30  ;;  %vm4031_vm10 = vcmp.eq.f32.partialorder %v4030_v0, 8.507059e+37  ;;  %v4052_v4 = vmul.f32 %v7641_v49, %v4003_v57  ;;  %vm4013_vm1 = vmor %vm4011_vm0, %vm4012_vm15  ;;  %vm4057_vm3 = vweird.f32 %v7641_v49 }
0x13d4   :  { %v4034_v29 = vsel %vm4031_vm10, %v4033_v3, %v4029_v42  ;;  %v4008_v12 = vsub.f32 1.0, %v4007_v63  ;;  %v4060_v3 = vand.u32 2147483647, %v4003_v57  ;;  %vm4058_vm5 = vmor %vm4056_vm4, %vm4057_vm3  ;;  %v4004_v24 = vmax.f32 %v10084_v9, 1e-07 }
0x13d5   :  { %3990 = vadd.xlane.f32.xlu2 %v3980_v52  ;;  %v4015_v52 = vand.u32 2147483647, %v4000_v28  ;;  %v4053_v51 = vsub.f32 1.0, %v4052_v4 }
0x13d6   :  { %v4009_v16 = vmul.f32 %v7639_v25, %v4008_v12  ;;  %vm4061_vm6 = vcmp.eq.f32.partialorder %v4060_v3, 8.507059e+37  ;;  %vm4071_vm12 = vweird.f32 %v4004_v24 }
0x13d7   :  { %vm4016_vm2 = vcmp.eq.f32.partialorder %v4015_v52, 8.507059e+37  ;;  %v4054_v0 = vmul.f32 %v7641_v49, %v4053_v51  ;;  %v4077_v52 = vand.u32 2147483648, %v4004_v24 }
0x13d8   :  { %v4010_v27 = vadd.f32 %v7639_v25, %v4009_v16 }
0x13d9   :  { %v4055_v15 = vadd.f32 %v7641_v49, %v4054_v0 }
0x13da   :  { %v4014_v1 = vsel %vm4013_vm1, %v7639_v25, %v4010_v27 }
0x13db   :  { %v4019_v35 = vsel %vm4016_vm2, %v4018_v60, %v4014_v1  ;;  %v4075_v1 = vand.u32 2147483647, %v4004_v24 }
0x13e4   :  { %v3985_v50 = vpop.xlane.xlu2 %3984 }
0x13e5   :  { %v3995_v48 = vsub.f32 0.0, %v3985_v50  ;;  %v4062_v50 = vand.u32 2147483648, %v4003_v57 }
0x13e6   :  { %v10067_v37 = vpop.permute.xlu0 %4096 }
0x13e7   :  { %v10048_v7 = vmul.f32 %v4034_v29, %v3995_v48  ;;  %v3963_v48 = vmul.f32 %v9979_v46, %v9979_v46  ;;  %v4059_v29 = vsel %vm4058_vm5, %v7641_v49, %v4055_v15  ;;  %v4063_v61 = vor.u32 1.1754944e-38, %v4062_v50 }
0x13e9   :  { %4121 = vperm.xlu0 %7404, %v10048_v7   ;;  %v3969_v21 = vsub.f32 1.0, %v3963_v48  ;;  %v4064_v5 = vsel %vm4061_vm6, %v4063_v61, %v4059_v29  ;;  %v4109_v29 = vmul.f32 %v8260_v6, %v10055_v10 }
0x13eb   :  { %v10080_v62 = vmul.f32 %v3969_v21, %v9962_v54 }
0x13ec   :  { %v4101_v12 = vpop.permute.xlu2 %4100 }
0x13ed   :  { %4106 = vrot.lane.b32.xlu2 %v3957_v8, %s7839_s3  ;;  %v4049_v8 = vsel %vm4046_vm14, %v4048_v22, %v4044_v47  ;;  %v4005_v46 = vmax.f32 %v10080_v62, 1e-07  ;;  %vm4076_vm14 = vcmp.eq.f32.partialorder %v4075_v1, 8.507059e+37 }
0x13ef   :  { %7642 = vrcp.f32 %v4005_v46  ;;  %v4092_v49 = vand.u32 2147483648, %v4005_v46  ;;  %vm4086_vm8 = vweird.f32 %v4005_v46  ;;  %v4090_v18 = vand.u32 2147483647, %v4005_v46 }
0x13f0   :  { %7644 = vrcp.f32 %v4004_v24 }
0x13f1   :  { %v4093_v27 = vor.u32 1.1754944e-38, %v4092_v49  ;;  %vm4091_vm11 = vcmp.eq.f32.partialorder %v4090_v18, 8.507059e+37 }
0x13f5   :  { %v7643_v47 = vpop.eup %7642 }
0x13f6   :  { %v4082_v33 = vmul.f32 %v7643_v47, %v4005_v46  ;;  %v7645_v22 = vpop.eup %7644  ;;  %vm4087_vm7 = vweird.f32 %v7643_v47  ;;  %v4110_v46 = vmul.f32 %v8260_v6, %v4101_v12 }
0x13f7   :  { %vm4088_vm9 = vmor %vm4086_vm8, %vm4087_vm7  ;;  %vm4072_vm10 = vweird.f32 %v7645_v22 }
0x13f8   :  { %v3987_v41 = vpop.xlane.xlu1 %3986  ;;  %vm4073_vm13 = vmor %vm4071_vm12, %vm4072_vm10 }
0x13f9   :  { %v3996_v13 = vsub.f32 0.0, %v3987_v41  ;;  %v4083_v41 = vsub.f32 1.0, %v4082_v33 }
0x13fb   :  { %v10063_v17 = vmul.f32 %v4049_v8, %v3996_v13  ;;  %v4067_v13 = vmul.f32 %v7645_v22, %v4004_v24  ;;  %v4084_v8 = vmul.f32 %v7643_v47, %v4083_v41  ;;  %v4108_v24 = vmul.f32 %v8260_v6, %v10067_v37 }
0x13fd   :  { %4126 = vperm.xlu0 %7404, %v10063_v17   ;;  %v4068_v25 = vsub.f32 1.0, %v4067_v13  ;;  %v4085_v54 = vadd.f32 %v7643_v47, %v4084_v8 }
0x13ff   :  { %v4069_v63 = vmul.f32 %v7645_v22, %v4068_v25  ;;  %v4089_v16 = vsel %vm4088_vm9, %v7643_v47, %v4085_v54 }
0x1400   :  { %v4094_v60 = vsel %vm4091_vm11, %v4093_v27, %v4089_v16 }
0x1401   :  { %v4070_v4 = vadd.f32 %v7645_v22, %v4069_v63 }
0x1411   :  { %v3983_v53 = vpop.xlane.xlu0 %3982 }
0x1412   :  { %v3994_v19 = vsub.f32 0.0, %v3983_v53 }
0x1414   :  { %v10069_v42 = vmul.f32 %v4019_v35, %v3994_v19  ;;  %v4074_v19 = vsel %vm4073_vm13, %v7645_v22, %v4070_v4  ;;  %v4078_v35 = vor.u32 1.1754944e-38, %v4077_v52 }
0x1416   :  { %4116 = vperm.xlu2 %7403, %v10069_v42   ;;  %v4079_v50 = vsel %vm4076_vm14, %v4078_v35, %v4074_v19 }
0x1419   :  { %v4103_v57 = vpop.permute.xlu1 %4102 }
0x141a   :  { %v4111_v37 = vmul.f32 %v8260_v6, %v4103_v57 }
0x141c   :  { %v3989_v44 = vpop.xlane.xlu0 %3988 }
0x141d   :  { %v3997_v32 = vsub.f32 0.0, %v3989_v44 }
0x141f   :  { %v10076_v28 = vmul.f32 %v4064_v5, %v3997_v32 }
0x1421   :  { %4131 = vperm.xlu2 %7403, %v10076_v28  }
0x1444   :  { %v3993_v38 = vpop.xlane.xlu1 %3992 }
0x1445   :  { %v3999_v51 = vsub.f32 0.0, %v3993_v38  ;;  %v4105_v48 = vpop.permute.xlu0 %4104 }
0x1446   :  { %v4112_v52 = vmul.f32 %v8260_v6, %v4105_v48 }
0x1447   :  { %v10087_v53 = vmul.f32 %v4094_v60, %v3999_v51 }
0x1448   :  { %v3991_v0 = vpop.xlane.xlu2 %3990 }
0x1449   :  { %v3998_v15 = vsub.f32 0.0, %v3991_v0  ;;  %4141 = vperm.xlu0 %7404, %v10087_v53  }
0x144b   :  { %v10090_v3 = vmul.f32 %v4079_v50, %v3998_v15  ;;  %v4169_v15 = vmul.f32 %v10048_v7, %v10048_v7 }
0x144d   :  { %4136 = vperm.xlu1 %7405, %v10090_v3   ;;  %v4175_v50 = vsub.f32 1.0, %v4169_v15 }
0x144f   :  { %v10137_v48 = vmul.f32 %v4175_v50, %v10028_v45 }
0x1450   :  { %v4107_v40 = vpop.permute.xlu2 %4106 }
0x1451   :  { %v4113_v4 = vmul.f32 %v8260_v6, %v4107_v40  ;;  %v4170_v40 = vmul.f32 %v10063_v17, %v10063_v17 }
0x145b   :  { %v4122_v61 = vpop.permute.xlu0 %4121 }
0x145c   :  { %v4145_v44 = vmul.f32 %v4122_v61, %v4109_v29  ;;  %v4157_v32 = vmul.f32 %v4122_v61, %v9989_v34 }
0x145e   :  { %v4163_v21 = vadd.f32 %v4157_v32, %v4109_v29  ;;  %v10097_v11 = vadd.f32 %v4145_v44, %v9989_v34 }
0x1460   :  { %4308 = vrot.lane.b32.xlu0 %v4163_v21, %s7839_s3  ;;  %v4187_v5 = vmul.f32 %v4163_v21, %v8228_v58 }
0x1462   :  { %4194 = vadd.xlane.f32.xlu2 %v4187_v5 }
0x146f   :  { %v4127_v10 = vpop.permute.xlu0 %4126 }
0x1470   :  { %v4146_v47 = vmul.f32 %v4127_v10, %v4110_v46  ;;  %v4158_v33 = vmul.f32 %v4127_v10, %v10006_v36  ;;  %v4117_v22 = vpop.permute.xlu2 %4116 }
0x1471   :  { %v4144_v41 = vmul.f32 %v4117_v22, %v4108_v24  ;;  %v4156_v34 = vmul.f32 %v4117_v22, %v10000_v23 }
0x1472   :  { %v4164_v13 = vadd.f32 %v4158_v33, %v4110_v46  ;;  %v10107_v8 = vadd.f32 %v4146_v47, %v10006_v36  ;;  %v4176_v33 = vsub.f32 1.0, %v4170_v40  ;;  %v4171_v40 = vmul.f32 %v10076_v28, %v10076_v28 }
0x1473   :  { %v4162_v25 = vadd.f32 %v4156_v34, %v4108_v24  ;;  %v10110_v54 = vadd.f32 %v4144_v41, %v10000_v23 }
0x1474   :  { %4310 = vrot.lane.b32.xlu0 %v4164_v13, %s7839_s3  ;;  %v4188_v18 = vmul.f32 %v4164_v13, %v8233_v2 }
0x1475   :  { %4306 = vrot.lane.b32.xlu1 %v4162_v25, %s7839_s3  ;;  %v4186_v36 = vmul.f32 %v4162_v25, %v8226_v56  ;;  %v10152_v25 = vmul.f32 %v4176_v33, %v10043_v59 }
0x147b   :  { %v4132_v63 = vpop.permute.xlu2 %4131 }
0x147c   :  { %v4147_v12 = vmul.f32 %v4132_v63, %v4111_v37  ;;  %v4159_v23 = vmul.f32 %v4132_v63, %v10016_v26 }
0x147e   :  { %v10116_v49 = vadd.f32 %v4147_v12, %v10016_v26  ;;  %v4165_v16 = vadd.f32 %v4159_v23, %v4111_v37  ;;  %v4212_v37 = vmax.f32 %v10152_v25, 1e-07 }
0x1480   :  { %v4189_v29 = vmul.f32 %v4165_v16, %v8240_v20  ;;  %vm4251_vm8 = vweird.f32 %v4212_v37 }
0x149e   :  { %4196 = vadd.xlane.f32.xlu0 %v4188_v18 }
0x149f   :  { %4192 = vadd.xlane.f32.xlu1 %v4186_v36 }
0x14b8   :  { %4312 = vrot.lane.b32.xlu1 %v4165_v16, %s7839_s3 }
0x14bb   :  { %v4142_v27 = vpop.permute.xlu0 %4141 }
0x14bc   :  { %v4149_v57 = vmul.f32 %v4142_v27, %v4113_v4  ;;  %v4161_v38 = vmul.f32 %v4142_v27, %v10025_v39 }
0x14be   :  { %v4167_v51 = vadd.f32 %v4161_v38, %v4113_v4  ;;  %v10126_v1 = vadd.f32 %v4149_v57, %v10025_v39  ;;  %v4211_v39 = vmax.f32 %v10137_v48, 1e-07 }
0x14bf   :  { %v4137_v60 = vpop.permute.xlu1 %4136 }
0x14c0   :  { %v4148_v19 = vmul.f32 %v4137_v60, %v4112_v52  ;;  %v4160_v35 = vmul.f32 %v4137_v60, %v10038_v55  ;;  %4316 = vrot.lane.b32.xlu0 %v4167_v51, %s7839_s3  ;;  %7646 = vrcp.f32 %v4211_v39  ;;  %v4191_v32 = vmul.f32 %v4167_v51, %v8277_v31 }
0x14c1   :  { %v4242_v10 = vand.u32 2147483648, %v4211_v39  ;;  %vm4236_vm0 = vweird.f32 %v4211_v39 }
0x14c2   :  { %v4166_v26 = vadd.f32 %v4160_v35, %v4112_v52  ;;  %v10131_v0 = vadd.f32 %v4148_v19, %v10038_v55  ;;  %v4168_v55 = vmul.f32 %v10069_v42, %v10069_v42  ;;  %v4240_v42 = vand.u32 2147483647, %v4211_v39 }
0x14c3   :  { %v4243_v13 = vor.u32 1.1754944e-38, %v4242_v10 }
0x14c4   :  { %4314 = vrot.lane.b32.xlu2 %v4166_v26, %s7839_s3  ;;  %v4190_v7 = vmul.f32 %v4166_v26, %v8275_v30  ;;  %v4174_v5 = vsub.f32 1.0, %v4168_v55  ;;  %vm4241_vm2 = vcmp.eq.f32.partialorder %v4240_v42, 8.507059e+37  ;;  %v4255_v55 = vand.u32 2147483647, %v4212_v37 }
0x14c5   :  { %v4172_v42 = vmul.f32 %v10090_v3, %v10090_v3 }
0x14c6   :  { %v7647_v61 = vpop.eup %7646  ;;  %v10148_v46 = vmul.f32 %v4174_v5, %v10053_v43  ;;  %vm4256_vm10 = vcmp.eq.f32.partialorder %v4255_v55, 8.507059e+37 }
0x14c7   :  { %v4232_v44 = vmul.f32 %v7647_v61, %v4211_v39  ;;  %vm4237_vm15 = vweird.f32 %v7647_v61 }
0x14c8   :  { %v4210_v22 = vmax.f32 %v10148_v46, 1e-07  ;;  %vm4238_vm1 = vmor %vm4236_vm0, %vm4237_vm15 }
0x14c9   :  { %v4233_v21 = vsub.f32 1.0, %v4232_v44 }
0x14ca   :  { %7648 = vrcp.f32 %v4210_v22  ;;  %v4227_v52 = vand.u32 2147483648, %v4210_v22  ;;  %vm4221_vm4 = vweird.f32 %v4210_v22  ;;  %v4225_v51 = vand.u32 2147483647, %v4210_v22 }
0x14cb   :  { %v4234_v45 = vmul.f32 %v7647_v61, %v4233_v21  ;;  %7650 = vrcp.f32 %v4212_v37 }
0x14cc   :  { %v4228_v35 = vor.u32 1.1754944e-38, %v4227_v52  ;;  %vm4226_vm6 = vcmp.eq.f32.partialorder %v4225_v51, 8.507059e+37 }
0x14cd   :  { %v4235_v24 = vadd.f32 %v7647_v61, %v4234_v45 }
0x14cf   :  { %v4239_v41 = vsel %vm4238_vm1, %v7647_v61, %v4235_v24  ;;  %v4257_v61 = vand.u32 2147483648, %v4212_v37  ;;  %v4177_v24 = vsub.f32 1.0, %v4171_v40 }
0x14d0   :  { %v4244_v43 = vsel %vm4241_vm2, %v4243_v13, %v4239_v41  ;;  %v7649_v63 = vpop.eup %7648  ;;  %v4178_v41 = vsub.f32 1.0, %v4172_v42 }
0x14d1   :  { %v4217_v12 = vmul.f32 %v7649_v63, %v4210_v22  ;;  %v7651_v36 = vpop.eup %7650  ;;  %vm4222_vm3 = vweird.f32 %v7649_v63  ;;  %v10173_v10 = vmul.f32 %v4177_v24, %v10061_v14 }
0x14d2   :  { %v10158_v23 = vpop.permute.xlu0 %4308  ;;  %v4247_v16 = vmul.f32 %v7651_v36, %v4212_v37  ;;  %vm4223_vm5 = vmor %vm4221_vm4, %vm4222_vm3  ;;  %vm4252_vm7 = vweird.f32 %v7651_v36  ;;  %v10184_v28 = vmul.f32 %v4178_v41, %v10084_v9 }
0x14d3   :  { %v4218_v18 = vsub.f32 1.0, %v4217_v12  ;;  %vm4253_vm9 = vmor %vm4251_vm8, %vm4252_vm7  ;;  %v4213_v33 = vmax.f32 %v10173_v10, 1e-07 }
0x14d4   :  { %v4248_v59 = vsub.f32 1.0, %v4247_v16 }
0x14d5   :  { %v4195_v47 = vpop.xlane.xlu2 %4194  ;;  %v4219_v4 = vmul.f32 %v7649_v63, %v4218_v18  ;;  %7652 = vrcp.f32 %v4213_v33  ;;  %vm4266_vm12 = vweird.f32 %v4213_v33 }
0x14d6   :  { %v4205_v34 = vsub.f32 0.0, %v4195_v47  ;;  %v4249_v60 = vmul.f32 %v7651_v36, %v4248_v59  ;;  %v4173_v47 = vmul.f32 %v10087_v53, %v10087_v53  ;;  %v4270_v59 = vand.u32 2147483647, %v4213_v33 }
0x14d7   :  { %v4220_v57 = vadd.f32 %v7649_v63, %v4219_v4  ;;  %v4272_v4 = vand.u32 2147483648, %v4213_v33 }
0x14d8   :  { %v10154_v17 = vmul.f32 %v4244_v43, %v4205_v34  ;;  %v4250_v39 = vadd.f32 %v7651_v36, %v4249_v60  ;;  %v4179_v22 = vsub.f32 1.0, %v4173_v47  ;;  %v4214_v43 = vmax.f32 %v10184_v28, 1e-07 }
0x14d9   :  { %v4224_v19 = vsel %vm4223_vm5, %v7649_v63, %v4220_v57  ;;  %vm4271_vm14 = vcmp.eq.f32.partialorder %v4270_v59, 8.507059e+37 }
0x14da   :  { %v4229_v50 = vsel %vm4226_vm6, %v4228_v35, %v4224_v19  ;;  %v10181_v34 = vmul.f32 %v4179_v22, %v10080_v62  ;;  %v4273_v19 = vor.u32 1.1754944e-38, %v4272_v4  ;;  %vm4281_vm3 = vweird.f32 %v4214_v43 }
0x14db   :  { %v7653_v13 = vpop.eup %7652  ;;  %v4285_v47 = vand.u32 2147483647, %v4214_v43 }
0x14dc   :  { %v4215_v14 = vmax.f32 %v10181_v34, 1e-07  ;;  %v4262_v53 = vmul.f32 %v7653_v13, %v4213_v33  ;;  %vm4267_vm11 = vweird.f32 %v7653_v13 }
0x14dd   :  { %vm4268_vm13 = vmor %vm4266_vm12, %vm4267_vm11  ;;  %vm4286_vm6 = vcmp.eq.f32.partialorder %v4285_v47, 8.507059e+37 }
0x14de   :  { %7654 = vrcp.f32 %v4215_v14  ;;  %v4263_v3 = vsub.f32 1.0, %v4262_v53  ;;  %v4302_v55 = vand.u32 2147483648, %v4215_v14  ;;  %vm4296_vm0 = vweird.f32 %v4215_v14 }
0x14df   :  { %7656 = vrcp.f32 %v4214_v43 }
0x14e0   :  { %v4264_v12 = vmul.f32 %v7653_v13, %v4263_v3  ;;  %v4303_v24 = vor.u32 1.1754944e-38, %v4302_v55 }
0x14e2   :  { %4198 = vadd.xlane.f32.xlu1 %v4189_v29  ;;  %v4265_v16 = vadd.f32 %v7653_v13, %v4264_v12 }
0x14e4   :  { %v7655_v37 = vpop.eup %7654  ;;  %v4269_v52 = vsel %vm4268_vm13, %v7653_v13, %v4265_v16 }
0x14e5   :  { %v7657_v63 = vpop.eup %7656  ;;  %v4292_v18 = vmul.f32 %v7655_v37, %v4215_v14  ;;  %vm4297_vm15 = vweird.f32 %v7655_v37 }
0x14e6   :  { %v10162_v38 = vpop.permute.xlu0 %4310  ;;  %v4277_v62 = vmul.f32 %v7657_v63, %v4214_v43  ;;  %vm4298_vm1 = vmor %vm4296_vm0, %vm4297_vm15  ;;  %vm4282_vm2 = vweird.f32 %v7657_v63 }
0x14e7   :  { %v10160_v27 = vpop.permute.xlu1 %4306  ;;  %v4293_v9 = vsub.f32 1.0, %v4292_v18  ;;  %vm4283_vm5 = vmor %vm4281_vm3, %vm4282_vm2 }
0x14e8   :  { %v4278_v57 = vsub.f32 1.0, %v4277_v62  ;;  %v4318_v62 = vmul.f32 %v8260_v6, %v10160_v27 }
0x14e9   :  { %v4294_v51 = vmul.f32 %v7655_v37, %v4293_v9 }
0x14ea   :  { %4202 = vadd.xlane.f32.xlu0 %v4191_v32  ;;  %v4254_v32 = vsel %vm4253_vm9, %v7651_v36, %v4250_v39 }
0x14ed   :  { %4200 = vadd.xlane.f32.xlu2 %v4190_v7  ;;  %v4258_v7 = vor.u32 1.1754944e-38, %v4257_v61 }
0x14ef   :  { %v4259_v5 = vsel %vm4256_vm10, %v4258_v7, %v4254_v32  ;;  %v4300_v32 = vand.u32 2147483647, %v4215_v14 }
0x14f1   :  { %vm4301_vm4 = vcmp.eq.f32.partialorder %v4300_v32, 8.507059e+37 }
0x14fb   :  { %4331 = vperm.xlu1 %7405, %v10154_v17  }
0x1511   :  { %v4197_v44 = vpop.xlane.xlu0 %4196 }
0x1512   :  { %v4193_v26 = vpop.xlane.xlu1 %4192  ;;  %v4206_v21 = vsub.f32 0.0, %v4197_v44  ;;  %v4295_v44 = vadd.f32 %v7655_v37, %v4294_v51  ;;  %v4320_v51 = vmul.f32 %v8260_v6, %v10162_v38 }
0x1513   :  { %v4204_v15 = vsub.f32 0.0, %v4193_v26 }
0x1514   :  { %v10167_v45 = vmul.f32 %v4259_v5, %v4206_v21  ;;  %v4299_v7 = vsel %vm4298_vm1, %v7655_v37, %v4295_v44  ;;  %v4287_v5 = vand.u32 2147483648, %v4214_v43  ;;  %v4319_v43 = vmul.f32 %v8260_v6, %v10158_v23 }
0x1515   :  { %v10164_v29 = vmul.f32 %v4229_v50, %v4204_v15  ;;  %v4274_v15 = vsel %vm4271_vm14, %v4273_v19, %v4269_v52  ;;  %v4279_v50 = vmul.f32 %v7657_v63, %v4278_v57  ;;  %v4304_v33 = vsel %vm4301_vm4, %v4303_v24, %v4299_v7 }
0x1516   :  { %v4288_v13 = vor.u32 1.1754944e-38, %v4287_v5 }
0x1517   :  { %4326 = vperm.xlu2 %7403, %v10164_v29   ;;  %v4280_v21 = vadd.f32 %v7657_v63, %v4279_v50 }
0x1519   :  { %v4284_v22 = vsel %vm4283_vm5, %v7657_v63, %v4280_v21 }
0x151a   :  { %v4289_v3 = vsel %vm4286_vm6, %v4288_v13, %v4284_v22 }
0x151e   :  { %v10192_v39 = vpop.permute.xlu2 %4314 }
0x151f   :  { %4336 = vperm.xlu2 %7403, %v10167_v45  }
0x152a   :  { %v10188_v36 = vpop.permute.xlu1 %4312 }
0x1532   :  { %v10190_v60 = vpop.permute.xlu0 %4316 }
0x1533   :  { %v4323_v38 = vmul.f32 %v8260_v6, %v10190_v60  ;;  %v4322_v60 = vmul.f32 %v8260_v6, %v10192_v39  ;;  %v4380_v39 = vmul.f32 %v10167_v45, %v10167_v45 }
0x1555   :  { %v4199_v35 = vpop.xlane.xlu1 %4198 }
0x1556   :  { %v4207_v26 = vsub.f32 0.0, %v4199_v35 }
0x1558   :  { %v10194_v61 = vmul.f32 %v4274_v15, %v4207_v26 }
0x155a   :  { %4341 = vperm.xlu0 %7404, %v10194_v61  }
0x155d   :  { %v4203_v40 = vpop.xlane.xlu0 %4202 }
0x155e   :  { %v4209_v42 = vsub.f32 0.0, %v4203_v40 }
0x1560   :  { %v10197_v41 = vmul.f32 %v4304_v33, %v4209_v42  ;;  %v4201_v53 = vpop.xlane.xlu2 %4200 }
0x1561   :  { %v4208_v14 = vsub.f32 0.0, %v4201_v53 }
0x1562   :  { %4351 = vperm.xlu2 %7403, %v10197_v41  }
0x1563   :  { %v10200_v37 = vmul.f32 %v4289_v3, %v4208_v14  ;;  %v4379_v14 = vmul.f32 %v10154_v17, %v10154_v17 }
0x1565   :  { %4346 = vperm.xlu1 %7405, %v10200_v37  }
0x156d   :  { %v4332_v12 = vpop.permute.xlu1 %4331 }
0x156e   :  { %v4355_v18 = vmul.f32 %v4332_v12, %v4319_v43  ;;  %v4367_v63 = vmul.f32 %v4332_v12, %v10097_v11 }
0x1570   :  { %v4373_v16 = vadd.f32 %v4367_v63, %v4319_v43  ;;  %v10209_v9 = vadd.f32 %v4355_v18, %v10097_v11  ;;  %v4385_v43 = vsub.f32 1.0, %v4379_v14 }
0x1571   :  { %v4327_v4 = vpop.permute.xlu2 %4326 }
0x1572   :  { %v4354_v59 = vmul.f32 %v4327_v4, %v4318_v62  ;;  %v4366_v57 = vmul.f32 %v4327_v4, %v10110_v54  ;;  %4518 = vrot.lane.b32.xlu2 %v4373_v16, %s7839_s3  ;;  %v4397_v35 = vmul.f32 %v4373_v16, %v8228_v58 }
0x1574   :  { %v4372_v52 = vadd.f32 %v4366_v57, %v4318_v62  ;;  %v10214_v23 = vadd.f32 %v4354_v59, %v10110_v54 }
0x1576   :  { %4516 = vrot.lane.b32.xlu1 %v4372_v52, %s7839_s3  ;;  %v4396_v54 = vmul.f32 %v4372_v52, %v8226_v56 }
0x1579   :  { %v4337_v27 = vpop.permute.xlu2 %4336 }
0x157a   :  { %v4356_v19 = vmul.f32 %v4337_v27, %v4320_v51  ;;  %v4368_v26 = vmul.f32 %v4337_v27, %v10107_v8 }
0x157c   :  { %v10220_v11 = vadd.f32 %v4356_v19, %v10107_v8  ;;  %v4374_v15 = vadd.f32 %v4368_v26, %v4320_v51  ;;  %v4321_v8 = vmul.f32 %v8260_v6, %v10188_v36 }
0x157e   :  { %v4398_v50 = vmul.f32 %v4374_v15, %v8233_v2 }
0x1584   :  { %4404 = vadd.xlane.f32.xlu0 %v4397_v35 }
0x159b   :  { %4406 = vadd.xlane.f32.xlu2 %v4398_v50 }
0x15a0   :  { %4402 = vadd.xlane.f32.xlu1 %v4396_v54 }
0x15b9   :  { %4520 = vrot.lane.b32.xlu1 %v4374_v15, %s7839_s3 }
0x15bc   :  { %v4352_v44 = vpop.permute.xlu2 %4351 }
0x15bd   :  { %v4359_v55 = vmul.f32 %v4352_v44, %v4323_v38  ;;  %v4371_v63 = vmul.f32 %v4352_v44, %v10126_v1 }
0x15bf   :  { %v10230_v32 = vadd.f32 %v4359_v55, %v10126_v1  ;;  %v4377_v62 = vadd.f32 %v4371_v63, %v4323_v38 }
0x15c1   :  { %v4401_v1 = vmul.f32 %v4377_v62, %v8277_v31 }
0x15cc   :  { %v4342_v21 = vpop.permute.xlu0 %4341  ;;  %v10271_v35 = vpop.permute.xlu2 %4518 }
0x15cd   :  { %v4357_v7 = vmul.f32 %v4342_v21, %v4321_v8  ;;  %v4369_v5 = vmul.f32 %v4342_v21, %v10116_v49 }
0x15cf   :  { %v4375_v40 = vadd.f32 %v4369_v5, %v4321_v8  ;;  %v10236_v24 = vadd.f32 %v4357_v7, %v10116_v49  ;;  %v4378_v49 = vmul.f32 %v10164_v29, %v10164_v29  ;;  %v10262_v29 = vmul.f32 %v4385_v43, %v10137_v48 }
0x15d1   :  { %4522 = vrot.lane.b32.xlu0 %v4375_v40, %s7839_s3  ;;  %v4399_v13 = vmul.f32 %v4375_v40, %v8240_v20  ;;  %v4384_v53 = vsub.f32 1.0, %v4378_v49 }
0x15d3   :  { %v10254_v3 = vmul.f32 %v4384_v53, %v10148_v46  ;;  %v4421_v46 = vmax.f32 %v10262_v29, 1e-07 }
0x15d5   :  { %v4420_v12 = vmax.f32 %v10254_v3, 1e-07  ;;  %vm4446_vm15 = vweird.f32 %v4421_v46  ;;  %v4450_v14 = vand.u32 2147483647, %v4421_v46 }
0x15d7   :  { %v4347_v47 = vpop.permute.xlu1 %4346  ;;  %7658 = vrcp.f32 %v4420_v12  ;;  %v4437_v54 = vand.u32 2147483648, %v4420_v12  ;;  %vm4431_vm8 = vweird.f32 %v4420_v12  ;;  %v4435_v38 = vand.u32 2147483647, %v4420_v12 }
0x15d8   :  { %v4358_v42 = vmul.f32 %v4347_v47, %v4322_v60  ;;  %v4370_v33 = vmul.f32 %v4347_v47, %v10131_v0  ;;  %vm4451_vm2 = vcmp.eq.f32.partialorder %v4450_v14, 8.507059e+37 }
0x15d9   :  { %v4438_v21 = vor.u32 1.1754944e-38, %v4437_v54  ;;  %vm4436_vm11 = vcmp.eq.f32.partialorder %v4435_v38, 8.507059e+37 }
0x15da   :  { %v4376_v22 = vadd.f32 %v4370_v33, %v4322_v60  ;;  %v10243_v36 = vadd.f32 %v4358_v42, %v10131_v0  ;;  %v4386_v0 = vsub.f32 1.0, %v4380_v39 }
0x15dc   :  { %4524 = vrot.lane.b32.xlu2 %v4376_v22, %s7839_s3  ;;  %v10258_v18 = vmul.f32 %v4386_v0, %v10152_v25  ;;  %v4400_v45 = vmul.f32 %v4376_v22, %v8275_v30 }
0x15dd   :  { %v7659_v16 = vpop.eup %7658 }
0x15de   :  { %v4422_v17 = vmax.f32 %v10258_v18, 1e-07  ;;  %v4427_v25 = vmul.f32 %v7659_v16, %v4420_v12  ;;  %vm4432_vm7 = vweird.f32 %v7659_v16 }
0x15df   :  { %vm4433_vm9 = vmor %vm4431_vm8, %vm4432_vm7 }
0x15e0   :  { %7660 = vrcp.f32 %v4422_v17  ;;  %v4428_v48 = vsub.f32 1.0, %v4427_v25  ;;  %v4467_v5 = vand.u32 2147483648, %v4422_v17  ;;  %vm4461_vm12 = vweird.f32 %v4422_v17 }
0x15e1   :  { %7662 = vrcp.f32 %v4421_v46  ;;  %v4465_v47 = vand.u32 2147483647, %v4422_v17 }
0x15e2   :  { %v4429_v51 = vmul.f32 %v7659_v16, %v4428_v48  ;;  %v4468_v0 = vor.u32 1.1754944e-38, %v4467_v5 }
0x15e3   :  { %4408 = vadd.xlane.f32.xlu1 %v4399_v13  ;;  %v4452_v13 = vand.u32 2147483648, %v4421_v46  ;;  %vm4466_vm1 = vcmp.eq.f32.partialorder %v4465_v47, 8.507059e+37 }
0x15e4   :  { %v4430_v15 = vadd.f32 %v7659_v16, %v4429_v51 }
0x15e6   :  { %v7661_v4 = vpop.eup %7660  ;;  %v4434_v55 = vsel %vm4433_vm9, %v7659_v16, %v4430_v15 }
0x15e7   :  { %v7663_v59 = vpop.eup %7662  ;;  %v4457_v57 = vmul.f32 %v7661_v4, %v4422_v17  ;;  %vm4462_vm10 = vweird.f32 %v7661_v4  ;;  %v4439_v42 = vsel %vm4436_vm11, %v4438_v21, %v4434_v55 }
0x15e8   :  { %v4442_v52 = vmul.f32 %v7663_v59, %v4421_v46  ;;  %v10269_v27 = vpop.permute.xlu1 %4516  ;;  %vm4447_vm13 = vweird.f32 %v7663_v59  ;;  %vm4463_vm14 = vmor %vm4461_vm12, %vm4462_vm10  ;;  %v4381_v46 = vmul.f32 %v10194_v61, %v10194_v61  ;;  %v4383_v61 = vmul.f32 %v10197_v41, %v10197_v41 }
0x15e9   :  { %v4458_v19 = vsub.f32 1.0, %v4457_v57  ;;  %vm4448_vm0 = vmor %vm4446_vm15, %vm4447_vm13 }
0x15ea   :  { %v4443_v26 = vsub.f32 1.0, %v4442_v52  ;;  %v4387_v25 = vsub.f32 1.0, %v4381_v46  ;;  %v4389_v54 = vsub.f32 1.0, %v4383_v61 }
0x15eb   :  { %v4459_v50 = vmul.f32 %v7661_v4, %v4458_v19 }
0x15ec   :  { %v4444_v44 = vmul.f32 %v7663_v59, %v4443_v26  ;;  %v10297_v55 = vmul.f32 %v4389_v54, %v10181_v34 }
0x15ed   :  { %v4460_v8 = vadd.f32 %v7661_v4, %v4459_v50 }
0x15ee   :  { %v4445_v33 = vadd.f32 %v7663_v59, %v4444_v44 }
0x15ef   :  { %v4464_v53 = vsel %vm4463_vm14, %v7661_v4, %v4460_v8 }
0x15f0   :  { %v4449_v43 = vsel %vm4448_vm0, %v7663_v59, %v4445_v33  ;;  %v4469_v63 = vsel %vm4466_vm1, %v4468_v0, %v4464_v53  ;;  %v4382_v59 = vmul.f32 %v10200_v37, %v10200_v37 }
0x15f2   :  { %v4388_v52 = vsub.f32 1.0, %v4382_v59 }
0x15f4   :  { %v10291_v19 = vmul.f32 %v4388_v52, %v10184_v28 }
0x15f7   :  { %v4405_v49 = vpop.xlane.xlu0 %4404 }
0x15f8   :  { %v4415_v12 = vsub.f32 0.0, %v4405_v49 }
0x15fb   :  { %4410 = vadd.xlane.f32.xlu0 %v4400_v45  ;;  %v4453_v45 = vor.u32 1.1754944e-38, %v4452_v13 }
0x15fc   :  { %4526 = vrot.lane.b32.xlu1 %v4377_v62, %s7839_s3 }
0x15fd   :  { %v4454_v62 = vsel %vm4451_vm2, %v4453_v45, %v4449_v43 }
0x15fe   :  { %v10279_v16 = vmul.f32 %v4454_v62, %v4415_v12 }
0x1605   :  { %4412 = vadd.xlane.f32.xlu2 %v4401_v1  ;;  %v10285_v1 = vmul.f32 %v4387_v25, %v10173_v10  ;;  %v4424_v10 = vmax.f32 %v10291_v19, 1e-07 }
0x1607   :  { %v4423_v4 = vmax.f32 %v10285_v1, 1e-07  ;;  %v4497_v53 = vand.u32 2147483648, %v4424_v10  ;;  %vm4491_vm8 = vweird.f32 %v4424_v10 }
0x1609   :  { %7664 = vrcp.f32 %v4423_v4  ;;  %v4482_v38 = vand.u32 2147483648, %v4423_v4  ;;  %vm4476_vm4 = vweird.f32 %v4423_v4  ;;  %v4480_v44 = vand.u32 2147483647, %v4423_v4 }
0x160a   :  { %7666 = vrcp.f32 %v4424_v10  ;;  %v4498_v43 = vor.u32 1.1754944e-38, %v4497_v53 }
0x160b   :  { %v4483_v28 = vor.u32 1.1754944e-38, %v4482_v38  ;;  %vm4481_vm6 = vcmp.eq.f32.partialorder %v4480_v44, 8.507059e+37 }
0x160e   :  { %v4407_v40 = vpop.xlane.xlu2 %4406 }
0x160f   :  { %v4416_v39 = vsub.f32 0.0, %v4407_v40  ;;  %v7665_v48 = vpop.eup %7664  ;;  %v4425_v40 = vmax.f32 %v10297_v55, 1e-07 }
0x1610   :  { %v4472_v57 = vmul.f32 %v7665_v48, %v4423_v4  ;;  %vm4477_vm3 = vweird.f32 %v7665_v48  ;;  %v7667_v5 = vpop.eup %7666 }
0x1611   :  { %v10276_v17 = vmul.f32 %v4469_v63, %v4416_v39  ;;  %vm4478_vm5 = vmor %vm4476_vm4, %vm4477_vm3  ;;  %7668 = vrcp.f32 %v4425_v40  ;;  %vm4492_vm7 = vweird.f32 %v7667_v5  ;;  %v4495_v39 = vand.u32 2147483647, %v4424_v10 }
0x1612   :  { %v4473_v51 = vsub.f32 1.0, %v4472_v57  ;;  %vm4493_vm9 = vmor %vm4491_vm8, %vm4492_vm7  ;;  %vm4506_vm12 = vweird.f32 %v4425_v40  ;;  %v4510_v59 = vand.u32 2147483647, %v4425_v40 }
0x1613   :  { %v4403_v7 = vpop.xlane.xlu1 %4402  ;;  %vm4496_vm10 = vcmp.eq.f32.partialorder %v4495_v39, 8.507059e+37 }
0x1614   :  { %v4414_v60 = vsub.f32 0.0, %v4403_v7  ;;  %v4474_v26 = vmul.f32 %v7665_v48, %v4473_v51  ;;  %vm4511_vm14 = vcmp.eq.f32.partialorder %v4510_v59, 8.507059e+37 }
0x1616   :  { %v10273_v22 = vmul.f32 %v4439_v42, %v4414_v60  ;;  %v4475_v50 = vadd.f32 %v7665_v48, %v4474_v26  ;;  %v4487_v60 = vmul.f32 %v7667_v5, %v4424_v10 }
0x1617   :  { %v7669_v42 = vpop.eup %7668 }
0x1618   :  { %4536 = vperm.xlu0 %7404, %v10273_v22   ;;  %v4479_v37 = vsel %vm4478_vm5, %v7665_v48, %v4475_v50  ;;  %v4488_v47 = vsub.f32 1.0, %v4487_v60  ;;  %v4502_v34 = vmul.f32 %v7669_v42, %v4425_v40  ;;  %vm4507_vm11 = vweird.f32 %v7669_v42 }
0x1619   :  { %v4484_v41 = vsel %vm4481_vm6, %v4483_v28, %v4479_v37  ;;  %v4512_v48 = vand.u32 2147483648, %v4425_v40  ;;  %vm4508_vm13 = vmor %vm4506_vm12, %vm4507_vm11  ;;  %v4528_v37 = vmul.f32 %v8260_v6, %v10269_v27 }
0x161a   :  { %v4489_v33 = vmul.f32 %v7667_v5, %v4488_v47  ;;  %v4503_v14 = vsub.f32 1.0, %v4502_v34 }
0x161b   :  { %v4513_v52 = vor.u32 1.1754944e-38, %v4512_v48 }
0x161c   :  { %v4490_v49 = vadd.f32 %v7667_v5, %v4489_v33  ;;  %v4504_v45 = vmul.f32 %v7669_v42, %v4503_v14 }
0x161d   :  { %4546 = vperm.xlu2 %7403, %v10276_v17  }
0x161e   :  { %v4494_v0 = vsel %vm4493_vm9, %v7667_v5, %v4490_v49  ;;  %v4505_v4 = vadd.f32 %v7669_v42, %v4504_v45 }
0x161f   :  { %v4499_v46 = vsel %vm4496_vm10, %v4498_v43, %v4494_v0 }
0x1620   :  { %4541 = vperm.xlu0 %7404, %v10279_v16   ;;  %v4509_v57 = vsel %vm4508_vm13, %v7669_v42, %v4505_v4 }
0x1621   :  { %v4514_v61 = vsel %vm4511_vm14, %v4513_v52, %v4509_v57 }
0x162b   :  { %v4521_v15 = vpop.permute.xlu1 %4520 }
0x162c   :  { %v4530_v50 = vmul.f32 %v8260_v6, %v4521_v15  ;;  %v4529_v15 = vmul.f32 %v8260_v6, %v10271_v35 }
0x1636   :  { %v4525_v62 = vpop.permute.xlu2 %4524 }
0x1637   :  { %v4532_v4 = vmul.f32 %v8260_v6, %v4525_v62 }
0x1643   :  { %v4523_v13 = vpop.permute.xlu0 %4522 }
0x1644   :  { %v4531_v39 = vmul.f32 %v8260_v6, %v4523_v13  ;;  %v4589_v13 = vmul.f32 %v10279_v16, %v10279_v16 }
0x1656   :  { %v4409_v8 = vpop.xlane.xlu1 %4408 }
0x1657   :  { %v4417_v21 = vsub.f32 0.0, %v4409_v8 }
0x1659   :  { %v10299_v7 = vmul.f32 %v4484_v41, %v4417_v21 }
0x165b   :  { %4551 = vperm.xlu1 %7405, %v10299_v7  }
0x166e   :  { %v4411_v12 = vpop.xlane.xlu0 %4410  ;;  %v4527_v53 = vpop.permute.xlu1 %4526 }
0x166f   :  { %v4418_v63 = vsub.f32 0.0, %v4411_v12 }
0x1671   :  { %v10303_v25 = vmul.f32 %v4499_v46, %v4418_v63 }
0x1673   :  { %4556 = vperm.xlu0 %7404, %v10303_v25  }
0x1678   :  { %v4413_v51 = vpop.xlane.xlu2 %4412 }
0x1679   :  { %v4419_v26 = vsub.f32 0.0, %v4413_v51 }
0x167b   :  { %v10306_v10 = vmul.f32 %v4514_v61, %v4419_v26 }
0x167d   :  { %4561 = vperm.xlu2 %7403, %v10306_v10  }
0x1680   :  { %v4547_v54 = vpop.permute.xlu2 %4546 }
0x1681   :  { %v4566_v38 = vmul.f32 %v4547_v54, %v4530_v50 }
0x1683   :  { %v10311_v44 = vadd.f32 %v4566_v38, %v10220_v11 }
0x168a   :  { %v4537_v28 = vpop.permute.xlu0 %4536 }
0x168b   :  { %v4564_v8 = vmul.f32 %v4537_v28, %v4528_v37  ;;  %v4576_v21 = vmul.f32 %v4537_v28, %v10214_v23 }
0x168d   :  { %v4582_v41 = vadd.f32 %v4576_v21, %v4528_v37  ;;  %v10317_v5 = vadd.f32 %v4564_v8, %v10214_v23  ;;  %v4578_v23 = vmul.f32 %v4547_v54, %v10220_v11  ;;  %v4533_v11 = vmul.f32 %v8260_v6, %v4527_v53 }
0x168e   :  { %v4590_v8 = vmul.f32 %v10276_v17, %v10276_v17 }
0x168f   :  { %4726 = vrot.lane.b32.xlu0 %v4582_v41, %s7839_s3  ;;  %v4606_v34 = vmul.f32 %v4582_v41, %v8226_v56  ;;  %v4584_v49 = vadd.f32 %v4578_v23, %v4530_v50 }
0x1691   :  { %v4608_v35 = vmul.f32 %v4584_v49, %v8233_v2 }
0x1692   :  { %v4542_v40 = vpop.permute.xlu0 %4541 }
0x1693   :  { %v4565_v60 = vmul.f32 %v4542_v40, %v4529_v15  ;;  %v4577_v47 = vmul.f32 %v4542_v40, %v10209_v9 }
0x1695   :  { %v4583_v42 = vadd.f32 %v4577_v47, %v4529_v15  ;;  %v10324_v27 = vadd.f32 %v4565_v60, %v10209_v9  ;;  %v4596_v47 = vsub.f32 1.0, %v4590_v8 }
0x1697   :  { %4728 = vrot.lane.b32.xlu2 %v4583_v42, %s7839_s3  ;;  %v4607_v33 = vmul.f32 %v4583_v42, %v8228_v58 }
0x1699   :  { %4614 = vadd.xlane.f32.xlu1 %v4607_v33 }
0x16b9   :  { %4612 = vadd.xlane.f32.xlu0 %v4606_v34  ;;  %v10367_v34 = vmul.f32 %v4596_v47, %v10258_v18 }
0x16c0   :  { %4616 = vadd.xlane.f32.xlu2 %v4608_v35  ;;  %v4632_v35 = vmax.f32 %v10367_v34, 1e-07 }
0x16c2   :  { %vm4671_vm8 = vweird.f32 %v4632_v35 }
0x16cd   :  { %4730 = vrot.lane.b32.xlu0 %v4584_v49, %s7839_s3  ;;  %v4552_v9 = vpop.permute.xlu1 %4551 }
0x16ce   :  { %v4567_v14 = vmul.f32 %v4552_v9, %v4531_v39  ;;  %v4579_v0 = vmul.f32 %v4552_v9, %v10236_v24 }
0x16d0   :  { %v4585_v43 = vadd.f32 %v4579_v0, %v4531_v39  ;;  %v10335_v12 = vadd.f32 %v4567_v14, %v10236_v24  ;;  %v4595_v24 = vsub.f32 1.0, %v4589_v13 }
0x16d2   :  { %4732 = vrot.lane.b32.xlu1 %v4585_v43, %s7839_s3  ;;  %v10351_v26 = vmul.f32 %v4595_v24, %v10262_v29  ;;  %v4609_v16 = vmul.f32 %v4585_v43, %v8240_v20 }
0x16d4   :  { %v4631_v61 = vmax.f32 %v10351_v26, 1e-07 }
0x16d6   :  { %7670 = vrcp.f32 %v4631_v61  ;;  %v4662_v40 = vand.u32 2147483648, %v4631_v61  ;;  %vm4656_vm0 = vweird.f32 %v4631_v61  ;;  %v4660_v60 = vand.u32 2147483647, %v4631_v61 }
0x16d7   :  { %v4562_v63 = vpop.permute.xlu2 %4561 }
0x16d8   :  { %v4569_v45 = vmul.f32 %v4562_v63, %v4533_v11  ;;  %v4581_v37 = vmul.f32 %v4562_v63, %v10230_v32  ;;  %v4663_v23 = vor.u32 1.1754944e-38, %v4662_v40  ;;  %vm4661_vm2 = vcmp.eq.f32.partialorder %v4660_v60, 8.507059e+37 }
0x16d9   :  { %v4592_v40 = vmul.f32 %v10303_v25, %v10303_v25 }
0x16da   :  { %v10340_v46 = vadd.f32 %v4569_v45, %v10230_v32  ;;  %v4587_v21 = vadd.f32 %v4581_v37, %v4533_v11 }
0x16dc   :  { %v7671_v62 = vpop.eup %7670  ;;  %v4611_v49 = vmul.f32 %v4587_v21, %v8277_v31 }
0x16dd   :  { %v4652_v54 = vmul.f32 %v7671_v62, %v4631_v61  ;;  %vm4657_vm15 = vweird.f32 %v7671_v62 }
0x16de   :  { %vm4658_vm1 = vmor %vm4656_vm0, %vm4657_vm15 }
0x16df   :  { %v4653_v38 = vsub.f32 1.0, %v4652_v54  ;;  %v4675_v54 = vand.u32 2147483647, %v4632_v35 }
0x16e1   :  { %v4654_v28 = vmul.f32 %v7671_v62, %v4653_v38  ;;  %vm4676_vm10 = vcmp.eq.f32.partialorder %v4675_v54, 8.507059e+37 }
0x16e3   :  { %v4655_v41 = vadd.f32 %v7671_v62, %v4654_v28 }
0x16e5   :  { %v4557_v48 = vpop.permute.xlu0 %4556  ;;  %v4659_v32 = vsel %vm4658_vm1, %v7671_v62, %v4655_v41 }
0x16e6   :  { %v4568_v59 = vmul.f32 %v4557_v48, %v4532_v4  ;;  %v4580_v57 = vmul.f32 %v4557_v48, %v10243_v36  ;;  %v4664_v17 = vsel %vm4661_vm2, %v4663_v23, %v4659_v32 }
0x16e8   :  { %v4586_v52 = vadd.f32 %v4580_v57, %v4532_v4  ;;  %v10347_v51 = vadd.f32 %v4568_v59, %v10243_v36  ;;  %v4588_v36 = vmul.f32 %v10273_v22, %v10273_v22 }
0x16ea   :  { %4734 = vrot.lane.b32.xlu2 %v4586_v52, %s7839_s3  ;;  %v4610_v50 = vmul.f32 %v4586_v52, %v8275_v30  ;;  %v4594_v29 = vsub.f32 1.0, %v4588_v36 }
0x16ec   :  { %v10362_v15 = vmul.f32 %v4594_v29, %v10254_v3 }
0x16ee   :  { %v4630_v33 = vmax.f32 %v10362_v15, 1e-07 }
0x16f0   :  { %7672 = vrcp.f32 %v4630_v33  ;;  %v4647_v45 = vand.u32 2147483648, %v4630_v33  ;;  %vm4641_vm4 = vweird.f32 %v4630_v33  ;;  %v4645_v13 = vand.u32 2147483647, %v4630_v33 }
0x16f1   :  { %7674 = vrcp.f32 %v4632_v35  ;;  %v10376_v48 = vpop.permute.xlu2 %4728 }
0x16f2   :  { %v4648_v24 = vor.u32 1.1754944e-38, %v4647_v45  ;;  %vm4646_vm6 = vcmp.eq.f32.partialorder %v4645_v13, 8.507059e+37 }
0x16f6   :  { %v7673_v53 = vpop.eup %7672 }
0x16f7   :  { %4618 = vadd.xlane.f32.xlu0 %v4609_v16  ;;  %v4637_v39 = vmul.f32 %v7673_v53, %v4630_v33  ;;  %v7675_v9 = vpop.eup %7674  ;;  %vm4642_vm3 = vweird.f32 %v7673_v53 }
0x16f8   :  { %v4667_v0 = vmul.f32 %v7675_v9, %v4632_v35  ;;  %vm4643_vm5 = vmor %vm4641_vm4, %vm4642_vm3  ;;  %vm4672_vm7 = vweird.f32 %v7675_v9 }
0x16f9   :  { %v4638_v14 = vsub.f32 1.0, %v4637_v39  ;;  %vm4673_vm9 = vmor %vm4671_vm8, %vm4672_vm7 }
0x16fa   :  { %v4668_v18 = vsub.f32 1.0, %v4667_v0 }
0x16fb   :  { %v4639_v43 = vmul.f32 %v7673_v53, %v4638_v14 }
0x16fc   :  { %4620 = vadd.xlane.f32.xlu1 %v4610_v50  ;;  %v4669_v4 = vmul.f32 %v7675_v9, %v4668_v18  ;;  %v4677_v50 = vand.u32 2147483648, %v4632_v35 }
0x16fd   :  { %v4640_v63 = vadd.f32 %v7673_v53, %v4639_v43 }
0x16fe   :  { %v4670_v16 = vadd.f32 %v7675_v9, %v4669_v4  ;;  %v4678_v36 = vor.u32 1.1754944e-38, %v4677_v50 }
0x16ff   :  { %v4644_v59 = vsel %vm4643_vm5, %v7673_v53, %v4640_v63 }
0x1700   :  { %v4649_v61 = vsel %vm4646_vm6, %v4648_v24, %v4644_v59  ;;  %v4674_v38 = vsel %vm4673_vm9, %v7675_v9, %v4670_v16 }
0x1701   :  { %v10374_v11 = vpop.permute.xlu0 %4726  ;;  %v4679_v29 = vsel %vm4676_vm10, %v4678_v36, %v4674_v38 }
0x170b   :  { %4736 = vrot.lane.b32.xlu0 %v4587_v21, %s7839_s3  ;;  %v4591_v21 = vmul.f32 %v10299_v7, %v10299_v7 }
0x170c   :  { %v4615_v22 = vpop.xlane.xlu1 %4614 }
0x170d   :  { %v4625_v42 = vsub.f32 0.0, %v4615_v22  ;;  %v4597_v41 = vsub.f32 1.0, %v4591_v21  ;;  %v4598_v22 = vsub.f32 1.0, %v4592_v40 }
0x170f   :  { %v10369_v3 = vmul.f32 %v4664_v17, %v4625_v42  ;;  %v10389_v60 = vmul.f32 %v4597_v41, %v10285_v1  ;;  %v10393_v32 = vmul.f32 %v4598_v22, %v10291_v19  ;;  %v4593_v17 = vmul.f32 %v10306_v10, %v10306_v10 }
0x1711   :  { %v4633_v47 = vmax.f32 %v10389_v60, 1e-07  ;;  %v4634_v42 = vmax.f32 %v10393_v32, 1e-07  ;;  %v4599_v1 = vsub.f32 1.0, %v4593_v17 }
0x1713   :  { %4622 = vadd.xlane.f32.xlu2 %v4611_v49  ;;  %4751 = vperm.xlu0 %7404, %v10369_v3   ;;  %7676 = vrcp.f32 %v4633_v47  ;;  %v10399_v9 = vmul.f32 %v4599_v1, %v10297_v55  ;;  %v4692_v14 = vand.u32 2147483648, %v4633_v47  ;;  %vm4686_vm12 = vweird.f32 %v4633_v47 }
0x1714   :  { %7678 = vrcp.f32 %v4634_v42  ;;  %v4690_v18 = vand.u32 2147483647, %v4633_v47  ;;  %v4707_v55 = vand.u32 2147483648, %v4634_v42  ;;  %vm4701_vm0 = vweird.f32 %v4634_v42 }
0x1715   :  { %v4635_v63 = vmax.f32 %v10399_v9, 1e-07  ;;  %v4693_v45 = vor.u32 1.1754944e-38, %v4692_v14  ;;  %v4705_v24 = vand.u32 2147483647, %v4634_v42 }
0x1716   :  { %vm4691_vm15 = vcmp.eq.f32.partialorder %v4690_v18, 8.507059e+37  ;;  %v4708_v16 = vor.u32 1.1754944e-38, %v4707_v55 }
0x1717   :  { %7680 = vrcp.f32 %v4635_v63  ;;  %vm4706_vm2 = vcmp.eq.f32.partialorder %v4705_v24, 8.507059e+37  ;;  %vm4716_vm4 = vweird.f32 %v4635_v63 }
0x1719   :  { %v7677_v33 = vpop.eup %7676 }
0x171a   :  { %v4682_v23 = vmul.f32 %v7677_v33, %v4633_v47  ;;  %v7679_v7 = vpop.eup %7678  ;;  %vm4687_vm11 = vweird.f32 %v7677_v33  ;;  %v4722_v47 = vand.u32 2147483648, %v4635_v63 }
0x171b   :  { %v4697_v49 = vmul.f32 %v7679_v7, %v4634_v42  ;;  %vm4688_vm13 = vmor %vm4686_vm12, %vm4687_vm11  ;;  %vm4702_vm14 = vweird.f32 %v7679_v7  ;;  %v4720_v42 = vand.u32 2147483647, %v4635_v63 }
0x171c   :  { %v4683_v25 = vsub.f32 1.0, %v4682_v23  ;;  %vm4703_vm1 = vmor %vm4701_vm0, %vm4702_vm14 }
0x171d   :  { %v4698_v39 = vsub.f32 1.0, %v4697_v49  ;;  %v7681_v36 = vpop.eup %7680  ;;  %v4723_v49 = vor.u32 1.1754944e-38, %v4722_v47  ;;  %vm4721_vm6 = vcmp.eq.f32.partialorder %v4720_v42, 8.507059e+37 }
0x171e   :  { %v4684_v35 = vmul.f32 %v7677_v33, %v4683_v25  ;;  %vm4717_vm3 = vweird.f32 %v7681_v36 }
0x171f   :  { %v4699_v0 = vmul.f32 %v7679_v7, %v4698_v39  ;;  %vm4718_vm5 = vmor %vm4716_vm4, %vm4717_vm3 }
0x1720   :  { %v4685_v19 = vadd.f32 %v7677_v33, %v4684_v35 }
0x1721   :  { %v4700_v4 = vadd.f32 %v7679_v7, %v4699_v0 }
0x1722   :  { %v4689_v10 = vsel %vm4688_vm13, %v7677_v33, %v4685_v19  ;;  %v4739_v33 = vmul.f32 %v8260_v6, %v10376_v48 }
0x172c   :  { %v4613_v57 = vpop.xlane.xlu0 %4612 }
0x172d   :  { %v4624_v52 = vsub.f32 0.0, %v4613_v57  ;;  %v4694_v57 = vsel %vm4691_vm15, %v4693_v45, %v4689_v10  ;;  %v4738_v45 = vmul.f32 %v8260_v6, %v10374_v11 }
0x172f   :  { %v10378_v62 = vmul.f32 %v4649_v61, %v4624_v52  ;;  %v4704_v61 = vsel %vm4703_vm1, %v7679_v7, %v4700_v4 }
0x1730   :  { %v4709_v38 = vsel %vm4706_vm2, %v4708_v16, %v4704_v61 }
0x1731   :  { %4746 = vperm.xlu1 %7405, %v10378_v62  }
0x1733   :  { %v4617_v37 = vpop.xlane.xlu2 %4616 }
0x1734   :  { %v4626_v28 = vsub.f32 0.0, %v4617_v37 }
0x1736   :  { %v10381_v8 = vmul.f32 %v4679_v29, %v4626_v28  ;;  %v4712_v28 = vmul.f32 %v7681_v36, %v4635_v63 }
0x1738   :  { %4756 = vperm.xlu2 %7403, %v10381_v8   ;;  %v4713_v29 = vsub.f32 1.0, %v4712_v28 }
0x173a   :  { %v4714_v41 = vmul.f32 %v7681_v36, %v4713_v29 }
0x173c   :  { %v4715_v22 = vadd.f32 %v7681_v36, %v4714_v41 }
0x173e   :  { %v4719_v7 = vsel %vm4718_vm5, %v7681_v36, %v4715_v22 }
0x173f   :  { %v4731_v53 = vpop.permute.xlu0 %4730  ;;  %v4724_v19 = vsel %vm4721_vm6, %v4723_v49, %v4719_v7 }
0x1740   :  { %v4740_v48 = vmul.f32 %v8260_v6, %v4731_v53 }
0x1744   :  { %v10401_v43 = vpop.permute.xlu1 %4732  ;;  %v4735_v40 = vpop.permute.xlu2 %4734 }
0x176a   :  { %v4619_v13 = vpop.xlane.xlu0 %4618 }
0x176b   :  { %v4627_v59 = vsub.f32 0.0, %v4619_v13 }
0x176d   :  { %v10404_v52 = vmul.f32 %v4694_v57, %v4627_v59 }
0x176f   :  { %4761 = vperm.xlu0 %7404, %v10404_v52   ;;  %v4621_v50 = vpop.xlane.xlu1 %4620 }
0x1770   :  { %v4628_v54 = vsub.f32 0.0, %v4621_v50 }
0x1772   :  { %v10407_v37 = vmul.f32 %v4709_v38, %v4628_v54  ;;  %v4742_v38 = vmul.f32 %v8260_v6, %v4735_v40 }
0x1774   :  { %4766 = vperm.xlu1 %7405, %v10407_v37  }
0x177d   :  { %v4737_v21 = vpop.permute.xlu0 %4736 }
0x177e   :  { %v4743_v54 = vmul.f32 %v8260_v6, %v4737_v21 }
0x1785   :  { %v4752_v23 = vpop.permute.xlu0 %4751 }
0x1786   :  { %v4775_v17 = vmul.f32 %v4752_v23, %v4739_v33  ;;  %v4787_v25 = vmul.f32 %v4752_v23, %v10324_v27  ;;  %v4623_v1 = vpop.xlane.xlu2 %4622 }
0x1787   :  { %v4629_v35 = vsub.f32 0.0, %v4623_v1 }
0x1788   :  { %v4793_v39 = vadd.f32 %v4787_v25, %v4739_v33  ;;  %v10414_v14 = vadd.f32 %v4775_v17, %v10324_v27 }
0x1789   :  { %v10416_v0 = vmul.f32 %v4724_v19, %v4629_v35 }
0x178a   :  { %4938 = vrot.lane.b32.xlu0 %v4793_v39, %s7839_s3  ;;  %v4817_v61 = vmul.f32 %v4793_v39, %v8228_v58 }
0x178b   :  { %4771 = vperm.xlu2 %7403, %v10416_v0  }
0x1792   :  { %v4757_v18 = vpop.permute.xlu2 %4756 }
0x1793   :  { %v4776_v63 = vmul.f32 %v4757_v18, %v4740_v48  ;;  %v4788_v53 = vmul.f32 %v4757_v18, %v10311_v44 }
0x1795   :  { %v10422_v10 = vadd.f32 %v4776_v63, %v10311_v44  ;;  %v4794_v57 = vadd.f32 %v4788_v53, %v4740_v48  ;;  %v4800_v63 = vmul.f32 %v10381_v8, %v10381_v8 }
0x1797   :  { %v4818_v24 = vmul.f32 %v4794_v57, %v8233_v2 }
0x17a3   :  { %v4747_v13 = vpop.permute.xlu1 %4746 }
0x17a4   :  { %v4774_v4 = vmul.f32 %v4747_v13, %v4738_v45  ;;  %v4786_v27 = vmul.f32 %v4747_v13, %v10317_v5 }
0x17a6   :  { %v4792_v59 = vadd.f32 %v4786_v27, %v4738_v45  ;;  %v10428_v55 = vadd.f32 %v4774_v4, %v10317_v5  ;;  %v4741_v5 = vmul.f32 %v8260_v6, %v10401_v43 }
0x17a8   :  { %4936 = vrot.lane.b32.xlu1 %v4792_v59, %s7839_s3  ;;  %v4816_v11 = vmul.f32 %v4792_v59, %v8226_v56  ;;  %v4806_v59 = vsub.f32 1.0, %v4800_v63  ;;  %v4803_v63 = vmul.f32 %v10416_v0, %v10416_v0 }
0x17b4   :  { %4826 = vadd.xlane.f32.xlu2 %v4818_v24  ;;  %4824 = vadd.xlane.f32.xlu0 %v4817_v61 }
0x17c8   :  { %4940 = vrot.lane.b32.xlu0 %v4794_v57, %s7839_s3 }
0x17d2   :  { %4822 = vadd.xlane.f32.xlu1 %v4816_v11 }
0x17e1   :  { %v4762_v16 = vpop.permute.xlu0 %4761 }
0x17e2   :  { %v4777_v50 = vmul.f32 %v4762_v16, %v4741_v5  ;;  %v4789_v36 = vmul.f32 %v4762_v16, %v10335_v12 }
0x17e4   :  { %v10440_v44 = vadd.f32 %v4777_v50, %v10335_v12  ;;  %v4795_v21 = vadd.f32 %v4789_v36, %v4741_v5  ;;  %v4799_v12 = vmul.f32 %v10369_v3, %v10369_v3  ;;  %v4798_v3 = vmul.f32 %v10378_v62, %v10378_v62 }
0x17e5   :  { %v4772_v28 = vpop.permute.xlu2 %4771 }
0x17e6   :  { %v4779_v29 = vmul.f32 %v4772_v28, %v4743_v54  ;;  %v4791_v41 = vmul.f32 %v4772_v28, %v10340_v46  ;;  %v4767_v22 = vpop.permute.xlu1 %4766  ;;  %v4805_v40 = vsub.f32 1.0, %v4799_v12  ;;  %v4819_v49 = vmul.f32 %v4795_v21, %v8240_v20 }
0x17e7   :  { %v4778_v47 = vmul.f32 %v4767_v22, %v4742_v38  ;;  %v4790_v42 = vmul.f32 %v4767_v22, %v10347_v51 }
0x17e8   :  { %v4797_v43 = vadd.f32 %v4791_v41, %v4743_v54  ;;  %v10447_v33 = vadd.f32 %v4779_v29, %v10340_v46  ;;  %v10458_v17 = vmul.f32 %v4805_v40, %v10351_v26  ;;  %v4804_v26 = vsub.f32 1.0, %v4798_v3 }
0x17e9   :  { %v4796_v23 = vadd.f32 %v4790_v42, %v4742_v38  ;;  %v10450_v7 = vadd.f32 %v4778_v47, %v10347_v51 }
0x17ea   :  { %4946 = vrot.lane.b32.xlu0 %v4797_v43, %s7839_s3  ;;  %v4841_v46 = vmax.f32 %v10458_v17, 1e-07  ;;  %v4821_v25 = vmul.f32 %v4797_v43, %v8277_v31  ;;  %v10469_v18 = vmul.f32 %v4804_v26, %v10362_v15  ;;  %v10475_v15 = vmul.f32 %v4806_v59, %v10367_v34 }
0x17eb   :  { %4942 = vrot.lane.b32.xlu1 %v4795_v21, %s7839_s3  ;;  %4944 = vrot.lane.b32.xlu2 %v4796_v23, %s7839_s3  ;;  %v4820_v51 = vmul.f32 %v4796_v23, %v8275_v30 }
0x17ec   :  { %7682 = vrcp.f32 %v4841_v46  ;;  %v4872_v13 = vand.u32 2147483648, %v4841_v46  ;;  %vm4866_vm8 = vweird.f32 %v4841_v46  ;;  %v4870_v4 = vand.u32 2147483647, %v4841_v46 }
0x17ed   :  { %v4840_v27 = vmax.f32 %v10469_v18, 1e-07  ;;  %v4842_v11 = vmax.f32 %v10475_v15, 1e-07 }
0x17ee   :  { %v4873_v24 = vor.u32 1.1754944e-38, %v4872_v13  ;;  %vm4871_vm10 = vcmp.eq.f32.partialorder %v4870_v4, 8.507059e+37  ;;  %v4809_v4 = vsub.f32 1.0, %v4803_v63 }
0x17ef   :  { %7684 = vrcp.f32 %v4840_v27  ;;  %v4857_v34 = vand.u32 2147483648, %v4840_v27  ;;  %vm4851_vm12 = vweird.f32 %v4840_v27  ;;  %v4855_v22 = vand.u32 2147483647, %v4840_v27 }
0x17f0   :  { %7686 = vrcp.f32 %v4842_v11  ;;  %vm4881_vm0 = vweird.f32 %v4842_v11 }
0x17f1   :  { %v4858_v43 = vor.u32 1.1754944e-38, %v4857_v34  ;;  %vm4856_vm14 = vcmp.eq.f32.partialorder %v4855_v22, 8.507059e+37 }
0x17f2   :  { %v7683_v1 = vpop.eup %7682 }
0x17f3   :  { %v4862_v35 = vmul.f32 %v7683_v1, %v4841_v46  ;;  %vm4867_vm7 = vweird.f32 %v7683_v1 }
0x17f4   :  { %vm4868_vm9 = vmor %vm4866_vm8, %vm4867_vm7 }
0x17f5   :  { %v4863_v39 = vsub.f32 1.0, %v4862_v35  ;;  %v7685_v5 = vpop.eup %7684 }
0x17f6   :  { %v4847_v16 = vmul.f32 %v7685_v5, %v4840_v27  ;;  %v7687_v54 = vpop.eup %7686  ;;  %vm4852_vm11 = vweird.f32 %v7685_v5 }
0x17f7   :  { %v4864_v48 = vmul.f32 %v7683_v1, %v4863_v39  ;;  %v4877_v38 = vmul.f32 %v7687_v54, %v4842_v11  ;;  %vm4853_vm13 = vmor %vm4851_vm12, %vm4852_vm11  ;;  %vm4882_vm15 = vweird.f32 %v7687_v54 }
0x17f8   :  { %v4848_v50 = vsub.f32 1.0, %v4847_v16  ;;  %vm4883_vm1 = vmor %vm4881_vm0, %vm4882_vm15 }
0x17f9   :  { %v4865_v45 = vadd.f32 %v7683_v1, %v4864_v48  ;;  %v4878_v29 = vsub.f32 1.0, %v4877_v38  ;;  %v4802_v48 = vmul.f32 %v10407_v37, %v10407_v37 }
0x17fa   :  { %v4849_v36 = vmul.f32 %v7685_v5, %v4848_v50 }
0x17fb   :  { %v4869_v57 = vsel %vm4868_vm9, %v7683_v1, %v4865_v45  ;;  %v4879_v47 = vmul.f32 %v7687_v54, %v4878_v29  ;;  %v4801_v45 = vmul.f32 %v10404_v52, %v10404_v52  ;;  %v4808_v13 = vsub.f32 1.0, %v4802_v48 }
0x17fc   :  { %v10466_v19 = vpop.permute.xlu0 %4938  ;;  %v4874_v61 = vsel %vm4871_vm10, %v4873_v24, %v4869_v57  ;;  %v4850_v41 = vadd.f32 %v7685_v5, %v4849_v36 }
0x17fd   :  { %v4880_v40 = vadd.f32 %v7687_v54, %v4879_v47  ;;  %v4807_v27 = vsub.f32 1.0, %v4801_v45  ;;  %v10496_v59 = vmul.f32 %v4808_v13, %v10393_v32 }
0x17fe   :  { %v4854_v42 = vsel %vm4853_vm13, %v7685_v5, %v4850_v41 }
0x17ff   :  { %v4859_v12 = vsel %vm4856_vm14, %v4858_v43, %v4854_v42  ;;  %v4884_v1 = vsel %vm4883_vm1, %v7687_v54, %v4880_v40  ;;  %v4844_v37 = vmax.f32 %v10496_v59, 1e-07 }
0x1801   :  { %7688 = vrcp.f32 %v4844_v37  ;;  %vm4911_vm5 = vweird.f32 %v4844_v37 }
0x1807   :  { %v7689_v52 = vpop.eup %7688 }
0x1808   :  { %vm4912_vm3 = vweird.f32 %v7689_v52 }
0x1809   :  { %vm10515_vm8 = vmor %vm4911_vm5, %vm4912_vm3 }
0x1814   :  { %4832 = vadd.xlane.f32.xlu0 %v4821_v25  ;;  %4830 = vadd.xlane.f32.xlu2 %v4820_v51  ;;  %v4887_v25 = vand.u32 2147483648, %v4842_v11 }
0x1815   :  { %4828 = vadd.xlane.f32.xlu1 %v4819_v49  ;;  %v4885_v49 = vand.u32 2147483647, %v4842_v11  ;;  %v4907_v11 = vmul.f32 %v7689_v52, %v4844_v37 }
0x1816   :  { %v4888_v3 = vor.u32 1.1754944e-38, %v4887_v25  ;;  %v4915_v25 = vand.u32 2147483647, %v4844_v37 }
0x1817   :  { %vm4886_vm2 = vcmp.eq.f32.partialorder %v4885_v49, 8.507059e+37 }
0x1818   :  { %v4889_v39 = vsel %vm4886_vm2, %v4888_v3, %v4884_v1  ;;  %vm4916_vm13 = vcmp.eq.f32.partialorder %v4915_v25, 8.507059e+37 }
0x181a   :  { %v10481_v28 = vpop.permute.xlu1 %4936 }
0x1827   :  { %v4825_v62 = vpop.xlane.xlu0 %4824  ;;  %v4827_v51 = vpop.xlane.xlu2 %4826 }
0x1828   :  { %v4835_v53 = vsub.f32 0.0, %v4825_v62  ;;  %v4836_v35 = vsub.f32 0.0, %v4827_v51  ;;  %v10499_v62 = vmul.f32 %v4809_v4, %v10399_v9 }
0x182a   :  { %v10477_v8 = vmul.f32 %v4874_v61, %v4835_v53  ;;  %v10486_v26 = vmul.f32 %v4889_v39, %v4836_v35  ;;  %v10502_v53 = vmul.f32 %v4807_v27, %v10389_v60  ;;  %v4845_v57 = vmax.f32 %v10499_v62, 1e-07 }
0x182b   :  { %v4908_v60 = vsub.f32 1.0, %v4907_v11 }
0x182c   :  { %v4843_v0 = vmax.f32 %v10502_v53, 1e-07  ;;  %7690 = vrcp.f32 %v4845_v57  ;;  %v4932_v43 = vand.u32 2147483648, %v4845_v57  ;;  %vm4926_vm7 = vweird.f32 %v4845_v57 }
0x182d   :  { %v4909_v38 = vmul.f32 %v7689_v52, %v4908_v60 }
0x182e   :  { %4961 = vperm.xlu1 %7405, %v10477_v8   ;;  %7692 = vrcp.f32 %v4843_v0  ;;  %v4902_v22 = vand.u32 2147483648, %v4843_v0  ;;  %vm4896_vm10 = vweird.f32 %v4843_v0  ;;  %v4900_v49 = vand.u32 2147483647, %v4843_v0 }
0x182f   :  { %v4910_v42 = vadd.f32 %v7689_v52, %v4909_v38  ;;  %v4933_v39 = vor.u32 1.1754944e-38, %v4932_v43  ;;  %v4948_v38 = vmul.f32 %v8260_v6, %v10481_v28 }
0x1830   :  { %v4903_v4 = vor.u32 1.1754944e-38, %v4902_v22  ;;  %vm4901_vm14 = vcmp.eq.f32.partialorder %v4900_v49, 8.507059e+37 }
0x1831   :  { %v4914_v35 = vsel %vm10515_vm8, %v7689_v52, %v4910_v42 }
0x1832   :  { %v7691_v24 = vpop.eup %7690 }
0x1833   :  { %v4922_v32 = vmul.f32 %v7691_v24, %v4845_v57  ;;  %vm4927_vm4 = vweird.f32 %v7691_v24 }
0x1834   :  { %v7693_v61 = vpop.eup %7692  ;;  %vm10519_vm9 = vmor %vm4926_vm7, %vm4927_vm4 }
0x1835   :  { %v4892_v9 = vmul.f32 %v7693_v61, %v4843_v0  ;;  %v4923_v16 = vsub.f32 1.0, %v4922_v32  ;;  %vm4897_vm6 = vweird.f32 %v7693_v61 }
0x1836   :  { %vm10527_vm11 = vmor %vm4896_vm10, %vm4897_vm6 }
0x1837   :  { %v4893_v50 = vsub.f32 1.0, %v4892_v9  ;;  %v4924_v54 = vmul.f32 %v7691_v24, %v4923_v16 }
0x1839   :  { %v4894_v41 = vmul.f32 %v7693_v61, %v4893_v50  ;;  %v4925_v47 = vadd.f32 %v7691_v24, %v4924_v54 }
0x183a   :  { %v10507_v5 = vpop.permute.xlu0 %4940 }
0x183b   :  { %v4929_v1 = vsel %vm10519_vm9, %v7691_v24, %v4925_v47 }
0x1845   :  { %v4823_v21 = vpop.xlane.xlu1 %4822  ;;  %v10509_v36 = vpop.permute.xlu2 %4944 }
0x1846   :  { %v4834_v23 = vsub.f32 0.0, %v4823_v21  ;;  %v4917_v21 = vand.u32 2147483648, %v4844_v37 }
0x1848   :  { %v10483_v46 = vmul.f32 %v4859_v12, %v4834_v23  ;;  %v4895_v23 = vadd.f32 %v7693_v61, %v4894_v41  ;;  %v4930_v12 = vand.u32 2147483647, %v4845_v57  ;;  %v4918_v63 = vor.u32 1.1754944e-38, %v4917_v21 }
0x184a   :  { %4956 = vperm.xlu2 %7403, %v10483_v46   ;;  %v4899_v13 = vsel %vm10527_vm11, %v7693_v61, %v4895_v23  ;;  %vm4931_vm12 = vcmp.eq.f32.partialorder %v4930_v12, 8.507059e+37  ;;  %v4919_v24 = vsel %vm4916_vm13, %v4918_v63, %v4914_v35  ;;  %v4949_v61 = vmul.f32 %v8260_v6, %v10466_v19 }
0x184b   :  { %v4934_v0 = vsel %vm4931_vm12, %v4933_v39, %v4929_v1  ;;  %v4904_v9 = vsel %vm4901_vm14, %v4903_v4, %v4899_v13  ;;  %v4950_v23 = vmul.f32 %v8260_v6, %v10507_v5 }
0x1852   :  { %4966 = vperm.xlu2 %7403, %v10486_v26  }
0x185c   :  { %v10511_v29 = vpop.permute.xlu0 %4946 }
0x185d   :  { %v10513_v34 = vpop.permute.xlu1 %4942  ;;  %v4953_v5 = vmul.f32 %v8260_v6, %v10511_v29 }
0x185e   :  { %v4951_v39 = vmul.f32 %v8260_v6, %v10513_v34  ;;  %v5010_v34 = vmul.f32 %v10486_v26, %v10486_v26 }
0x1887   :  { %v4833_v48 = vpop.xlane.xlu0 %4832  ;;  %v4831_v45 = vpop.xlane.xlu2 %4830 }
0x1888   :  { %v4839_v27 = vsub.f32 0.0, %v4833_v48  ;;  %v4838_v37 = vsub.f32 0.0, %v4831_v45  ;;  %v4829_v57 = vpop.xlane.xlu1 %4828 }
0x1889   :  { %v4837_v52 = vsub.f32 0.0, %v4829_v57 }
0x188a   :  { %v10533_v32 = vmul.f32 %v4934_v0, %v4839_v27  ;;  %v10535_v11 = vmul.f32 %v4919_v24, %v4838_v37  ;;  %v5016_v24 = vsub.f32 1.0, %v5010_v34 }
0x188b   :  { %v10537_v16 = vmul.f32 %v4904_v9, %v4837_v52  ;;  %v5008_v52 = vmul.f32 %v10483_v46, %v10483_v46 }
0x188c   :  { %4976 = vperm.xlu1 %7405, %v10535_v11   ;;  %4981 = vperm.xlu2 %7403, %v10533_v32  }
0x188d   :  { %4971 = vperm.xlu0 %7404, %v10537_v16   ;;  %v5014_v9 = vsub.f32 1.0, %v5008_v52 }
0x18a0   :  { %v4962_v60 = vpop.permute.xlu1 %4961 }
0x18a1   :  { %v4985_v50 = vmul.f32 %v4962_v60, %v4949_v61  ;;  %v4997_v54 = vmul.f32 %v4962_v60, %v10414_v14  ;;  %v5009_v60 = vmul.f32 %v10477_v8, %v10477_v8 }
0x18a3   :  { %v5003_v41 = vadd.f32 %v4997_v54, %v4949_v61  ;;  %v10548_v22 = vadd.f32 %v4985_v50, %v10414_v14  ;;  %v10598_v50 = vmul.f32 %v5014_v9, %v10469_v18  ;;  %v5015_v26 = vsub.f32 1.0, %v5009_v60 }
0x18a4   :  { %v4957_v47 = vpop.permute.xlu2 %4956 }
0x18a5   :  { %v4984_v42 = vmul.f32 %v4957_v47, %v4948_v38  ;;  %v4996_v43 = vmul.f32 %v4957_v47, %v10428_v55  ;;  %5148 = vrot.lane.b32.xlu2 %v5003_v41, %s7839_s3  ;;  %v5027_v40 = vmul.f32 %v5003_v41, %v8228_v58 }
0x18a7   :  { %v5002_v21 = vadd.f32 %v4996_v43, %v4948_v38  ;;  %v10553_v19 = vadd.f32 %v4984_v42, %v10428_v55  ;;  %v5050_v38 = vmax.f32 %v10598_v50, 1e-07 }
0x18a9   :  { %5146 = vrot.lane.b32.xlu1 %v5002_v21, %s7839_s3  ;;  %v5026_v55 = vmul.f32 %v5002_v21, %v8226_v56  ;;  %vm5061_vm4 = vweird.f32 %v5050_v38 }
0x18ac   :  { %v4967_v28 = vpop.permute.xlu2 %4966 }
0x18ad   :  { %v4986_v12 = vmul.f32 %v4967_v28, %v4950_v23  ;;  %v4998_v25 = vmul.f32 %v4967_v28, %v10422_v10 }
0x18af   :  { %v10559_v14 = vadd.f32 %v4986_v12, %v10422_v10  ;;  %v5004_v51 = vadd.f32 %v4998_v25, %v4950_v23  ;;  %v4952_v10 = vmul.f32 %v8260_v6, %v10509_v36 }
0x18b1   :  { %v5028_v49 = vmul.f32 %v5004_v51, %v8233_v2 }
0x18b7   :  { %5034 = vadd.xlane.f32.xlu0 %v5027_v40 }
0x18ce   :  { %5036 = vadd.xlane.f32.xlu2 %v5028_v49 }
0x18d3   :  { %5032 = vadd.xlane.f32.xlu1 %v5026_v55 }
0x18e6   :  { %v4982_v1 = vpop.permute.xlu2 %4981 }
0x18e7   :  { %v4989_v35 = vmul.f32 %v4982_v1, %v4953_v5 }
0x18e9   :  { %v10568_v3 = vadd.f32 %v4989_v35, %v10447_v33 }
0x18ec   :  { %5150 = vrot.lane.b32.xlu1 %v5004_v51, %s7839_s3 }
0x18fe   :  { %v4977_v48 = vpop.permute.xlu1 %4976 }
0x18ff   :  { %v4988_v63 = vmul.f32 %v4977_v48, %v4952_v10  ;;  %v5000_v45 = vmul.f32 %v4977_v48, %v10450_v7  ;;  %v4972_v13 = vpop.permute.xlu0 %4971  ;;  %v10608_v23 = vpop.permute.xlu2 %5148 }
0x1900   :  { %v4987_v4 = vmul.f32 %v4972_v13, %v4951_v39  ;;  %v4999_v29 = vmul.f32 %v4972_v13, %v10440_v44  ;;  %v5065_v13 = vand.u32 2147483647, %v5050_v38 }
0x1901   :  { %v5006_v27 = vadd.f32 %v5000_v45, %v4952_v10  ;;  %v10578_v37 = vadd.f32 %v4988_v63, %v10450_v7  ;;  %v10591_v7 = vmul.f32 %v5016_v24, %v10475_v15  ;;  %v10603_v15 = vmul.f32 %v5015_v26, %v10458_v17 }
0x1902   :  { %v5005_v57 = vadd.f32 %v4999_v29, %v4951_v39  ;;  %v10581_v0 = vadd.f32 %v4987_v4, %v10440_v44  ;;  %v5001_v44 = vmul.f32 %v4982_v1, %v10447_v33  ;;  %v5067_v63 = vand.u32 2147483648, %v5050_v38 }
0x1903   :  { %5154 = vrot.lane.b32.xlu2 %v5006_v27, %s7839_s3  ;;  %v5052_v61 = vmax.f32 %v10591_v7, 1e-07  ;;  %v5030_v33 = vmul.f32 %v5006_v27, %v8275_v30  ;;  %v5051_v18 = vmax.f32 %v10603_v15, 1e-07  ;;  %vm5066_vm6 = vcmp.eq.f32.partialorder %v5065_v13, 8.507059e+37 }
0x1904   :  { %5152 = vrot.lane.b32.xlu0 %v5005_v57, %s7839_s3  ;;  %v5029_v36 = vmul.f32 %v5005_v57, %v8240_v20  ;;  %v5007_v54 = vadd.f32 %v5001_v44, %v4953_v5  ;;  %v5068_v57 = vor.u32 1.1754944e-38, %v5067_v63 }
0x1905   :  { %7694 = vrcp.f32 %v5052_v61  ;;  %v5097_v25 = vand.u32 2147483648, %v5052_v61  ;;  %vm5091_vm0 = vweird.f32 %v5052_v61  ;;  %v5095_v55 = vand.u32 2147483647, %v5052_v61 }
0x1906   :  { %v5031_v46 = vmul.f32 %v5007_v54, %v8277_v31  ;;  %7696 = vrcp.f32 %v5050_v38  ;;  %v5082_v44 = vand.u32 2147483648, %v5051_v18  ;;  %vm5076_vm8 = vweird.f32 %v5051_v18 }
0x1907   :  { %7698 = vrcp.f32 %v5051_v18  ;;  %v5098_v35 = vor.u32 1.1754944e-38, %v5097_v25  ;;  %vm5096_vm3 = vcmp.eq.f32.partialorder %v5095_v55, 8.507059e+37  ;;  %v5080_v60 = vand.u32 2147483647, %v5051_v18 }
0x1909   :  { %vm5081_vm10 = vcmp.eq.f32.partialorder %v5080_v60, 8.507059e+37 }
0x190b   :  { %v7695_v41 = vpop.eup %7694 }
0x190c   :  { %v5087_v8 = vmul.f32 %v7695_v41, %v5052_v61  ;;  %v7697_v47 = vpop.eup %7696  ;;  %vm5092_vm15 = vweird.f32 %v7695_v41 }
0x190d   :  { %v5057_v43 = vmul.f32 %v7697_v47, %v5050_v38  ;;  %v7699_v28 = vpop.eup %7698  ;;  %vm5093_vm1 = vmor %vm5091_vm0, %vm5092_vm15  ;;  %vm5062_vm2 = vweird.f32 %v7697_v47  ;;  %v5083_v38 = vor.u32 1.1754944e-38, %v5082_v44 }
0x190e   :  { %v5088_v42 = vsub.f32 1.0, %v5087_v8  ;;  %v5072_v40 = vmul.f32 %v7699_v28, %v5051_v18  ;;  %vm5063_vm5 = vmor %vm5061_vm4, %vm5062_vm2  ;;  %vm5077_vm7 = vweird.f32 %v7699_v28 }
0x190f   :  { %v5058_v17 = vsub.f32 1.0, %v5057_v43  ;;  %vm5078_vm9 = vmor %vm5076_vm8, %vm5077_vm7  ;;  %v5013_v43 = vmul.f32 %v10533_v32, %v10533_v32 }
0x1910   :  { %v5089_v21 = vmul.f32 %v7695_v41, %v5088_v42  ;;  %v5073_v1 = vsub.f32 1.0, %v5072_v40 }
0x1911   :  { %v5059_v51 = vmul.f32 %v7697_v47, %v5058_v17 }
0x1912   :  { %v5090_v12 = vadd.f32 %v7695_v41, %v5089_v21  ;;  %v5074_v29 = vmul.f32 %v7699_v28, %v5073_v1  ;;  %v5012_v21 = vmul.f32 %v10535_v11, %v10535_v11 }
0x1913   :  { %v5060_v39 = vadd.f32 %v7697_v47, %v5059_v51 }
0x1914   :  { %v5094_v5 = vsel %vm5093_vm1, %v7695_v41, %v5090_v12  ;;  %v5075_v52 = vadd.f32 %v7699_v28, %v5074_v29  ;;  %v5011_v41 = vmul.f32 %v10537_v16, %v10537_v16  ;;  %v5018_v12 = vsub.f32 1.0, %v5012_v21 }
0x1915   :  { %v5099_v45 = vsel %vm5096_vm3, %v5098_v35, %v5094_v5  ;;  %v5064_v27 = vsel %vm5063_vm5, %v7697_v47, %v5060_v39 }
0x1916   :  { %5038 = vadd.xlane.f32.xlu1 %v5029_v36  ;;  %v5069_v24 = vsel %vm5066_vm6, %v5068_v57, %v5064_v27  ;;  %v5017_v8 = vsub.f32 1.0, %v5011_v41 }
0x1918   :  { %v10624_v47 = vmul.f32 %v5017_v8, %v10502_v53  ;;  %v10635_v53 = vmul.f32 %v5018_v12, %v10496_v59 }
0x191a   :  { %v5053_v18 = vmax.f32 %v10624_v47, 1e-07  ;;  %v5054_v5 = vmax.f32 %v10635_v53, 1e-07 }
0x191b   :  { %v10610_v49 = vpop.permute.xlu1 %5146 }
0x191c   :  { %7700 = vrcp.f32 %v5053_v18  ;;  %v5112_v11 = vand.u32 2147483648, %v5053_v18  ;;  %vm5106_vm12 = vweird.f32 %v5053_v18  ;;  %v5110_v1 = vand.u32 2147483647, %v5053_v18 }
0x191d   :  { %vm5121_vm3 = vweird.f32 %v5054_v5 }
0x191e   :  { %vm5111_vm14 = vcmp.eq.f32.partialorder %v5110_v1, 8.507059e+37  ;;  %v5158_v1 = vmul.f32 %v8260_v6, %v10610_v49 }
0x1922   :  { %v7701_v42 = vpop.eup %7700 }
0x1923   :  { %v5102_v17 = vmul.f32 %v7701_v42, %v5053_v18  ;;  %vm5107_vm11 = vweird.f32 %v7701_v42 }
0x1924   :  { %vm5108_vm13 = vmor %vm5106_vm12, %vm5107_vm11 }
0x1925   :  { %v5103_v40 = vsub.f32 1.0, %v5102_v17 }
0x1927   :  { %v5104_v25 = vmul.f32 %v7701_v42, %v5103_v40 }
0x1929   :  { %v5105_v32 = vadd.f32 %v7701_v42, %v5104_v25 }
0x192a   :  { %v5035_v61 = vpop.xlane.xlu0 %5034 }
0x192b   :  { %v5045_v26 = vsub.f32 0.0, %v5035_v61  ;;  %v5109_v35 = vsel %vm5108_vm13, %v7701_v42, %v5105_v32 }
0x192c   :  { %5042 = vadd.xlane.f32.xlu2 %v5031_v46 }
0x192e   :  { %5040 = vadd.xlane.f32.xlu0 %v5030_v33 }
0x192f   :  { %5156 = vrot.lane.b32.xlu1 %v5007_v54, %s7839_s3  ;;  %v5079_v54 = vsel %vm5078_vm9, %v7699_v28, %v5075_v52  ;;  %v5019_v28 = vsub.f32 1.0, %v5013_v43 }
0x1930   :  { %v5084_v46 = vsel %vm5081_vm10, %v5083_v38, %v5079_v54 }
0x1931   :  { %v10618_v33 = vmul.f32 %v5084_v46, %v5045_v26  ;;  %v10632_v16 = vmul.f32 %v5019_v28, %v10499_v62  ;;  %v5113_v62 = vor.u32 1.1754944e-38, %v5112_v11  ;;  %v5127_v26 = vand.u32 2147483648, %v5054_v5 }
0x1932   :  { %v5125_v46 = vand.u32 2147483647, %v5054_v5 }
0x1933   :  { %v5055_v51 = vmax.f32 %v10632_v16, 1e-07  ;;  %v5128_v21 = vor.u32 1.1754944e-38, %v5127_v26 }
0x1934   :  { %vm5126_vm6 = vcmp.eq.f32.partialorder %v5125_v46, 8.507059e+37 }
0x1935   :  { %7702 = vrcp.f32 %v5055_v51  ;;  %v5142_v61 = vand.u32 2147483648, %v5055_v51  ;;  %vm5136_vm0 = vweird.f32 %v5055_v51  ;;  %v5140_v60 = vand.u32 2147483647, %v5055_v51 }
0x1936   :  { %7704 = vrcp.f32 %v5054_v5 }
0x1937   :  { %v5143_v41 = vor.u32 1.1754944e-38, %v5142_v61  ;;  %vm5141_vm5 = vcmp.eq.f32.partialorder %v5140_v60, 8.507059e+37 }
0x193b   :  { %v7703_v39 = vpop.eup %7702 }
0x193c   :  { %v5132_v13 = vmul.f32 %v7703_v39, %v5055_v51  ;;  %vm5137_vm15 = vweird.f32 %v7703_v39 }
0x193d   :  { %vm5138_vm2 = vmor %vm5136_vm0, %vm5137_vm15 }
0x193e   :  { %v5133_v27 = vsub.f32 1.0, %v5132_v13 }
0x1941   :  { %v5037_v10 = vpop.xlane.xlu2 %5036 }
0x1942   :  { %v5046_v48 = vsub.f32 0.0, %v5037_v10 }
0x1944   :  { %v10612_v4 = vmul.f32 %v5099_v45, %v5046_v48  ;;  %v5114_v48 = vsel %vm5111_vm14, %v5113_v62, %v5109_v35  ;;  %v7705_v45 = vpop.eup %7704 }
0x1945   :  { %v5117_v29 = vmul.f32 %v7705_v45, %v5054_v5  ;;  %vm5122_vm1 = vweird.f32 %v7705_v45 }
0x1946   :  { %5176 = vperm.xlu2 %7403, %v10612_v4   ;;  %v5033_v36 = vpop.xlane.xlu1 %5032  ;;  %vm5123_vm4 = vmor %vm5121_vm3, %vm5122_vm1 }
0x1947   :  { %v5044_v34 = vsub.f32 0.0, %v5033_v36  ;;  %v5118_v57 = vsub.f32 1.0, %v5117_v29  ;;  %v5134_v36 = vmul.f32 %v7703_v39, %v5133_v27 }
0x1949   :  { %v10615_v9 = vmul.f32 %v5069_v24, %v5044_v34  ;;  %v5119_v24 = vmul.f32 %v7705_v45, %v5118_v57  ;;  %v5135_v44 = vadd.f32 %v7703_v39, %v5134_v36 }
0x194b   :  { %5166 = vperm.xlu0 %7404, %v10615_v9   ;;  %v5120_v54 = vadd.f32 %v7705_v45, %v5119_v24  ;;  %v5139_v38 = vsel %vm5138_vm2, %v7703_v39, %v5135_v44 }
0x194c   :  { %v5144_v43 = vsel %vm5141_vm5, %v5143_v41, %v5139_v38 }
0x194d   :  { %v5124_v42 = vsel %vm5123_vm4, %v7705_v45, %v5120_v54 }
0x194e   :  { %v5129_v40 = vsel %vm5126_vm6, %v5128_v21, %v5124_v42 }
0x1953   :  { %5171 = vperm.xlu0 %7404, %v10618_v33  }
0x195d   :  { %v10642_v34 = vpop.permute.xlu2 %5154 }
0x195e   :  { %v5151_v55 = vpop.permute.xlu1 %5150 }
0x195f   :  { %v5160_v51 = vmul.f32 %v8260_v6, %v5151_v55  ;;  %v5159_v55 = vmul.f32 %v8260_v6, %v10608_v23 }
0x1976   :  { %v5153_v52 = vpop.permute.xlu0 %5152 }
0x1989   :  { %v5039_v10 = vpop.xlane.xlu1 %5038 }
0x198a   :  { %v5047_v59 = vsub.f32 0.0, %v5039_v10 }
0x198c   :  { %v10639_v63 = vmul.f32 %v5114_v48, %v5047_v59 }
0x198e   :  { %5181 = vperm.xlu1 %7405, %v10639_v63  }
0x199f   :  { %v5043_v8 = vpop.xlane.xlu2 %5042 }
0x19a0   :  { %v5049_v18 = vsub.f32 0.0, %v5043_v8  ;;  %v5219_v8 = vmul.f32 %v10618_v33, %v10618_v33 }
0x19a1   :  { %v5041_v17 = vpop.xlane.xlu0 %5040  ;;  %v5157_v24 = vpop.permute.xlu1 %5156 }
0x19a2   :  { %v10644_v28 = vmul.f32 %v5144_v43, %v5049_v18  ;;  %v5048_v12 = vsub.f32 0.0, %v5041_v17  ;;  %v5163_v44 = vmul.f32 %v8260_v6, %v5157_v24  ;;  %v5225_v21 = vsub.f32 1.0, %v5219_v8 }
0x19a4   :  { %v10646_v25 = vmul.f32 %v5129_v40, %v5048_v12  ;;  %5191 = vperm.xlu2 %7403, %v10644_v28  }
0x19a6   :  { %5186 = vperm.xlu0 %7404, %v10646_v25  }
0x19a7   :  { %v5177_v5 = vpop.permute.xlu2 %5176 }
0x19a8   :  { %v5196_v32 = vmul.f32 %v5177_v5, %v5160_v51 }
0x19aa   :  { %v10652_v11 = vadd.f32 %v5196_v32, %v10559_v14 }
0x19bd   :  { %v5167_v35 = vpop.permute.xlu0 %5166 }
0x19be   :  { %v5194_v62 = vmul.f32 %v5167_v35, %v5158_v1  ;;  %v5206_v10 = vmul.f32 %v5167_v35, %v10553_v19  ;;  %v5218_v35 = vmul.f32 %v10615_v9, %v10615_v9 }
0x19c0   :  { %v5212_v59 = vadd.f32 %v5206_v10, %v5158_v1  ;;  %v10658_v39 = vadd.f32 %v5194_v62, %v10553_v19  ;;  %v5208_v19 = vmul.f32 %v5177_v5, %v10559_v14  ;;  %v5224_v62 = vsub.f32 1.0, %v5218_v35 }
0x19c1   :  { %v5220_v10 = vmul.f32 %v10612_v4, %v10612_v4 }
0x19c2   :  { %5356 = vrot.lane.b32.xlu0 %v5212_v59, %s7839_s3  ;;  %v5236_v57 = vmul.f32 %v5212_v59, %v8226_v56  ;;  %v5214_v36 = vadd.f32 %v5208_v19, %v5160_v51 }
0x19c4   :  { %v5238_v23 = vmul.f32 %v5214_v36, %v8233_v2 }
0x19c5   :  { %v5172_v48 = vpop.permute.xlu0 %5171 }
0x19c6   :  { %v5195_v45 = vmul.f32 %v5172_v48, %v5159_v55  ;;  %v5207_v13 = vmul.f32 %v5172_v48, %v10548_v22 }
0x19c8   :  { %v5213_v29 = vadd.f32 %v5207_v13, %v5159_v55  ;;  %v10665_v49 = vadd.f32 %v5195_v45, %v10548_v22  ;;  %v5161_v22 = vmul.f32 %v8260_v6, %v5153_v52  ;;  %v5162_v52 = vmul.f32 %v8260_v6, %v10642_v34 }
0x19c9   :  { %v5226_v13 = vsub.f32 1.0, %v5220_v10  ;;  %v5221_v10 = vmul.f32 %v10639_v63, %v10639_v63  ;;  %v5222_v63 = vmul.f32 %v10646_v25, %v10646_v25 }
0x19ca   :  { %5358 = vrot.lane.b32.xlu2 %v5213_v29, %s7839_s3  ;;  %v5237_v27 = vmul.f32 %v5213_v29, %v8228_v58 }
0x19cc   :  { %5244 = vadd.xlane.f32.xlu1 %v5237_v27 }
0x19ec   :  { %5242 = vadd.xlane.f32.xlu0 %v5236_v57  ;;  %v10709_v57 = vmul.f32 %v5226_v13, %v10591_v7 }
0x19f3   :  { %5246 = vadd.xlane.f32.xlu2 %v5238_v23  ;;  %v5262_v23 = vmax.f32 %v10709_v57, 1e-07 }
0x19f5   :  { %vm5301_vm0 = vweird.f32 %v5262_v23 }
0x19fe   :  { %v5192_v61 = vpop.permute.xlu2 %5191 }
0x19ff   :  { %v5199_v60 = vmul.f32 %v5192_v61, %v5163_v44  ;;  %v5211_v34 = vmul.f32 %v5192_v61, %v10568_v3 }
0x1a00   :  { %5360 = vrot.lane.b32.xlu0 %v5214_v36, %s7839_s3  ;;  %v5182_v54 = vpop.permute.xlu1 %5181 }
0x1a01   :  { %v5197_v26 = vmul.f32 %v5182_v54, %v5161_v22  ;;  %v10676_v14 = vadd.f32 %v5199_v60, %v10568_v3  ;;  %v5209_v46 = vmul.f32 %v5182_v54, %v10581_v0  ;;  %v5217_v5 = vadd.f32 %v5211_v34, %v5163_v44 }
0x1a02   :  { %v10704_v3 = vmul.f32 %v5224_v62, %v10598_v50 }
0x1a03   :  { %v10679_v38 = vadd.f32 %v5197_v26, %v10581_v0  ;;  %v5215_v41 = vadd.f32 %v5209_v46, %v5161_v22  ;;  %v10693_v0 = vmul.f32 %v5225_v21, %v10603_v15  ;;  %v5241_v1 = vmul.f32 %v5217_v5, %v8277_v31 }
0x1a04   :  { %v5260_v27 = vmax.f32 %v10704_v3, 1e-07 }
0x1a05   :  { %v5261_v40 = vmax.f32 %v10693_v0, 1e-07  ;;  %v5239_v33 = vmul.f32 %v5215_v41, %v8240_v20 }
0x1a06   :  { %vm5271_vm12 = vweird.f32 %v5260_v27  ;;  %v5275_v8 = vand.u32 2147483647, %v5260_v27 }
0x1a07   :  { %7706 = vrcp.f32 %v5261_v40  ;;  %v5292_v55 = vand.u32 2147483648, %v5261_v40  ;;  %vm5286_vm8 = vweird.f32 %v5261_v40  ;;  %v5290_v48 = vand.u32 2147483647, %v5261_v40 }
0x1a08   :  { %7708 = vrcp.f32 %v5260_v27  ;;  %vm5276_vm14 = vcmp.eq.f32.partialorder %v5275_v8, 8.507059e+37 }
0x1a09   :  { %v5293_v19 = vor.u32 1.1754944e-38, %v5292_v55  ;;  %vm5291_vm10 = vcmp.eq.f32.partialorder %v5290_v48, 8.507059e+37  ;;  %7710 = vrcp.f32 %v5262_v23  ;;  %v5223_v48 = vmul.f32 %v10644_v28, %v10644_v28 }
0x1a0b   :  { %5362 = vrot.lane.b32.xlu2 %v5215_v41, %s7839_s3  ;;  %v5277_v41 = vand.u32 2147483648, %v5260_v27  ;;  %v5229_v13 = vsub.f32 1.0, %v5223_v48 }
0x1a0d   :  { %v7707_v51 = vpop.eup %7706  ;;  %v5278_v21 = vor.u32 1.1754944e-38, %v5277_v41 }
0x1a0e   :  { %v5282_v32 = vmul.f32 %v7707_v51, %v5261_v40  ;;  %vm5287_vm7 = vweird.f32 %v7707_v51  ;;  %v7709_v24 = vpop.eup %7708 }
0x1a0f   :  { %vm5288_vm9 = vmor %vm5286_vm8, %vm5287_vm7  ;;  %v5267_v44 = vmul.f32 %v7709_v24, %v5260_v27  ;;  %v7711_v61 = vpop.eup %7710  ;;  %vm5272_vm11 = vweird.f32 %v7709_v24 }
0x1a10   :  { %v5297_v60 = vmul.f32 %v7711_v61, %v5262_v23  ;;  %vm5273_vm13 = vmor %vm5271_vm12, %vm5272_vm11  ;;  %vm5302_vm15 = vweird.f32 %v7711_v61 }
0x1a11   :  { %v5268_v22 = vsub.f32 1.0, %v5267_v44  ;;  %vm5303_vm1 = vmor %vm5301_vm0, %vm5302_vm15 }
0x1a12   :  { %v5298_v7 = vsub.f32 1.0, %v5297_v60 }
0x1a13   :  { %v5269_v54 = vmul.f32 %v7709_v24, %v5268_v22 }
0x1a15   :  { %v5270_v46 = vadd.f32 %v7709_v24, %v5269_v54 }
0x1a18   :  { %v5187_v18 = vpop.permute.xlu0 %5186 }
0x1a19   :  { %v5198_v42 = vmul.f32 %v5187_v18, %v5162_v52  ;;  %v5210_v43 = vmul.f32 %v5187_v18, %v10578_v37 }
0x1a1b   :  { %v5216_v17 = vadd.f32 %v5210_v43, %v5162_v52  ;;  %v10689_v12 = vadd.f32 %v5198_v42, %v10578_v37  ;;  %v5283_v37 = vsub.f32 1.0, %v5282_v32  ;;  %v5299_v52 = vmul.f32 %v7711_v61, %v5298_v7 }
0x1a1c   :  { %v5274_v42 = vsel %vm5273_vm13, %v7709_v24, %v5270_v46 }
0x1a1d   :  { %5364 = vrot.lane.b32.xlu1 %v5216_v17, %s7839_s3  ;;  %v5284_v15 = vmul.f32 %v7707_v51, %v5283_v37  ;;  %v5240_v36 = vmul.f32 %v5216_v17, %v8275_v30  ;;  %v5279_v40 = vsel %vm5276_vm14, %v5278_v21, %v5274_v42 }
0x1a1f   :  { %v5285_v59 = vadd.f32 %v7707_v51, %v5284_v15 }
0x1a21   :  { %v5289_v29 = vsel %vm5288_vm9, %v7707_v51, %v5285_v59  ;;  %v5307_v51 = vand.u32 2147483648, %v5262_v23  ;;  %v5227_v59 = vsub.f32 1.0, %v5221_v10 }
0x1a22   :  { %v5294_v4 = vsel %vm5291_vm10, %v5293_v19, %v5289_v29  ;;  %v10735_v29 = vmul.f32 %v5229_v13, %v10632_v16 }
0x1a23   :  { %v10729_v55 = vmul.f32 %v5227_v59, %v10624_v47 }
0x1a24   :  { %v10718_v18 = vpop.permute.xlu2 %5358  ;;  %v5265_v27 = vmax.f32 %v10735_v29, 1e-07 }
0x1a26   :  { %v5352_v21 = vand.u32 2147483648, %v5265_v27  ;;  %vm5346_vm8 = vweird.f32 %v5265_v27 }
0x1a2a   :  { %5248 = vadd.xlane.f32.xlu0 %v5239_v33  ;;  %v5300_v33 = vadd.f32 %v7711_v61, %v5299_v52 }
0x1a2c   :  { %v5304_v32 = vsel %vm5303_vm1, %v7711_v61, %v5300_v33 }
0x1a34   :  { %5252 = vadd.xlane.f32.xlu2 %v5241_v1  ;;  %v10716_v26 = vpop.permute.xlu0 %5356  ;;  %v5308_v1 = vor.u32 1.1754944e-38, %v5307_v51  ;;  %v5353_v51 = vor.u32 1.1754944e-38, %v5352_v21 }
0x1a3e   :  { %5366 = vrot.lane.b32.xlu0 %v5217_v5, %s7839_s3  ;;  %v5305_v5 = vand.u32 2147483647, %v5262_v23 }
0x1a3f   :  { %v5245_v45 = vpop.xlane.xlu1 %5244 }
0x1a40   :  { %v5255_v9 = vsub.f32 0.0, %v5245_v45  ;;  %vm5306_vm2 = vcmp.eq.f32.partialorder %v5305_v5, 8.507059e+37  ;;  %v5263_v45 = vmax.f32 %v10729_v55, 1e-07 }
0x1a41   :  { %v5309_v15 = vsel %vm5306_vm2, %v5308_v1, %v5304_v32 }
0x1a42   :  { %v10711_v50 = vmul.f32 %v5294_v4, %v5255_v9  ;;  %7712 = vrcp.f32 %v5263_v45  ;;  %v5322_v61 = vand.u32 2147483648, %v5263_v45  ;;  %vm5316_vm4 = vweird.f32 %v5263_v45 }
0x1a43   :  { %7714 = vrcp.f32 %v5265_v27  ;;  %v5320_v22 = vand.u32 2147483647, %v5263_v45 }
0x1a44   :  { %v5323_v7 = vor.u32 1.1754944e-38, %v5322_v61 }
0x1a45   :  { %vm5321_vm6 = vcmp.eq.f32.partialorder %v5320_v22, 8.507059e+37 }
0x1a46   :  { %5381 = vperm.xlu0 %7404, %v10711_v50  }
0x1a47   :  { %5250 = vadd.xlane.f32.xlu1 %v5240_v36  ;;  %v5228_v36 = vsub.f32 1.0, %v5222_v63 }
0x1a48   :  { %v7713_v9 = vpop.eup %7712 }
0x1a49   :  { %v5312_v19 = vmul.f32 %v7713_v9, %v5263_v45  ;;  %v7715_v4 = vpop.eup %7714  ;;  %v10743_v44 = vmul.f32 %v5228_v36, %v10635_v53  ;;  %vm5317_vm3 = vweird.f32 %v7713_v9 }
0x1a4a   :  { %v5342_v24 = vmul.f32 %v7715_v4, %v5265_v27  ;;  %vm5318_vm5 = vmor %vm5316_vm4, %vm5317_vm3  ;;  %vm5347_vm7 = vweird.f32 %v7715_v4 }
0x1a4b   :  { %v5313_v47 = vsub.f32 1.0, %v5312_v19  ;;  %v5264_v54 = vmax.f32 %v10743_v44, 1e-07  ;;  %vm5348_vm9 = vmor %vm5346_vm8, %vm5347_vm7 }
0x1a4c   :  { %v5343_v60 = vsub.f32 1.0, %v5342_v24 }
0x1a4d   :  { %v5314_v23 = vmul.f32 %v7713_v9, %v5313_v47  ;;  %7716 = vrcp.f32 %v5264_v54  ;;  %v5337_v13 = vand.u32 2147483648, %v5264_v54  ;;  %vm5331_vm12 = vweird.f32 %v5264_v54 }
0x1a4e   :  { %v5344_v8 = vmul.f32 %v7715_v4, %v5343_v60 }
0x1a4f   :  { %v5315_v16 = vadd.f32 %v7713_v9, %v5314_v23  ;;  %v5338_v36 = vor.u32 1.1754944e-38, %v5337_v13 }
0x1a51   :  { %v5319_v25 = vsel %vm5318_vm5, %v7713_v9, %v5315_v16  ;;  %v5369_v9 = vmul.f32 %v8260_v6, %v10718_v18 }
0x1a52   :  { %v5324_v42 = vsel %vm5321_vm6, %v5323_v7, %v5319_v25 }
0x1a5f   :  { %v5243_v43 = vpop.xlane.xlu0 %5242 }
0x1a60   :  { %v5254_v17 = vsub.f32 0.0, %v5243_v43  ;;  %v5345_v43 = vadd.f32 %v7715_v4, %v5344_v8 }
0x1a62   :  { %v10720_v34 = vmul.f32 %v5279_v40, %v5254_v17  ;;  %v5350_v17 = vand.u32 2147483647, %v5265_v27  ;;  %v7717_v40 = vpop.eup %7716  ;;  %v5349_v33 = vsel %vm5348_vm9, %v7715_v4, %v5345_v43  ;;  %v5335_v27 = vand.u32 2147483647, %v5264_v54 }
0x1a63   :  { %vm5332_vm11 = vweird.f32 %v7717_v40 }
0x1a64   :  { %5376 = vperm.xlu1 %7405, %v10720_v34   ;;  %vm5351_vm10 = vcmp.eq.f32.partialorder %v5350_v17, 8.507059e+37  ;;  %vm5333_vm13 = vmor %vm5331_vm12, %vm5332_vm11  ;;  %vm5336_vm14 = vcmp.eq.f32.partialorder %v5335_v27, 8.507059e+37 }
0x1a65   :  { %v5354_v1 = vsel %vm5351_vm10, %v5353_v51, %v5349_v33  ;;  %v5429_v51 = vmul.f32 %v10711_v50, %v10711_v50 }
0x1a66   :  { %v5247_v37 = vpop.xlane.xlu2 %5246 }
0x1a67   :  { %v5256_v35 = vsub.f32 0.0, %v5247_v37  ;;  %v5327_v37 = vmul.f32 %v7717_v40, %v5264_v54  ;;  %v5368_v54 = vmul.f32 %v8260_v6, %v10716_v26 }
0x1a69   :  { %v10723_v62 = vmul.f32 %v5309_v15, %v5256_v35  ;;  %v5328_v15 = vsub.f32 1.0, %v5327_v37 }
0x1a6b   :  { %v5329_v59 = vmul.f32 %v7717_v40, %v5328_v15  ;;  %v5435_v15 = vsub.f32 1.0, %v5429_v51 }
0x1a6c   :  { %5386 = vperm.xlu1 %7405, %v10723_v62  }
0x1a6d   :  { %v5330_v45 = vadd.f32 %v7717_v40, %v5329_v59  ;;  %v10797_v27 = vmul.f32 %v5435_v15, %v10693_v0  ;;  %v5430_v0 = vmul.f32 %v10723_v62, %v10723_v62 }
0x1a6e   :  { %v10746_v52 = vpop.permute.xlu2 %5362 }
0x1a6f   :  { %v5334_v4 = vsel %vm5333_vm13, %v7717_v40, %v5330_v45  ;;  %v5371_v33 = vmul.f32 %v8260_v6, %v10746_v52 }
0x1a70   :  { %v5339_v22 = vsel %vm5336_vm14, %v5338_v36, %v5334_v4 }
0x1a72   :  { %v10740_v28 = vpop.permute.xlu0 %5360 }
0x1a73   :  { %v5370_v8 = vmul.f32 %v8260_v6, %v10740_v28 }
0x1a8f   :  { %v5365_v48 = vpop.permute.xlu1 %5364 }
0x1a90   :  { %v5372_v37 = vmul.f32 %v8260_v6, %v5365_v48 }
0x1a9d   :  { %v5249_v46 = vpop.xlane.xlu0 %5248 }
0x1a9e   :  { %v5257_v41 = vsub.f32 0.0, %v5249_v46 }
0x1aa0   :  { %v10748_v53 = vmul.f32 %v5324_v42, %v5257_v41 }
0x1aa2   :  { %5391 = vperm.xlu0 %7404, %v10748_v53  }
0x1aa7   :  { %v5253_v5 = vpop.xlane.xlu2 %5252 }
0x1aa8   :  { %v5259_v32 = vsub.f32 0.0, %v5253_v5 }
0x1aaa   :  { %v10751_v35 = vmul.f32 %v5354_v1, %v5259_v32 }
0x1aac   :  { %5401 = vperm.xlu1 %7405, %v10751_v35  }
0x1ab0   :  { %v5367_v10 = vpop.permute.xlu0 %5366 }
0x1ab8   :  { %v5382_v19 = vpop.permute.xlu0 %5381 }
0x1ab9   :  { %v5405_v63 = vmul.f32 %v5382_v19, %v5369_v9  ;;  %v5417_v47 = vmul.f32 %v5382_v19, %v10665_v49 }
0x1aba   :  { %v5251_v23 = vpop.xlane.xlu1 %5250 }
0x1abb   :  { %v5423_v24 = vadd.f32 %v5417_v47, %v5369_v9  ;;  %v5258_v16 = vsub.f32 0.0, %v5251_v23  ;;  %v10758_v61 = vadd.f32 %v5405_v63, %v10665_v49  ;;  %v5471_v47 = vmax.f32 %v10797_v27, 1e-07 }
0x1abd   :  { %v10760_v60 = vmul.f32 %v5339_v22, %v5258_v16  ;;  %5568 = vrot.lane.b32.xlu1 %v5423_v24, %s7839_s3  ;;  %v5447_v18 = vmul.f32 %v5423_v24, %v8228_v58  ;;  %7718 = vrcp.f32 %v5471_v47  ;;  %v5436_v16 = vsub.f32 1.0, %v5430_v0 }
0x1abe   :  { %vm5496_vm0 = vweird.f32 %v5471_v47 }
0x1abf   :  { %5396 = vperm.xlu2 %7403, %v10760_v60  }
0x1ac3   :  { %v7719_v36 = vpop.eup %7718 }
0x1ac4   :  { %v5492_v23 = vmul.f32 %v7719_v36, %v5471_v47  ;;  %vm5497_vm15 = vweird.f32 %v7719_v36 }
0x1ac5   :  { %vm5498_vm1 = vmor %vm5496_vm0, %vm5497_vm15 }
0x1acc   :  { %5454 = vadd.xlane.f32.xlu0 %v5447_v18  ;;  %v10811_v18 = vmul.f32 %v5436_v16, %v10709_v57 }
0x1ad6   :  { %v5377_v25 = vpop.permute.xlu1 %5376 }
0x1ad7   :  { %v5404_v7 = vmul.f32 %v5377_v25, %v5368_v54  ;;  %v5416_v46 = vmul.f32 %v5377_v25, %v10658_v39  ;;  %v5502_v25 = vand.u32 2147483648, %v5471_v47 }
0x1ad9   :  { %v5422_v41 = vadd.f32 %v5416_v46, %v5368_v54  ;;  %v10769_v49 = vadd.f32 %v5404_v7, %v10658_v39  ;;  %v5500_v7 = vand.u32 2147483647, %v5471_v47 }
0x1adb   :  { %5566 = vrot.lane.b32.xlu2 %v5422_v41, %s7839_s3  ;;  %v5446_v39 = vmul.f32 %v5422_v41, %v8226_v56  ;;  %v5503_v41 = vor.u32 1.1754944e-38, %v5502_v25  ;;  %vm5501_vm2 = vcmp.eq.f32.partialorder %v5500_v7, 8.507059e+37 }
0x1ade   :  { %v5387_v42 = vpop.permute.xlu1 %5386 }
0x1adf   :  { %v5406_v43 = vmul.f32 %v5387_v42, %v5370_v8  ;;  %v5418_v21 = vmul.f32 %v5387_v42, %v10652_v11 }
0x1ae1   :  { %v5424_v17 = vadd.f32 %v5418_v21, %v5370_v8  ;;  %v10776_v26 = vadd.f32 %v5406_v43, %v10652_v11 }
0x1ae3   :  { %5570 = vrot.lane.b32.xlu0 %v5424_v17, %s7839_s3  ;;  %v5448_v40 = vmul.f32 %v5424_v17, %v8233_v2 }
0x1ae7   :  { %5456 = vadd.xlane.f32.xlu1 %v5448_v40  ;;  %v5428_v40 = vmul.f32 %v10720_v34, %v10720_v34 }
0x1b04   :  { %5452 = vadd.xlane.f32.xlu2 %v5446_v39 }
0x1b14   :  { %v5392_v28 = vpop.permute.xlu0 %5391 }
0x1b15   :  { %v5407_v5 = vmul.f32 %v5392_v28, %v5371_v33  ;;  %v5419_v32 = vmul.f32 %v5392_v28, %v10679_v38 }
0x1b17   :  { %v5425_v11 = vadd.f32 %v5419_v32, %v5371_v33  ;;  %v10787_v1 = vadd.f32 %v5407_v5, %v10679_v38  ;;  %v5373_v38 = vmul.f32 %v8260_v6, %v5367_v10  ;;  %v5493_v10 = vsub.f32 1.0, %v5492_v23 }
0x1b18   :  { %v5434_v33 = vsub.f32 1.0, %v5428_v40 }
0x1b19   :  { %v5397_v59 = vpop.permute.xlu2 %5396  ;;  %5572 = vrot.lane.b32.xlu1 %v5425_v11, %s7839_s3  ;;  %v5449_v45 = vmul.f32 %v5425_v11, %v8240_v20  ;;  %v5494_v22 = vmul.f32 %v7719_v36, %v5493_v10 }
0x1b1a   :  { %v5408_v52 = vmul.f32 %v5397_v59, %v5372_v37  ;;  %v5420_v13 = vmul.f32 %v5397_v59, %v10689_v12  ;;  %v10823_v5 = vmul.f32 %v5434_v33, %v10704_v3 }
0x1b1b   :  { %5458 = vadd.xlane.f32.xlu2 %v5449_v45  ;;  %v5495_v54 = vadd.f32 %v7719_v36, %v5494_v22 }
0x1b1c   :  { %v5426_v50 = vadd.f32 %v5420_v13, %v5372_v37  ;;  %v10794_v9 = vadd.f32 %v5408_v52, %v10689_v12  ;;  %v5470_v15 = vmax.f32 %v10823_v5, 1e-07 }
0x1b1d   :  { %v5499_v62 = vsel %vm5498_vm1, %v7719_v36, %v5495_v54 }
0x1b1e   :  { %v5402_v48 = vpop.permute.xlu1 %5401  ;;  %v5450_v19 = vmul.f32 %v5426_v50, %v8275_v30  ;;  %v5504_v42 = vsel %vm5501_vm2, %v5503_v41, %v5499_v62  ;;  %vm5481_vm8 = vweird.f32 %v5470_v15  ;;  %v5485_v22 = vand.u32 2147483647, %v5470_v15 }
0x1b1f   :  { %v5409_v63 = vmul.f32 %v5402_v48, %v5373_v38  ;;  %v5421_v12 = vmul.f32 %v5402_v48, %v10676_v14 }
0x1b20   :  { %5460 = vadd.xlane.f32.xlu0 %v5450_v19  ;;  %vm5486_vm10 = vcmp.eq.f32.partialorder %v5485_v22, 8.507059e+37 }
0x1b21   :  { %v10803_v4 = vadd.f32 %v5409_v63, %v10676_v14  ;;  %v5427_v24 = vadd.f32 %v5421_v12, %v5373_v38  ;;  %v5472_v14 = vmax.f32 %v10811_v18, 1e-07  ;;  %v5431_v38 = vmul.f32 %v10748_v53, %v10748_v53 }
0x1b22   :  { %v5432_v63 = vmul.f32 %v10760_v60, %v10760_v60  ;;  %v5487_v53 = vand.u32 2147483648, %v5470_v15 }
0x1b23   :  { %7720 = vrcp.f32 %v5472_v14  ;;  %v5451_v43 = vmul.f32 %v5427_v24, %v8277_v31  ;;  %v5517_v11 = vand.u32 2147483648, %v5472_v14  ;;  %vm5511_vm4 = vweird.f32 %v5472_v14 }
0x1b24   :  { %v5515_v37 = vand.u32 2147483647, %v5472_v14  ;;  %7722 = vrcp.f32 %v5470_v15  ;;  %v5437_v19 = vsub.f32 1.0, %v5431_v38  ;;  %v5438_v12 = vsub.f32 1.0, %v5432_v63 }
0x1b25   :  { %v5518_v45 = vor.u32 1.1754944e-38, %v5517_v11  ;;  %v5488_v54 = vor.u32 1.1754944e-38, %v5487_v53 }
0x1b26   :  { %vm5516_vm6 = vcmp.eq.f32.partialorder %v5515_v37, 8.507059e+37  ;;  %v10834_v36 = vmul.f32 %v5437_v19, %v10729_v55  ;;  %v10840_v10 = vmul.f32 %v5438_v12, %v10743_v44 }
0x1b28   :  { %v5474_v60 = vmax.f32 %v10840_v10, 1e-07 }
0x1b29   :  { %v7721_v57 = vpop.eup %7720 }
0x1b2a   :  { %v5507_v17 = vmul.f32 %v7721_v57, %v5472_v14  ;;  %vm5512_vm3 = vweird.f32 %v7721_v57  ;;  %v7723_v3 = vpop.eup %7722  ;;  %vm5541_vm0 = vweird.f32 %v5474_v60 }
0x1b2b   :  { %vm5513_vm5 = vmor %vm5511_vm4, %vm5512_vm3  ;;  %v5477_v48 = vmul.f32 %v7723_v3, %v5470_v15  ;;  %vm5482_vm7 = vweird.f32 %v7723_v3 }
0x1b2c   :  { %v5508_v39 = vsub.f32 1.0, %v5507_v17  ;;  %vm5483_vm9 = vmor %vm5481_vm8, %vm5482_vm7 }
0x1b2d   :  { %v5478_v47 = vsub.f32 1.0, %v5477_v48 }
0x1b2e   :  { %v5509_v28 = vmul.f32 %v7721_v57, %v5508_v39 }
0x1b2f   :  { %v10820_v51 = vpop.permute.xlu1 %5568  ;;  %v5479_v23 = vmul.f32 %v7723_v3, %v5478_v47 }
0x1b30   :  { %v5510_v32 = vadd.f32 %v7721_v57, %v5509_v28  ;;  %v5579_v53 = vmul.f32 %v8260_v6, %v10820_v51 }
0x1b31   :  { %v5480_v16 = vadd.f32 %v7723_v3, %v5479_v23 }
0x1b32   :  { %v5514_v59 = vsel %vm5513_vm5, %v7721_v57, %v5510_v32  ;;  %v5433_v32 = vmul.f32 %v10751_v35, %v10751_v35 }
0x1b33   :  { %5574 = vrot.lane.b32.xlu2 %v5426_v50, %s7839_s3  ;;  %v5519_v13 = vsel %vm5516_vm6, %v5518_v45, %v5514_v59  ;;  %v5484_v55 = vsel %vm5483_vm9, %v7723_v3, %v5480_v16  ;;  %v5545_v3 = vand.u32 2147483647, %v5474_v60 }
0x1b34   :  { %5576 = vrot.lane.b32.xlu0 %v5427_v24, %s7839_s3  ;;  %v5473_v24 = vmax.f32 %v10834_v36, 1e-07  ;;  %v5489_v7 = vsel %vm5486_vm10, %v5488_v54, %v5484_v55 }
0x1b35   :  { %v10836_v0 = vpop.permute.xlu2 %5566  ;;  %vm5546_vm2 = vcmp.eq.f32.partialorder %v5545_v3, 8.507059e+37 }
0x1b36   :  { %7724 = vrcp.f32 %v5473_v24  ;;  %v5532_v40 = vand.u32 2147483648, %v5473_v24  ;;  %vm5526_vm12 = vweird.f32 %v5473_v24  ;;  %v5530_v28 = vand.u32 2147483647, %v5473_v24 }
0x1b37   :  { %7726 = vrcp.f32 %v5474_v60 }
0x1b38   :  { %v5533_v37 = vor.u32 1.1754944e-38, %v5532_v40  ;;  %vm5531_vm15 = vcmp.eq.f32.partialorder %v5530_v28, 8.507059e+37 }
0x1b3c   :  { %v7725_v62 = vpop.eup %7724 }
0x1b3d   :  { %v5522_v44 = vmul.f32 %v7725_v62, %v5473_v24  ;;  %v7727_v41 = vpop.eup %7726  ;;  %vm5527_vm11 = vweird.f32 %v7725_v62 }
0x1b3e   :  { %vm5528_vm13 = vmor %vm5526_vm12, %vm5527_vm11  ;;  %vm5542_vm14 = vweird.f32 %v7727_v41 }
0x1b3f   :  { %v5455_v46 = vpop.xlane.xlu0 %5454  ;;  %vm5543_vm1 = vmor %vm5541_vm0, %vm5542_vm14 }
0x1b40   :  { %v5465_v8 = vsub.f32 0.0, %v5455_v46 }
0x1b42   :  { %v10815_v21 = vmul.f32 %v5504_v42, %v5465_v8  ;;  %v5523_v8 = vsub.f32 1.0, %v5522_v44  ;;  %v5537_v42 = vmul.f32 %v7727_v41, %v5474_v60 }
0x1b43   :  { %5462 = vadd.xlane.f32.xlu1 %v5451_v43 }
0x1b44   :  { %5591 = vperm.xlu2 %7403, %v10815_v21   ;;  %v5524_v43 = vmul.f32 %v7725_v62, %v5523_v8  ;;  %v5538_v57 = vsub.f32 1.0, %v5537_v42 }
0x1b46   :  { %v5525_v17 = vadd.f32 %v7725_v62, %v5524_v43  ;;  %v5539_v39 = vmul.f32 %v7727_v41, %v5538_v57 }
0x1b48   :  { %v5529_v11 = vsel %vm5528_vm13, %v7725_v62, %v5525_v17  ;;  %v5540_v59 = vadd.f32 %v7727_v41, %v5539_v39 }
0x1b4a   :  { %v5544_v48 = vsel %vm5543_vm1, %v7727_v41, %v5540_v59 }
0x1b55   :  { %v5571_v33 = vpop.permute.xlu0 %5570 }
0x1b56   :  { %v5580_v40 = vmul.f32 %v8260_v6, %v5571_v33 }
0x1b5a   :  { %v5457_v52 = vpop.xlane.xlu1 %5456 }
0x1b5b   :  { %v5466_v34 = vsub.f32 0.0, %v5457_v52  ;;  %v5547_v52 = vand.u32 2147483648, %v5474_v60 }
0x1b5d   :  { %v10826_v50 = vmul.f32 %v5519_v13, %v5466_v34  ;;  %v5439_v34 = vsub.f32 1.0, %v5433_v32  ;;  %v5534_v13 = vsel %vm5531_vm15, %v5533_v37, %v5529_v11  ;;  %v5548_v19 = vor.u32 1.1754944e-38, %v5547_v52 }
0x1b5e   :  { %v5578_v52 = vmul.f32 %v8260_v6, %v10836_v0 }
0x1b5f   :  { %5596 = vperm.xlu2 %7403, %v10826_v50   ;;  %v10852_v35 = vmul.f32 %v5439_v34, %v10735_v29  ;;  %v5549_v12 = vsel %vm5546_vm2, %v5548_v19, %v5544_v48 }
0x1b61   :  { %v5475_v16 = vmax.f32 %v10852_v35, 1e-07 }
0x1b63   :  { %7728 = vrcp.f32 %v5475_v16  ;;  %v5562_v8 = vand.u32 2147483648, %v5475_v16  ;;  %vm5556_vm4 = vweird.f32 %v5475_v16  ;;  %v5560_v42 = vand.u32 2147483647, %v5475_v16 }
0x1b65   :  { %v5563_v43 = vor.u32 1.1754944e-38, %v5562_v8  ;;  %vm5561_vm6 = vcmp.eq.f32.partialorder %v5560_v42, 8.507059e+37 }
0x1b77   :  { %v5453_v25 = vpop.xlane.xlu2 %5452 }
0x1b78   :  { %v5464_v14 = vsub.f32 0.0, %v5453_v25  ;;  %v7729_v25 = vpop.eup %7728 }
0x1b79   :  { %vm5557_vm3 = vweird.f32 %v7729_v25 }
0x1b7a   :  { %v10843_v46 = vmul.f32 %v5489_v7, %v5464_v14  ;;  %v5552_v14 = vmul.f32 %v7729_v25, %v5475_v16  ;;  %vm5558_vm5 = vmor %vm5556_vm4, %vm5557_vm3 }
0x1b7c   :  { %5586 = vperm.xlu0 %7404, %v10843_v46   ;;  %v5553_v7 = vsub.f32 1.0, %v5552_v14 }
0x1b7e   :  { %v5554_v62 = vmul.f32 %v7729_v25, %v5553_v7 }
0x1b80   :  { %v5555_v41 = vadd.f32 %v7729_v25, %v5554_v62 }
0x1b82   :  { %v5559_v51 = vsel %vm5558_vm5, %v7729_v25, %v5555_v41 }
0x1b8b   :  { %v5573_v44 = vpop.permute.xlu1 %5572 }
0x1b8e   :  { %v5459_v15 = vpop.xlane.xlu2 %5458 }
0x1b8f   :  { %v5467_v45 = vsub.f32 0.0, %v5459_v15 }
0x1b91   :  { %v10848_v38 = vmul.f32 %v5534_v13, %v5467_v45 }
0x1b93   :  { %v5461_v63 = vpop.xlane.xlu0 %5460  ;;  %5601 = vperm.xlu0 %7404, %v10848_v38  }
0x1b94   :  { %v5468_v47 = vsub.f32 0.0, %v5461_v63 }
0x1b96   :  { %v10854_v23 = vmul.f32 %v5549_v12, %v5468_v47  ;;  %v5575_v24 = vpop.permute.xlu2 %5574 }
0x1b97   :  { %v5582_v0 = vmul.f32 %v8260_v6, %v5575_v24 }
0x1b98   :  { %5606 = vperm.xlu1 %7405, %v10854_v23  }
0x1b9e   :  { %v5592_v22 = vpop.permute.xlu2 %5591 }
0x1b9f   :  { %v5615_v60 = vmul.f32 %v5592_v22, %v5579_v53  ;;  %v5627_v55 = vmul.f32 %v5592_v22, %v10758_v61 }
0x1ba1   :  { %v5633_v29 = vadd.f32 %v5627_v55, %v5579_v53  ;;  %v10862_v54 = vadd.f32 %v5615_v60, %v10758_v61  ;;  %v5564_v61 = vsel %vm5561_vm6, %v5563_v43, %v5559_v51 }
0x1ba3   :  { %v5657_v11 = vmul.f32 %v5633_v29, %v8228_v58 }
0x1ba6   :  { %v5577_v59 = vpop.permute.xlu0 %5576 }
0x1ba7   :  { %v5583_v25 = vmul.f32 %v8260_v6, %v5577_v59 }
0x1bb6   :  { %v5463_v57 = vpop.xlane.xlu1 %5462 }
0x1bb7   :  { %v5469_v17 = vsub.f32 0.0, %v5463_v57 }
0x1bb9   :  { %v10865_v39 = vmul.f32 %v5564_v61, %v5469_v17  ;;  %v5597_v28 = vpop.permute.xlu2 %5596 }
0x1bba   :  { %v5616_v32 = vmul.f32 %v5597_v28, %v5580_v40  ;;  %v5628_v15 = vmul.f32 %v5597_v28, %v10776_v26 }
0x1bbb   :  { %5611 = vperm.xlu2 %7403, %v10865_v39  }
0x1bbc   :  { %v10870_v37 = vadd.f32 %v5616_v32, %v10776_v26  ;;  %v5634_v45 = vadd.f32 %v5628_v15, %v5580_v40  ;;  %v5581_v26 = vmul.f32 %v8260_v6, %v5573_v44 }
0x1bbd   :  { %5664 = vadd.xlane.f32.xlu0 %v5657_v11 }
0x1bbe   :  { %v5658_v33 = vmul.f32 %v5634_v45, %v8233_v2 }
0x1bc3   :  { %5778 = vrot.lane.b32.xlu2 %v5633_v29, %s7839_s3 }
0x1bec   :  { %5666 = vadd.xlane.f32.xlu2 %v5658_v33 }
0x1bee   :  { %v5587_v34 = vpop.permute.xlu0 %5586 }
0x1bef   :  { %v5614_v13 = vmul.f32 %v5587_v34, %v5578_v52  ;;  %v5626_v3 = vmul.f32 %v5587_v34, %v10769_v49  ;;  %v5638_v34 = vmul.f32 %v10843_v46, %v10843_v46  ;;  %v5642_v46 = vmul.f32 %v10854_v23, %v10854_v23 }
0x1bf1   :  { %v5632_v48 = vadd.f32 %v5626_v3, %v5578_v52  ;;  %v10879_v19 = vadd.f32 %v5614_v13, %v10769_v49  ;;  %v5644_v13 = vsub.f32 1.0, %v5638_v34  ;;  %v5639_v3 = vmul.f32 %v10815_v21, %v10815_v21 }
0x1bf3   :  { %5776 = vrot.lane.b32.xlu1 %v5632_v48, %s7839_s3  ;;  %v5656_v24 = vmul.f32 %v5632_v48, %v8226_v56  ;;  %v10920_v48 = vmul.f32 %v5644_v13, %v10823_v5  ;;  %v5643_v5 = vmul.f32 %v10865_v39, %v10865_v39 }
0x1c05   :  { %v5602_v63 = vpop.permute.xlu0 %5601 }
0x1c06   :  { %v5617_v47 = vmul.f32 %v5602_v63, %v5581_v26  ;;  %v5629_v12 = vmul.f32 %v5602_v63, %v10787_v1  ;;  %v5680_v63 = vmax.f32 %v10920_v48, 1e-07 }
0x1c08   :  { %v5635_v16 = vadd.f32 %v5629_v12, %v5581_v26  ;;  %v10885_v53 = vadd.f32 %v5617_v47, %v10787_v1  ;;  %v5645_v26 = vsub.f32 1.0, %v5639_v3  ;;  %vm5691_vm12 = vweird.f32 %v5680_v63 }
0x1c0a   :  { %5782 = vrot.lane.b32.xlu0 %v5635_v16, %s7839_s3  ;;  %v5607_v22 = vpop.permute.xlu1 %5606  ;;  %v5659_v15 = vmul.f32 %v5635_v16, %v8240_v20  ;;  %v10924_v47 = vmul.f32 %v5645_v26, %v10797_v27 }
0x1c0b   :  { %v5618_v60 = vmul.f32 %v5607_v22, %v5582_v0  ;;  %v5630_v49 = vmul.f32 %v5607_v22, %v10794_v9 }
0x1c0c   :  { %v5681_v12 = vmax.f32 %v10924_v47, 1e-07 }
0x1c0d   :  { %v5636_v55 = vadd.f32 %v5630_v49, %v5582_v0  ;;  %v10891_v29 = vadd.f32 %v5618_v60, %v10794_v9  ;;  %v5640_v9 = vmul.f32 %v10826_v50, %v10826_v50  ;;  %v5648_v0 = vsub.f32 1.0, %v5642_v46 }
0x1c0e   :  { %v5649_v49 = vsub.f32 1.0, %v5643_v5  ;;  %vm5706_vm0 = vweird.f32 %v5681_v12 }
0x1c0f   :  { %5784 = vrot.lane.b32.xlu2 %v5636_v55, %s7839_s3  ;;  %v5660_v41 = vmul.f32 %v5636_v55, %v8275_v30  ;;  %v5646_v42 = vsub.f32 1.0, %v5640_v9  ;;  %v10933_v27 = vmul.f32 %v5648_v0, %v10840_v10  ;;  %v5695_v10 = vand.u32 2147483647, %v5680_v63 }
0x1c10   :  { %v10939_v23 = vmul.f32 %v5649_v49, %v10852_v35 }
0x1c11   :  { %v10906_v51 = vmul.f32 %v5646_v42, %v10811_v18  ;;  %vm5696_vm14 = vcmp.eq.f32.partialorder %v5695_v10, 8.507059e+37 }
0x1c12   :  { %v5685_v39 = vmax.f32 %v10939_v23, 1e-07 }
0x1c13   :  { %v5682_v43 = vmax.f32 %v10906_v51, 1e-07 }
0x1c15   :  { %v5612_v14 = vpop.permute.xlu2 %5611  ;;  %7730 = vrcp.f32 %v5682_v43  ;;  %v5727_v50 = vand.u32 2147483648, %v5682_v43  ;;  %vm5721_vm8 = vweird.f32 %v5682_v43  ;;  %v5725_v32 = vand.u32 2147483647, %v5682_v43 }
0x1c16   :  { %v5619_v7 = vmul.f32 %v5612_v14, %v5583_v25  ;;  %v5631_v62 = vmul.f32 %v5612_v14, %v10803_v4  ;;  %7732 = vrcp.f32 %v5680_v63 }
0x1c17   :  { %v5728_v18 = vor.u32 1.1754944e-38, %v5727_v50  ;;  %vm5726_vm10 = vcmp.eq.f32.partialorder %v5725_v32, 8.507059e+37  ;;  %7734 = vrcp.f32 %v5681_v12  ;;  %v5710_v50 = vand.u32 2147483647, %v5681_v12 }
0x1c18   :  { %v10896_v1 = vadd.f32 %v5619_v7, %v10803_v4  ;;  %v5637_v44 = vadd.f32 %v5631_v62, %v5583_v25  ;;  %v5684_v7 = vmax.f32 %v10933_v27, 1e-07 }
0x1c19   :  { %vm5711_vm2 = vcmp.eq.f32.partialorder %v5710_v50, 8.507059e+37 }
0x1c1a   :  { %v5661_v8 = vmul.f32 %v5637_v44, %v8277_v31  ;;  %7736 = vrcp.f32 %v5684_v7  ;;  %vm5751_vm4 = vweird.f32 %v5684_v7  ;;  %v5755_v0 = vand.u32 2147483647, %v5684_v7 }
0x1c1b   :  { %v7731_v4 = vpop.eup %7730  ;;  %7738 = vrcp.f32 %v5685_v39 }
0x1c1c   :  { %v5717_v57 = vmul.f32 %v7731_v4, %v5682_v43  ;;  %vm5722_vm7 = vweird.f32 %v7731_v4  ;;  %v7733_v16 = vpop.eup %7732 }
0x1c1d   :  { %5662 = vadd.xlane.f32.xlu1 %v5656_v24  ;;  %v10909_v61 = vpop.permute.xlu2 %5778  ;;  %vm5723_vm9 = vmor %vm5721_vm8, %vm5722_vm7  ;;  %v5687_v21 = vmul.f32 %v7733_v16, %v5680_v63  ;;  %v7735_v60 = vpop.eup %7734  ;;  %vm5692_vm11 = vweird.f32 %v7733_v16  ;;  %vm5756_vm7 = vcmp.eq.f32.partialorder %v5755_v0, 8.507059e+37  ;;  %vm5766_vm8 = vweird.f32 %v5685_v39 }
0x1c1e   :  { %v5718_v17 = vsub.f32 1.0, %v5717_v57  ;;  %v5702_v55 = vmul.f32 %v7735_v60, %v5681_v12  ;;  %vm5693_vm13 = vmor %vm5691_vm12, %vm5692_vm11  ;;  %vm5707_vm15 = vweird.f32 %v7735_v60 }
0x1c1f   :  { %v5688_v22 = vsub.f32 1.0, %v5687_v21  ;;  %vm5708_vm1 = vmor %vm5706_vm0, %vm5707_vm15  ;;  %v5757_v21 = vand.u32 2147483648, %v5684_v7 }
0x1c20   :  { %v5719_v40 = vmul.f32 %v7731_v4, %v5718_v17  ;;  %v5703_v24 = vsub.f32 1.0, %v5702_v55  ;;  %v7737_v35 = vpop.eup %7736  ;;  %v5772_v55 = vand.u32 2147483648, %v5685_v39 }
0x1c21   :  { %v5689_v25 = vmul.f32 %v7733_v16, %v5688_v22  ;;  %v5747_v32 = vmul.f32 %v7737_v35, %v5684_v7  ;;  %vm5752_vm3 = vweird.f32 %v7737_v35 }
0x1c22   :  { %v5720_v28 = vadd.f32 %v7731_v4, %v5719_v40  ;;  %v5712_v40 = vand.u32 2147483648, %v5681_v12  ;;  %vm5753_vm5 = vmor %vm5751_vm4, %vm5752_vm3  ;;  %v5773_v7 = vor.u32 1.1754944e-38, %v5772_v55 }
0x1c23   :  { %v5690_v62 = vadd.f32 %v7733_v16, %v5689_v25 }
0x1c24   :  { %v5724_v11 = vsel %vm5723_vm9, %v7731_v4, %v5720_v28 }
0x1c25   :  { %v5729_v33 = vsel %vm5726_vm10, %v5728_v18, %v5724_v11  ;;  %v5694_v9 = vsel %vm5693_vm13, %v7733_v16, %v5690_v62  ;;  %v7739_v11 = vpop.eup %7738  ;;  %v5641_v62 = vmul.f32 %v10848_v38, %v10848_v38 }
0x1c26   :  { %v5762_v34 = vmul.f32 %v7739_v11, %v5685_v39  ;;  %vm5767_vm6 = vweird.f32 %v7739_v11 }
0x1c27   :  { %vm5768_vm9 = vmor %vm5766_vm8, %vm5767_vm6 }
0x1c28   :  { %v5763_v26 = vsub.f32 1.0, %v5762_v34 }
0x1c2a   :  { %v5764_v16 = vmul.f32 %v7739_v11, %v5763_v26 }
0x1c2c   :  { %v5765_v22 = vadd.f32 %v7739_v11, %v5764_v16 }
0x1c30   :  { %v5665_v28 = vpop.xlane.xlu0 %5664 }
0x1c31   :  { %v5675_v18 = vsub.f32 0.0, %v5665_v28 }
0x1c34   :  { %5670 = vadd.xlane.f32.xlu0 %v5660_v41  ;;  %v5704_v41 = vmul.f32 %v7735_v60, %v5703_v24  ;;  %v5770_v24 = vand.u32 2147483647, %v5685_v39 }
0x1c36   :  { %5780 = vrot.lane.b32.xlu1 %v5634_v45, %s7839_s3  ;;  %v5705_v57 = vadd.f32 %v7735_v60, %v5704_v41  ;;  %v5769_v41 = vsel %vm5768_vm9, %v7739_v11, %v5765_v22  ;;  %vm5771_vm10 = vcmp.eq.f32.partialorder %v5770_v24, 8.507059e+37 }
0x1c38   :  { %5672 = vadd.xlane.f32.xlu2 %v5661_v8 }
0x1c5f   :  { %v5667_v59 = vpop.xlane.xlu2 %5666 }
0x1c60   :  { %v5676_v45 = vsub.f32 0.0, %v5667_v59  ;;  %5668 = vadd.xlane.f32.xlu1 %v5659_v15  ;;  %v5709_v15 = vsel %vm5708_vm1, %v7735_v60, %v5705_v57  ;;  %v5713_v59 = vor.u32 1.1754944e-38, %v5712_v40  ;;  %v5758_v60 = vor.u32 1.1754944e-38, %v5757_v21 }
0x1c62   :  { %v10912_v52 = vmul.f32 %v5729_v33, %v5676_v45  ;;  %v5714_v45 = vsel %vm5711_vm2, %v5713_v59, %v5709_v15  ;;  %v5748_v33 = vsub.f32 1.0, %v5747_v32 }
0x1c63   :  { %v10945_v13 = vmul.f32 %v5714_v45, %v5675_v18 }
0x1c64   :  { %5806 = vperm.xlu2 %7403, %v10912_v52   ;;  %v5749_v3 = vmul.f32 %v7737_v35, %v5748_v33 }
0x1c65   :  { %v10935_v14 = vpop.permute.xlu1 %5776 }
0x1c66   :  { %v5750_v12 = vadd.f32 %v7737_v35, %v5749_v3 }
0x1c68   :  { %v5754_v5 = vsel %vm5753_vm5, %v7737_v35, %v5750_v12 }
0x1c69   :  { %v10950_v46 = vpop.permute.xlu2 %5784 }
0x1c79   :  { %5786 = vrot.lane.b32.xlu1 %v5637_v44, %s7839_s3  ;;  %v5697_v44 = vand.u32 2147483648, %v5680_v63 }
0x1c7b   :  { %v5698_v8 = vor.u32 1.1754944e-38, %v5697_v44  ;;  %v5759_v44 = vsel %vm5756_vm7, %v5758_v60, %v5754_v5 }
0x1c7c   :  { %v10948_v63 = vpop.permute.xlu0 %5782 }
0x1c7d   :  { %v5699_v4 = vsel %vm5696_vm14, %v5698_v8, %v5694_v9 }
0x1c90   :  { %v5663_v42 = vpop.xlane.xlu1 %5662 }
0x1c91   :  { %v5674_v43 = vsub.f32 0.0, %v5663_v42  ;;  %v5647_v42 = vsub.f32 1.0, %v5641_v62 }
0x1c93   :  { %v10942_v17 = vmul.f32 %v5699_v4, %v5674_v43  ;;  %v5774_v43 = vsel %vm5771_vm10, %v5773_v7, %v5769_v41  ;;  %v10961_v39 = vmul.f32 %v5647_v42, %v10834_v36 }
0x1c95   :  { %5796 = vperm.xlu0 %7404, %v10942_v17   ;;  %v5683_v38 = vmax.f32 %v10961_v39, 1e-07 }
0x1c97   :  { %7740 = vrcp.f32 %v5683_v38  ;;  %v5742_v33 = vand.u32 2147483648, %v5683_v38  ;;  %vm5736_vm12 = vweird.f32 %v5683_v38  ;;  %v5740_v34 = vand.u32 2147483647, %v5683_v38 }
0x1c99   :  { %v5743_v26 = vor.u32 1.1754944e-38, %v5742_v33  ;;  %vm5741_vm14 = vcmp.eq.f32.partialorder %v5740_v34, 8.507059e+37 }
0x1c9d   :  { %5801 = vperm.xlu0 %7404, %v10945_v13   ;;  %v7741_v28 = vpop.eup %7740 }
0x1c9e   :  { %v5732_v18 = vmul.f32 %v7741_v28, %v5683_v38  ;;  %vm5737_vm11 = vweird.f32 %v7741_v28  ;;  %v5792_v38 = vmul.f32 %v8260_v6, %v10950_v46 }
0x1c9f   :  { %vm5738_vm13 = vmor %vm5736_vm12, %vm5737_vm11 }
0x1ca0   :  { %v5733_v59 = vsub.f32 1.0, %v5732_v18 }
0x1ca2   :  { %v5734_v45 = vmul.f32 %v7741_v28, %v5733_v59 }
0x1ca4   :  { %v5735_v36 = vadd.f32 %v7741_v28, %v5734_v45 }
0x1ca6   :  { %v5739_v3 = vsel %vm5738_vm13, %v7741_v28, %v5735_v36  ;;  %v5791_v28 = vmul.f32 %v8260_v6, %v10948_v63  ;;  %v5849_v63 = vmul.f32 %v10945_v13, %v10945_v13  ;;  %v5848_v13 = vmul.f32 %v10942_v17, %v10942_v17 }
0x1ca7   :  { %v5671_v49 = vpop.xlane.xlu0 %5670  ;;  %v5744_v21 = vsel %vm5741_vm14, %v5743_v26, %v5739_v3 }
0x1ca8   :  { %v5678_v25 = vsub.f32 0.0, %v5671_v49  ;;  %v5781_v35 = vpop.permute.xlu1 %5780  ;;  %v5855_v34 = vsub.f32 1.0, %v5849_v63 }
0x1ca9   :  { %v5790_v57 = vmul.f32 %v8260_v6, %v5781_v35 }
0x1caa   :  { %v10954_v10 = vmul.f32 %v5759_v44, %v5678_v25 }
0x1cab   :  { %v5673_v9 = vpop.xlane.xlu2 %5672 }
0x1cac   :  { %v5679_v8 = vsub.f32 0.0, %v5673_v9  ;;  %5816 = vperm.xlu0 %7404, %v10954_v10  }
0x1cae   :  { %v10957_v4 = vmul.f32 %v5774_v43, %v5679_v8 }
0x1cb0   :  { %5821 = vperm.xlu2 %7403, %v10957_v4  }
0x1cbe   :  { %v5807_v40 = vpop.permute.xlu2 %5806 }
0x1cbf   :  { %v5826_v50 = vmul.f32 %v5807_v40, %v5790_v57  ;;  %v5838_v32 = vmul.f32 %v5807_v40, %v10870_v37 }
0x1cc1   :  { %v5844_v11 = vadd.f32 %v5838_v32, %v5790_v57  ;;  %v10967_v15 = vadd.f32 %v5826_v50, %v10870_v37  ;;  %v5788_v37 = vmul.f32 %v8260_v6, %v10935_v14  ;;  %v5789_v14 = vmul.f32 %v8260_v6, %v10909_v61 }
0x1cd3   :  { %v5669_v12 = vpop.xlane.xlu1 %5668 }
0x1cd4   :  { %v5677_v16 = vsub.f32 0.0, %v5669_v12 }
0x1cd6   :  { %v10969_v0 = vmul.f32 %v5744_v21, %v5677_v16 }
0x1cd8   :  { %5811 = vperm.xlu1 %7405, %v10969_v0  }
0x1ceb   :  { %v5787_v5 = vpop.permute.xlu1 %5786 }
0x1cec   :  { %v5793_v55 = vmul.f32 %v8260_v6, %v5787_v5 }
0x1d07   :  { %v5797_v22 = vpop.permute.xlu0 %5796 }
0x1d08   :  { %v5824_v60 = vmul.f32 %v5797_v22, %v5788_v37  ;;  %v5836_v49 = vmul.f32 %v5797_v22, %v10879_v19 }
0x1d0a   :  { %v5842_v25 = vadd.f32 %v5836_v49, %v5788_v37  ;;  %v5822_v24 = vpop.permute.xlu2 %5821  ;;  %v10977_v62 = vadd.f32 %v5824_v60, %v10879_v19 }
0x1d0b   :  { %v5829_v44 = vmul.f32 %v5822_v24, %v5793_v55  ;;  %v5841_v3 = vmul.f32 %v5822_v24, %v10896_v1 }
0x1d0c   :  { %5986 = vrot.lane.b32.xlu0 %v5842_v25, %s7839_s3  ;;  %v5866_v40 = vmul.f32 %v5842_v25, %v8226_v56 }
0x1d0d   :  { %v10981_v41 = vadd.f32 %v5829_v44, %v10896_v1  ;;  %v5847_v26 = vadd.f32 %v5841_v3, %v5793_v55  ;;  %v5850_v1 = vmul.f32 %v10912_v52, %v10912_v52 }
0x1d0f   :  { %v5802_v7 = vpop.permute.xlu0 %5801  ;;  %v5871_v21 = vmul.f32 %v5847_v26, %v8277_v31 }
0x1d10   :  { %v5825_v9 = vmul.f32 %v5802_v7, %v5789_v14  ;;  %v5837_v8 = vmul.f32 %v5802_v7, %v10862_v54 }
0x1d12   :  { %v5843_v42 = vadd.f32 %v5837_v8, %v5789_v14  ;;  %v10987_v43 = vadd.f32 %v5825_v9, %v10862_v54  ;;  %v5868_v54 = vmul.f32 %v5844_v11, %v8233_v2  ;;  %v5856_v14 = vsub.f32 1.0, %v5850_v1 }
0x1d14   :  { %5988 = vrot.lane.b32.xlu2 %v5843_v42, %s7839_s3  ;;  %v5867_v19 = vmul.f32 %v5843_v42, %v8228_v58  ;;  %v11030_v42 = vmul.f32 %v5856_v14, %v10906_v51  ;;  %v5852_v51 = vmul.f32 %v10954_v10, %v10954_v10 }
0x1d16   :  { %5874 = vadd.xlane.f32.xlu1 %v5867_v19  ;;  %v5892_v52 = vmax.f32 %v11030_v42, 1e-07 }
0x1d18   :  { %vm5931_vm8 = vweird.f32 %v5892_v52 }
0x1d1e   :  { %v5817_v35 = vpop.permute.xlu0 %5816 }
0x1d1f   :  { %v5828_v57 = vmul.f32 %v5817_v35, %v5792_v38  ;;  %v5840_v45 = vmul.f32 %v5817_v35, %v10891_v29 }
0x1d21   :  { %v10994_v61 = vadd.f32 %v5828_v57, %v10891_v29  ;;  %v5846_v33 = vadd.f32 %v5840_v45, %v5792_v38  ;;  %v5851_v38 = vmul.f32 %v10969_v0, %v10969_v0 }
0x1d2f   :  { %5990 = vrot.lane.b32.xlu1 %v5844_v11, %s7839_s3  ;;  %v5870_v11 = vmul.f32 %v5846_v33, %v8275_v30 }
0x1d36   :  { %5872 = vadd.xlane.f32.xlu0 %v5866_v40  ;;  %v5857_v40 = vsub.f32 1.0, %v5851_v38 }
0x1d3d   :  { %5876 = vadd.xlane.f32.xlu2 %v5868_v54 }
0x1d4a   :  { %v5812_v50 = vpop.permute.xlu1 %5811 }
0x1d4b   :  { %v5827_v32 = vmul.f32 %v5812_v50, %v5791_v28  ;;  %v5839_v46 = vmul.f32 %v5812_v50, %v10885_v53 }
0x1d4d   :  { %v5845_v18 = vadd.f32 %v5839_v46, %v5791_v28  ;;  %v11003_v59 = vadd.f32 %v5827_v32, %v10885_v53  ;;  %v11013_v53 = vmul.f32 %v5855_v34, %v10924_v47  ;;  %v5854_v47 = vsub.f32 1.0, %v5848_v13 }
0x1d4e   :  { %v11041_v32 = vmul.f32 %v5857_v40, %v10961_v39 }
0x1d4f   :  { %v5869_v36 = vmul.f32 %v5845_v18, %v8240_v20  ;;  %v5891_v29 = vmax.f32 %v11013_v53, 1e-07  ;;  %v11024_v55 = vmul.f32 %v5854_v47, %v10920_v48 }
0x1d50   :  { %v5893_v0 = vmax.f32 %v11041_v32, 1e-07 }
0x1d51   :  { %5878 = vadd.xlane.f32.xlu0 %v5869_v36  ;;  %7742 = vrcp.f32 %v5891_v29  ;;  %v5922_v60 = vand.u32 2147483648, %v5891_v29  ;;  %vm5916_vm0 = vweird.f32 %v5891_v29  ;;  %v5920_v49 = vand.u32 2147483647, %v5891_v29 }
0x1d52   :  { %v5890_v7 = vmax.f32 %v11024_v55, 1e-07  ;;  %v5858_v36 = vsub.f32 1.0, %v5852_v51  ;;  %vm5946_vm12 = vweird.f32 %v5893_v0  ;;  %v5853_v51 = vmul.f32 %v10957_v4, %v10957_v4 }
0x1d53   :  { %v5923_v24 = vor.u32 1.1754944e-38, %v5922_v60  ;;  %vm5921_vm2 = vcmp.eq.f32.partialorder %v5920_v49, 8.507059e+37 }
0x1d54   :  { %7744 = vrcp.f32 %v5890_v7  ;;  %v5907_v45 = vand.u32 2147483648, %v5890_v7  ;;  %vm5901_vm4 = vweird.f32 %v5890_v7  ;;  %v11047_v10 = vmul.f32 %v5858_v36, %v10933_v27 }
0x1d55   :  { %5992 = vrot.lane.b32.xlu2 %v5845_v18, %s7839_s3  ;;  %7746 = vrcp.f32 %v5892_v52 }
0x1d56   :  { %v5908_v3 = vor.u32 1.1754944e-38, %v5907_v45  ;;  %7748 = vrcp.f32 %v5893_v0  ;;  %v5894_v13 = vmax.f32 %v11047_v10, 1e-07 }
0x1d57   :  { %v7743_v12 = vpop.eup %7742 }
0x1d58   :  { %v5912_v16 = vmul.f32 %v7743_v12, %v5891_v29  ;;  %vm5917_vm15 = vweird.f32 %v7743_v12  ;;  %7750 = vrcp.f32 %v5894_v13  ;;  %v5967_v45 = vand.u32 2147483648, %v5894_v13 }
0x1d59   :  { %5880 = vadd.xlane.f32.xlu1 %v5870_v11  ;;  %vm5918_vm1 = vmor %vm5916_vm0, %vm5917_vm15  ;;  %vm5961_vm0 = vweird.f32 %v5894_v13  ;;  %v5965_v36 = vand.u32 2147483647, %v5894_v13 }
0x1d5a   :  { %v5913_v37 = vsub.f32 1.0, %v5912_v16  ;;  %v7745_v48 = vpop.eup %7744 }
0x1d5b   :  { %v5897_v19 = vmul.f32 %v7745_v48, %v5890_v7  ;;  %v7747_v35 = vpop.eup %7746  ;;  %vm5902_vm3 = vweird.f32 %v7745_v48 }
0x1d5c   :  { %v5914_v5 = vmul.f32 %v7743_v12, %v5913_v37  ;;  %v5927_v54 = vmul.f32 %v7747_v35, %v5892_v52  ;;  %vm5903_vm5 = vmor %vm5901_vm4, %vm5902_vm3  ;;  %vm5932_vm7 = vweird.f32 %v7747_v35  ;;  %v5935_v37 = vand.u32 2147483647, %v5892_v52  ;;  %v7749_v47 = vpop.eup %7748 }
0x1d5d   :  { %v5898_v57 = vsub.f32 1.0, %v5897_v19  ;;  %vm5933_vm9 = vmor %vm5931_vm8, %vm5932_vm7  ;;  %vm5947_vm11 = vweird.f32 %v7749_v47 }
0x1d5e   :  { %v5915_v22 = vadd.f32 %v7743_v12, %v5914_v5  ;;  %v5928_v46 = vsub.f32 1.0, %v5927_v54  ;;  %vm5936_vm10 = vcmp.eq.f32.partialorder %v5935_v37, 8.507059e+37  ;;  %vm5948_vm13 = vmor %vm5946_vm12, %vm5947_vm11 }
0x1d5f   :  { %v5899_v28 = vmul.f32 %v7745_v48, %v5898_v57 }
0x1d60   :  { %v5919_v25 = vsel %vm5918_vm1, %v7743_v12, %v5915_v22  ;;  %v5929_v11 = vmul.f32 %v7747_v35, %v5928_v46 }
0x1d61   :  { %v5924_v9 = vsel %vm5921_vm2, %v5923_v24, %v5919_v25  ;;  %v5900_v18 = vadd.f32 %v7745_v48, %v5899_v28  ;;  %v5942_v25 = vmul.f32 %v7749_v47, %v5893_v0  ;;  %vm5966_vm2 = vcmp.eq.f32.partialorder %v5965_v36, 8.507059e+37 }
0x1d62   :  { %v5930_v12 = vadd.f32 %v7747_v35, %v5929_v11  ;;  %v5968_v11 = vor.u32 1.1754944e-38, %v5967_v45 }
0x1d63   :  { %v5904_v34 = vsel %vm5903_vm5, %v7745_v48, %v5900_v18  ;;  %v5943_v24 = vsub.f32 1.0, %v5942_v25  ;;  %v5950_v48 = vand.u32 2147483647, %v5893_v0 }
0x1d64   :  { %v5934_v5 = vsel %vm5933_vm9, %v7747_v35, %v5930_v12 }
0x1d65   :  { %5994 = vrot.lane.b32.xlu0 %v5846_v33, %s7839_s3  ;;  %v5905_v33 = vand.u32 2147483647, %v5890_v7  ;;  %v5944_v14 = vmul.f32 %v7749_v47, %v5943_v24  ;;  %vm5951_vm14 = vcmp.eq.f32.partialorder %v5950_v48, 8.507059e+37 }
0x1d67   :  { %vm5906_vm6 = vcmp.eq.f32.partialorder %v5905_v33, 8.507059e+37  ;;  %v5945_v7 = vadd.f32 %v7749_v47, %v5944_v14 }
0x1d69   :  { %v5949_v19 = vsel %vm5948_vm13, %v7749_v47, %v5945_v7 }
0x1d6e   :  { %v11044_v63 = vpop.permute.xlu2 %5988 }
0x1d72   :  { %5996 = vrot.lane.b32.xlu1 %v5847_v26, %s7839_s3  ;;  %v5909_v26 = vsel %vm5906_vm6, %v5908_v3, %v5904_v34 }
0x1d7e   :  { %5882 = vadd.xlane.f32.xlu2 %v5871_v21  ;;  %v11036_v50 = vpop.permute.xlu0 %5986  ;;  %v5937_v21 = vand.u32 2147483648, %v5892_v52  ;;  %v5952_v52 = vand.u32 2147483648, %v5893_v0  ;;  %v5859_v0 = vsub.f32 1.0, %v5853_v51 }
0x1d80   :  { %v5938_v27 = vor.u32 1.1754944e-38, %v5937_v21  ;;  %v5953_v57 = vor.u32 1.1754944e-38, %v5952_v52 }
0x1d82   :  { %v5939_v1 = vsel %vm5936_vm10, %v5938_v27, %v5934_v5  ;;  %v5954_v28 = vsel %vm5951_vm14, %v5953_v57, %v5949_v19 }
0x1d89   :  { %v5875_v44 = vpop.xlane.xlu1 %5874 }
0x1d8a   :  { %v5885_v17 = vsub.f32 0.0, %v5875_v44  ;;  %v7751_v44 = vpop.eup %7750 }
0x1d8b   :  { %vm5962_vm15 = vweird.f32 %v7751_v44 }
0x1d8c   :  { %v11027_v8 = vmul.f32 %v5924_v9, %v5885_v17  ;;  %v5957_v17 = vmul.f32 %v7751_v44, %v5894_v13  ;;  %vm5963_vm1 = vmor %vm5961_vm0, %vm5962_vm15 }
0x1d8e   :  { %6011 = vperm.xlu0 %7404, %v11027_v8   ;;  %v5958_v9 = vsub.f32 1.0, %v5957_v17  ;;  %v5999_v17 = vmul.f32 %v8260_v6, %v11044_v63 }
0x1d90   :  { %v5959_v38 = vmul.f32 %v7751_v44, %v5958_v9 }
0x1d92   :  { %v5960_v18 = vadd.f32 %v7751_v44, %v5959_v38 }
0x1d94   :  { %v5964_v33 = vsel %vm5963_vm1, %v7751_v44, %v5960_v18 }
0x1d95   :  { %v5969_v3 = vsel %vm5966_vm2, %v5968_v11, %v5964_v33 }
0x1da1   :  { %v11056_v35 = vpop.permute.xlu1 %5990 }
0x1da9   :  { %v5873_v29 = vpop.xlane.xlu0 %5872 }
0x1daa   :  { %v5884_v39 = vsub.f32 0.0, %v5873_v29 }
0x1dac   :  { %v11049_v16 = vmul.f32 %v5909_v26, %v5884_v39  ;;  %v11064_v39 = vmul.f32 %v5859_v0, %v10939_v23 }
0x1dae   :  { %6006 = vperm.xlu1 %7405, %v11049_v16   ;;  %v5895_v26 = vmax.f32 %v11064_v39, 1e-07 }
0x1db0   :  { %v5877_v22 = vpop.xlane.xlu2 %5876  ;;  %7752 = vrcp.f32 %v5895_v26  ;;  %v5982_v27 = vand.u32 2147483648, %v5895_v26  ;;  %vm5976_vm4 = vweird.f32 %v5895_v26 }
0x1db1   :  { %v5886_v60 = vsub.f32 0.0, %v5877_v22  ;;  %v5980_v22 = vand.u32 2147483647, %v5895_v26 }
0x1db3   :  { %v11053_v49 = vmul.f32 %v5939_v1, %v5886_v60  ;;  %v5983_v60 = vor.u32 1.1754944e-38, %v5982_v27  ;;  %vm5981_vm6 = vcmp.eq.f32.partialorder %v5980_v22, 8.507059e+37 }
0x1db5   :  { %6016 = vperm.xlu0 %7404, %v11053_v49  }
0x1db6   :  { %v7753_v12 = vpop.eup %7752 }
0x1db7   :  { %v5972_v21 = vmul.f32 %v7753_v12, %v5895_v26  ;;  %vm5977_vm3 = vweird.f32 %v7753_v12 }
0x1db8   :  { %v5993_v5 = vpop.permute.xlu2 %5992  ;;  %vm5978_vm5 = vmor %vm5976_vm4, %vm5977_vm3 }
0x1db9   :  { %v5973_v37 = vsub.f32 1.0, %v5972_v21 }
0x1dbb   :  { %v5974_v13 = vmul.f32 %v7753_v12, %v5973_v37 }
0x1dbd   :  { %v5975_v47 = vadd.f32 %v7753_v12, %v5974_v13 }
0x1dbf   :  { %v5979_v23 = vsel %vm5978_vm5, %v7753_v12, %v5975_v47 }
0x1dc0   :  { %v5984_v24 = vsel %vm5981_vm6, %v5983_v60, %v5979_v23 }
0x1dc4   :  { %v5879_v40 = vpop.xlane.xlu0 %5878 }
0x1dc5   :  { %v5887_v54 = vsub.f32 0.0, %v5879_v40  ;;  %v5998_v40 = vmul.f32 %v8260_v6, %v11036_v50 }
0x1dc7   :  { %v11060_v46 = vmul.f32 %v5954_v28, %v5887_v54 }
0x1dc9   :  { %6021 = vperm.xlu1 %7405, %v11060_v46  }
0x1dcc   :  { %v5881_v34 = vpop.xlane.xlu1 %5880 }
0x1dcd   :  { %v5888_v29 = vsub.f32 0.0, %v5881_v34 }
0x1dcf   :  { %v11066_v4 = vmul.f32 %v5969_v3, %v5888_v29 }
0x1dd1   :  { %6026 = vperm.xlu2 %7403, %v11066_v4  }
0x1dd7   :  { %v5995_v14 = vpop.permute.xlu0 %5994 }
0x1dd8   :  { %v6002_v33 = vmul.f32 %v8260_v6, %v5995_v14 }
0x1de4   :  { %v5997_v57 = vpop.permute.xlu1 %5996 }
0x1df1   :  { %v5883_v1 = vpop.xlane.xlu2 %5882 }
0x1df2   :  { %v5889_v25 = vsub.f32 0.0, %v5883_v1 }
0x1df4   :  { %v11070_v44 = vmul.f32 %v5984_v24, %v5889_v25  ;;  %v6059_v25 = vmul.f32 %v11027_v8, %v11027_v8 }
0x1df6   :  { %6031 = vperm.xlu0 %7404, %v11070_v44   ;;  %v6065_v24 = vsub.f32 1.0, %v6059_v25 }
0x1df8   :  { %v11119_v14 = vmul.f32 %v6065_v24, %v11013_v53 }
0x1e00   :  { %v6012_v7 = vpop.permute.xlu0 %6011 }
0x1e01   :  { %v6035_v9 = vmul.f32 %v6012_v7, %v5999_v17  ;;  %v6047_v52 = vmul.f32 %v6012_v7, %v10987_v43 }
0x1e03   :  { %v6053_v48 = vadd.f32 %v6047_v52, %v5999_v17  ;;  %v11077_v19 = vadd.f32 %v6035_v9, %v10987_v43  ;;  %v6000_v43 = vmul.f32 %v8260_v6, %v11056_v35  ;;  %v6001_v35 = vmul.f32 %v8260_v6, %v5993_v5 }
0x1e04   :  { %v6003_v5 = vmul.f32 %v8260_v6, %v5997_v57  ;;  %v6101_v17 = vmax.f32 %v11119_v14, 1e-07 }
0x1e05   :  { %6198 = vrot.lane.b32.xlu0 %v6053_v48, %s7839_s3  ;;  %v6077_v38 = vmul.f32 %v6053_v48, %v8228_v58 }
0x1e06   :  { %7754 = vrcp.f32 %v6101_v17  ;;  %v6132_v53 = vand.u32 2147483648, %v6101_v17  ;;  %vm6126_vm8 = vweird.f32 %v6101_v17 }
0x1e07   :  { %6084 = vadd.xlane.f32.xlu1 %v6077_v38  ;;  %v6058_v38 = vmul.f32 %v11049_v16, %v11049_v16 }
0x1e09   :  { %v6064_v57 = vsub.f32 1.0, %v6058_v38 }
0x1e0c   :  { %v7755_v9 = vpop.eup %7754 }
0x1e0d   :  { %v6122_v52 = vmul.f32 %v7755_v9, %v6101_v17  ;;  %vm6127_vm7 = vweird.f32 %v7755_v9 }
0x1e0e   :  { %vm6128_vm9 = vmor %vm6126_vm8, %vm6127_vm7 }
0x1e0f   :  { %v6123_v48 = vsub.f32 1.0, %v6122_v52 }
0x1e11   :  { %v6124_v8 = vmul.f32 %v7755_v9, %v6123_v48 }
0x1e20   :  { %v6007_v54 = vpop.permute.xlu1 %6006 }
0x1e21   :  { %v6034_v28 = vmul.f32 %v6007_v54, %v5998_v40  ;;  %v6046_v63 = vmul.f32 %v6007_v54, %v10977_v62 }
0x1e23   :  { %v6052_v51 = vadd.f32 %v6046_v63, %v5998_v40  ;;  %v11085_v18 = vadd.f32 %v6034_v28, %v10977_v62  ;;  %v6125_v40 = vadd.f32 %v7755_v9, %v6124_v8  ;;  %v11127_v28 = vmul.f32 %v6064_v57, %v11024_v55 }
0x1e24   :  { %v6060_v63 = vmul.f32 %v11053_v49, %v11053_v49 }
0x1e25   :  { %6196 = vrot.lane.b32.xlu2 %v6052_v51, %s7839_s3  ;;  %v6076_v47 = vmul.f32 %v6052_v51, %v8226_v56  ;;  %v6130_v51 = vand.u32 2147483647, %v6101_v17  ;;  %v6100_v16 = vmax.f32 %v11127_v28, 1e-07 }
0x1e27   :  { %v6017_v45 = vpop.permute.xlu0 %6016  ;;  %vm6131_vm10 = vcmp.eq.f32.partialorder %v6130_v51, 8.507059e+37  ;;  %7756 = vrcp.f32 %v6100_v16  ;;  %vm6111_vm12 = vweird.f32 %v6100_v16 }
0x1e28   :  { %v6036_v36 = vmul.f32 %v6017_v45, %v6000_v43  ;;  %v6048_v0 = vmul.f32 %v6017_v45, %v10967_v15 }
0x1e2a   :  { %v6054_v50 = vadd.f32 %v6048_v0, %v6000_v43  ;;  %v11093_v11 = vadd.f32 %v6036_v36, %v10967_v15  ;;  %v6129_v43 = vsel %vm6128_vm9, %v7755_v9, %v6125_v40  ;;  %v6133_v36 = vor.u32 1.1754944e-38, %v6132_v53 }
0x1e2b   :  { %v6027_v34 = vpop.permute.xlu2 %6026  ;;  %v6066_v0 = vsub.f32 1.0, %v6060_v63 }
0x1e2c   :  { %v6038_v29 = vmul.f32 %v6027_v34, %v6002_v33  ;;  %v6050_v62 = vmul.f32 %v6027_v34, %v10994_v61  ;;  %6200 = vrot.lane.b32.xlu0 %v6054_v50, %s7839_s3  ;;  %v6078_v27 = vmul.f32 %v6054_v50, %v8233_v2  ;;  %v6134_v50 = vsel %vm6131_vm10, %v6133_v36, %v6129_v43 }
0x1e2d   :  { %v11137_v55 = vmul.f32 %v6066_v0, %v11030_v42 }
0x1e2e   :  { %v6056_v3 = vadd.f32 %v6050_v62, %v6002_v33  ;;  %v11098_v26 = vadd.f32 %v6038_v29, %v10994_v61  ;;  %v6062_v33 = vmul.f32 %v11066_v4, %v11066_v4 }
0x1e2f   :  { %v6102_v29 = vmax.f32 %v11137_v55, 1e-07 }
0x1e30   :  { %6204 = vrot.lane.b32.xlu1 %v6056_v3, %s7839_s3  ;;  %v6080_v61 = vmul.f32 %v6056_v3, %v8275_v30  ;;  %v6068_v49 = vsub.f32 1.0, %v6062_v33  ;;  %v7757_v3 = vpop.eup %7756 }
0x1e31   :  { %7758 = vrcp.f32 %v6102_v29  ;;  %vm6112_vm11 = vweird.f32 %v7757_v3  ;;  %v6147_v57 = vand.u32 2147483648, %v6102_v29  ;;  %vm6141_vm0 = vweird.f32 %v6102_v29 }
0x1e32   :  { %v11142_v62 = vmul.f32 %v6068_v49, %v11047_v10  ;;  %vm6113_vm13 = vmor %vm6111_vm12, %vm6112_vm11  ;;  %v6145_v40 = vand.u32 2147483647, %v6102_v29 }
0x1e33   :  { %v6148_v63 = vor.u32 1.1754944e-38, %v6147_v57 }
0x1e34   :  { %v6104_v4 = vmax.f32 %v11142_v62, 1e-07  ;;  %vm6146_vm3 = vcmp.eq.f32.partialorder %v6145_v40, 8.507059e+37 }
0x1e36   :  { %7760 = vrcp.f32 %v6104_v4  ;;  %v6177_v43 = vand.u32 2147483648, %v6104_v4  ;;  %vm6171_vm4 = vweird.f32 %v6104_v4  ;;  %v6175_v36 = vand.u32 2147483647, %v6104_v4 }
0x1e38   :  { %vm6176_vm6 = vcmp.eq.f32.partialorder %v6175_v36, 8.507059e+37 }
0x1e3b   :  { %v6022_v12 = vpop.permute.xlu1 %6021 }
0x1e3c   :  { %v6037_v21 = vmul.f32 %v6022_v12, %v6001_v35  ;;  %v6049_v37 = vmul.f32 %v6022_v12, %v11003_v59 }
0x1e3e   :  { %v6055_v15 = vadd.f32 %v6049_v37, %v6001_v35  ;;  %v11104_v13 = vadd.f32 %v6037_v21, %v11003_v59  ;;  %v6107_v35 = vmul.f32 %v7757_v3, %v6100_v16  ;;  %v7759_v21 = vpop.eup %7758 }
0x1e3f   :  { %v7761_v42 = vpop.eup %7760  ;;  %vm6142_vm15 = vweird.f32 %v7759_v21 }
0x1e40   :  { %v6079_v7 = vmul.f32 %v6055_v15, %v8240_v20  ;;  %v6108_v12 = vsub.f32 1.0, %v6107_v35  ;;  %v6167_v10 = vmul.f32 %v7761_v42, %v6104_v4  ;;  %vm6143_vm1 = vmor %vm6141_vm0, %vm6142_vm15  ;;  %vm6172_vm2 = vweird.f32 %v7761_v42 }
0x1e41   :  { %vm6173_vm5 = vmor %vm6171_vm4, %vm6172_vm2 }
0x1e42   :  { %v6109_v37 = vmul.f32 %v7757_v3, %v6108_v12  ;;  %v6168_v25 = vsub.f32 1.0, %v6167_v10  ;;  %v6061_v12 = vmul.f32 %v11060_v46, %v11060_v46 }
0x1e44   :  { %v6169_v38 = vmul.f32 %v7761_v42, %v6168_v25  ;;  %v6067_v4 = vsub.f32 1.0, %v6061_v12 }
0x1e4e   :  { %6082 = vadd.xlane.f32.xlu2 %v6076_v47 }
0x1e56   :  { %6086 = vadd.xlane.f32.xlu0 %v6078_v27 }
0x1e5a   :  { %6090 = vadd.xlane.f32.xlu1 %v6080_v61  ;;  %v6110_v61 = vadd.f32 %v7757_v3, %v6109_v37  ;;  %v6063_v37 = vmul.f32 %v11070_v44, %v11070_v44 }
0x1e66   :  { %6202 = vrot.lane.b32.xlu2 %v6055_v15, %s7839_s3  ;;  %v6137_v15 = vmul.f32 %v7759_v21, %v6102_v29 }
0x1e68   :  { %v6032_v22 = vpop.permute.xlu0 %6031 }
0x1e69   :  { %v6039_v23 = vmul.f32 %v6032_v22, %v6003_v5  ;;  %v6051_v60 = vmul.f32 %v6032_v22, %v10981_v41  ;;  %v6117_v22 = vand.u32 2147483648, %v6100_v16 }
0x1e6b   :  { %v6057_v1 = vadd.f32 %v6051_v60, %v6003_v5  ;;  %v11113_v59 = vadd.f32 %v6039_v23, %v10981_v41  ;;  %v6138_v5 = vsub.f32 1.0, %v6137_v15  ;;  %v6115_v23 = vand.u32 2147483647, %v6100_v16 }
0x1e6c   :  { %v6114_v60 = vsel %vm6113_vm13, %v7757_v3, %v6110_v61  ;;  %v6118_v17 = vor.u32 1.1754944e-38, %v6117_v22 }
0x1e6d   :  { %6206 = vrot.lane.b32.xlu0 %v6057_v1, %s7839_s3  ;;  %v6081_v41 = vmul.f32 %v6057_v1, %v8277_v31  ;;  %v6139_v1 = vmul.f32 %v7759_v21, %v6138_v5  ;;  %vm6116_vm14 = vcmp.eq.f32.partialorder %v6115_v23, 8.507059e+37 }
0x1e6e   :  { %v6119_v52 = vsel %vm6116_vm14, %v6118_v17, %v6114_v60 }
0x1e77   :  { %v11145_v47 = vpop.permute.xlu0 %6198 }
0x1e7a   :  { %v6085_v54 = vpop.xlane.xlu1 %6084 }
0x1e7b   :  { %v6095_v45 = vsub.f32 0.0, %v6085_v54  ;;  %v6170_v54 = vadd.f32 %v7761_v42, %v6169_v38 }
0x1e7d   :  { %v11134_v34 = vmul.f32 %v6134_v50, %v6095_v45  ;;  %v6174_v33 = vsel %vm6173_vm5, %v7761_v42, %v6170_v54  ;;  %v6178_v50 = vor.u32 1.1754944e-38, %v6177_v43  ;;  %v6069_v42 = vsub.f32 1.0, %v6063_v37 }
0x1e7e   :  { %v6209_v43 = vmul.f32 %v8260_v6, %v11145_v47 }
0x1e7f   :  { %v11147_v27 = vpop.permute.xlu2 %6196  ;;  %v6179_v3 = vsel %vm6176_vm6, %v6178_v50, %v6174_v33  ;;  %v11171_v61 = vmul.f32 %v6069_v42, %v11064_v39 }
0x1e81   :  { %v6105_v5 = vmax.f32 %v11171_v61, 1e-07 }
0x1e83   :  { %vm6186_vm12 = vweird.f32 %v6105_v5 }
0x1e8f   :  { %6088 = vadd.xlane.f32.xlu2 %v6079_v7 }
0x1e97   :  { %6092 = vadd.xlane.f32.xlu0 %v6081_v41  ;;  %v6140_v41 = vadd.f32 %v7759_v21, %v6139_v1 }
0x1e99   :  { %v6144_v53 = vsel %vm6143_vm1, %v7759_v21, %v6140_v41  ;;  %v11165_v21 = vmul.f32 %v6067_v4, %v11041_v32 }
0x1e9a   :  { %v6149_v16 = vsel %vm6146_vm3, %v6148_v63, %v6144_v53  ;;  %v6192_v63 = vand.u32 2147483648, %v6105_v5 }
0x1e9b   :  { %v6103_v15 = vmax.f32 %v11165_v21, 1e-07 }
0x1e9c   :  { %v6193_v36 = vor.u32 1.1754944e-38, %v6192_v63 }
0x1e9d   :  { %7762 = vrcp.f32 %v6103_v15  ;;  %v6162_v17 = vand.u32 2147483648, %v6103_v15  ;;  %vm6156_vm8 = vweird.f32 %v6103_v15 }
0x1e9e   :  { %v11149_v24 = vpop.permute.xlu0 %6200  ;;  %7764 = vrcp.f32 %v6105_v5 }
0x1e9f   :  { %v6163_v41 = vor.u32 1.1754944e-38, %v6162_v17 }
0x1ea2   :  { %v11153_v8 = vpop.permute.xlu1 %6204 }
0x1ea3   :  { %v7763_v10 = vpop.eup %7762  ;;  %v6212_v47 = vmul.f32 %v8260_v6, %v11153_v8 }
0x1ea4   :  { %v6152_v22 = vmul.f32 %v7763_v10, %v6103_v15  ;;  %v7765_v23 = vpop.eup %7764  ;;  %vm6157_vm7 = vweird.f32 %v7763_v10 }
0x1ea5   :  { %v6182_v32 = vmul.f32 %v7765_v23, %v6105_v5  ;;  %vm6158_vm9 = vmor %vm6156_vm8, %vm6157_vm7  ;;  %vm6187_vm11 = vweird.f32 %v7765_v23 }
0x1ea6   :  { %v6153_v46 = vsub.f32 1.0, %v6152_v22  ;;  %vm6188_vm13 = vmor %vm6186_vm12, %vm6187_vm11 }
0x1ea7   :  { %6221 = vperm.xlu2 %7403, %v11134_v34   ;;  %v6183_v44 = vsub.f32 1.0, %v6182_v32 }
0x1ea8   :  { %v6154_v60 = vmul.f32 %v7763_v10, %v6153_v46 }
0x1eaa   :  { %v6155_v25 = vadd.f32 %v7763_v10, %v6154_v60 }
0x1eac   :  { %v6159_v39 = vsel %vm6158_vm9, %v7763_v10, %v6155_v25 }
0x1ec1   :  { %v6083_v7 = vpop.xlane.xlu2 %6082 }
0x1ec2   :  { %v6094_v9 = vsub.f32 0.0, %v6083_v7  ;;  %v6160_v7 = vand.u32 2147483647, %v6103_v15 }
0x1ec4   :  { %v11151_v48 = vmul.f32 %v6119_v52, %v6094_v9  ;;  %v6184_v9 = vmul.f32 %v7765_v23, %v6183_v44  ;;  %vm6161_vm10 = vcmp.eq.f32.partialorder %v6160_v7, 8.507059e+37  ;;  %v6210_v44 = vmul.f32 %v8260_v6, %v11149_v24 }
0x1ec5   :  { %v6164_v40 = vsel %vm6161_vm10, %v6163_v41, %v6159_v39 }
0x1ec6   :  { %6216 = vperm.xlu1 %7405, %v11151_v48   ;;  %v6185_v54 = vadd.f32 %v7765_v23, %v6184_v9 }
0x1ec9   :  { %v6087_v51 = vpop.xlane.xlu0 %6086  ;;  %v11174_v1 = vpop.permute.xlu2 %6202 }
0x1eca   :  { %v6096_v45 = vsub.f32 0.0, %v6087_v51  ;;  %v6190_v51 = vand.u32 2147483647, %v6105_v5  ;;  %v6211_v24 = vmul.f32 %v8260_v6, %v11174_v1 }
0x1ecc   :  { %v11156_v0 = vmul.f32 %v6149_v16, %v6096_v45  ;;  %v6189_v45 = vsel %vm6188_vm13, %v7765_v23, %v6185_v54  ;;  %vm6191_vm14 = vcmp.eq.f32.partialorder %v6190_v51, 8.507059e+37 }
0x1ecd   :  { %v6091_v49 = vpop.xlane.xlu1 %6090 }
0x1ece   :  { %v6098_v29 = vsub.f32 0.0, %v6091_v49  ;;  %6226 = vperm.xlu1 %7405, %v11156_v0  }
0x1ed0   :  { %v11159_v35 = vmul.f32 %v6179_v3, %v6098_v29  ;;  %v6194_v3 = vsel %vm6191_vm14, %v6193_v36, %v6189_v45 }
0x1ed2   :  { %6236 = vperm.xlu2 %7403, %v11159_v35  }
0x1edf   :  { %v11176_v52 = vpop.permute.xlu0 %6206 }
0x1ee0   :  { %v6213_v63 = vmul.f32 %v8260_v6, %v11176_v52 }
0x1f02   :  { %v6089_v38 = vpop.xlane.xlu2 %6088 }
0x1f03   :  { %v6097_v57 = vsub.f32 0.0, %v6089_v38 }
0x1f05   :  { %v11178_v53 = vmul.f32 %v6164_v40, %v6097_v57 }
0x1f07   :  { %6231 = vperm.xlu0 %7404, %v11178_v53  }
0x1f0a   :  { %v6093_v16 = vpop.xlane.xlu0 %6092  ;;  %v6222_v33 = vpop.permute.xlu2 %6221 }
0x1f0b   :  { %v6099_v50 = vsub.f32 0.0, %v6093_v16  ;;  %v6245_v49 = vmul.f32 %v6222_v33, %v6209_v43  ;;  %v6257_v29 = vmul.f32 %v6222_v33, %v11077_v19  ;;  %v6268_v33 = vmul.f32 %v11151_v48, %v11151_v48 }
0x1f0c   :  { %v6270_v48 = vmul.f32 %v11156_v0, %v11156_v0 }
0x1f0d   :  { %v11184_v12 = vmul.f32 %v6194_v3, %v6099_v50  ;;  %v6263_v4 = vadd.f32 %v6257_v29, %v6209_v43  ;;  %v11187_v37 = vadd.f32 %v6245_v49, %v11077_v19  ;;  %v6208_v19 = vmul.f32 %v8260_v6, %v11147_v27 }
0x1f0e   :  { %v6274_v52 = vsub.f32 1.0, %v6268_v33  ;;  %v6269_v50 = vmul.f32 %v11134_v34, %v11134_v34  ;;  %v6272_v49 = vmul.f32 %v11159_v35, %v11159_v35  ;;  %v6276_v34 = vsub.f32 1.0, %v6270_v48 }
0x1f0f   :  { %6241 = vperm.xlu1 %7405, %v11184_v12   ;;  %v6287_v22 = vmul.f32 %v6263_v4, %v8228_v58 }
0x1f10   :  { %v6275_v29 = vsub.f32 1.0, %v6269_v50 }
0x1f17   :  { %6408 = vrot.lane.b32.xlu1 %v6263_v4, %s7839_s3  ;;  %v6278_v4 = vsub.f32 1.0, %v6272_v49 }
0x1f2c   :  { %v6237_v15 = vpop.permute.xlu2 %6236 }
0x1f2d   :  { %v6248_v42 = vmul.f32 %v6237_v15, %v6212_v47  ;;  %v6260_v5 = vmul.f32 %v6237_v15, %v11098_v26  ;;  %v11248_v15 = vmul.f32 %v6278_v4, %v11142_v62 }
0x1f2f   :  { %v6266_v10 = vadd.f32 %v6260_v5, %v6212_v47  ;;  %v11196_v46 = vadd.f32 %v6248_v42, %v11098_v26  ;;  %v11243_v47 = vmul.f32 %v6275_v29, %v11119_v14  ;;  %v6314_v42 = vmax.f32 %v11248_v15, 1e-07 }
0x1f30   :  { %v11253_v5 = vmul.f32 %v6276_v34, %v11137_v55 }
0x1f31   :  { %6294 = vadd.xlane.f32.xlu0 %v6287_v22  ;;  %v6290_v41 = vmul.f32 %v6266_v10, %v8275_v30  ;;  %vm6381_vm7 = vweird.f32 %v6314_v42  ;;  %v6385_v50 = vand.u32 2147483647, %v6314_v42 }
0x1f33   :  { %vm6386_vm10 = vcmp.eq.f32.partialorder %v6385_v50, 8.507059e+37 }
0x1f38   :  { %v6217_v23 = vpop.permute.xlu1 %6216 }
0x1f39   :  { %v6244_v60 = vmul.f32 %v6217_v23, %v6208_v19  ;;  %v6256_v32 = vmul.f32 %v6217_v23, %v11085_v18 }
0x1f3b   :  { %v6262_v25 = vadd.f32 %v6256_v32, %v6208_v19  ;;  %v11202_v8 = vadd.f32 %v6244_v60, %v11085_v18 }
0x1f3d   :  { %6406 = vrot.lane.b32.xlu2 %v6262_v25, %s7839_s3  ;;  %v6286_v18 = vmul.f32 %v6262_v25, %v8226_v56 }
0x1f40   :  { %v6227_v17 = vpop.permute.xlu1 %6226 }
0x1f41   :  { %v6246_v26 = vmul.f32 %v6227_v17, %v6210_v44  ;;  %v6258_v7 = vmul.f32 %v6227_v17, %v11093_v11 }
0x1f43   :  { %v6264_v39 = vadd.f32 %v6258_v7, %v6210_v44  ;;  %v11209_v27 = vadd.f32 %v6246_v26, %v11093_v11 }
0x1f45   :  { %6414 = vrot.lane.b32.xlu0 %v6266_v10, %s7839_s3  ;;  %v6288_v9 = vmul.f32 %v6264_v39, %v8233_v2  ;;  %v11256_v10 = vmax.f32 %v11253_v5, 1e-07 }
0x1f47   :  { %6296 = vadd.xlane.f32.xlu1 %v6288_v9  ;;  %vm6351_vm12 = vweird.f32 %v11256_v10 }
0x1f66   :  { %6292 = vadd.xlane.f32.xlu2 %v6286_v18 }
0x1f6f   :  { %6300 = vadd.xlane.f32.xlu0 %v6290_v41 }
0x1f79   :  { %v6232_v38 = vpop.permute.xlu0 %6231 }
0x1f7a   :  { %v6247_v57 = vmul.f32 %v6232_v38, %v6211_v24  ;;  %v6259_v40 = vmul.f32 %v6232_v38, %v11104_v13 }
0x1f7c   :  { %v6265_v11 = vadd.f32 %v6259_v40, %v6211_v24  ;;  %v11219_v54 = vadd.f32 %v6247_v57, %v11104_v13 }
0x1f7e   :  { %6410 = vrot.lane.b32.xlu2 %v6264_v39, %s7839_s3  ;;  %v6289_v13 = vmul.f32 %v6265_v11, %v8240_v20 }
0x1f81   :  { %v6242_v51 = vpop.permute.xlu1 %6241 }
0x1f82   :  { %v6249_v43 = vmul.f32 %v6242_v51, %v6213_v63  ;;  %v6261_v45 = vmul.f32 %v6242_v51, %v11113_v59 }
0x1f84   :  { %v6267_v36 = vadd.f32 %v6261_v45, %v6213_v63  ;;  %v11226_v1 = vadd.f32 %v6249_v43, %v11113_v59  ;;  %v11237_v59 = vmul.f32 %v6274_v52, %v11127_v28  ;;  %v6311_v28 = vmax.f32 %v11243_v47, 1e-07 }
0x1f85   :  { %v6387_v52 = vand.u32 2147483648, %v6314_v42 }
0x1f86   :  { %6412 = vrot.lane.b32.xlu2 %v6265_v11, %s7839_s3  ;;  %6416 = vrot.lane.b32.xlu1 %v6267_v36, %s7839_s3  ;;  %v6291_v16 = vmul.f32 %v6267_v36, %v8277_v31  ;;  %v6310_v3 = vmax.f32 %v11237_v59, 1e-07  ;;  %vm6336_vm5 = vweird.f32 %v6311_v28  ;;  %v6340_v33 = vand.u32 2147483647, %v6311_v28 }
0x1f88   :  { %7766 = vrcp.f32 %v6310_v3  ;;  %v6327_v26 = vand.u32 2147483648, %v6310_v3  ;;  %vm6321_vm0 = vweird.f32 %v6310_v3  ;;  %v6325_v39 = vand.u32 2147483647, %v6310_v3 }
0x1f89   :  { %7768 = vrcp.f32 %v6311_v28  ;;  %v11266_v36 = vpop.permute.xlu1 %6408  ;;  %vm6341_vm9 = vcmp.eq.f32.partialorder %v6340_v33, 8.507059e+37 }
0x1f8a   :  { %7770 = vrcp.f32 %v6314_v42  ;;  %v6328_v24 = vor.u32 1.1754944e-38, %v6327_v26  ;;  %vm6326_vm2 = vcmp.eq.f32.partialorder %v6325_v39, 8.507059e+37  ;;  %v6271_v39 = vmul.f32 %v11178_v53, %v11178_v53 }
0x1f8b   :  { %7772 = vrcp.f32 %v11256_v10 }
0x1f8e   :  { %v7767_v35 = vpop.eup %7766 }
0x1f8f   :  { %v6317_v14 = vmul.f32 %v7767_v35, %v6310_v3  ;;  %v7769_v0 = vpop.eup %7768  ;;  %vm6322_vm15 = vweird.f32 %v7767_v35 }
0x1f90   :  { %v7771_v19 = vpop.eup %7770  ;;  %v6332_v62 = vmul.f32 %v7769_v0, %v6311_v28  ;;  %vm6323_vm1 = vmor %vm6321_vm0, %vm6322_vm15  ;;  %vm6337_vm3 = vweird.f32 %v7769_v0 }
0x1f91   :  { %v6318_v22 = vsub.f32 1.0, %v6317_v14  ;;  %v6377_v32 = vmul.f32 %v7771_v19, %v6314_v42  ;;  %v7773_v55 = vpop.eup %7772  ;;  %vm6382_vm4 = vweird.f32 %v7771_v19  ;;  %vm6338_vm6 = vmor %vm6336_vm5, %vm6337_vm3 }
0x1f92   :  { %v6333_v44 = vsub.f32 1.0, %v6332_v62  ;;  %v6347_v18 = vmul.f32 %v7773_v55, %v11256_v10  ;;  %vm6383_vm8 = vmor %vm6381_vm7, %vm6382_vm4  ;;  %vm6352_vm11 = vweird.f32 %v7773_v55 }
0x1f93   :  { %v6319_v23 = vmul.f32 %v7767_v35, %v6318_v22  ;;  %v6378_v7 = vsub.f32 1.0, %v6377_v32  ;;  %v6357_v32 = vand.u32 2147483648, %v11256_v10  ;;  %vm6353_vm13 = vmor %vm6351_vm12, %vm6352_vm11 }
0x1f94   :  { %v6334_v9 = vmul.f32 %v7769_v0, %v6333_v44  ;;  %v6348_v43 = vsub.f32 1.0, %v6347_v18 }
0x1f95   :  { %v6320_v17 = vadd.f32 %v7767_v35, %v6319_v23  ;;  %v6379_v57 = vmul.f32 %v7771_v19, %v6378_v7 }
0x1f96   :  { %v6335_v51 = vadd.f32 %v7769_v0, %v6334_v9  ;;  %v6349_v3 = vmul.f32 %v7773_v55, %v6348_v43  ;;  %v6277_v9 = vsub.f32 1.0, %v6271_v39 }
0x1f97   :  { %v11259_v60 = vpop.permute.xlu2 %6406  ;;  %v6324_v41 = vsel %vm6323_vm1, %v7767_v35, %v6320_v17  ;;  %v6388_v35 = vor.u32 1.1754944e-38, %v6387_v52  ;;  %v6358_v17 = vor.u32 1.1754944e-38, %v6357_v32 }
0x1f98   :  { %v6329_v63 = vsel %vm6326_vm2, %v6328_v24, %v6324_v41  ;;  %v6339_v29 = vsel %vm6338_vm6, %v7769_v0, %v6335_v51  ;;  %v6355_v0 = vand.u32 2147483647, %v11256_v10  ;;  %v6273_v10 = vmul.f32 %v11184_v12, %v11184_v12 }
0x1f99   :  { %v11286_v41 = vmul.f32 %v6277_v9, %v11165_v21 }
0x1f9a   :  { %vm6356_vm14 = vcmp.eq.f32.partialorder %v6355_v0, 8.507059e+37  ;;  %v6279_v18 = vsub.f32 1.0, %v6273_v10 }
0x1f9b   :  { %v6313_v24 = vmax.f32 %v11286_v41, 1e-07 }
0x1f9d   :  { %7774 = vrcp.f32 %v6313_v24  ;;  %v6372_v52 = vand.u32 2147483648, %v6313_v24  ;;  %vm6366_vm1 = vweird.f32 %v6313_v24 }
0x1fa4   :  { %v6295_v25 = vpop.xlane.xlu0 %6294 }
0x1fa5   :  { %v6305_v49 = vsub.f32 0.0, %v6295_v25 }
0x1faf   :  { %6298 = vadd.xlane.f32.xlu2 %v6289_v13  ;;  %v6342_v13 = vand.u32 2147483648, %v6311_v28  ;;  %v6350_v28 = vadd.f32 %v7773_v55, %v6349_v3 }
0x1fb0   :  { %6302 = vadd.xlane.f32.xlu1 %v6291_v16  ;;  %v6380_v16 = vadd.f32 %v7771_v19, %v6379_v57  ;;  %v7775_v57 = vpop.eup %7774 }
0x1fb1   :  { %v6343_v4 = vor.u32 1.1754944e-38, %v6342_v13  ;;  %vm6367_vm15 = vweird.f32 %v7775_v57 }
0x1fb2   :  { %v6384_v48 = vsel %vm6383_vm8, %v7771_v19, %v6380_v16  ;;  %v6354_v19 = vsel %vm6353_vm13, %v7773_v55, %v6350_v28  ;;  %v11289_v55 = vmul.f32 %v6279_v18, %v11171_v61  ;;  %vm6368_vm2 = vmor %vm6366_vm1, %vm6367_vm15  ;;  %v6418_v18 = vmul.f32 %v8260_v6, %v11259_v60 }
0x1fb3   :  { %v6344_v14 = vsel %vm6341_vm9, %v6343_v4, %v6339_v29  ;;  %v6389_v23 = vsel %vm6386_vm10, %v6388_v35, %v6384_v48  ;;  %v6359_v26 = vsel %vm6356_vm14, %v6358_v17, %v6354_v19  ;;  %v6373_v48 = vor.u32 1.1754944e-38, %v6372_v52 }
0x1fb4   :  { %v11269_v62 = vmul.f32 %v6344_v14, %v6305_v49  ;;  %v6370_v49 = vand.u32 2147483647, %v6313_v24 }
0x1fb6   :  { %vm6371_vm5 = vcmp.eq.f32.partialorder %v6370_v49, 8.507059e+37 }
0x1fb7   :  { %v11262_v40 = vpop.permute.xlu0 %6414 }
0x1fba   :  { %v6297_v42 = vpop.xlane.xlu1 %6296 }
0x1fbb   :  { %v6306_v44 = vsub.f32 0.0, %v6297_v42 }
0x1fbd   :  { %v11278_v7 = vmul.f32 %v6359_v26, %v6306_v44  ;;  %v6422_v44 = vmul.f32 %v8260_v6, %v11262_v40 }
0x1fd9   :  { %v6293_v38 = vpop.xlane.xlu2 %6292 }
0x1fda   :  { %v6304_v11 = vsub.f32 0.0, %v6293_v38  ;;  %v6315_v38 = vmax.f32 %v11289_v55, 1e-07 }
0x1fdc   :  { %v11264_v45 = vmul.f32 %v6329_v63, %v6304_v11  ;;  %7776 = vrcp.f32 %v6315_v38  ;;  %v6362_v63 = vmul.f32 %v7775_v57, %v6313_v24  ;;  %v6402_v29 = vand.u32 2147483648, %v6315_v38 }
0x1fdd   :  { %vm6396_vm3 = vweird.f32 %v6315_v38  ;;  %v6400_v3 = vand.u32 2147483647, %v6315_v38 }
0x1fde   :  { %6426 = vperm.xlu0 %7404, %v11264_v45   ;;  %v6363_v12 = vsub.f32 1.0, %v6362_v63 }
0x1fdf   :  { %vm6401_vm6 = vcmp.eq.f32.partialorder %v6400_v3, 8.507059e+37 }
0x1fe0   :  { %v6364_v13 = vmul.f32 %v7775_v57, %v6363_v12 }
0x1fe1   :  { %v6411_v53 = vpop.permute.xlu2 %6410 }
0x1fe2   :  { %v6301_v34 = vpop.xlane.xlu0 %6300  ;;  %v7777_v11 = vpop.eup %7776  ;;  %v6365_v61 = vadd.f32 %v7775_v57, %v6364_v13 }
0x1fe3   :  { %v6308_v22 = vsub.f32 0.0, %v6301_v34  ;;  %v6392_v51 = vmul.f32 %v7777_v11, %v6315_v38  ;;  %vm6397_vm0 = vweird.f32 %v7777_v11 }
0x1fe4   :  { %v6369_v4 = vsel %vm6368_vm2, %v7775_v57, %v6365_v61  ;;  %vm6398_vm4 = vmor %vm6396_vm3, %vm6397_vm0 }
0x1fe5   :  { %v11272_v25 = vmul.f32 %v6389_v23, %v6308_v22  ;;  %v6393_v43 = vsub.f32 1.0, %v6392_v51  ;;  %v6403_v22 = vor.u32 1.1754944e-38, %v6402_v29  ;;  %v6374_v23 = vsel %vm6371_vm5, %v6373_v48, %v6369_v4 }
0x1fe6   :  { %6431 = vperm.xlu0 %7404, %v11269_v62   ;;  %v6419_v51 = vmul.f32 %v8260_v6, %v11266_v36 }
0x1fe7   :  { %6446 = vperm.xlu2 %7403, %v11272_v25   ;;  %v6394_v21 = vmul.f32 %v7777_v11, %v6393_v43 }
0x1fe9   :  { %v11293_v16 = vpop.permute.xlu2 %6412  ;;  %v6395_v50 = vadd.f32 %v7777_v11, %v6394_v21 }
0x1feb   :  { %v6399_v35 = vsel %vm6398_vm4, %v7777_v11, %v6395_v50 }
0x1fec   :  { %v6404_v0 = vsel %vm6401_vm6, %v6403_v22, %v6399_v35 }
0x1fee   :  { %6436 = vperm.xlu0 %7404, %v11278_v7  }
0x1ff8   :  { %v11295_v33 = vpop.permute.xlu1 %6416 }
0x1ff9   :  { %v6423_v29 = vmul.f32 %v8260_v6, %v11295_v33 }
0x2022   :  { %v6299_v34 = vpop.xlane.xlu2 %6298 }
0x2023   :  { %v6307_v14 = vsub.f32 0.0, %v6299_v34  ;;  %v6303_v28 = vpop.xlane.xlu1 %6302 }
0x2024   :  { %v6309_v32 = vsub.f32 0.0, %v6303_v28 }
0x2025   :  { %v11297_v42 = vmul.f32 %v6374_v23, %v6307_v14 }
0x2026   :  { %v11299_v19 = vmul.f32 %v6404_v0, %v6309_v32  ;;  %v6479_v0 = vmul.f32 %v11269_v62, %v11269_v62 }
0x2027   :  { %6441 = vperm.xlu1 %7405, %v11297_v42  }
0x2028   :  { %6451 = vperm.xlu0 %7404, %v11299_v19  }
0x2041   :  { %v6447_v17 = vpop.permute.xlu2 %6446 }
0x2042   :  { %v6458_v26 = vmul.f32 %v6447_v17, %v6422_v44  ;;  %v6470_v39 = vmul.f32 %v6447_v17, %v11196_v46 }
0x2044   :  { %v6476_v10 = vadd.f32 %v6470_v39, %v6422_v44  ;;  %v11307_v9 = vadd.f32 %v6458_v26, %v11196_v46 }
0x2046   :  { %v6500_v33 = vmul.f32 %v6476_v10, %v8275_v30 }
0x2050   :  { %v6427_v24 = vpop.permute.xlu0 %6426 }
0x2051   :  { %v6454_v38 = vmul.f32 %v6427_v24, %v6418_v18  ;;  %v6466_v57 = vmul.f32 %v6427_v24, %v11202_v8 }
0x2053   :  { %v6472_v11 = vadd.f32 %v6466_v57, %v6418_v18  ;;  %v11313_v63 = vadd.f32 %v6454_v38, %v11202_v8  ;;  %v6420_v8 = vmul.f32 %v8260_v6, %v6411_v53  ;;  %v6421_v53 = vmul.f32 %v8260_v6, %v11293_v16 }
0x2054   :  { %v6478_v16 = vmul.f32 %v11264_v45, %v11264_v45 }
0x2055   :  { %6616 = vrot.lane.b32.xlu0 %v6472_v11, %s7839_s3  ;;  %v6496_v40 = vmul.f32 %v6472_v11, %v8226_v56 }
0x2056   :  { %v6484_v32 = vsub.f32 1.0, %v6478_v16 }
0x2057   :  { %6502 = vadd.xlane.f32.xlu2 %v6496_v40  ;;  %v6480_v40 = vmul.f32 %v11278_v7, %v11278_v7 }
0x2058   :  { %v6432_v46 = vpop.permute.xlu0 %6431  ;;  %v11352_v44 = vmul.f32 %v6484_v32, %v11237_v59  ;;  %v6482_v32 = vmul.f32 %v11272_v25, %v11272_v25 }
0x2059   :  { %v6455_v12 = vmul.f32 %v6432_v46, %v6419_v51  ;;  %v6467_v60 = vmul.f32 %v6432_v46, %v11187_v37 }
0x205a   :  { %v6520_v17 = vmax.f32 %v11352_v44, 1e-07 }
0x205b   :  { %v6473_v43 = vadd.f32 %v6467_v60, %v6419_v51  ;;  %v11321_v13 = vadd.f32 %v6455_v12, %v11187_v37 }
0x205c   :  { %7778 = vrcp.f32 %v6520_v17  ;;  %v6537_v11 = vand.u32 2147483648, %v6520_v17  ;;  %vm6531_vm8 = vweird.f32 %v6520_v17 }
0x205d   :  { %v6497_v21 = vmul.f32 %v6473_v43, %v8228_v58 }
0x205e   :  { %v6538_v12 = vor.u32 1.1754944e-38, %v6537_v11 }
0x205f   :  { %6504 = vadd.xlane.f32.xlu1 %v6497_v21  ;;  %v6486_v21 = vsub.f32 1.0, %v6480_v40 }
0x2060   :  { %v6437_v61 = vpop.permute.xlu0 %6436 }
0x2061   :  { %v6456_v52 = vmul.f32 %v6437_v61, %v6420_v8  ;;  %v6468_v50 = vmul.f32 %v6437_v61, %v11209_v27 }
0x2062   :  { %v7779_v45 = vpop.eup %7778 }
0x2063   :  { %v6474_v49 = vadd.f32 %v6468_v50, %v6420_v8  ;;  %v11327_v36 = vadd.f32 %v6456_v52, %v11209_v27  ;;  %v6527_v39 = vmul.f32 %v7779_v45, %v6520_v17  ;;  %vm6532_vm7 = vweird.f32 %v7779_v45 }
0x2064   :  { %vm6533_vm9 = vmor %vm6531_vm8, %vm6532_vm7 }
0x2065   :  { %v6498_v37 = vmul.f32 %v6474_v49, %v8233_v2 }
0x206f   :  { %6618 = vrot.lane.b32.xlu2 %v6473_v43, %s7839_s3 }
0x2078   :  { %6620 = vrot.lane.b32.xlu1 %v6474_v49, %s7839_s3 }
0x207f   :  { %6506 = vadd.xlane.f32.xlu0 %v6498_v37  ;;  %v11367_v37 = vmul.f32 %v6486_v21, %v11253_v5 }
0x2093   :  { %6624 = vrot.lane.b32.xlu0 %v6476_v10, %s7839_s3  ;;  %v6528_v10 = vsub.f32 1.0, %v6527_v39 }
0x2095   :  { %v6529_v24 = vmul.f32 %v7779_v45, %v6528_v10 }
0x2097   :  { %v6530_v59 = vadd.f32 %v7779_v45, %v6529_v24 }
0x2099   :  { %v6442_v3 = vpop.permute.xlu1 %6441  ;;  %v6534_v51 = vsel %vm6533_vm9, %v7779_v45, %v6530_v59 }
0x209a   :  { %v6457_v4 = vmul.f32 %v6442_v3, %v6421_v53  ;;  %v6469_v27 = vmul.f32 %v6442_v3, %v11219_v54  ;;  %v6452_v48 = vpop.permute.xlu0 %6451 }
0x209b   :  { %v6459_v34 = vmul.f32 %v6452_v48, %v6423_v29  ;;  %v6471_v35 = vmul.f32 %v6452_v48, %v11226_v1 }
0x209c   :  { %v6475_v14 = vadd.f32 %v6469_v27, %v6421_v53  ;;  %v11340_v22 = vadd.f32 %v6457_v4, %v11219_v54  ;;  %v6485_v54 = vsub.f32 1.0, %v6479_v0  ;;  %v6522_v27 = vmax.f32 %v11367_v37, 1e-07 }
0x209d   :  { %v6477_v28 = vadd.f32 %v6471_v35, %v6423_v29  ;;  %v11343_v23 = vadd.f32 %v6459_v34, %v11226_v1 }
0x209e   :  { %6622 = vrot.lane.b32.xlu2 %v6475_v14, %s7839_s3  ;;  %v11356_v1 = vmul.f32 %v6485_v54, %v11243_v47  ;;  %v6499_v62 = vmul.f32 %v6475_v14, %v8240_v20  ;;  %v6535_v47 = vand.u32 2147483647, %v6520_v17  ;;  %v6567_v54 = vand.u32 2147483648, %v6522_v27 }
0x209f   :  { %v6501_v52 = vmul.f32 %v6477_v28, %v8277_v31  ;;  %v6488_v17 = vsub.f32 1.0, %v6482_v32  ;;  %vm6561_vm0 = vweird.f32 %v6522_v27 }
0x20a0   :  { %v6521_v26 = vmax.f32 %v11356_v1, 1e-07  ;;  %vm6536_vm10 = vcmp.eq.f32.partialorder %v6535_v47, 8.507059e+37  ;;  %v6568_v45 = vor.u32 1.1754944e-38, %v6567_v54 }
0x20a1   :  { %v6539_v8 = vsel %vm6536_vm10, %v6538_v12, %v6534_v51  ;;  %v11379_v10 = vmul.f32 %v6488_v17, %v11248_v15  ;;  %v6481_v15 = vmul.f32 %v11297_v42, %v11297_v42 }
0x20a2   :  { %6510 = vadd.xlane.f32.xlu1 %v6500_v33  ;;  %7780 = vrcp.f32 %v6521_v26  ;;  %v6552_v49 = vand.u32 2147483648, %v6521_v26  ;;  %vm6546_vm12 = vweird.f32 %v6521_v26  ;;  %v6550_v7 = vand.u32 2147483647, %v6521_v26 }
0x20a3   :  { %7782 = vrcp.f32 %v6522_v27  ;;  %v6524_v25 = vmax.f32 %v11379_v10, 1e-07  ;;  %v6487_v12 = vsub.f32 1.0, %v6481_v15 }
0x20a4   :  { %v6553_v29 = vor.u32 1.1754944e-38, %v6552_v49  ;;  %vm6551_vm14 = vcmp.eq.f32.partialorder %v6550_v7, 8.507059e+37  ;;  %v6483_v49 = vmul.f32 %v11299_v19, %v11299_v19 }
0x20a5   :  { %7784 = vrcp.f32 %v6524_v25  ;;  %v6597_v51 = vand.u32 2147483648, %v6524_v25  ;;  %vm6591_vm4 = vweird.f32 %v6524_v25 }
0x20a8   :  { %v7781_v18 = vpop.eup %7780 }
0x20a9   :  { %v6542_v38 = vmul.f32 %v7781_v18, %v6521_v26  ;;  %vm6547_vm11 = vweird.f32 %v7781_v18  ;;  %v7783_v35 = vpop.eup %7782  ;;  %v6565_v26 = vand.u32 2147483647, %v6522_v27 }
0x20aa   :  { %vm6548_vm13 = vmor %vm6546_vm12, %vm6547_vm11  ;;  %v6557_v14 = vmul.f32 %v7783_v35, %v6522_v27  ;;  %vm6562_vm15 = vweird.f32 %v7783_v35 }
0x20ab   :  { %v6543_v57 = vsub.f32 1.0, %v6542_v38  ;;  %vm6563_vm1 = vmor %vm6561_vm0, %vm6562_vm15  ;;  %vm6566_vm2 = vcmp.eq.f32.partialorder %v6565_v26, 8.507059e+37 }
0x20ac   :  { %v6558_v5 = vsub.f32 1.0, %v6557_v14 }
0x20ad   :  { %v6544_v46 = vmul.f32 %v7781_v18, %v6543_v57 }
0x20ae   :  { %v6559_v16 = vmul.f32 %v7783_v35, %v6558_v5 }
0x20af   :  { %v6545_v50 = vadd.f32 %v7781_v18, %v6544_v46  ;;  %v6595_v46 = vand.u32 2147483647, %v6524_v25 }
0x20b0   :  { %v6560_v0 = vadd.f32 %v7783_v35, %v6559_v16 }
0x20b1   :  { %v6549_v53 = vsel %vm6548_vm13, %v7781_v18, %v6545_v50  ;;  %vm6596_vm6 = vcmp.eq.f32.partialorder %v6595_v46, 8.507059e+37  ;;  %v11390_v50 = vmul.f32 %v6487_v12, %v11286_v41 }
0x20b2   :  { %v6554_v48 = vsel %vm6551_vm14, %v6553_v29, %v6549_v53  ;;  %v6489_v53 = vsub.f32 1.0, %v6483_v49 }
0x20b3   :  { %v6523_v7 = vmax.f32 %v11390_v50, 1e-07 }
0x20b4   :  { %v11399_v29 = vmul.f32 %v6489_v53, %v11289_v55 }
0x20b5   :  { %7786 = vrcp.f32 %v6523_v7  ;;  %vm6576_vm8 = vweird.f32 %v6523_v7  ;;  %v6580_v54 = vand.u32 2147483647, %v6523_v7 }
0x20b7   :  { %vm6581_vm10 = vcmp.eq.f32.partialorder %v6580_v54, 8.507059e+37 }
0x20c7   :  { %6508 = vadd.xlane.f32.xlu2 %v6499_v62  ;;  %v11374_v33 = vpop.permute.xlu0 %6616  ;;  %v7785_v62 = vpop.eup %7784 }
0x20c8   :  { %v6587_v59 = vmul.f32 %v7785_v62, %v6524_v25  ;;  %vm6592_vm3 = vweird.f32 %v7785_v62 }
0x20c9   :  { %vm6593_vm5 = vmor %vm6591_vm4, %vm6592_vm3 }
0x20ca   :  { %v6503_v60 = vpop.xlane.xlu2 %6502  ;;  %v6588_v57 = vsub.f32 1.0, %v6587_v59  ;;  %v6628_v59 = vmul.f32 %v8260_v6, %v11374_v33 }
0x20cb   :  { %v6514_v43 = vsub.f32 0.0, %v6503_v60 }
0x20cc   :  { %v6589_v11 = vmul.f32 %v7785_v62, %v6588_v57 }
0x20cd   :  { %v11362_v61 = vmul.f32 %v6539_v8, %v6514_v43  ;;  %v6598_v43 = vor.u32 1.1754944e-38, %v6597_v51 }
0x20ce   :  { %v6590_v40 = vadd.f32 %v7785_v62, %v6589_v11 }
0x20cf   :  { %6636 = vperm.xlu1 %7405, %v11362_v61   ;;  %6512 = vadd.xlane.f32.xlu2 %v6501_v52 }
0x20d0   :  { %v6594_v60 = vsel %vm6593_vm5, %v7785_v62, %v6590_v40 }
0x20d1   :  { %v6599_v52 = vsel %vm6596_vm6, %v6598_v43, %v6594_v60 }
0x20d2   :  { %v6505_v3 = vpop.xlane.xlu1 %6504  ;;  %v6619_v27 = vpop.permute.xlu2 %6618 }
0x20d3   :  { %v6515_v4 = vsub.f32 0.0, %v6505_v3  ;;  %v6525_v3 = vmax.f32 %v11399_v29, 1e-07  ;;  %v6629_v33 = vmul.f32 %v8260_v6, %v6619_v27 }
0x20d5   :  { %v11370_v34 = vmul.f32 %v6554_v48, %v6515_v4  ;;  %v7787_v4 = vpop.eup %7786  ;;  %7788 = vrcp.f32 %v6525_v3  ;;  %v6612_v25 = vand.u32 2147483648, %v6525_v3  ;;  %vm6606_vm12 = vweird.f32 %v6525_v3 }
0x20d6   :  { %v6572_v41 = vmul.f32 %v7787_v4, %v6523_v7  ;;  %vm6577_vm7 = vweird.f32 %v7787_v4  ;;  %v6610_v62 = vand.u32 2147483647, %v6525_v3 }
0x20d7   :  { %6626 = vrot.lane.b32.xlu1 %v6477_v28, %s7839_s3  ;;  %6641 = vperm.xlu0 %7404, %v11370_v34   ;;  %v6564_v28 = vsel %vm6563_vm1, %v7783_v35, %v6560_v0  ;;  %v6582_v0 = vand.u32 2147483648, %v6523_v7  ;;  %vm6578_vm9 = vmor %vm6576_vm8, %vm6577_vm7  ;;  %v6613_v46 = vor.u32 1.1754944e-38, %v6612_v25 }
0x20d8   :  { %v6569_v24 = vsel %vm6566_vm2, %v6568_v45, %v6564_v28  ;;  %v6573_v48 = vsub.f32 1.0, %v6572_v41  ;;  %vm6611_vm14 = vcmp.eq.f32.partialorder %v6610_v62, 8.507059e+37 }
0x20d9   :  { %v6583_v26 = vor.u32 1.1754944e-38, %v6582_v0 }
0x20da   :  { %v6574_v19 = vmul.f32 %v7787_v4, %v6573_v48 }
0x20db   :  { %v7789_v35 = vpop.eup %7788 }
0x20dc   :  { %v6602_v14 = vmul.f32 %v7789_v35, %v6525_v3  ;;  %v6575_v16 = vadd.f32 %v7787_v4, %v6574_v19  ;;  %vm6607_vm11 = vweird.f32 %v7789_v35 }
0x20dd   :  { %vm6608_vm13 = vmor %vm6606_vm12, %vm6607_vm11 }
0x20de   :  { %v6603_v32 = vsub.f32 1.0, %v6602_v14  ;;  %v6579_v55 = vsel %vm6578_vm9, %v7787_v4, %v6575_v16 }
0x20e0   :  { %v6604_v17 = vmul.f32 %v7789_v35, %v6603_v32 }
0x20ea   :  { %v11385_v47 = vpop.permute.xlu1 %6620 }
0x20eb   :  { %v6630_v41 = vmul.f32 %v8260_v6, %v11385_v47 }
0x20f2   :  { %v6507_v39 = vpop.xlane.xlu0 %6506 }
0x20f3   :  { %v6516_v18 = vsub.f32 0.0, %v6507_v39  ;;  %v6584_v39 = vsel %vm6581_vm10, %v6583_v26, %v6579_v55 }
0x20f5   :  { %v11381_v38 = vmul.f32 %v6569_v24, %v6516_v18  ;;  %v6605_v24 = vadd.f32 %v7789_v35, %v6604_v17 }
0x20f7   :  { %6646 = vperm.xlu0 %7404, %v11381_v38   ;;  %v6609_v15 = vsel %vm6608_vm13, %v7789_v35, %v6605_v24 }
0x20f8   :  { %v11402_v5 = vpop.permute.xlu2 %6622 }
0x2105   :  { %v6625_v57 = vpop.permute.xlu0 %6624 }
0x2106   :  { %v6632_v32 = vmul.f32 %v8260_v6, %v6625_v57 }
0x2115   :  { %v6511_v21 = vpop.xlane.xlu1 %6510 }
0x2116   :  { %v6518_v8 = vsub.f32 0.0, %v6511_v21  ;;  %v6614_v21 = vsel %vm6611_vm14, %v6613_v46, %v6609_v15 }
0x2118   :  { %v11394_v42 = vmul.f32 %v6599_v52, %v6518_v8 }
0x211a   :  { %6656 = vperm.xlu2 %7403, %v11394_v42  }
0x213a   :  { %v6509_v28 = vpop.xlane.xlu2 %6508 }
0x213b   :  { %v6517_v45 = vsub.f32 0.0, %v6509_v28  ;;  %v6631_v28 = vmul.f32 %v8260_v6, %v11402_v5 }
0x213d   :  { %v11404_v18 = vmul.f32 %v6584_v39, %v6517_v45  ;;  %v6689_v39 = vmul.f32 %v11370_v34, %v11370_v34 }
0x213f   :  { %6651 = vperm.xlu1 %7405, %v11404_v18  }
0x2141   :  { %v6637_v11 = vpop.permute.xlu1 %6636 }
0x2142   :  { %v6664_v40 = vmul.f32 %v6637_v11, %v6628_v59  ;;  %v6676_v51 = vmul.f32 %v6637_v11, %v11313_v63  ;;  %v6513_v12 = vpop.xlane.xlu2 %6512  ;;  %v6688_v11 = vmul.f32 %v11362_v61, %v11362_v61 }
0x2143   :  { %v6519_v60 = vsub.f32 0.0, %v6513_v12 }
0x2144   :  { %v6682_v43 = vadd.f32 %v6676_v51, %v6628_v59  ;;  %v11411_v8 = vadd.f32 %v6664_v40, %v11313_v63  ;;  %v6694_v46 = vsub.f32 1.0, %v6688_v11 }
0x2145   :  { %v11413_v52 = vmul.f32 %v6614_v21, %v6519_v60 }
0x2146   :  { %6826 = vrot.lane.b32.xlu2 %v6682_v43, %s7839_s3 }
0x2147   :  { %6661 = vperm.xlu0 %7404, %v11413_v52  }
0x2149   :  { %v6642_v49 = vpop.permute.xlu0 %6641  ;;  %v6627_v26 = vpop.permute.xlu1 %6626 }
0x214a   :  { %v6665_v7 = vmul.f32 %v6642_v49, %v6629_v33  ;;  %v6677_v3 = vmul.f32 %v6642_v49, %v11321_v13  ;;  %v6633_v15 = vmul.f32 %v8260_v6, %v6627_v26 }
0x214c   :  { %v11419_v53 = vadd.f32 %v6665_v7, %v11321_v13  ;;  %v11422_v4 = vadd.f32 %v6677_v3, %v6629_v33  ;;  %v6706_v13 = vmul.f32 %v6682_v43, %v8226_v56  ;;  %v11471_v43 = vmul.f32 %v6694_v46, %v11352_v44 }
0x214e   :  { %v6707_v63 = vmul.f32 %v11422_v4, %v8228_v58  ;;  %v6730_v21 = vmax.f32 %v11471_v43, 1e-07 }
0x2150   :  { %vm6741_vm4 = vweird.f32 %v6730_v21  ;;  %v6745_v11 = vand.u32 2147483647, %v6730_v21 }
0x2152   :  { %vm6746_vm6 = vcmp.eq.f32.partialorder %v6745_v11, 8.507059e+37 }
0x2169   :  { %6714 = vadd.xlane.f32.xlu1 %v6707_v63  ;;  %v6647_v48 = vpop.permute.xlu0 %6646 }
0x216a   :  { %v6666_v35 = vmul.f32 %v6647_v48, %v6630_v41  ;;  %v6678_v27 = vmul.f32 %v6647_v48, %v11327_v36 }
0x216c   :  { %v11429_v19 = vadd.f32 %v6678_v27, %v6630_v41  ;;  %v11432_v14 = vadd.f32 %v6666_v35, %v11327_v36 }
0x216e   :  { %v6708_v16 = vmul.f32 %v11429_v19, %v8233_v2 }
0x216f   :  { %6712 = vadd.xlane.f32.xlu2 %v6706_v13 }
0x2171   :  { %6716 = vadd.xlane.f32.xlu0 %v6708_v16 }
0x2174   :  { %v6657_v47 = vpop.permute.xlu2 %6656 }
0x2175   :  { %v6668_v0 = vmul.f32 %v6657_v47, %v6632_v32  ;;  %v6680_v54 = vmul.f32 %v6657_v47, %v11307_v9 }
0x2177   :  { %v11439_v55 = vadd.f32 %v6680_v54, %v6632_v32  ;;  %v11442_v17 = vadd.f32 %v6668_v0, %v11307_v9  ;;  %v6695_v9 = vsub.f32 1.0, %v6689_v39 }
0x2179   :  { %v6710_v36 = vmul.f32 %v11439_v55, %v8275_v30  ;;  %v11459_v40 = vmul.f32 %v6695_v9, %v11356_v1  ;;  %v6690_v1 = vmul.f32 %v11381_v38, %v11381_v38  ;;  %v6747_v9 = vand.u32 2147483648, %v6730_v21 }
0x217b   :  { %6720 = vadd.xlane.f32.xlu1 %v6710_v36  ;;  %v6731_v60 = vmax.f32 %v11459_v40, 1e-07  ;;  %v6696_v33 = vsub.f32 1.0, %v6690_v1 }
0x217d   :  { %7790 = vrcp.f32 %v6731_v60  ;;  %v11479_v7 = vmul.f32 %v6696_v33, %v11367_v37  ;;  %v6760_v16 = vand.u32 2147483647, %v6731_v60  ;;  %v6762_v32 = vand.u32 2147483648, %v6731_v60 }
0x217e   :  { %7792 = vrcp.f32 %v6730_v21  ;;  %vm6756_vm0 = vweird.f32 %v6731_v60 }
0x217f   :  { %v11482_v44 = vmax.f32 %v11479_v7, 1e-07  ;;  %vm6761_vm2 = vcmp.eq.f32.partialorder %v6760_v16, 8.507059e+37 }
0x2181   :  { %7794 = vrcp.f32 %v11482_v44  ;;  %vm6771_vm8 = vweird.f32 %v11482_v44 }
0x2183   :  { %v7791_v49 = vpop.eup %7790 }
0x2184   :  { %v6752_v63 = vmul.f32 %v7791_v49, %v6731_v60  ;;  %v7793_v41 = vpop.eup %7792  ;;  %vm6757_vm15 = vweird.f32 %v7791_v49 }
0x2185   :  { %vm6758_vm1 = vmor %vm6756_vm0, %vm6757_vm15  ;;  %vm6742_vm3 = vweird.f32 %v7793_v41 }
0x2186   :  { %v6753_v48 = vsub.f32 1.0, %v6752_v63  ;;  %vm6743_vm5 = vmor %vm6741_vm4, %vm6742_vm3 }
0x2187   :  { %v7795_v13 = vpop.eup %7794 }
0x2188   :  { %v6754_v37 = vmul.f32 %v7791_v49, %v6753_v48  ;;  %v6767_v0 = vmul.f32 %v7795_v13, %v11482_v44  ;;  %vm6772_vm7 = vweird.f32 %v7795_v13 }
0x2189   :  { %vm6773_vm9 = vmor %vm6771_vm8, %vm6772_vm7 }
0x21a0   :  { %v11496_v36 = vpop.permute.xlu2 %6826 }
0x21b1   :  { %v6652_v45 = vpop.permute.xlu1 %6651 }
0x21b2   :  { %v6667_v24 = vmul.f32 %v6652_v45, %v6631_v28  ;;  %v6679_v25 = vmul.f32 %v6652_v45, %v11340_v22 }
0x21b4   :  { %v6685_v62 = vadd.f32 %v6679_v25, %v6631_v28  ;;  %v11452_v59 = vadd.f32 %v6667_v24, %v11340_v22  ;;  %v6768_v24 = vsub.f32 1.0, %v6767_v0 }
0x21b6   :  { %v6709_v57 = vmul.f32 %v6685_v62, %v8240_v20 }
0x21b8   :  { %6718 = vadd.xlane.f32.xlu2 %v6709_v57 }
0x21b9   :  { %v6662_v5 = vpop.permute.xlu0 %6661 }
0x21ba   :  { %v6669_v34 = vmul.f32 %v6662_v5, %v6633_v15  ;;  %v6681_v51 = vmul.f32 %v6662_v5, %v11343_v23 }
0x21bc   :  { %v11462_v12 = vadd.f32 %v6681_v51, %v6633_v15  ;;  %v11465_v22 = vadd.f32 %v6669_v34, %v11343_v23  ;;  %v6692_v23 = vmul.f32 %v11394_v42, %v11394_v42  ;;  %v6737_v42 = vmul.f32 %v7793_v41, %v6730_v21 }
0x21bd   :  { %v6748_v34 = vor.u32 1.1754944e-38, %v6747_v9  ;;  %v6777_v21 = vand.u32 2147483648, %v11482_v44 }
0x21be   :  { %v6711_v61 = vmul.f32 %v11462_v12, %v8277_v31  ;;  %v6698_v3 = vsub.f32 1.0, %v6692_v23  ;;  %v6738_v27 = vsub.f32 1.0, %v6737_v42 }
0x21c0   :  { %6722 = vadd.xlane.f32.xlu0 %v6711_v61  ;;  %v11485_v38 = vmul.f32 %v6698_v3, %v11379_v10  ;;  %v6755_v10 = vadd.f32 %v7791_v49, %v6754_v37  ;;  %v6739_v47 = vmul.f32 %v7793_v41, %v6738_v27 }
0x21c2   :  { %v11489_v35 = vmax.f32 %v11485_v38, 1e-07  ;;  %v6759_v26 = vsel %vm6758_vm1, %v7791_v49, %v6755_v10  ;;  %v6740_v39 = vadd.f32 %v7793_v41, %v6739_v47  ;;  %v6775_v49 = vand.u32 2147483647, %v11482_v44 }
0x21c4   :  { %7796 = vrcp.f32 %v11489_v35  ;;  %v6744_v15 = vsel %vm6743_vm5, %v7793_v41, %v6740_v39  ;;  %v6807_v48 = vand.u32 2147483648, %v11489_v35  ;;  %vm6776_vm11 = vcmp.eq.f32.partialorder %v6775_v49, 8.507059e+37 }
0x21c5   :  { %v6749_v60 = vsel %vm6746_vm6, %v6748_v34, %v6744_v15  ;;  %vm6801_vm12 = vweird.f32 %v11489_v35  ;;  %v6805_v42 = vand.u32 2147483647, %v11489_v35 }
0x21c6   :  { %v6808_v10 = vor.u32 1.1754944e-38, %v6807_v48 }
0x21c7   :  { %vm6806_vm14 = vcmp.eq.f32.partialorder %v6805_v42, 8.507059e+37 }
0x21ca   :  { %v7797_v54 = vpop.eup %7796 }
0x21cb   :  { %v6797_v25 = vmul.f32 %v7797_v54, %v11489_v35  ;;  %vm6802_vm10 = vweird.f32 %v7797_v54  ;;  %v6691_v35 = vmul.f32 %v11404_v18, %v11404_v18 }
0x21cc   :  { %vm6803_vm13 = vmor %vm6801_vm12, %vm6802_vm10 }
0x21cd   :  { %v6798_v5 = vsub.f32 1.0, %v6797_v25  ;;  %v6697_v0 = vsub.f32 1.0, %v6691_v35  ;;  %v6838_v35 = vmul.f32 %v8260_v6, %v11496_v36 }
0x21cf   :  { %v6799_v33 = vmul.f32 %v7797_v54, %v6798_v5 }
0x21d0   :  { %6832 = vrot.lane.b32.xlu2 %v6685_v62, %s7839_s3 }
0x21d1   :  { %v6800_v41 = vadd.f32 %v7797_v54, %v6799_v33 }
0x21d3   :  { %v6804_v44 = vsel %vm6803_vm13, %v7797_v54, %v6800_v41  ;;  %v11526_v54 = vmul.f32 %v6697_v0, %v11390_v50 }
0x21d4   :  { %6828 = vrot.lane.b32.xlu0 %v11422_v4, %s7839_s3  ;;  %v6763_v4 = vor.u32 1.1754944e-38, %v6762_v32  ;;  %v6809_v32 = vsel %vm6806_vm14, %v6808_v10, %v6804_v44 }
0x21d6   :  { %v6764_v62 = vsel %vm6761_vm2, %v6763_v4, %v6759_v26  ;;  %v6693_v26 = vmul.f32 %v11413_v52, %v11413_v52  ;;  %v6733_v4 = vmax.f32 %v11526_v54, 1e-07 }
0x21d8   :  { %7798 = vrcp.f32 %v6733_v4  ;;  %v6792_v52 = vand.u32 2147483648, %v6733_v4  ;;  %vm6786_vm0 = vweird.f32 %v6733_v4  ;;  %v6790_v15 = vand.u32 2147483647, %v6733_v4 }
0x21da   :  { %vm6791_vm2 = vcmp.eq.f32.partialorder %v6790_v15, 8.507059e+37 }
0x21dc   :  { %6830 = vrot.lane.b32.xlu0 %v11429_v19, %s7839_s3  ;;  %v6715_v28 = vpop.xlane.xlu1 %6714  ;;  %v6769_v19 = vmul.f32 %v7795_v13, %v6768_v24 }
0x21dd   :  { %v6725_v45 = vsub.f32 0.0, %v6715_v28  ;;  %v6699_v28 = vsub.f32 1.0, %v6693_v26 }
0x21de   :  { %v6770_v1 = vadd.f32 %v7795_v13, %v6769_v19 }
0x21df   :  { %v11501_v57 = vmul.f32 %v6764_v62, %v6725_v45  ;;  %v11532_v45 = vmul.f32 %v6699_v28, %v11399_v29  ;;  %v6793_v29 = vor.u32 1.1754944e-38, %v6792_v52 }
0x21e0   :  { %v6774_v3 = vsel %vm6773_vm9, %v7795_v13, %v6770_v1 }
0x21e1   :  { %6851 = vperm.xlu2 %7403, %v11501_v57   ;;  %v6735_v39 = vmax.f32 %v11532_v45, 1e-07 }
0x21e2   :  { %v6713_v51 = vpop.xlane.xlu2 %6712 }
0x21e3   :  { %v6724_v46 = vsub.f32 0.0, %v6713_v51  ;;  %7800 = vrcp.f32 %v6735_v39  ;;  %v6822_v33 = vand.u32 2147483648, %v6735_v39  ;;  %vm6816_vm4 = vweird.f32 %v6735_v39 }
0x21e4   :  { %6836 = vrot.lane.b32.xlu0 %v11462_v12, %s7839_s3  ;;  %v6717_v23 = vpop.xlane.xlu0 %6716  ;;  %v6778_v12 = vor.u32 1.1754944e-38, %v6777_v21  ;;  %v6820_v21 = vand.u32 2147483647, %v6735_v39 }
0x21e5   :  { %v11506_v61 = vmul.f32 %v6749_v60, %v6724_v46  ;;  %v6726_v63 = vsub.f32 0.0, %v6717_v23  ;;  %v6823_v49 = vor.u32 1.1754944e-38, %v6822_v33 }
0x21e6   :  { %v6779_v37 = vsel %vm6776_vm11, %v6778_v12, %v6774_v3  ;;  %vm6821_vm6 = vcmp.eq.f32.partialorder %v6820_v21, 8.507059e+37 }
0x21e7   :  { %6846 = vperm.xlu1 %7405, %v11506_v61   ;;  %v11515_v27 = vmul.f32 %v6779_v37, %v6726_v63  ;;  %v6898_v21 = vmul.f32 %v11506_v61, %v11506_v61 }
0x21ee   :  { %v6721_v16 = vpop.xlane.xlu1 %6720 }
0x21ef   :  { %v6728_v13 = vsub.f32 0.0, %v6721_v16  ;;  %6856 = vperm.xlu1 %7405, %v11515_v27  }
0x21f1   :  { %v11518_v47 = vmul.f32 %v6809_v32, %v6728_v13 }
0x21f3   :  { %6866 = vperm.xlu2 %7403, %v11518_v47  }
0x21f7   :  { %6834 = vrot.lane.b32.xlu1 %v11439_v55, %s7839_s3  ;;  %v7799_v55 = vpop.eup %7798 }
0x21f8   :  { %v6782_v24 = vmul.f32 %v7799_v55, %v6733_v4  ;;  %v7801_v25 = vpop.eup %7800  ;;  %vm6787_vm15 = vweird.f32 %v7799_v55 }
0x21f9   :  { %v6812_v50 = vmul.f32 %v7801_v25, %v6735_v39  ;;  %vm6788_vm1 = vmor %vm6786_vm0, %vm6787_vm15  ;;  %vm6817_vm3 = vweird.f32 %v7801_v25 }
0x21fa   :  { %v6783_v18 = vsub.f32 1.0, %v6782_v24  ;;  %vm6818_vm5 = vmor %vm6816_vm4, %vm6817_vm3 }
0x21fb   :  { %v6813_v11 = vsub.f32 1.0, %v6812_v50 }
0x21fc   :  { %v6784_v62 = vmul.f32 %v7799_v55, %v6783_v18 }
0x21fd   :  { %v6814_v5 = vmul.f32 %v7801_v25, %v6813_v11 }
0x21fe   :  { %v6785_v9 = vadd.f32 %v7799_v55, %v6784_v62 }
0x21ff   :  { %v6815_v1 = vadd.f32 %v7801_v25, %v6814_v5 }
0x2200   :  { %v6789_v19 = vsel %vm6788_vm1, %v7799_v55, %v6785_v9 }
0x2201   :  { %v6794_v46 = vsel %vm6791_vm2, %v6793_v29, %v6789_v19  ;;  %v6819_v23 = vsel %vm6818_vm5, %v7801_v25, %v6815_v1 }
0x2202   :  { %v6824_v41 = vsel %vm6821_vm6, %v6823_v49, %v6819_v23 }
0x222b   :  { %v6719_v34 = vpop.xlane.xlu2 %6718 }
0x222c   :  { %v6727_v51 = vsub.f32 0.0, %v6719_v34 }
0x222e   :  { %v11535_v60 = vmul.f32 %v6794_v46, %v6727_v51 }
0x2230   :  { %6861 = vperm.xlu0 %7404, %v11535_v60  }
0x2233   :  { %v6723_v3 = vpop.xlane.xlu0 %6722  ;;  %v6833_v48 = vpop.permute.xlu2 %6832 }
0x2234   :  { %v6729_v63 = vsub.f32 0.0, %v6723_v3  ;;  %v6841_v51 = vmul.f32 %v8260_v6, %v6833_v48 }
0x2236   :  { %v11538_v12 = vmul.f32 %v6824_v41, %v6729_v63  ;;  %v6904_v63 = vsub.f32 1.0, %v6898_v21 }
0x2238   :  { %6871 = vperm.xlu1 %7405, %v11538_v12   ;;  %v6910_v61 = vmul.f32 %v6904_v63, %v11471_v43 }
0x223b   :  { %v6852_v42 = vpop.permute.xlu2 %6851 }
0x223c   :  { %v6887_v44 = vmul.f32 %v6852_v42, %v11419_v53 }
0x2246   :  { %v6829_v37 = vpop.permute.xlu0 %6828 }
0x2247   :  { %v6839_v10 = vmul.f32 %v8260_v6, %v6829_v37  ;;  %v6940_v37 = vmax.f32 %v6910_v61, 1e-07 }
0x2249   :  { %v6875_v16 = vmul.f32 %v6852_v42, %v6839_v10  ;;  %v6893_v13 = vadd.f32 %v6887_v44, %v6839_v10  ;;  %7802 = vrcp.f32 %v6940_v37  ;;  %v6902_v10 = vmul.f32 %v11518_v47, %v11518_v47 }
0x224a   :  { %vm6951_vm8 = vweird.f32 %v6940_v37 }
0x224b   :  { %7038 = vrot.lane.b32.xlu1 %v6893_v13, %s7839_s3  ;;  %v11545_v32 = vadd.f32 %v6875_v16, %v11419_v53  ;;  %v6917_v0 = vmul.f32 %v6893_v13, %v8228_v58  ;;  %v6900_v13 = vmul.f32 %v11515_v27, %v11515_v27 }
0x224d   :  { %v6867_v58 = vpop.permute.xlu2 %6866  ;;  %v6906_v43 = vsub.f32 1.0, %v6900_v13 }
0x224e   :  { %v6831_v24 = vpop.permute.xlu0 %6830  ;;  %v6890_v9 = vmul.f32 %v6867_v58, %v11442_v17 }
0x224f   :  { %v6840_v53 = vmul.f32 %v8260_v6, %v6831_v24 }
0x2256   :  { %v6837_v34 = vpop.permute.xlu0 %6836 }
0x2259   :  { %v6847_v26 = vpop.permute.xlu1 %6846 }
0x225a   :  { %v6874_v4 = vmul.f32 %v6847_v26, %v6838_v35  ;;  %v6886_v28 = vmul.f32 %v6847_v26, %v11411_v8  ;;  %6924 = vadd.xlane.f32.xlu0 %v6917_v0 }
0x225c   :  { %v6892_v39 = vadd.f32 %v6886_v28, %v6838_v35  ;;  %v11552_v55 = vadd.f32 %v6874_v4, %v11411_v8 }
0x225e   :  { %v6916_v18 = vmul.f32 %v6892_v39, %v8226_v56 }
0x2260   :  { %6922 = vadd.xlane.f32.xlu2 %v6916_v18  ;;  %v6957_v18 = vand.u32 2147483648, %v6940_v37 }
0x2261   :  { %v6857_v25 = vpop.permute.xlu1 %6856 }
0x2262   :  { %v6876_v62 = vmul.f32 %v6857_v25, %v6840_v53  ;;  %v6888_v8 = vmul.f32 %v6857_v25, %v11432_v14 }
0x2264   :  { %v11557_v36 = vadd.f32 %v6876_v62, %v11432_v14  ;;  %v6894_v5 = vadd.f32 %v6888_v8, %v6840_v53  ;;  %v6955_v53 = vand.u32 2147483647, %v6940_v37 }
0x2266   :  { %v6918_v29 = vmul.f32 %v6894_v5, %v8233_v2  ;;  %v6843_v2 = vmul.f32 %v8260_v6, %v6837_v34  ;;  %vm6956_vm10 = vcmp.eq.f32.partialorder %v6955_v53, 8.507059e+37 }
0x2269   :  { %v6835_v50 = vpop.permute.xlu1 %6834 }
0x226a   :  { %v6842_v11 = vmul.f32 %v8260_v6, %v6835_v50 }
0x226c   :  { %v6878_v52 = vmul.f32 %v6867_v58, %v6842_v11  ;;  %v11562_v15 = vadd.f32 %v6890_v9, %v6842_v11  ;;  %v6958_v58 = vor.u32 1.1754944e-38, %v6957_v18 }
0x226e   :  { %v11565_v56 = vadd.f32 %v6878_v52, %v11442_v17  ;;  %v6920_v19 = vmul.f32 %v11562_v15, %v8275_v30 }
0x2270   :  { %6930 = vadd.xlane.f32.xlu0 %v6920_v19 }
0x2275   :  { %6926 = vadd.xlane.f32.xlu1 %v6918_v29 }
0x2278   :  { %7036 = vrot.lane.b32.xlu2 %v6892_v39, %s7839_s3 }
0x22a2   :  { %v6862_v14 = vpop.permute.xlu0 %6861 }
0x22a3   :  { %v6877_v46 = vmul.f32 %v6862_v14, %v6841_v51  ;;  %v6889_v1 = vmul.f32 %v6862_v14, %v11452_v59 }
0x22a5   :  { %v6895_v33 = vadd.f32 %v6889_v1, %v6841_v51  ;;  %v11574_v17 = vadd.f32 %v6877_v46, %v11452_v59 }
0x22a7   :  { %v6919_v30 = vmul.f32 %v6895_v33, %v8240_v20  ;;  %v6899_v20 = vmul.f32 %v11501_v57, %v11501_v57 }
0x22a9   :  { %6928 = vadd.xlane.f32.xlu2 %v6919_v30  ;;  %v6905_v42 = vsub.f32 1.0, %v6899_v20 }
0x22aa   :  { %v6872_v23 = vpop.permute.xlu1 %6871 }
0x22ab   :  { %v6879_v49 = vmul.f32 %v6872_v23, %v6843_v2  ;;  %v6891_v3 = vmul.f32 %v6872_v23, %v11465_v22  ;;  %v6911_v44 = vmul.f32 %v6905_v42, %v11459_v40  ;;  %v6912_v40 = vmul.f32 %v6906_v43, %v11479_v7 }
0x22ad   :  { %v11581_v41 = vadd.f32 %v6891_v3, %v6843_v2  ;;  %v11584_v48 = vadd.f32 %v6879_v49, %v11465_v22  ;;  %v6941_v16 = vmax.f32 %v6911_v44, 1e-07  ;;  %v6908_v22 = vsub.f32 1.0, %v6902_v10 }
0x22ae   :  { %v11599_v47 = vmax.f32 %v6912_v40, 1e-07 }
0x22af   :  { %v6921_v59 = vmul.f32 %v11581_v41, %v8277_v31  ;;  %v7803_v31 = vpop.eup %7802  ;;  %7804 = vrcp.f32 %v6941_v16  ;;  %v6914_v57 = vmul.f32 %v6908_v22, %v11485_v38  ;;  %v6972_v34 = vand.u32 2147483648, %v6941_v16 }
0x22b0   :  { %v6947_v35 = vmul.f32 %v7803_v31, %v6940_v37  ;;  %vm6952_vm7 = vweird.f32 %v7803_v31  ;;  %vm6966_vm12 = vweird.f32 %v6941_v16  ;;  %v6970_v14 = vand.u32 2147483647, %v6941_v16 }
0x22b1   :  { %6932 = vadd.xlane.f32.xlu1 %v6921_v59  ;;  %v6944_v0 = vmax.f32 %v6914_v57, 1e-07  ;;  %vm6953_vm9 = vmor %vm6951_vm8, %vm6952_vm7  ;;  %v6973_v30 = vor.u32 1.1754944e-38, %v6972_v34  ;;  %vm6981_vm4 = vweird.f32 %v11599_v47  ;;  %v6985_v13 = vand.u32 2147483647, %v11599_v47  ;;  %v7114_v34 = vld [vmem:[%s11848_s5 + $0x90] sm:$0xff] }
0x22b2   :  { %v6948_v26 = vsub.f32 1.0, %v6947_v35  ;;  %vm6971_vm14 = vcmp.eq.f32.partialorder %v6970_v14, 8.507059e+37 }
0x22b3   :  { %7806 = vrcp.f32 %v6944_v0  ;;  %v7017_v3 = vand.u32 2147483648, %v6944_v0  ;;  %vm7011_vm0 = vweird.f32 %v6944_v0  ;;  %v7015_v20 = vand.u32 2147483647, %v6944_v0 }
0x22b4   :  { %v6949_v27 = vmul.f32 %v7803_v31, %v6948_v26  ;;  %7808 = vrcp.f32 %v11599_v47  ;;  %vm6986_vm6 = vcmp.eq.f32.partialorder %v6985_v13, 8.507059e+37 }
0x22b5   :  { %v7805_v4 = vpop.eup %7804  ;;  %v7018_v42 = vor.u32 1.1754944e-38, %v7017_v3  ;;  %vm7016_vm3 = vcmp.eq.f32.partialorder %v7015_v20, 8.507059e+37  ;;  %v7113_v20 = vld [vmem:[%s11848_s5 + $0x88] sm:$0xff] }
0x22b6   :  { %v6962_v28 = vmul.f32 %v7805_v4, %v6941_v16  ;;  %v6950_v38 = vadd.f32 %v7803_v31, %v6949_v27  ;;  %vm6967_vm11 = vweird.f32 %v7805_v4  ;;  %v6987_v16 = vand.u32 2147483648, %v11599_v47 }
0x22b7   :  { %vm6968_vm13 = vmor %vm6966_vm12, %vm6967_vm11  ;;  %v6903_v27 = vmul.f32 %v11538_v12, %v11538_v12 }
0x22b8   :  { %v6963_v39 = vsub.f32 1.0, %v6962_v28  ;;  %v6954_v25 = vsel %vm6953_vm9, %v7803_v31, %v6950_v38  ;;  %v6988_v43 = vor.u32 1.1754944e-38, %v6987_v16  ;;  %v7108_v16 = vld [vmem:[%s11848_s5 + $0x60] sm:$0xff] }
0x22b9   :  { %v7807_v24 = vpop.eup %7806  ;;  %v6959_v8 = vsel %vm6956_vm10, %v6958_v58, %v6954_v25  ;;  %v6909_v38 = vsub.f32 1.0, %v6903_v27  ;;  %v7123_v25 = vld [vmem:[%s11848_s5 + $0xd8] sm:$0xff]  ;;  %v7121_v58 = vld [vmem:[%s11848_s5 + $0xc8] sm:$0xff]  ;;  %v7102_v27 = vld [vmem:[%s11848_s5 + $0x30] sm:$0xff] }
0x22ba   :  { %v6964_v7 = vmul.f32 %v7805_v4, %v6963_v39  ;;  %v7007_v62 = vmul.f32 %v7807_v24, %v6944_v0  ;;  %v7809_v9 = vpop.eup %7808  ;;  %vm7012_vm15 = vweird.f32 %v7807_v24 }
0x22bb   :  { %v6977_v51 = vmul.f32 %v7809_v9, %v11599_v47  ;;  %vm7013_vm1 = vmor %vm7011_vm0, %vm7012_vm15  ;;  %vm6982_vm2 = vweird.f32 %v7809_v9 }
0x22bc   :  { %v6965_v52 = vadd.f32 %v7805_v4, %v6964_v7  ;;  %vm6983_vm5 = vmor %vm6981_vm4, %vm6982_vm2  ;;  %v7122_v7 = vld [vmem:[%s11848_s5 + $0xd0] sm:$0xff] }
0x22bd   :  { %v6978_v21 = vsub.f32 1.0, %v6977_v51  ;;  %v11604_v59 = vpop.permute.xlu1 %7038  ;;  %v7115_v51 = vld [vmem:[%s11848_s5 + $0x98] sm:$0xff] }
0x22be   :  { %v6969_v1 = vsel %vm6968_vm13, %v7805_v4, %v6965_v52  ;;  %v6901_v4 = vmul.f32 %v11535_v60, %v11535_v60  ;;  %v7126_v60 = vld [vmem:[%s11848_s5 + $0xf0] sm:$0xff]  ;;  %v7116_v52 = vld [vmem:[%s11848_s5 + $0xa0] sm:$0xff] }
0x22bf   :  { %v6974_v2 = vsel %vm6971_vm14, %v6973_v30, %v6969_v1  ;;  %v6979_v63 = vmul.f32 %v7809_v9, %v6978_v21  ;;  %7128 = vmatpush.msra.mxu3 %v7126_v60  ;;  %v7098_v60 = vld [vmem:[%s11848_s5 + $0x10] sm:$0xff] }
0x22c0   :  { %v6907_v28 = vsub.f32 1.0, %v6901_v4 }
0x22c1   :  { %7040 = vrot.lane.b32.xlu2 %v6894_v5, %s7839_s3  ;;  %v7008_v5 = vsub.f32 1.0, %v7007_v62  ;;  %v6980_v44 = vadd.f32 %v7809_v9, %v6979_v63  ;;  %v7120_v62 = vld [vmem:[%s11848_s5 + $0xc0] sm:$0xff] }
0x22c2   :  { %v6913_v47 = vmul.f32 %v6907_v28, %v11526_v54  ;;  %v7124_v54 = vld [vmem:[%s11848_s5 + $0xe0] sm:$0xff] }
0x22c3   :  { %v6984_v57 = vsel %vm6983_vm5, %v7809_v9, %v6980_v44  ;;  %7129 = vmatpush.msra.mxu3 %v7124_v54  ;;  %v7118_v9 = vld [vmem:[%s11848_s5 + $0xb0] sm:$0xff]  ;;  %v7112_v63 = vld [vmem:[%s11848_s5 + $0x80] sm:$0xff] }
0x22c4   :  { %v6989_v40 = vsel %vm6986_vm6, %v6988_v43, %v6984_v57  ;;  %v6943_v39 = vmax.f32 %v6913_v47, 1e-07  ;;  %v7106_v57 = vld [vmem:[%s11848_s5 + $0x50] sm:$0xff]  ;;  %v7107_v43 = vld [vmem:[%s11848_s5 + $0x58] sm:$0xff]  ;;  %v7096_v54 = vld [vmem:[%s11848_s5] sm:$0xff] }
0x22c5   :  { %7130 = vmatpush.msra.mxu3 %v7122_v7 }
0x22c6   :  { %7810 = vrcp.f32 %v6943_v39  ;;  %vm6996_vm8 = vweird.f32 %v6943_v39  ;;  %v7000_v30 = vand.u32 2147483647, %v6943_v39 }
0x22c7   :  { %7131 = vmatpush.msra.mxu3 %v7120_v62  ;;  %v7049_v62 = vmul.f32 %v8260_v6, %v11604_v59 }
0x22c8   :  { %vm7001_vm10 = vcmp.eq.f32.partialorder %v7000_v30, 8.507059e+37 }
0x22c9   :  { %7132 = vmatpush.msra.mxu3 %v7118_v9 }
0x22ca   :  { %7042 = vrot.lane.b32.xlu1 %v6895_v33, %s7839_s3  ;;  %v7009_v33 = vmul.f32 %v7807_v24, %v7008_v5 }
0x22cb   :  { %7133 = vmatpush.msra.mxu3 %v7116_v52 }
0x22cc   :  { %v7010_v49 = vadd.f32 %v7807_v24, %v7009_v33  ;;  %v7811_v53 = vpop.eup %7810  ;;  %v7002_v33 = vand.u32 2147483648, %v6943_v39 }
0x22cd   :  { %v6925_v29 = vpop.xlane.xlu0 %6924  ;;  %v6992_v12 = vmul.f32 %v7811_v53, %v6943_v39  ;;  %7134 = vmatpush.msra.mxu3 %v7114_v34  ;;  %vm6997_vm7 = vweird.f32 %v7811_v53  ;;  %v7103_v39 = vld [vmem:[%s11848_s5 + $0x38] sm:$0xff] }
0x22ce   :  { %v6935_v46 = vsub.f32 0.0, %v6925_v29  ;;  %v7014_v61 = vsel %vm7013_vm1, %v7807_v24, %v7010_v49  ;;  %v6915_v24 = vmul.f32 %v6909_v38, %v11532_v45  ;;  %v7125_v45 = vld [vmem:[%s11848_s5 + $0xe8] sm:$0xff]  ;;  %vm6998_vm9 = vmor %vm6996_vm8, %vm6997_vm7 }
0x22cf   :  { %v7019_v22 = vsel %vm7016_vm3, %v7018_v42, %v7014_v61  ;;  %v7110_v61 = vld [vmem:[%s11848_s5 + $0x70] sm:$0xff]  ;;  %7135 = vmatpush.msra.mxu3 %v7112_v63 }
0x22d0   :  { %v6975_v23 = vmul.f32 %v6974_v2, %v6935_v46  ;;  %v11617_v18 = vmax.f32 %v6915_v24, 1e-07 }
0x22d1   :  { %7136 = vmatpush.msra.mxu3 %v7110_v61 }
0x22d2   :  { %7812 = vrcp.f32 %v11617_v18  ;;  %v7032_v13 = vand.u32 2147483648, %v11617_v18  ;;  %vm7026_vm12 = vweird.f32 %v11617_v18 }
0x22d3   :  { %v6923_v50 = vpop.xlane.xlu2 %6922  ;;  %7137 = vmatpush.msra.mxu3 %v7108_v16 }
0x22d4   :  { %v6934_v11 = vsub.f32 0.0, %v6923_v50  ;;  %v6993_v50 = vsub.f32 1.0, %v6992_v12  ;;  %v7033_v4 = vor.u32 1.1754944e-38, %v7032_v13 }
0x22d5   :  { %7138 = vmatpush.msra.mxu3 %v7106_v57 }
0x22d6   :  { %v6960_v19 = vmul.f32 %v6959_v8, %v6934_v11  ;;  %v7119_v11 = vld [vmem:[%s11848_s5 + $0xb8] sm:$0xff]  ;;  %v6994_v5 = vmul.f32 %v7811_v53, %v6993_v50 }
0x22d8   :  { %7056 = vperm.xlu0 %7404, %v6960_v19   ;;  %v11650_v8 = vpop.eup %7812  ;;  %v7117_v19 = vld [vmem:[%s11848_s5 + $0xa8] sm:$0xff]  ;;  %v6995_v46 = vadd.f32 %v7811_v53, %v6994_v5 }
0x22d9   :  { %v7022_v29 = vmul.f32 %v11650_v8, %v11617_v18  ;;  %vm7027_vm11 = vweird.f32 %v11650_v8 }
0x22da   :  { %v6999_v21 = vsel %vm6998_vm9, %v7811_v53, %v6995_v46  ;;  %vm11698_vm13 = vmor %vm7026_vm12, %vm7027_vm11  ;;  %v7101_v53 = vld [vmem:[%s11848_s5 + $0x28] sm:$0xff] }
0x22db   :  { %v11666_v14 = vpop.permute.xlu2 %7036  ;;  %v7023_v1 = vsub.f32 1.0, %v7022_v29 }
0x22dd   :  { %v7024_v2 = vmul.f32 %v11650_v8, %v7023_v1 }
0x22e0   :  { %7061 = vperm.xlu0 %7404, %v6975_v23   ;;  %v7003_v23 = vor.u32 1.1754944e-38, %v7002_v33 }
0x22e2   :  { %v7004_v42 = vsel %vm7001_vm10, %v7003_v23, %v6999_v21 }
0x22e3   :  { %v6931_v37 = vpop.xlane.xlu0 %6930 }
0x22e4   :  { %v6938_v10 = vsub.f32 0.0, %v6931_v37  ;;  %v7111_v37 = vld [vmem:[%s11848_s5 + $0x78] sm:$0xff] }
0x22e6   :  { %v7020_v31 = vmul.f32 %v7019_v22, %v6938_v10  ;;  %v7025_v10 = vadd.f32 %v11650_v8, %v7024_v2  ;;  %v7109_v22 = vld [vmem:[%s11848_s5 + $0x68] sm:$0xff] }
0x22e8   :  { %7076 = vperm.xlu1 %7405, %v7020_v31   ;;  %v6927_v35 = vpop.xlane.xlu1 %6926  ;;  %v7030_v31 = vand.u32 2147483647, %v11617_v18  ;;  %v7100_v18 = vld [vmem:[%s11848_s5 + $0x20] sm:$0xff] }
0x22e9   :  { %v6936_v0 = vsub.f32 0.0, %v6927_v35 }
0x22ea   :  { %vm7031_vm14 = vcmp.eq.f32.partialorder %v7030_v31, 8.507059e+37 }
0x22eb   :  { %v6990_v26 = vmul.f32 %v6989_v40, %v6936_v0  ;;  %v7029_v0 = vsel %vm11698_vm13, %v11650_v8, %v7025_v10  ;;  %v7104_v40 = vld [vmem:[%s11848_s5 + $0x40] sm:$0xff] }
0x22ec   :  { %v7034_v38 = vsel %vm7031_vm14, %v7033_v4, %v7029_v0  ;;  %7139 = vmatpush.msra.mxu3 %v7104_v40 }
0x22ed   :  { %7066 = vperm.xlu0 %7404, %v6990_v26   ;;  %v7105_v26 = vld [vmem:[%s11848_s5 + $0x48] sm:$0xff] }
0x22ee   :  { %7140 = vmatpush.msra.mxu3 %v7102_v27 }
0x22f0   :  { %7141 = vmatpush.msra.mxu3 %v7100_v18 }
0x22f2   :  { %7142 = vmatpush.msra.mxu3 %v7098_v60 }
0x22f4   :  { %7143 = vmatpush.msra.mxu3 %v7096_v54 }
0x22f5   :  { %7044 = vrot.lane.b32.xlu0 %v11562_v15, %s7839_s3  ;;  %v7127_v15 = vld [vmem:[%s11848_s5 + $0xf8] sm:$0xff] }
0x22f6   :  { %7163 = vmatpush.msrb.mxu0 %v7127_v15  ;;  %7379 = vmatpush.msrb.mxu2 %v7127_v15  ;;  %v7099_v15 = vld [vmem:[%s11848_s5 + $0x18] sm:$0xff] }
0x22f8   :  { %7164 = vmatpush.msrb.mxu0 %v7125_v45  ;;  %7380 = vmatpush.msrb.mxu2 %v7125_v45  ;;  %v7048_v45 = vmul.f32 %v8260_v6, %v11666_v14 }
0x22fa   :  { %7165 = vmatpush.msrb.mxu0 %v7123_v25  ;;  %7381 = vmatpush.msrb.mxu2 %v7123_v25 }
0x22fc   :  { %7166 = vmatpush.msrb.mxu0 %v7121_v58  ;;  %7382 = vmatpush.msrb.mxu2 %v7121_v58 }
0x22fe   :  { %7167 = vmatpush.msrb.mxu0 %v7119_v11  ;;  %7383 = vmatpush.msrb.mxu2 %v7119_v11 }
0x2300   :  { %7168 = vmatpush.msrb.mxu0 %v7117_v19  ;;  %7384 = vmatpush.msrb.mxu2 %v7117_v19 }
0x2302   :  { %7169 = vmatpush.msrb.mxu0 %v7115_v51  ;;  %7385 = vmatpush.msrb.mxu2 %v7115_v51 }
0x2304   :  { %7170 = vmatpush.msrb.mxu0 %v7113_v20  ;;  %7386 = vmatpush.msrb.mxu2 %v7113_v20 }
0x2306   :  { %7171 = vmatpush.msrb.mxu0 %v7111_v37  ;;  %7387 = vmatpush.msrb.mxu2 %v7111_v37 }
0x2308   :  { %7172 = vmatpush.msrb.mxu0 %v7109_v22  ;;  %7388 = vmatpush.msrb.mxu2 %v7109_v22 }
0x230a   :  { %7173 = vmatpush.msrb.mxu0 %v7107_v43  ;;  %7389 = vmatpush.msrb.mxu2 %v7107_v43 }
0x230c   :  { %7174 = vmatpush.msrb.mxu0 %v7105_v26  ;;  %7390 = vmatpush.msrb.mxu2 %v7105_v26 }
0x230e   :  { %7175 = vmatpush.msrb.mxu0 %v7103_v39  ;;  %7391 = vmatpush.msrb.mxu2 %v7103_v39 }
0x2310   :  { %7176 = vmatpush.msrb.mxu0 %v7101_v53  ;;  %7392 = vmatpush.msrb.mxu2 %v7101_v53 }
0x2312   :  { %7177 = vmatpush.msrb.mxu0 %v7099_v15  ;;  %7393 = vmatpush.msrb.mxu2 %v7099_v15 }
0x231c   :  { %v6929_v49 = vpop.xlane.xlu2 %6928 }
0x231d   :  { %v6937_v3 = vsub.f32 0.0, %v6929_v49 }
0x231f   :  { %v7005_v44 = vmul.f32 %v7004_v42, %v6937_v3 }
0x2321   :  { %7071 = vperm.xlu2 %7403, %v7005_v44  }
0x2324   :  { %v6933_v28 = vpop.xlane.xlu1 %6932  ;;  %v7041_v11 = vpop.permute.xlu2 %7040 }
0x2325   :  { %v6939_v47 = vsub.f32 0.0, %v6933_v28  ;;  %v7050_v8 = vmul.f32 %v8260_v6, %v7041_v11 }
0x2327   :  { %v7035_v24 = vmul.f32 %v7034_v38, %v6939_v47 }
0x2329   :  { %7046 = vrot.lane.b32.xlu2 %v11581_v41, %s7839_s3  ;;  %7081 = vperm.xlu0 %7404, %v7035_v24   ;;  %v7097_v41 = vld [vmem:[%s11848_s5 + $0x8] sm:$0xff] }
0x232a   :  { %7178 = vmatpush.msrb.mxu0 %v7097_v41  ;;  %7394 = vmatpush.msrb.mxu2 %v7097_v41 }
0x233c   :  { %v7043_v5 = vpop.permute.xlu1 %7042 }
0x234a   :  { %v7057_v12 = vpop.permute.xlu0 %7056 }
0x234b   :  { %v7084_v7 = vmul.f32 %v7057_v12, %v7048_v45  ;;  %v7312_v45 = vld [vmem:[%s11845_s7] sm:$0xff] }
0x234c   :  { %v7330_v12 = vld [vmem:[%s11846_s8] sm:$0xff] }
0x234d   :  { %v7090_v25 = vadd.f32 %v7084_v7, %v11552_v55 }
0x234f   :  { %7144 = vmatmul.f32.vlgmr.msra.gmra.mxu3 %v7090_v25  ;;  %7179 = vmatmul.f32.vlgmr.msrb.gmra.mxu0 %v7090_v25 }
0x2352   :  { %v7062_v58 = vpop.permute.xlu0 %7061 }
0x2353   :  { %v7085_v50 = vmul.f32 %v7062_v58, %v7049_v62 }
0x2355   :  { %v7091_v9 = vadd.f32 %v7085_v50, %v11545_v32  ;;  %v7051_v32 = vmul.f32 %v8260_v6, %v7043_v5 }
0x2357   :  { %7147 = vmatmul.f32.gmra.mxu3 %v7091_v9  ;;  %7182 = vmatmul.f32.gmra.mxu0 %v7091_v9 }
0x235a   :  { %v7077_v59 = vpop.permute.xlu1 %7076 }
0x235f   :  { %v7067_v52 = vpop.permute.xlu0 %7066 }
0x2360   :  { %v7086_v19 = vmul.f32 %v7067_v52, %v7050_v8  ;;  %v7313_v52 = vld [vmem:[%s11845_s7 + $0x8] sm:$0xff] }
0x2362   :  { %v7092_v29 = vadd.f32 %v7086_v19, %v11557_v36  ;;  %v7331_v19 = vld [vmem:[%s11846_s8 + $0x8] sm:$0xff] }
0x2364   :  { %7150 = vmatmul.f32.gmra.mxu3 %v7092_v29  ;;  %7185 = vmatmul.f32.gmra.mxu0 %v7092_v29 }
0x2367   :  { %v7045_v55 = vpop.permute.xlu0 %7044 }
0x2368   :  { %v7052_v34 = vmul.f32 %v8260_v6, %v7045_v55 }
0x236a   :  { %v7088_v51 = vmul.f32 %v7077_v59, %v7052_v34 }
0x236c   :  { %v7094_v14 = vadd.f32 %v7088_v51, %v11565_v56 }
0x236e   :  { %7191 = vmatmul.f32.vlgmr.msrb.gmra.mxu2 %v7094_v14 }
0x237b   :  { %v7072_v46 = vpop.permute.xlu2 %7071 }
0x237c   :  { %v7087_v1 = vmul.f32 %v7072_v46, %v7051_v32 }
0x237e   :  { %v7093_v33 = vadd.f32 %v7087_v1, %v11574_v17 }
0x2380   :  { %7153 = vmatmul.f32.gmra.mxu3 %v7093_v33  ;;  %7188 = vmatmul.f32.gmra.mxu0 %v7093_v33 }
0x2383   :  { %v7047_v36 = vpop.permute.xlu2 %7046 }
0x2384   :  { %v7053_v30 = vmul.f32 %v8260_v6, %v7047_v36 }
0x2388   :  { %7156 = vmatmul.f32.gmra.mxu3 %v7094_v14 }
0x239b   :  { %v7082_v21 = vpop.permute.xlu0 %7081 }
0x239c   :  { %v7089_v2 = vmul.f32 %v7082_v21, %v7053_v30 }
0x239e   :  { %v7095_v23 = vadd.f32 %v7089_v2, %v11584_v48 }
0x23a0   :  { %7159 = vmatmul.f32.gmra.mxu3 %v7095_v23  ;;  %7194 = vmatmul.f32.gmra.mxu2 %v7095_v23  ;;  %v7314_v23 = vld [vmem:[%s11845_s7 + $0x10] sm:$0xff] }
0x23cc   :  { %v7180_v56 = vpop.f32.mrf.mxu0 }
0x23cd   :  { %v7204_v3 = vmul.f32 %v7180_v56, %v7180_v56  ;;  %v7332_v56 = vld [vmem:[%s11846_s8 + $0x10] sm:$0xff] }
0x23d2   :  { %v7145_v49 = vpop.f32.mrf.mxu3 }
0x23d3   :  { %v7198_v63 = vmul.f32 %v7145_v49, %v7145_v49 }
0x23d4   :  { %v7183_v42 = vpop.f32.mrf.mxu0 }
0x23d5   :  { %v7210_v20 = vadd.f32 %v7204_v3, %v7198_v63  ;;  %v7205_v37 = vmul.f32 %v7183_v42, %v7183_v42 }
0x23d7   :  { %v7222_v61 = vmax.f32 %v7210_v20, 1e-14  ;;  %vm7216_vm2 = vcmp.lt.f32.partialorder %v7210_v20, 1e-14 }
0x23d9   :  { %7814 = vrsqrt.f32 %v7222_v61  ;;  %vm7234_vm0 = vweird.f32 %v7222_v61 }
0x23da   :  { %v7148_v17 = vpop.f32.mrf.mxu3 }
0x23db   :  { %v7199_v44 = vmul.f32 %v7148_v17, %v7148_v17 }
0x23dd   :  { %v7211_v10 = vadd.f32 %v7205_v37, %v7199_v44 }
0x23df   :  { %v7815_v16 = vpop.eup %7814  ;;  %v7223_v6 = vmax.f32 %v7211_v10, 1e-14  ;;  %vm7217_vm6 = vcmp.lt.f32.partialorder %v7211_v10, 1e-14 }
0x23e0   :  { %v7229_v22 = vmul.f32 %v7815_v16, %v7222_v61  ;;  %vm7235_vm15 = vweird.f32 %v7815_v16 }
0x23e1   :  { %7816 = vrsqrt.f32 %v7223_v6  ;;  %v7186_v31 = vpop.f32.mrf.mxu0  ;;  %vm7236_vm1 = vmor %vm7234_vm0, %vm7235_vm15  ;;  %vm7244_vm4 = vweird.f32 %v7223_v6 }
0x23e2   :  { %v7230_v13 = vmul.f32 %v7815_v16, %v7229_v22  ;;  %v7206_v26 = vmul.f32 %v7186_v31, %v7186_v31 }
0x23e4   :  { %v7231_v48 = vmul.f32 0.5, %v7230_v13 }
0x23e6   :  { %v7232_v57 = vsub.f32 1.5, %v7231_v48 }
0x23e7   :  { %v7817_v43 = vpop.eup %7816  ;;  %v7151_v35 = vpop.f32.mrf.mxu3 }
0x23e8   :  { %v7233_v0 = vmul.f32 %v7815_v16, %v7232_v57  ;;  %v7239_v40 = vmul.f32 %v7817_v43, %v7223_v6  ;;  %v7200_v4 = vmul.f32 %v7151_v35, %v7151_v35  ;;  %vm7245_vm3 = vweird.f32 %v7817_v43 }
0x23e9   :  { %vm7246_vm5 = vmor %vm7244_vm4, %vm7245_vm3 }
0x23ea   :  { %v7237_v28 = vsel %vm7236_vm1, %v7815_v16, %v7233_v0  ;;  %v7240_v47 = vmul.f32 %v7817_v43, %v7239_v40  ;;  %v7212_v27 = vadd.f32 %v7206_v26, %v7200_v4 }
0x23eb   :  { %v7288_v39 = vsel %vm7216_vm2, 1.0, %v7237_v28 }
0x23ec   :  { %7294 = vst [vmem:[%s11849_s6] sm:$0xff] %v7288_v39  ;;  %v7300_v38 = vadd.f32 1e-07, %v7288_v39  ;;  %v7241_v24 = vmul.f32 0.5, %v7240_v47  ;;  %v7224_v18 = vmax.f32 %v7212_v27, 1e-14 }
0x23ed   :  { %vm7218_vm10 = vcmp.lt.f32.partialorder %v7212_v27, 1e-14 }
0x23ee   :  { %7818 = vrcp.f32 %v7300_v38  ;;  %v7242_v53 = vsub.f32 1.5, %v7241_v24  ;;  %vm7254_vm8 = vweird.f32 %v7224_v18 }
0x23ef   :  { %7820 = vrsqrt.f32 %v7224_v18 }
0x23f0   :  { %v7243_v60 = vmul.f32 %v7817_v43, %v7242_v53  ;;  %v7333_v53 = vld [vmem:[%s11846_s8 + $0x18] sm:$0xff] }
0x23f1   :  { %v7192_v21 = vpop.f32.mrf.mxu2 }
0x23f2   :  { %v7247_v15 = vsel %vm7246_vm5, %v7817_v43, %v7243_v60  ;;  %v7208_v20 = vmul.f32 %v7192_v21, %v7192_v21 }
0x23f3   :  { %v7289_v54 = vsel %vm7217_vm6, 1.0, %v7247_v15 }
0x23f4   :  { %v7819_v41 = vpop.eup %7818  ;;  %7295 = vst [vmem:[%s11849_s6 + $0x8] sm:$0xff] %v7289_v54  ;;  %v7301_v7 = vadd.f32 1e-07, %v7289_v54 }
0x23f5   :  { %v7821_v25 = vpop.eup %7820  ;;  %v7318_v62 = vmul.f32 %v7819_v41, %v7312_v45  ;;  %v7336_v58 = vmul.f32 %v7819_v41, %v7330_v12 }
0x23f6   :  { %7822 = vrcp.f32 %v7301_v7  ;;  %v7249_v50 = vmul.f32 %v7821_v25, %v7224_v18  ;;  %vm7255_vm7 = vweird.f32 %v7821_v25  ;;  %v7315_v18 = vld [vmem:[%s11845_s7 + $0x18] sm:$0xff]  ;;  %v7316_v7 = vld [vmem:[%s11845_s7 + $0x20] sm:$0xff] }
0x23f7   :  { %7324 = vst [vmem:[%s11845_s7] sm:$0xff] %v7318_v62  ;;  %vm7256_vm9 = vmor %vm7254_vm8, %vm7255_vm7 }
0x23f8   :  { %7342 = vst [vmem:[%s11846_s8] sm:$0xff] %v7336_v58  ;;  %v7250_v9 = vmul.f32 %v7821_v25, %v7249_v50 }
0x23fa   :  { %v7251_v11 = vmul.f32 0.5, %v7250_v9 }
0x23fc   :  { %v7823_v8 = vpop.eup %7822  ;;  %v7252_v5 = vsub.f32 1.5, %v7251_v11 }
0x23fd   :  { %v7319_v29 = vmul.f32 %v7823_v8, %v7313_v52  ;;  %v7337_v55 = vmul.f32 %v7823_v8, %v7331_v19  ;;  %v7189_v14 = vpop.f32.mrf.mxu0 }
0x23fe   :  { %v7253_v34 = vmul.f32 %v7821_v25, %v7252_v5  ;;  %v7207_v1 = vmul.f32 %v7189_v14, %v7189_v14 }
0x23ff   :  { %7325 = vst [vmem:[%s11845_s7 + $0x8] sm:$0xff] %v7319_v29 }
0x2400   :  { %7343 = vst [vmem:[%s11846_s8 + $0x8] sm:$0xff] %v7337_v55  ;;  %v7257_v59 = vsel %vm7256_vm9, %v7821_v25, %v7253_v34  ;;  %v7334_v25 = vld [vmem:[%s11846_s8 + $0x20] sm:$0xff] }
0x2401   :  { %v7290_v51 = vsel %vm7218_vm10, 1.0, %v7257_v59  ;;  %v7317_v59 = vld [vmem:[%s11845_s7 + $0x28] sm:$0xff] }
0x2402   :  { %7296 = vst [vmem:[%s11849_s6 + $0x10] sm:$0xff] %v7290_v51  ;;  %v7302_v32 = vadd.f32 1e-07, %v7290_v51  ;;  %v7335_v51 = vld [vmem:[%s11846_s8 + $0x28] sm:$0xff] }
0x2403   :  { %v7154_v46 = vpop.f32.mrf.mxu3 }
0x2404   :  { %7824 = vrcp.f32 %v7302_v32  ;;  %v7201_v33 = vmul.f32 %v7154_v46, %v7154_v46 }
0x2406   :  { %v7213_v36 = vadd.f32 %v7207_v1, %v7201_v33 }
0x2408   :  { %v7225_v30 = vmax.f32 %v7213_v36, 1e-14  ;;  %vm7219_vm14 = vcmp.lt.f32.partialorder %v7213_v36, 1e-14 }
0x240a   :  { %v7825_v2 = vpop.eup %7824  ;;  %7826 = vrsqrt.f32 %v7225_v30  ;;  %vm7264_vm12 = vweird.f32 %v7225_v30 }
0x240b   :  { %v7320_v49 = vmul.f32 %v7825_v2, %v7314_v23  ;;  %v7338_v3 = vmul.f32 %v7825_v2, %v7332_v56  ;;  %v7157_v63 = vpop.f32.mrf.mxu3 }
0x240c   :  { %v7202_v61 = vmul.f32 %v7157_v63, %v7157_v63 }
0x240d   :  { %7326 = vst [vmem:[%s11845_s7 + $0x10] sm:$0xff] %v7320_v49 }
0x240e   :  { %7344 = vst [vmem:[%s11846_s8 + $0x10] sm:$0xff] %v7338_v3  ;;  %v7214_v42 = vadd.f32 %v7208_v20, %v7202_v61 }
0x2410   :  { %v7827_v17 = vpop.eup %7826  ;;  %v7226_v37 = vmax.f32 %v7214_v42, 1e-14  ;;  %vm7220_vm2 = vcmp.lt.f32.partialorder %v7214_v42, 1e-14 }
0x2411   :  { %v7259_v44 = vmul.f32 %v7827_v17, %v7225_v30  ;;  %vm7265_vm11 = vweird.f32 %v7827_v17 }
0x2412   :  { %7828 = vrsqrt.f32 %v7226_v37  ;;  %vm7266_vm13 = vmor %vm7264_vm12, %vm7265_vm11  ;;  %vm7274_vm0 = vweird.f32 %v7226_v37 }
0x2413   :  { %v7260_v10 = vmul.f32 %v7827_v17, %v7259_v44 }
0x2415   :  { %v7261_v16 = vmul.f32 0.5, %v7260_v10 }
0x2417   :  { %v7262_v6 = vsub.f32 1.5, %v7261_v16 }
0x2418   :  { %v7829_v22 = vpop.eup %7828 }
0x2419   :  { %v7263_v13 = vmul.f32 %v7827_v17, %v7262_v6  ;;  %v7269_v48 = vmul.f32 %v7829_v22, %v7226_v37  ;;  %vm7275_vm15 = vweird.f32 %v7829_v22 }
0x241a   :  { %vm7276_vm1 = vmor %vm7274_vm0, %vm7275_vm15 }
0x241b   :  { %v7267_v31 = vsel %vm7266_vm13, %v7827_v17, %v7263_v13  ;;  %v7270_v57 = vmul.f32 %v7829_v22, %v7269_v48 }
0x241c   :  { %v7291_v43 = vsel %vm7219_vm14, 1.0, %v7267_v31 }
0x241d   :  { %7297 = vst [vmem:[%s11849_s6 + $0x18] sm:$0xff] %v7291_v43  ;;  %v7303_v35 = vadd.f32 1e-07, %v7291_v43  ;;  %v7271_v0 = vmul.f32 0.5, %v7270_v57 }
0x241f   :  { %7830 = vrcp.f32 %v7303_v35  ;;  %v7272_v40 = vsub.f32 1.5, %v7271_v0 }
0x2421   :  { %v7273_v26 = vmul.f32 %v7829_v22, %v7272_v40 }
0x2423   :  { %v7277_v4 = vsel %vm7276_vm1, %v7829_v22, %v7273_v26  ;;  %v7160_v28 = vpop.f32.mrf.mxu3  ;;  %v7195_v47 = vpop.f32.mrf.mxu2 }
0x2424   :  { %v7292_v27 = vsel %vm7220_vm2, 1.0, %v7277_v4  ;;  %v7203_v39 = vmul.f32 %v7160_v28, %v7160_v28  ;;  %v7209_v38 = vmul.f32 %v7195_v47, %v7195_v47 }
0x2425   :  { %v7831_v24 = vpop.eup %7830  ;;  %7298 = vst [vmem:[%s11849_s6 + $0x20] sm:$0xff] %v7292_v27  ;;  %v7304_v60 = vadd.f32 1e-07, %v7292_v27 }
0x2426   :  { %v7321_v15 = vmul.f32 %v7831_v24, %v7315_v18  ;;  %v7339_v54 = vmul.f32 %v7831_v24, %v7333_v53  ;;  %v7215_v41 = vadd.f32 %v7209_v38, %v7203_v39 }
0x2427   :  { %7832 = vrcp.f32 %v7304_v60 }
0x2428   :  { %7327 = vst [vmem:[%s11845_s7 + $0x18] sm:$0xff] %v7321_v15  ;;  %v7227_v45 = vmax.f32 %v7215_v41, 1e-14  ;;  %vm7221_vm6 = vcmp.lt.f32.partialorder %v7215_v41, 1e-14 }
0x2429   :  { %7345 = vst [vmem:[%s11846_s8 + $0x18] sm:$0xff] %v7339_v54 }
0x242a   :  { %7834 = vrsqrt.f32 %v7227_v45  ;;  %vm7284_vm4 = vweird.f32 %v7227_v45 }
0x242d   :  { %v7833_v12 = vpop.eup %7832 }
0x242e   :  { %v7322_v62 = vmul.f32 %v7833_v12, %v7316_v7  ;;  %v7340_v58 = vmul.f32 %v7833_v12, %v7334_v25 }
0x2430   :  { %v7835_v50 = vpop.eup %7834  ;;  %7328 = vst [vmem:[%s11845_s7 + $0x20] sm:$0xff] %v7322_v62 }
0x2431   :  { %7346 = vst [vmem:[%s11846_s8 + $0x20] sm:$0xff] %v7340_v58  ;;  %v7279_v9 = vmul.f32 %v7835_v50, %v7227_v45  ;;  %vm7285_vm3 = vweird.f32 %v7835_v50 }
0x2432   :  { %vm7286_vm5 = vmor %vm7284_vm4, %vm7285_vm3 }
0x2433   :  { %v7280_v11 = vmul.f32 %v7835_v50, %v7279_v9 }
0x2435   :  { %v7281_v8 = vmul.f32 0.5, %v7280_v11 }
0x2437   :  { %v7282_v52 = vsub.f32 1.5, %v7281_v8 }
0x2439   :  { %v7283_v19 = vmul.f32 %v7835_v50, %v7282_v52 }
0x243b   :  { %v7287_v5 = vsel %vm7286_vm5, %v7835_v50, %v7283_v19 }
0x243c   :  { %v7293_v29 = vsel %vm7221_vm6, 1.0, %v7287_v5 }
0x243d   :  { %7299 = vst [vmem:[%s11849_s6 + $0x28] sm:$0xff] %v7293_v29  ;;  %v7305_v55 = vadd.f32 1e-07, %v7293_v29 }
0x243f   :  { %7836 = vrcp.f32 %v7305_v55 }
0x2445   :  { %v7837_v34 = vpop.eup %7836 }
0x2446   :  { %v7323_v14 = vmul.f32 %v7837_v34, %v7317_v59  ;;  %v7341_v32 = vmul.f32 %v7837_v34, %v7335_v51 }
0x2448   :  { %7329 = vst [vmem:[%s11845_s7 + $0x28] sm:$0xff] %v7323_v14 }
0x2449   :  { %7347 = vst [vmem:[%s11846_s8 + $0x28] sm:$0xff] %v7341_v32 }

</bundles_post_ra>
